<compile_context>
chip_gen: v7x
topology: tpu7x:2x2x1
jax: 0.10.0
libtpu: 0.0.40
codegen_flags: <defaults>
</compile_context>

<pallas_src>
import functools

import jax
import jax.numpy as jnp
from jax.experimental import pallas as pl
from jax.experimental.pallas import tpu as pltpu


_STAGE_STRIDES = (2, 2, 1, 1)
_STAGE_CHANNELS = (16, 32, 64, 128)
_BN_EPS = 1e-5
# ~4x the estimated peak usage (~7 MiB); safe on v5e/v6e (128 MiB) and v7x (64 MiB).
_VMEM_LIMIT = 32 * 1024 * 1024


# ---------------------------------------------------------------------------
# Kernel helpers (traced inline into the single fused kernel)
# ---------------------------------------------------------------------------
def _conv_pool(xp, w_ref, b_ref, h, w, cin, cout, stride):
    """3x3 'same' conv (BN folded into w/b) + ReLU + MaxPool2d(2,2).

    xp    : (h+2, w+2, cin) zero-padded input (VMEM ref)
    w_ref : (9*cin, cout) bf16 weights, row order (dy*3+dx)*cin + c
    b_ref : (1, cout) f32 folded bias
    returns (hp*wp, cout) f32 pooled activations, rows in (h, w) raster order.
    """
    ho = (h - 1) // stride + 1
    wo = (w - 1) // stride + 1
    hp, wp = ho // 2, wo // 2
    m = hp * wp
    ps = 2 * stride                      # step between pooled output positions
    # Hoist the 9 weight sub-blocks (reused across the 4 pool phases).
    wk = [w_ref[k * cin:(k + 1) * cin, :] for k in range(9)]
    zero = jnp.zeros((m, cout), jnp.float32)

    pooled = None
    for py in range(2):                  # 2x2 pool phase
        for px in range(2):
            acc = zero
            for dy in range(3):          # 3x3 conv taps
                for dx in range(3):
                    tap = xp[pl.ds(stride * py + dy, hp, ps),
                             pl.ds(stride * px + dx, wp, ps), :]
                    tap = tap.reshape(m, cin).astype(jnp.bfloat16)
                    acc = acc + jnp.dot(tap, wk[dy * 3 + dx],
                                        preferred_element_type=jnp.float32)
            pooled = acc if pooled is None else jnp.maximum(pooled, acc)
    # Bias add and ReLU commute with the max over pool phases.
    return jnp.maximum(pooled + b_ref[...], 0.0)


def _pad_store(xp, feat, h, w, c):
    """Write feat ((h*w, c) value, raster order) into the interior of xp
    ((h+2, w+2, c) VMEM ref), zeroing ONLY the 1-pixel halo (no full memset)."""
    zrow = jnp.zeros((1, w + 2, c), jnp.float32)
    xp[0:1, :, :] = zrow
    xp[h + 1:h + 2, :, :] = zrow
    zpix = jnp.zeros((1, c), jnp.float32)
    for i in range(h):
        xp[1 + i, 0:1, :] = zpix
        xp[1 + i, 1:w + 1, :] = feat[i * w:(i + 1) * w, :]
        xp[1 + i, w + 1:w + 2, :] = zpix


def _network_kernel(x_ref, cw1, cb1, cw2, cb2, cw3, cb3, cw4, cb4,
                    fw1, fb1, fw2, fb2, o_ref, xp2, xp3, xp4, *, stage_dims):
    """Whole DepthFeatureExtractor forward for ONE image (grid step = batch idx).

    x_ref : (H+2, W+2, Cin_pad) stage-1 padded input (batch dim squeezed)
    cw*/cb*: BN-folded conv weights (bf16) / biases (f32)
    fw*/fb*: fc weights (bf16) / biases (f32)
    o_ref : (1, out_dim) f32 output row
    xp2-4 : padded-input VMEM scratches for stages 2-4
    """
    conv_w = (cw1, cw2, cw3, cw4)
    conv_b = (cb1, cb2, cb3, cb4)
    pads = (x_ref, xp2, xp3, xp4)

    feat = None
    for s, (h, w, cin, cout, stride) in enumerate(stage_dims):
        if s > 0:
            _pad_store(pads[s], feat, h, w, cin)
        feat = _conv_pool(pads[s], conv_w[s], conv_b[s], h, w, cin, cout, stride)

    # fc head: Linear -> ReLU -> (Dropout: identity at inference) -> Linear.
    npos, cf = feat.shape                # (hf*wf, 128), raster-ordered rows
    hid = fb1[...]
    for p in range(npos):
        hid = hid + jnp.dot(feat[p:p + 1, :].astype(jnp.bfloat16),
                            fw1[p * cf:(p + 1) * cf, :],
                            preferred_element_type=jnp.float32)
    hid = jnp.maximum(hid, 0.0)
    # TODO(synk): nn.Dropout(0.5) is identity at inference; training-mode random
    # masking (pltpu.prng_*) is not implemented.
    o_ref[...] = (jnp.dot(hid.astype(jnp.bfloat16), fw2[...],
                          preferred_element_type=jnp.float32) + fb2[...])


# ---------------------------------------------------------------------------
# Parameter preparation (wrapper-side, fused by XLA under jit)
# ---------------------------------------------------------------------------
def _fold_conv_bn(layer, cin_pad=None):
    """Fold inference BatchNorm into the conv weight/bias and reshape the
    (3,3,Cin,Cout) weight into the (9*Cin, Cout) layout used by the kernel."""
    # TODO(synk): BatchNorm2d uses inference (running-stats) semantics; training
    # batch statistics are not implemented.
    w, b = layer["w"], layer["b"]
    scale = layer["gamma"] / jnp.sqrt(layer["var"] + _BN_EPS)
    w = w * scale[None, None, None, :]
    b = (b - layer["mean"]) * scale + layer["beta"]
    if cin_pad is not None and cin_pad > w.shape[2]:
        w = jnp.pad(w, ((0, 0), (0, 0), (0, cin_pad - w.shape[2]), (0, 0)))
    kh, kw, cin, cout = w.shape
    return w.reshape(kh * kw * cin, cout).astype(jnp.bfloat16), b.reshape(1, cout)


def _fc1_weight_nhwc(w1, c, hf, wf):
    """Permute fc1 rows from PyTorch's NCHW-flatten order to the NHWC-flatten
    order produced by the kernel (weight-side permutation, no activation work)."""
    return (w1.reshape(c, hf, wf, -1).transpose(1, 2, 0, 3)
            .reshape(hf * wf * c, -1).astype(jnp.bfloat16))


def depth_feature_extractor(x_nchw, params):
    n, cin, h, w = x_nchw.shape
    cinp = max(8, ((cin + 7) // 8) * 8)

    # Single relayout pass: NCHW -> NHWC, channel pad to a multiple of 8, and the
    # stage-1 'same' conv padding, so the largest feature map needs no in-kernel
    # halo fill or interior copy.
    x = jnp.transpose(x_nchw, (0, 2, 3, 1))
    x = jnp.pad(x, ((0, 0), (1, 1), (1, 1), (0, cinp - cin)))

    chans = (cinp,) + _STAGE_CHANNELS
    stage_dims = []
    hh, ww = h, w
    for s, stride in enumerate(_STAGE_STRIDES):
        stage_dims.append((hh, ww, chans[s], chans[s + 1], stride))
        hh = ((hh - 1) // stride + 1) // 2
        ww = ((ww - 1) // stride + 1) // 2
        assert hh >= 1 and ww >= 1, "input too small for 4x (conv + MaxPool2d(2,2))"
    hf, wf, cf = hh, ww, chans[-1]

    conv_args = []
    for s, layer in enumerate(params["conv"]):
        wm, bv = _fold_conv_bn(layer, cin_pad=cinp if s == 0 else None)
        conv_args += [wm, bv]

    fc = params["fc"]
    fw1 = _fc1_weight_nhwc(fc["w1"], cf, hf, wf)
    fb1 = fc["b1"].reshape(1, -1)
    fw2 = fc["w2"].astype(jnp.bfloat16)
    fb2 = fc["b2"].reshape(1, -1)
    out_dim = fw2.shape[1]

    def full_block(a):
        return pl.BlockSpec(a.shape, lambda b: (0, 0))

    in_specs = ([pl.BlockSpec((None, h + 2, w + 2, cinp), lambda b: (b, 0, 0, 0))]
                + [full_block(a) for a in conv_args]
                + [full_block(fw1), full_block(fb1),
                   full_block(fw2), full_block(fb2)])

    # Padded-input scratches for stages 2-4 only (stage 1 is padded in the wrapper).
    scratch = [pltpu.VMEM((d[0] + 2, d[1] + 2, d[2]), jnp.float32)
               for d in stage_dims[1:]]

    kernel = functools.partial(_network_kernel, stage_dims=tuple(stage_dims))
    out = pl.pallas_call(
        kernel,
        grid=(n,),
        in_specs=in_specs,
        out_specs=pl.BlockSpec((None, 1, out_dim), lambda b: (b, 0, 0)),
        out_shape=jax.ShapeDtypeStruct((n, 1, out_dim), jnp.float32),
        scratch_shapes=scratch,
        compiler_params=pltpu.CompilerParams(
            dimension_semantics=("parallel",),
            vmem_limit_bytes=_VMEM_LIMIT),
    )(x, *conv_args, fw1, fb1, fw2, fb2)
    return out.reshape(n, out_dim)        # pure metadata reshape


# ---------------------------------------------------------------------------
# Deterministic synthetic parameters
# ---------------------------------------------------------------------------
def init_params(key, in_channel, out_dim, flat_size):
    chans = (in_channel,) + _STAGE_CHANNELS
    keys = jax.random.split(key, 6)
    conv = []
    for i in range(4):
        cin, cout = chans[i], chans[i + 1]
        kw, km, kv = jax.random.split(keys[i], 3)
        fan_out = 3 * 3 * cout
        conv.append({
            "w": jax.random.normal(kw, (3, 3, cin, cout), jnp.float32)
                 * (2.0 / fan_out) ** 0.5,
            "b": jnp.zeros((cout,), jnp.float32),
            "gamma": jnp.ones((cout,), jnp.float32),
            "beta": jnp.zeros((cout,), jnp.float32),
            "mean": jax.random.normal(km, (cout,), jnp.float32) * 0.05,
            "var": jax.random.uniform(kv, (cout,), jnp.float32, 0.5, 1.5),
        })
    k1, k2 = jax.random.split(keys[5], 2)
    fc = {
        "w1": jax.random.normal(k1, (flat_size, 512), jnp.float32)
              * (2.0 / flat_size) ** 0.5,
        "b1": jnp.zeros((512,), jnp.float32),
        "w2": jax.random.normal(k2, (512, out_dim), jnp.float32)
              * (2.0 / 512) ** 0.5,
        "b2": jnp.zeros((out_dim,), jnp.float32),
    }
    return {"conv": conv, "fc": fc}


if __name__ == "__main__":
    # Smallest input for which every MaxPool2d(2, 2) stage is non-degenerate:
    # spatial 64 -> 16 -> 4 -> 2 -> 1; module defaults input_dim=5, output_dim=64.
    N, CIN, H, W = 2, 5, 64, 64
    OUT_DIM = 64

    hh, ww = H, W
    for s in _STAGE_STRIDES:
        hh = ((hh - 1) // s + 1) // 2
        ww = ((ww - 1) // s + 1) // 2
    flat_size = _STAGE_CHANNELS[-1] * hh * ww
    # TODO(synk): the PyTorch module hardcodes nn.Linear(128*5*5, 512), which assumes
    # a ~320x320 input; fc1 is sized from the actual feature map so the small test
    # input stays shape-consistent.

    key = jax.random.PRNGKey(0)
    kx, kp = jax.random.split(key)
    x = jax.random.normal(kx, (N, CIN, H, W), jnp.float32)
    params = init_params(kp, CIN, OUT_DIM, flat_size)

    fwd = jax.jit(depth_feature_extractor)
    out = jax.block_until_ready(fwd(x, params))
    assert out.shape == (N, OUT_DIM), out.shape
    assert out.dtype == jnp.float32
    assert bool(jnp.all(jnp.isfinite(out)))
    print("KERNEL_OK")
</pallas_src>

<mosaic_0001>
module attributes {stable_mosaic.version = 11 : i64} {
  func.func @_network_kernel(%arg0: i32, %arg1: memref<1x66x66x8xf32, #tpu.memory_space<vmem>>, %arg2: memref<72x16xbf16, #tpu.memory_space<vmem>>, %arg3: memref<1x16xf32, #tpu.memory_space<vmem>>, %arg4: memref<144x32xbf16, #tpu.memory_space<vmem>>, %arg5: memref<1x32xf32, #tpu.memory_space<vmem>>, %arg6: memref<288x64xbf16, #tpu.memory_space<vmem>>, %arg7: memref<1x64xf32, #tpu.memory_space<vmem>>, %arg8: memref<576x128xbf16, #tpu.memory_space<vmem>>, %arg9: memref<1x128xf32, #tpu.memory_space<vmem>>, %arg10: memref<128x512xbf16, #tpu.memory_space<vmem>>, %arg11: memref<1x512xf32, #tpu.memory_space<vmem>>, %arg12: memref<512x64xbf16, #tpu.memory_space<vmem>>, %arg13: memref<1x64xf32, #tpu.memory_space<vmem>>, %arg14: memref<1x1x64xf32, #tpu.memory_space<vmem>>, %arg15: memref<18x18x16xf32, #tpu.memory_space<vmem>>, %arg16: memref<6x6x32xf32, #tpu.memory_space<vmem>>, %arg17: memref<4x4x64xf32, #tpu.memory_space<vmem>>) attributes {dimension_semantics = [#tpu.dimension_semantics<parallel>], iteration_bounds = array<i64: 2>, scalar_prefetch = 0 : i64, scratch_operands = 3 : i64, tpu.core_type = #tpu.core_type<tc>, window_params = [{transform_indices = @transform_0, window_bounds = array<i64: 1, 66, 66, 8>}, {pipeline_mode = #tpu.pipeline_mode<synchronous>, transform_indices = @transform_1, window_bounds = array<i64: 72, 16>}, {pipeline_mode = #tpu.pipeline_mode<synchronous>, transform_indices = @transform_2, window_bounds = array<i64: 1, 16>}, {pipeline_mode = #tpu.pipeline_mode<synchronous>, transform_indices = @transform_3, window_bounds = array<i64: 144, 32>}, {pipeline_mode = #tpu.pipeline_mode<synchronous>, transform_indices = @transform_4, window_bounds = array<i64: 1, 32>}, {pipeline_mode = #tpu.pipeline_mode<synchronous>, transform_indices = @transform_5, window_bounds = array<i64: 288, 64>}, {pipeline_mode = #tpu.pipeline_mode<synchronous>, transform_indices = @transform_6, window_bounds = array<i64: 1, 64>}, {pipeline_mode = #tpu.pipeline_mode<synchronous>, transform_indices = @transform_7, window_bounds = array<i64: 576, 128>}, {pipeline_mode = #tpu.pipeline_mode<synchronous>, transform_indices = @transform_8, window_bounds = array<i64: 1, 128>}, {pipeline_mode = #tpu.pipeline_mode<synchronous>, transform_indices = @transform_9, window_bounds = array<i64: 128, 512>}, {pipeline_mode = #tpu.pipeline_mode<synchronous>, transform_indices = @transform_10, window_bounds = array<i64: 1, 512>}, {pipeline_mode = #tpu.pipeline_mode<synchronous>, transform_indices = @transform_11, window_bounds = array<i64: 512, 64>}, {pipeline_mode = #tpu.pipeline_mode<synchronous>, transform_indices = @transform_12, window_bounds = array<i64: 1, 64>}, {transform_indices = @transform_13, window_bounds = array<i64: 1, 1, 64>}]} {
    %c0 = arith.constant 0 : index
    %c0_0 = arith.constant 0 : index
    %0 = vector.load %arg2[%c0, %c0_0] : memref<72x16xbf16, #tpu.memory_space<vmem>>, vector<8x16xbf16>
    %c8 = arith.constant 8 : index
    %c0_1 = arith.constant 0 : index
    %1 = vector.load %arg2[%c8, %c0_1] : memref<72x16xbf16, #tpu.memory_space<vmem>>, vector<8x16xbf16>
    %c16 = arith.constant 16 : index
    %c0_2 = arith.constant 0 : index
    %2 = vector.load %arg2[%c16, %c0_2] : memref<72x16xbf16, #tpu.memory_space<vmem>>, vector<8x16xbf16>
    %c24 = arith.constant 24 : index
    %c0_3 = arith.constant 0 : index
    %3 = vector.load %arg2[%c24, %c0_3] : memref<72x16xbf16, #tpu.memory_space<vmem>>, vector<8x16xbf16>
    %c32 = arith.constant 32 : index
    %c0_4 = arith.constant 0 : index
    %4 = vector.load %arg2[%c32, %c0_4] : memref<72x16xbf16, #tpu.memory_space<vmem>>, vector<8x16xbf16>
    %c40 = arith.constant 40 : index
    %c0_5 = arith.constant 0 : index
    %5 = vector.load %arg2[%c40, %c0_5] : memref<72x16xbf16, #tpu.memory_space<vmem>>, vector<8x16xbf16>
    %c48 = arith.constant 48 : index
    %c0_6 = arith.constant 0 : index
    %6 = vector.load %arg2[%c48, %c0_6] : memref<72x16xbf16, #tpu.memory_space<vmem>>, vector<8x16xbf16>
    %c56 = arith.constant 56 : index
    %c0_7 = arith.constant 0 : index
    %7 = vector.load %arg2[%c56, %c0_7] : memref<72x16xbf16, #tpu.memory_space<vmem>>, vector<8x16xbf16>
    %c64 = arith.constant 64 : index
    %c0_8 = arith.constant 0 : index
    %8 = vector.load %arg2[%c64, %c0_8] : memref<72x16xbf16, #tpu.memory_space<vmem>>, vector<8x16xbf16>
    %cst = arith.constant 0.000000e+00 : f32
    %9 = vector.broadcast %cst : f32 to vector<256x16xf32>
    %c0_9 = arith.constant 0 : index
    %c0_10 = arith.constant 0 : index
    %c0_11 = arith.constant 0 : index
    %c0_12 = arith.constant 0 : index
    %10 = tpu.strided_load %arg1[%c0_9, %c0_10, %c0_11, %c0_12] {strides = array<i32: 1, 4, 4, 1>} : memref<1x66x66x8xf32, #tpu.memory_space<vmem>>, vector<1x16x16x8xf32>
    %11 = vector.shape_cast %10 : vector<1x16x16x8xf32> to vector<16x16x8xf32>
    %12 = vector.shape_cast %11 : vector<16x16x8xf32> to vector<256x8xf32>
    %13 = arith.truncf %12 : vector<256x8xf32> to vector<256x8xbf16>
    %cst_13 = arith.constant dense<0.000000e+00> : vector<256x16xf32>
    %14 = tpu.matmul %13, %0, %cst_13 {dimension_numbers = #tpu.dot_dimension_numbers<[1], [0], [0], [1], [0, 0, 1, 1], [], []>} : vector<256x8xbf16>, vector<8x16xbf16>, vector<256x16xf32> -> vector<256x16xf32>
    %15 = arith.addf %9, %14 : vector<256x16xf32>
    %c0_14 = arith.constant 0 : index
    %c0_15 = arith.constant 0 : index
    %c1 = arith.constant 1 : index
    %c0_16 = arith.constant 0 : index
    %16 = tpu.strided_load %arg1[%c0_14, %c0_15, %c1, %c0_16] {strides = array<i32: 1, 4, 4, 1>} : memref<1x66x66x8xf32, #tpu.memory_space<vmem>>, vector<1x16x16x8xf32>
    %17 = vector.shape_cast %16 : vector<1x16x16x8xf32> to vector<16x16x8xf32>
    %18 = vector.shape_cast %17 : vector<16x16x8xf32> to vector<256x8xf32>
    %19 = arith.truncf %18 : vector<256x8xf32> to vector<256x8xbf16>
    %cst_17 = arith.constant dense<0.000000e+00> : vector<256x16xf32>
    %20 = tpu.matmul %19, %1, %cst_17 {dimension_numbers = #tpu.dot_dimension_numbers<[1], [0], [0], [1], [0, 0, 1, 1], [], []>} : vector<256x8xbf16>, vector<8x16xbf16>, vector<256x16xf32> -> vector<256x16xf32>
    %21 = arith.addf %15, %20 : vector<256x16xf32>
    %c0_18 = arith.constant 0 : index
    %c0_19 = arith.constant 0 : index
    %c2 = arith.constant 2 : index
    %c0_20 = arith.constant 0 : index
    %22 = tpu.strided_load %arg1[%c0_18, %c0_19, %c2, %c0_20] {strides = array<i32: 1, 4, 4, 1>} : memref<1x66x66x8xf32, #tpu.memory_space<vmem>>, vector<1x16x16x8xf32>
    %23 = vector.shape_cast %22 : vector<1x16x16x8xf32> to vector<16x16x8xf32>
    %24 = vector.shape_cast %23 : vector<16x16x8xf32> to vector<256x8xf32>
    %25 = arith.truncf %24 : vector<256x8xf32> to vector<256x8xbf16>
    %cst_21 = arith.constant dense<0.000000e+00> : vector<256x16xf32>
    %26 = tpu.matmul %25, %2, %cst_21 {dimension_numbers = #tpu.dot_dimension_numbers<[1], [0], [0], [1], [0, 0, 1, 1], [], []>} : vector<256x8xbf16>, vector<8x16xbf16>, vector<256x16xf32> -> vector<256x16xf32>
    %27 = arith.addf %21, %26 : vector<256x16xf32>
    %c0_22 = arith.constant 0 : index
    %c1_23 = arith.constant 1 : index
    %c0_24 = arith.constant 0 : index
    %c0_25 = arith.constant 0 : index
    %28 = tpu.strided_load %arg1[%c0_22, %c1_23, %c0_24, %c0_25] {strides = array<i32: 1, 4, 4, 1>} : memref<1x66x66x8xf32, #tpu.memory_space<vmem>>, vector<1x16x16x8xf32>
    %29 = vector.shape_cast %28 : vector<1x16x16x8xf32> to vector<16x16x8xf32>
    %30 = vector.shape_cast %29 : vector<16x16x8xf32> to vector<256x8xf32>
    %31 = arith.truncf %30 : vector<256x8xf32> to vector<256x8xbf16>
    %cst_26 = arith.constant dense<0.000000e+00> : vector<256x16xf32>
    %32 = tpu.matmul %31, %3, %cst_26 {dimension_numbers = #tpu.dot_dimension_numbers<[1], [0], [0], [1], [0, 0, 1, 1], [], []>} : vector<256x8xbf16>, vector<8x16xbf16>, vector<256x16xf32> -> vector<256x16xf32>
    %33 = arith.addf %27, %32 : vector<256x16xf32>
    %c0_27 = arith.constant 0 : index
    %c1_28 = arith.constant 1 : index
    %c1_29 = arith.constant 1 : index
    %c0_30 = arith.constant 0 : index
    %34 = tpu.strided_load %arg1[%c0_27, %c1_28, %c1_29, %c0_30] {strides = array<i32: 1, 4, 4, 1>} : memref<1x66x66x8xf32, #tpu.memory_space<vmem>>, vector<1x16x16x8xf32>
    %35 = vector.shape_cast %34 : vector<1x16x16x8xf32> to vector<16x16x8xf32>
    %36 = vector.shape_cast %35 : vector<16x16x8xf32> to vector<256x8xf32>
    %37 = arith.truncf %36 : vector<256x8xf32> to vector<256x8xbf16>
    %cst_31 = arith.constant dense<0.000000e+00> : vector<256x16xf32>
    %38 = tpu.matmul %37, %4, %cst_31 {dimension_numbers = #tpu.dot_dimension_numbers<[1], [0], [0], [1], [0, 0, 1, 1], [], []>} : vector<256x8xbf16>, vector<8x16xbf16>, vector<256x16xf32> -> vector<256x16xf32>
    %39 = arith.addf %33, %38 : vector<256x16xf32>
    %c0_32 = arith.constant 0 : index
    %c1_33 = arith.constant 1 : index
    %c2_34 = arith.constant 2 : index
    %c0_35 = arith.constant 0 : index
    %40 = tpu.strided_load %arg1[%c0_32, %c1_33, %c2_34, %c0_35] {strides = array<i32: 1, 4, 4, 1>} : memref<1x66x66x8xf32, #tpu.memory_space<vmem>>, vector<1x16x16x8xf32>
    %41 = vector.shape_cast %40 : vector<1x16x16x8xf32> to vector<16x16x8xf32>
    %42 = vector.shape_cast %41 : vector<16x16x8xf32> to vector<256x8xf32>
    %43 = arith.truncf %42 : vector<256x8xf32> to vector<256x8xbf16>
    %cst_36 = arith.constant dense<0.000000e+00> : vector<256x16xf32>
    %44 = tpu.matmul %43, %5, %cst_36 {dimension_numbers = #tpu.dot_dimension_numbers<[1], [0], [0], [1], [0, 0, 1, 1], [], []>} : vector<256x8xbf16>, vector<8x16xbf16>, vector<256x16xf32> -> vector<256x16xf32>
    %45 = arith.addf %39, %44 : vector<256x16xf32>
    %c0_37 = arith.constant 0 : index
    %c2_38 = arith.constant 2 : index
    %c0_39 = arith.constant 0 : index
    %c0_40 = arith.constant 0 : index
    %46 = tpu.strided_load %arg1[%c0_37, %c2_38, %c0_39, %c0_40] {strides = array<i32: 1, 4, 4, 1>} : memref<1x66x66x8xf32, #tpu.memory_space<vmem>>, vector<1x16x16x8xf32>
    %47 = vector.shape_cast %46 : vector<1x16x16x8xf32> to vector<16x16x8xf32>
    %48 = vector.shape_cast %47 : vector<16x16x8xf32> to vector<256x8xf32>
    %49 = arith.truncf %48 : vector<256x8xf32> to vector<256x8xbf16>
    %cst_41 = arith.constant dense<0.000000e+00> : vector<256x16xf32>
    %50 = tpu.matmul %49, %6, %cst_41 {dimension_numbers = #tpu.dot_dimension_numbers<[1], [0], [0], [1], [0, 0, 1, 1], [], []>} : vector<256x8xbf16>, vector<8x16xbf16>, vector<256x16xf32> -> vector<256x16xf32>
    %51 = arith.addf %45, %50 : vector<256x16xf32>
    %c0_42 = arith.constant 0 : index
    %c2_43 = arith.constant 2 : index
    %c1_44 = arith.constant 1 : index
    %c0_45 = arith.constant 0 : index
    %52 = tpu.strided_load %arg1[%c0_42, %c2_43, %c1_44, %c0_45] {strides = array<i32: 1, 4, 4, 1>} : memref<1x66x66x8xf32, #tpu.memory_space<vmem>>, vector<1x16x16x8xf32>
    %53 = vector.shape_cast %52 : vector<1x16x16x8xf32> to vector<16x16x8xf32>
    %54 = vector.shape_cast %53 : vector<16x16x8xf32> to vector<256x8xf32>
    %55 = arith.truncf %54 : vector<256x8xf32> to vector<256x8xbf16>
    %cst_46 = arith.constant dense<0.000000e+00> : vector<256x16xf32>
    %56 = tpu.matmul %55, %7, %cst_46 {dimension_numbers = #tpu.dot_dimension_numbers<[1], [0], [0], [1], [0, 0, 1, 1], [], []>} : vector<256x8xbf16>, vector<8x16xbf16>, vector<256x16xf32> -> vector<256x16xf32>
    %57 = arith.addf %51, %56 : vector<256x16xf32>
    %c0_47 = arith.constant 0 : index
    %c2_48 = arith.constant 2 : index
    %c2_49 = arith.constant 2 : index
    %c0_50 = arith.constant 0 : index
    %58 = tpu.strided_load %arg1[%c0_47, %c2_48, %c2_49, %c0_50] {strides = array<i32: 1, 4, 4, 1>} : memref<1x66x66x8xf32, #tpu.memory_space<vmem>>, vector<1x16x16x8xf32>
    %59 = vector.shape_cast %58 : vector<1x16x16x8xf32> to vector<16x16x8xf32>
    %60 = vector.shape_cast %59 : vector<16x16x8xf32> to vector<256x8xf32>
    %61 = arith.truncf %60 : vector<256x8xf32> to vector<256x8xbf16>
    %cst_51 = arith.constant dense<0.000000e+00> : vector<256x16xf32>
    %62 = tpu.matmul %61, %8, %cst_51 {dimension_numbers = #tpu.dot_dimension_numbers<[1], [0], [0], [1], [0, 0, 1, 1], [], []>} : vector<256x8xbf16>, vector<8x16xbf16>, vector<256x16xf32> -> vector<256x16xf32>
    %63 = arith.addf %57, %62 : vector<256x16xf32>
    %c0_52 = arith.constant 0 : index
    %c0_53 = arith.constant 0 : index
    %c2_54 = arith.constant 2 : index
    %c0_55 = arith.constant 0 : index
    %64 = tpu.strided_load %arg1[%c0_52, %c0_53, %c2_54, %c0_55] {strides = array<i32: 1, 4, 4, 1>} : memref<1x66x66x8xf32, #tpu.memory_space<vmem>>, vector<1x16x16x8xf32>
    %65 = vector.shape_cast %64 : vector<1x16x16x8xf32> to vector<16x16x8xf32>
    %66 = vector.shape_cast %65 : vector<16x16x8xf32> to vector<256x8xf32>
    %67 = arith.truncf %66 : vector<256x8xf32> to vector<256x8xbf16>
    %cst_56 = arith.constant dense<0.000000e+00> : vector<256x16xf32>
    %68 = tpu.matmul %67, %0, %cst_56 {dimension_numbers = #tpu.dot_dimension_numbers<[1], [0], [0], [1], [0, 0, 1, 1], [], []>} : vector<256x8xbf16>, vector<8x16xbf16>, vector<256x16xf32> -> vector<256x16xf32>
    %69 = arith.addf %9, %68 : vector<256x16xf32>
    %c0_57 = arith.constant 0 : index
    %c0_58 = arith.constant 0 : index
    %c3 = arith.constant 3 : index
    %c0_59 = arith.constant 0 : index
    %70 = tpu.strided_load %arg1[%c0_57, %c0_58, %c3, %c0_59] {strides = array<i32: 1, 4, 4, 1>} : memref<1x66x66x8xf32, #tpu.memory_space<vmem>>, vector<1x16x16x8xf32>
    %71 = vector.shape_cast %70 : vector<1x16x16x8xf32> to vector<16x16x8xf32>
    %72 = vector.shape_cast %71 : vector<16x16x8xf32> to vector<256x8xf32>
    %73 = arith.truncf %72 : vector<256x8xf32> to vector<256x8xbf16>
    %cst_60 = arith.constant dense<0.000000e+00> : vector<256x16xf32>
    %74 = tpu.matmul %73, %1, %cst_60 {dimension_numbers = #tpu.dot_dimension_numbers<[1], [0], [0], [1], [0, 0, 1, 1], [], []>} : vector<256x8xbf16>, vector<8x16xbf16>, vector<256x16xf32> -> vector<256x16xf32>
    %75 = arith.addf %69, %74 : vector<256x16xf32>
    %c0_61 = arith.constant 0 : index
    %c0_62 = arith.constant 0 : index
    %c4 = arith.constant 4 : index
    %c0_63 = arith.constant 0 : index
    %76 = tpu.strided_load %arg1[%c0_61, %c0_62, %c4, %c0_63] {strides = array<i32: 1, 4, 4, 1>} : memref<1x66x66x8xf32, #tpu.memory_space<vmem>>, vector<1x16x16x8xf32>
    %77 = vector.shape_cast %76 : vector<1x16x16x8xf32> to vector<16x16x8xf32>
    %78 = vector.shape_cast %77 : vector<16x16x8xf32> to vector<256x8xf32>
    %79 = arith.truncf %78 : vector<256x8xf32> to vector<256x8xbf16>
    %cst_64 = arith.constant dense<0.000000e+00> : vector<256x16xf32>
    %80 = tpu.matmul %79, %2, %cst_64 {dimension_numbers = #tpu.dot_dimension_numbers<[1], [0], [0], [1], [0, 0, 1, 1], [], []>} : vector<256x8xbf16>, vector<8x16xbf16>, vector<256x16xf32> -> vector<256x16xf32>
    %81 = arith.addf %75, %80 : vector<256x16xf32>
    %c0_65 = arith.constant 0 : index
    %c1_66 = arith.constant 1 : index
    %c2_67 = arith.constant 2 : index
    %c0_68 = arith.constant 0 : index
    %82 = tpu.strided_load %arg1[%c0_65, %c1_66, %c2_67, %c0_68] {strides = array<i32: 1, 4, 4, 1>} : memref<1x66x66x8xf32, #tpu.memory_space<vmem>>, vector<1x16x16x8xf32>
    %83 = vector.shape_cast %82 : vector<1x16x16x8xf32> to vector<16x16x8xf32>
    %84 = vector.shape_cast %83 : vector<16x16x8xf32> to vector<256x8xf32>
    %85 = arith.truncf %84 : vector<256x8xf32> to vector<256x8xbf16>
    %cst_69 = arith.constant dense<0.000000e+00> : vector<256x16xf32>
    %86 = tpu.matmul %85, %3, %cst_69 {dimension_numbers = #tpu.dot_dimension_numbers<[1], [0], [0], [1], [0, 0, 1, 1], [], []>} : vector<256x8xbf16>, vector<8x16xbf16>, vector<256x16xf32> -> vector<256x16xf32>
    %87 = arith.addf %81, %86 : vector<256x16xf32>
    %c0_70 = arith.constant 0 : index
    %c1_71 = arith.constant 1 : index
    %c3_72 = arith.constant 3 : index
    %c0_73 = arith.constant 0 : index
    %88 = tpu.strided_load %arg1[%c0_70, %c1_71, %c3_72, %c0_73] {strides = array<i32: 1, 4, 4, 1>} : memref<1x66x66x8xf32, #tpu.memory_space<vmem>>, vector<1x16x16x8xf32>
    %89 = vector.shape_cast %88 : vector<1x16x16x8xf32> to vector<16x16x8xf32>
    %90 = vector.shape_cast %89 : vector<16x16x8xf32> to vector<256x8xf32>
    %91 = arith.truncf %90 : vector<256x8xf32> to vector<256x8xbf16>
    %cst_74 = arith.constant dense<0.000000e+00> : vector<256x16xf32>
    %92 = tpu.matmul %91, %4, %cst_74 {dimension_numbers = #tpu.dot_dimension_numbers<[1], [0], [0], [1], [0, 0, 1, 1], [], []>} : vector<256x8xbf16>, vector<8x16xbf16>, vector<256x16xf32> -> vector<256x16xf32>
    %93 = arith.addf %87, %92 : vector<256x16xf32>
    %c0_75 = arith.constant 0 : index
    %c1_76 = arith.constant 1 : index
    %c4_77 = arith.constant 4 : index
    %c0_78 = arith.constant 0 : index
    %94 = tpu.strided_load %arg1[%c0_75, %c1_76, %c4_77, %c0_78] {strides = array<i32: 1, 4, 4, 1>} : memref<1x66x66x8xf32, #tpu.memory_space<vmem>>, vector<1x16x16x8xf32>
    %95 = vector.shape_cast %94 : vector<1x16x16x8xf32> to vector<16x16x8xf32>
    %96 = vector.shape_cast %95 : vector<16x16x8xf32> to vector<256x8xf32>
    %97 = arith.truncf %96 : vector<256x8xf32> to vector<256x8xbf16>
    %cst_79 = arith.constant dense<0.000000e+00> : vector<256x16xf32>
    %98 = tpu.matmul %97, %5, %cst_79 {dimension_numbers = #tpu.dot_dimension_numbers<[1], [0], [0], [1], [0, 0, 1, 1], [], []>} : vector<256x8xbf16>, vector<8x16xbf16>, vector<256x16xf32> -> vector<256x16xf32>
    %99 = arith.addf %93, %98 : vector<256x16xf32>
    %c0_80 = arith.constant 0 : index
    %c2_81 = arith.constant 2 : index
    %c2_82 = arith.constant 2 : index
    %c0_83 = arith.constant 0 : index
    %100 = tpu.strided_load %arg1[%c0_80, %c2_81, %c2_82, %c0_83] {strides = array<i32: 1, 4, 4, 1>} : memref<1x66x66x8xf32, #tpu.memory_space<vmem>>, vector<1x16x16x8xf32>
    %101 = vector.shape_cast %100 : vector<1x16x16x8xf32> to vector<16x16x8xf32>
    %102 = vector.shape_cast %101 : vector<16x16x8xf32> to vector<256x8xf32>
    %103 = arith.truncf %102 : vector<256x8xf32> to vector<256x8xbf16>
    %cst_84 = arith.constant dense<0.000000e+00> : vector<256x16xf32>
    %104 = tpu.matmul %103, %6, %cst_84 {dimension_numbers = #tpu.dot_dimension_numbers<[1], [0], [0], [1], [0, 0, 1, 1], [], []>} : vector<256x8xbf16>, vector<8x16xbf16>, vector<256x16xf32> -> vector<256x16xf32>
    %105 = arith.addf %99, %104 : vector<256x16xf32>
    %c0_85 = arith.constant 0 : index
    %c2_86 = arith.constant 2 : index
    %c3_87 = arith.constant 3 : index
    %c0_88 = arith.constant 0 : index
    %106 = tpu.strided_load %arg1[%c0_85, %c2_86, %c3_87, %c0_88] {strides = array<i32: 1, 4, 4, 1>} : memref<1x66x66x8xf32, #tpu.memory_space<vmem>>, vector<1x16x16x8xf32>
    %107 = vector.shape_cast %106 : vector<1x16x16x8xf32> to vector<16x16x8xf32>
    %108 = vector.shape_cast %107 : vector<16x16x8xf32> to vector<256x8xf32>
    %109 = arith.truncf %108 : vector<256x8xf32> to vector<256x8xbf16>
    %cst_89 = arith.constant dense<0.000000e+00> : vector<256x16xf32>
    %110 = tpu.matmul %109, %7, %cst_89 {dimension_numbers = #tpu.dot_dimension_numbers<[1], [0], [0], [1], [0, 0, 1, 1], [], []>} : vector<256x8xbf16>, vector<8x16xbf16>, vector<256x16xf32> -> vector<256x16xf32>
    %111 = arith.addf %105, %110 : vector<256x16xf32>
    %c0_90 = arith.constant 0 : index
    %c2_91 = arith.constant 2 : index
    %c4_92 = arith.constant 4 : index
    %c0_93 = arith.constant 0 : index
    %112 = tpu.strided_load %arg1[%c0_90, %c2_91, %c4_92, %c0_93] {strides = array<i32: 1, 4, 4, 1>} : memref<1x66x66x8xf32, #tpu.memory_space<vmem>>, vector<1x16x16x8xf32>
    %113 = vector.shape_cast %112 : vector<1x16x16x8xf32> to vector<16x16x8xf32>
    %114 = vector.shape_cast %113 : vector<16x16x8xf32> to vector<256x8xf32>
    %115 = arith.truncf %114 : vector<256x8xf32> to vector<256x8xbf16>
    %cst_94 = arith.constant dense<0.000000e+00> : vector<256x16xf32>
    %116 = tpu.matmul %115, %8, %cst_94 {dimension_numbers = #tpu.dot_dimension_numbers<[1], [0], [0], [1], [0, 0, 1, 1], [], []>} : vector<256x8xbf16>, vector<8x16xbf16>, vector<256x16xf32> -> vector<256x16xf32>
    %117 = arith.addf %111, %116 : vector<256x16xf32>
    %118 = arith.maximumf %63, %117 : vector<256x16xf32>
    %c0_95 = arith.constant 0 : index
    %c2_96 = arith.constant 2 : index
    %c0_97 = arith.constant 0 : index
    %c0_98 = arith.constant 0 : index
    %119 = tpu.strided_load %arg1[%c0_95, %c2_96, %c0_97, %c0_98] {strides = array<i32: 1, 4, 4, 1>} : memref<1x66x66x8xf32, #tpu.memory_space<vmem>>, vector<1x16x16x8xf32>
    %120 = vector.shape_cast %119 : vector<1x16x16x8xf32> to vector<16x16x8xf32>
    %121 = vector.shape_cast %120 : vector<16x16x8xf32> to vector<256x8xf32>
    %122 = arith.truncf %121 : vector<256x8xf32> to vector<256x8xbf16>
    %cst_99 = arith.constant dense<0.000000e+00> : vector<256x16xf32>
    %123 = tpu.matmul %122, %0, %cst_99 {dimension_numbers = #tpu.dot_dimension_numbers<[1], [0], [0], [1], [0, 0, 1, 1], [], []>} : vector<256x8xbf16>, vector<8x16xbf16>, vector<256x16xf32> -> vector<256x16xf32>
    %124 = arith.addf %9, %123 : vector<256x16xf32>
    %c0_100 = arith.constant 0 : index
    %c2_101 = arith.constant 2 : index
    %c1_102 = arith.constant 1 : index
    %c0_103 = arith.constant 0 : index
    %125 = tpu.strided_load %arg1[%c0_100, %c2_101, %c1_102, %c0_103] {strides = array<i32: 1, 4, 4, 1>} : memref<1x66x66x8xf32, #tpu.memory_space<vmem>>, vector<1x16x16x8xf32>
    %126 = vector.shape_cast %125 : vector<1x16x16x8xf32> to vector<16x16x8xf32>
    %127 = vector.shape_cast %126 : vector<16x16x8xf32> to vector<256x8xf32>
    %128 = arith.truncf %127 : vector<256x8xf32> to vector<256x8xbf16>
    %cst_104 = arith.constant dense<0.000000e+00> : vector<256x16xf32>
    %129 = tpu.matmul %128, %1, %cst_104 {dimension_numbers = #tpu.dot_dimension_numbers<[1], [0], [0], [1], [0, 0, 1, 1], [], []>} : vector<256x8xbf16>, vector<8x16xbf16>, vector<256x16xf32> -> vector<256x16xf32>
    %130 = arith.addf %124, %129 : vector<256x16xf32>
    %c0_105 = arith.constant 0 : index
    %c2_106 = arith.constant 2 : index
    %c2_107 = arith.constant 2 : index
    %c0_108 = arith.constant 0 : index
    %131 = tpu.strided_load %arg1[%c0_105, %c2_106, %c2_107, %c0_108] {strides = array<i32: 1, 4, 4, 1>} : memref<1x66x66x8xf32, #tpu.memory_space<vmem>>, vector<1x16x16x8xf32>
    %132 = vector.shape_cast %131 : vector<1x16x16x8xf32> to vector<16x16x8xf32>
    %133 = vector.shape_cast %132 : vector<16x16x8xf32> to vector<256x8xf32>
    %134 = arith.truncf %133 : vector<256x8xf32> to vector<256x8xbf16>
    %cst_109 = arith.constant dense<0.000000e+00> : vector<256x16xf32>
    %135 = tpu.matmul %134, %2, %cst_109 {dimension_numbers = #tpu.dot_dimension_numbers<[1], [0], [0], [1], [0, 0, 1, 1], [], []>} : vector<256x8xbf16>, vector<8x16xbf16>, vector<256x16xf32> -> vector<256x16xf32>
    %136 = arith.addf %130, %135 : vector<256x16xf32>
    %c0_110 = arith.constant 0 : index
    %c3_111 = arith.constant 3 : index
    %c0_112 = arith.constant 0 : index
    %c0_113 = arith.constant 0 : index
    %137 = tpu.strided_load %arg1[%c0_110, %c3_111, %c0_112, %c0_113] {strides = array<i32: 1, 4, 4, 1>} : memref<1x66x66x8xf32, #tpu.memory_space<vmem>>, vector<1x16x16x8xf32>
    %138 = vector.shape_cast %137 : vector<1x16x16x8xf32> to vector<16x16x8xf32>
    %139 = vector.shape_cast %138 : vector<16x16x8xf32> to vector<256x8xf32>
    %140 = arith.truncf %139 : vector<256x8xf32> to vector<256x8xbf16>
    %cst_114 = arith.constant dense<0.000000e+00> : vector<256x16xf32>
    %141 = tpu.matmul %140, %3, %cst_114 {dimension_numbers = #tpu.dot_dimension_numbers<[1], [0], [0], [1], [0, 0, 1, 1], [], []>} : vector<256x8xbf16>, vector<8x16xbf16>, vector<256x16xf32> -> vector<256x16xf32>
    %142 = arith.addf %136, %141 : vector<256x16xf32>
    %c0_115 = arith.constant 0 : index
    %c3_116 = arith.constant 3 : index
    %c1_117 = arith.constant 1 : index
    %c0_118 = arith.constant 0 : index
    %143 = tpu.strided_load %arg1[%c0_115, %c3_116, %c1_117, %c0_118] {strides = array<i32: 1, 4, 4, 1>} : memref<1x66x66x8xf32, #tpu.memory_space<vmem>>, vector<1x16x16x8xf32>
    %144 = vector.shape_cast %143 : vector<1x16x16x8xf32> to vector<16x16x8xf32>
    %145 = vector.shape_cast %144 : vector<16x16x8xf32> to vector<256x8xf32>
    %146 = arith.truncf %145 : vector<256x8xf32> to vector<256x8xbf16>
    %cst_119 = arith.constant dense<0.000000e+00> : vector<256x16xf32>
    %147 = tpu.matmul %146, %4, %cst_119 {dimension_numbers = #tpu.dot_dimension_numbers<[1], [0], [0], [1], [0, 0, 1, 1], [], []>} : vector<256x8xbf16>, vector<8x16xbf16>, vector<256x16xf32> -> vector<256x16xf32>
    %148 = arith.addf %142, %147 : vector<256x16xf32>
    %c0_120 = arith.constant 0 : index
    %c3_121 = arith.constant 3 : index
    %c2_122 = arith.constant 2 : index
    %c0_123 = arith.constant 0 : index
    %149 = tpu.strided_load %arg1[%c0_120, %c3_121, %c2_122, %c0_123] {strides = array<i32: 1, 4, 4, 1>} : memref<1x66x66x8xf32, #tpu.memory_space<vmem>>, vector<1x16x16x8xf32>
    %150 = vector.shape_cast %149 : vector<1x16x16x8xf32> to vector<16x16x8xf32>
    %151 = vector.shape_cast %150 : vector<16x16x8xf32> to vector<256x8xf32>
    %152 = arith.truncf %151 : vector<256x8xf32> to vector<256x8xbf16>
    %cst_124 = arith.constant dense<0.000000e+00> : vector<256x16xf32>
    %153 = tpu.matmul %152, %5, %cst_124 {dimension_numbers = #tpu.dot_dimension_numbers<[1], [0], [0], [1], [0, 0, 1, 1], [], []>} : vector<256x8xbf16>, vector<8x16xbf16>, vector<256x16xf32> -> vector<256x16xf32>
    %154 = arith.addf %148, %153 : vector<256x16xf32>
    %c0_125 = arith.constant 0 : index
    %c4_126 = arith.constant 4 : index
    %c0_127 = arith.constant 0 : index
    %c0_128 = arith.constant 0 : index
    %155 = tpu.strided_load %arg1[%c0_125, %c4_126, %c0_127, %c0_128] {strides = array<i32: 1, 4, 4, 1>} : memref<1x66x66x8xf32, #tpu.memory_space<vmem>>, vector<1x16x16x8xf32>
    %156 = vector.shape_cast %155 : vector<1x16x16x8xf32> to vector<16x16x8xf32>
    %157 = vector.shape_cast %156 : vector<16x16x8xf32> to vector<256x8xf32>
    %158 = arith.truncf %157 : vector<256x8xf32> to vector<256x8xbf16>
    %cst_129 = arith.constant dense<0.000000e+00> : vector<256x16xf32>
    %159 = tpu.matmul %158, %6, %cst_129 {dimension_numbers = #tpu.dot_dimension_numbers<[1], [0], [0], [1], [0, 0, 1, 1], [], []>} : vector<256x8xbf16>, vector<8x16xbf16>, vector<256x16xf32> -> vector<256x16xf32>
    %160 = arith.addf %154, %159 : vector<256x16xf32>
    %c0_130 = arith.constant 0 : index
    %c4_131 = arith.constant 4 : index
    %c1_132 = arith.constant 1 : index
    %c0_133 = arith.constant 0 : index
    %161 = tpu.strided_load %arg1[%c0_130, %c4_131, %c1_132, %c0_133] {strides = array<i32: 1, 4, 4, 1>} : memref<1x66x66x8xf32, #tpu.memory_space<vmem>>, vector<1x16x16x8xf32>
    %162 = vector.shape_cast %161 : vector<1x16x16x8xf32> to vector<16x16x8xf32>
    %163 = vector.shape_cast %162 : vector<16x16x8xf32> to vector<256x8xf32>
    %164 = arith.truncf %163 : vector<256x8xf32> to vector<256x8xbf16>
    %cst_134 = arith.constant dense<0.000000e+00> : vector<256x16xf32>
    %165 = tpu.matmul %164, %7, %cst_134 {dimension_numbers = #tpu.dot_dimension_numbers<[1], [0], [0], [1], [0, 0, 1, 1], [], []>} : vector<256x8xbf16>, vector<8x16xbf16>, vector<256x16xf32> -> vector<256x16xf32>
    %166 = arith.addf %160, %165 : vector<256x16xf32>
    %c0_135 = arith.constant 0 : index
    %c4_136 = arith.constant 4 : index
    %c2_137 = arith.constant 2 : index
    %c0_138 = arith.constant 0 : index
    %167 = tpu.strided_load %arg1[%c0_135, %c4_136, %c2_137, %c0_138] {strides = array<i32: 1, 4, 4, 1>} : memref<1x66x66x8xf32, #tpu.memory_space<vmem>>, vector<1x16x16x8xf32>
    %168 = vector.shape_cast %167 : vector<1x16x16x8xf32> to vector<16x16x8xf32>
    %169 = vector.shape_cast %168 : vector<16x16x8xf32> to vector<256x8xf32>
    %170 = arith.truncf %169 : vector<256x8xf32> to vector<256x8xbf16>
    %cst_139 = arith.constant dense<0.000000e+00> : vector<256x16xf32>
    %171 = tpu.matmul %170, %8, %cst_139 {dimension_numbers = #tpu.dot_dimension_numbers<[1], [0], [0], [1], [0, 0, 1, 1], [], []>} : vector<256x8xbf16>, vector<8x16xbf16>, vector<256x16xf32> -> vector<256x16xf32>
    %172 = arith.addf %166, %171 : vector<256x16xf32>
    %173 = arith.maximumf %118, %172 : vector<256x16xf32>
    %c0_140 = arith.constant 0 : index
    %c2_141 = arith.constant 2 : index
    %c2_142 = arith.constant 2 : index
    %c0_143 = arith.constant 0 : index
    %174 = tpu.strided_load %arg1[%c0_140, %c2_141, %c2_142, %c0_143] {strides = array<i32: 1, 4, 4, 1>} : memref<1x66x66x8xf32, #tpu.memory_space<vmem>>, vector<1x16x16x8xf32>
    %175 = vector.shape_cast %174 : vector<1x16x16x8xf32> to vector<16x16x8xf32>
    %176 = vector.shape_cast %175 : vector<16x16x8xf32> to vector<256x8xf32>
    %177 = arith.truncf %176 : vector<256x8xf32> to vector<256x8xbf16>
    %cst_144 = arith.constant dense<0.000000e+00> : vector<256x16xf32>
    %178 = tpu.matmul %177, %0, %cst_144 {dimension_numbers = #tpu.dot_dimension_numbers<[1], [0], [0], [1], [0, 0, 1, 1], [], []>} : vector<256x8xbf16>, vector<8x16xbf16>, vector<256x16xf32> -> vector<256x16xf32>
    %179 = arith.addf %9, %178 : vector<256x16xf32>
    %c0_145 = arith.constant 0 : index
    %c2_146 = arith.constant 2 : index
    %c3_147 = arith.constant 3 : index
    %c0_148 = arith.constant 0 : index
    %180 = tpu.strided_load %arg1[%c0_145, %c2_146, %c3_147, %c0_148] {strides = array<i32: 1, 4, 4, 1>} : memref<1x66x66x8xf32, #tpu.memory_space<vmem>>, vector<1x16x16x8xf32>
    %181 = vector.shape_cast %180 : vector<1x16x16x8xf32> to vector<16x16x8xf32>
    %182 = vector.shape_cast %181 : vector<16x16x8xf32> to vector<256x8xf32>
    %183 = arith.truncf %182 : vector<256x8xf32> to vector<256x8xbf16>
    %cst_149 = arith.constant dense<0.000000e+00> : vector<256x16xf32>
    %184 = tpu.matmul %183, %1, %cst_149 {dimension_numbers = #tpu.dot_dimension_numbers<[1], [0], [0], [1], [0, 0, 1, 1], [], []>} : vector<256x8xbf16>, vector<8x16xbf16>, vector<256x16xf32> -> vector<256x16xf32>
    %185 = arith.addf %179, %184 : vector<256x16xf32>
    %c0_150 = arith.constant 0 : index
    %c2_151 = arith.constant 2 : index
    %c4_152 = arith.constant 4 : index
    %c0_153 = arith.constant 0 : index
    %186 = tpu.strided_load %arg1[%c0_150, %c2_151, %c4_152, %c0_153] {strides = array<i32: 1, 4, 4, 1>} : memref<1x66x66x8xf32, #tpu.memory_space<vmem>>, vector<1x16x16x8xf32>
    %187 = vector.shape_cast %186 : vector<1x16x16x8xf32> to vector<16x16x8xf32>
    %188 = vector.shape_cast %187 : vector<16x16x8xf32> to vector<256x8xf32>
    %189 = arith.truncf %188 : vector<256x8xf32> to vector<256x8xbf16>
    %cst_154 = arith.constant dense<0.000000e+00> : vector<256x16xf32>
    %190 = tpu.matmul %189, %2, %cst_154 {dimension_numbers = #tpu.dot_dimension_numbers<[1], [0], [0], [1], [0, 0, 1, 1], [], []>} : vector<256x8xbf16>, vector<8x16xbf16>, vector<256x16xf32> -> vector<256x16xf32>
    %191 = arith.addf %185, %190 : vector<256x16xf32>
    %c0_155 = arith.constant 0 : index
    %c3_156 = arith.constant 3 : index
    %c2_157 = arith.constant 2 : index
    %c0_158 = arith.constant 0 : index
    %192 = tpu.strided_load %arg1[%c0_155, %c3_156, %c2_157, %c0_158] {strides = array<i32: 1, 4, 4, 1>} : memref<1x66x66x8xf32, #tpu.memory_space<vmem>>, vector<1x16x16x8xf32>
    %193 = vector.shape_cast %192 : vector<1x16x16x8xf32> to vector<16x16x8xf32>
    %194 = vector.shape_cast %193 : vector<16x16x8xf32> to vector<256x8xf32>
    %195 = arith.truncf %194 : vector<256x8xf32> to vector<256x8xbf16>
    %cst_159 = arith.constant dense<0.000000e+00> : vector<256x16xf32>
    %196 = tpu.matmul %195, %3, %cst_159 {dimension_numbers = #tpu.dot_dimension_numbers<[1], [0], [0], [1], [0, 0, 1, 1], [], []>} : vector<256x8xbf16>, vector<8x16xbf16>, vector<256x16xf32> -> vector<256x16xf32>
    %197 = arith.addf %191, %196 : vector<256x16xf32>
    %c0_160 = arith.constant 0 : index
    %c3_161 = arith.constant 3 : index
    %c3_162 = arith.constant 3 : index
    %c0_163 = arith.constant 0 : index
    %198 = tpu.strided_load %arg1[%c0_160, %c3_161, %c3_162, %c0_163] {strides = array<i32: 1, 4, 4, 1>} : memref<1x66x66x8xf32, #tpu.memory_space<vmem>>, vector<1x16x16x8xf32>
    %199 = vector.shape_cast %198 : vector<1x16x16x8xf32> to vector<16x16x8xf32>
    %200 = vector.shape_cast %199 : vector<16x16x8xf32> to vector<256x8xf32>
    %201 = arith.truncf %200 : vector<256x8xf32> to vector<256x8xbf16>
    %cst_164 = arith.constant dense<0.000000e+00> : vector<256x16xf32>
    %202 = tpu.matmul %201, %4, %cst_164 {dimension_numbers = #tpu.dot_dimension_numbers<[1], [0], [0], [1], [0, 0, 1, 1], [], []>} : vector<256x8xbf16>, vector<8x16xbf16>, vector<256x16xf32> -> vector<256x16xf32>
    %203 = arith.addf %197, %202 : vector<256x16xf32>
    %c0_165 = arith.constant 0 : index
    %c3_166 = arith.constant 3 : index
    %c4_167 = arith.constant 4 : index
    %c0_168 = arith.constant 0 : index
    %204 = tpu.strided_load %arg1[%c0_165, %c3_166, %c4_167, %c0_168] {strides = array<i32: 1, 4, 4, 1>} : memref<1x66x66x8xf32, #tpu.memory_space<vmem>>, vector<1x16x16x8xf32>
    %205 = vector.shape_cast %204 : vector<1x16x16x8xf32> to vector<16x16x8xf32>
    %206 = vector.shape_cast %205 : vector<16x16x8xf32> to vector<256x8xf32>
    %207 = arith.truncf %206 : vector<256x8xf32> to vector<256x8xbf16>
    %cst_169 = arith.constant dense<0.000000e+00> : vector<256x16xf32>
    %208 = tpu.matmul %207, %5, %cst_169 {dimension_numbers = #tpu.dot_dimension_numbers<[1], [0], [0], [1], [0, 0, 1, 1], [], []>} : vector<256x8xbf16>, vector<8x16xbf16>, vector<256x16xf32> -> vector<256x16xf32>
    %209 = arith.addf %203, %208 : vector<256x16xf32>
    %c0_170 = arith.constant 0 : index
    %c4_171 = arith.constant 4 : index
    %c2_172 = arith.constant 2 : index
    %c0_173 = arith.constant 0 : index
    %210 = tpu.strided_load %arg1[%c0_170, %c4_171, %c2_172, %c0_173] {strides = array<i32: 1, 4, 4, 1>} : memref<1x66x66x8xf32, #tpu.memory_space<vmem>>, vector<1x16x16x8xf32>
    %211 = vector.shape_cast %210 : vector<1x16x16x8xf32> to vector<16x16x8xf32>
    %212 = vector.shape_cast %211 : vector<16x16x8xf32> to vector<256x8xf32>
    %213 = arith.truncf %212 : vector<256x8xf32> to vector<256x8xbf16>
    %cst_174 = arith.constant dense<0.000000e+00> : vector<256x16xf32>
    %214 = tpu.matmul %213, %6, %cst_174 {dimension_numbers = #tpu.dot_dimension_numbers<[1], [0], [0], [1], [0, 0, 1, 1], [], []>} : vector<256x8xbf16>, vector<8x16xbf16>, vector<256x16xf32> -> vector<256x16xf32>
    %215 = arith.addf %209, %214 : vector<256x16xf32>
    %c0_175 = arith.constant 0 : index
    %c4_176 = arith.constant 4 : index
    %c3_177 = arith.constant 3 : index
    %c0_178 = arith.constant 0 : index
    %216 = tpu.strided_load %arg1[%c0_175, %c4_176, %c3_177, %c0_178] {strides = array<i32: 1, 4, 4, 1>} : memref<1x66x66x8xf32, #tpu.memory_space<vmem>>, vector<1x16x16x8xf32>
    %217 = vector.shape_cast %216 : vector<1x16x16x8xf32> to vector<16x16x8xf32>
    %218 = vector.shape_cast %217 : vector<16x16x8xf32> to vector<256x8xf32>
    %219 = arith.truncf %218 : vector<256x8xf32> to vector<256x8xbf16>
    %cst_179 = arith.constant dense<0.000000e+00> : vector<256x16xf32>
    %220 = tpu.matmul %219, %7, %cst_179 {dimension_numbers = #tpu.dot_dimension_numbers<[1], [0], [0], [1], [0, 0, 1, 1], [], []>} : vector<256x8xbf16>, vector<8x16xbf16>, vector<256x16xf32> -> vector<256x16xf32>
    %221 = arith.addf %215, %220 : vector<256x16xf32>
    %c0_180 = arith.constant 0 : index
    %c4_181 = arith.constant 4 : index
    %c4_182 = arith.constant 4 : index
    %c0_183 = arith.constant 0 : index
    %222 = tpu.strided_load %arg1[%c0_180, %c4_181, %c4_182, %c0_183] {strides = array<i32: 1, 4, 4, 1>} : memref<1x66x66x8xf32, #tpu.memory_space<vmem>>, vector<1x16x16x8xf32>
    %223 = vector.shape_cast %222 : vector<1x16x16x8xf32> to vector<16x16x8xf32>
    %224 = vector.shape_cast %223 : vector<16x16x8xf32> to vector<256x8xf32>
    %225 = arith.truncf %224 : vector<256x8xf32> to vector<256x8xbf16>
    %cst_184 = arith.constant dense<0.000000e+00> : vector<256x16xf32>
    %226 = tpu.matmul %225, %8, %cst_184 {dimension_numbers = #tpu.dot_dimension_numbers<[1], [0], [0], [1], [0, 0, 1, 1], [], []>} : vector<256x8xbf16>, vector<8x16xbf16>, vector<256x16xf32> -> vector<256x16xf32>
    %227 = arith.addf %221, %226 : vector<256x16xf32>
    %228 = arith.maximumf %173, %227 : vector<256x16xf32>
    %c0_185 = arith.constant 0 : index
    %c0_186 = arith.constant 0 : index
    %229 = vector.load %arg3[%c0_185, %c0_186] : memref<1x16xf32, #tpu.memory_space<vmem>>, vector<1x16xf32>
    %230 = vector.broadcast %229 : vector<1x16xf32> to vector<256x16xf32>
    %231 = arith.addf %228, %230 : vector<256x16xf32>
    %cst_187 = arith.constant 0.000000e+00 : f32
    %232 = vector.broadcast %cst_187 : f32 to vector<256x16xf32>
    %233 = arith.maximumf %231, %232 : vector<256x16xf32>
    %cst_188 = arith.constant 0.000000e+00 : f32
    %234 = vector.broadcast %cst_188 : f32 to vector<1x18x16xf32>
    %c0_189 = arith.constant 0 : index
    %c0_190 = arith.constant 0 : index
    %c0_191 = arith.constant 0 : index
    %235 = vector.load %arg15[%c0_189, %c0_190, %c0_191] : memref<18x18x16xf32, #tpu.memory_space<vmem>>, vector<1x18x16xf32>
    tpu.vector_store %arg15[%c0_189, %c0_190, %c0_191], %234 {strides = array<i32>} : memref<18x18x16xf32, #tpu.memory_space<vmem>>, vector<1x18x16xf32>,
    %c17 = arith.constant 17 : index
    %c0_192 = arith.constant 0 : index
    %c0_193 = arith.constant 0 : index
    %236 = vector.load %arg15[%c17, %c0_192, %c0_193] : memref<18x18x16xf32, #tpu.memory_space<vmem>>, vector<1x18x16xf32>
    tpu.vector_store %arg15[%c17, %c0_192, %c0_193], %234 {strides = array<i32>} : memref<18x18x16xf32, #tpu.memory_space<vmem>>, vector<1x18x16xf32>,
    %cst_194 = arith.constant 0.000000e+00 : f32
    %237 = vector.broadcast %cst_194 : f32 to vector<1x16xf32>
    %c1_195 = arith.constant 1 : index
    %c0_196 = arith.constant 0 : index
    %c0_197 = arith.constant 0 : index
    %238 = vector.load %arg15[%c1_195, %c0_196, %c0_197] : memref<18x18x16xf32, #tpu.memory_space<vmem>>, vector<1x1x16xf32>
    %239 = vector.shape_cast %238 : vector<1x1x16xf32> to vector<1x16xf32>
    %240 = vector.shape_cast %237 : vector<1x16xf32> to vector<1x1x16xf32>
    tpu.vector_store %arg15[%c1_195, %c0_196, %c0_197], %240 {strides = array<i32>} : memref<18x18x16xf32, #tpu.memory_space<vmem>>, vector<1x1x16xf32>,
    %241 = vector.extract_strided_slice %233 {offsets = [0, 0], sizes = [16, 16], strides = [1, 1]} : vector<256x16xf32> to vector<16x16xf32>
    %c1_198 = arith.constant 1 : index
    %c1_199 = arith.constant 1 : index
    %c0_200 = arith.constant 0 : index
    %242 = vector.load %arg15[%c1_198, %c1_199, %c0_200] : memref<18x18x16xf32, #tpu.memory_space<vmem>>, vector<1x16x16xf32>
    %243 = vector.shape_cast %242 : vector<1x16x16xf32> to vector<16x16xf32>
    %244 = vector.shape_cast %241 : vector<16x16xf32> to vector<1x16x16xf32>
    tpu.vector_store %arg15[%c1_198, %c1_199, %c0_200], %244 {strides = array<i32>} : memref<18x18x16xf32, #tpu.memory_space<vmem>>, vector<1x16x16xf32>,
    %c1_201 = arith.constant 1 : index
    %c17_202 = arith.constant 17 : index
    %c0_203 = arith.constant 0 : index
    %245 = vector.load %arg15[%c1_201, %c17_202, %c0_203] : memref<18x18x16xf32, #tpu.memory_space<vmem>>, vector<1x1x16xf32>
    %246 = vector.shape_cast %245 : vector<1x1x16xf32> to vector<1x16xf32>
    %247 = vector.shape_cast %237 : vector<1x16xf32> to vector<1x1x16xf32>
    tpu.vector_store %arg15[%c1_201, %c17_202, %c0_203], %247 {strides = array<i32>} : memref<18x18x16xf32, #tpu.memory_space<vmem>>, vector<1x1x16xf32>,
    %c2_204 = arith.constant 2 : index
    %c0_205 = arith.constant 0 : index
    %c0_206 = arith.constant 0 : index
    %248 = vector.load %arg15[%c2_204, %c0_205, %c0_206] : memref<18x18x16xf32, #tpu.memory_space<vmem>>, vector<1x1x16xf32>
    %249 = vector.shape_cast %248 : vector<1x1x16xf32> to vector<1x16xf32>
    %250 = vector.shape_cast %237 : vector<1x16xf32> to vector<1x1x16xf32>
    tpu.vector_store %arg15[%c2_204, %c0_205, %c0_206], %250 {strides = array<i32>} : memref<18x18x16xf32, #tpu.memory_space<vmem>>, vector<1x1x16xf32>,
    %251 = vector.extract_strided_slice %233 {offsets = [16, 0], sizes = [16, 16], strides = [1, 1]} : vector<256x16xf32> to vector<16x16xf32>
    %c2_207 = arith.constant 2 : index
    %c1_208 = arith.constant 1 : index
    %c0_209 = arith.constant 0 : index
    %252 = vector.load %arg15[%c2_207, %c1_208, %c0_209] : memref<18x18x16xf32, #tpu.memory_space<vmem>>, vector<1x16x16xf32>
    %253 = vector.shape_cast %252 : vector<1x16x16xf32> to vector<16x16xf32>
    %254 = vector.shape_cast %251 : vector<16x16xf32> to vector<1x16x16xf32>
    tpu.vector_store %arg15[%c2_207, %c1_208, %c0_209], %254 {strides = array<i32>} : memref<18x18x16xf32, #tpu.memory_space<vmem>>, vector<1x16x16xf32>,
    %c2_210 = arith.constant 2 : index
    %c17_211 = arith.constant 17 : index
    %c0_212 = arith.constant 0 : index
    %255 = vector.load %arg15[%c2_210, %c17_211, %c0_212] : memref<18x18x16xf32, #tpu.memory_space<vmem>>, vector<1x1x16xf32>
    %256 = vector.shape_cast %255 : vector<1x1x16xf32> to vector<1x16xf32>
    %257 = vector.shape_cast %237 : vector<1x16xf32> to vector<1x1x16xf32>
    tpu.vector_store %arg15[%c2_210, %c17_211, %c0_212], %257 {strides = array<i32>} : memref<18x18x16xf32, #tpu.memory_space<vmem>>, vector<1x1x16xf32>,
    %c3_213 = arith.constant 3 : index
    %c0_214 = arith.constant 0 : index
    %c0_215 = arith.constant 0 : index
    %258 = vector.load %arg15[%c3_213, %c0_214, %c0_215] : memref<18x18x16xf32, #tpu.memory_space<vmem>>, vector<1x1x16xf32>
    %259 = vector.shape_cast %258 : vector<1x1x16xf32> to vector<1x16xf32>
    %260 = vector.shape_cast %237 : vector<1x16xf32> to vector<1x1x16xf32>
    tpu.vector_store %arg15[%c3_213, %c0_214, %c0_215], %260 {strides = array<i32>} : memref<18x18x16xf32, #tpu.memory_space<vmem>>, vector<1x1x16xf32>,
    %261 = vector.extract_strided_slice %233 {offsets = [32, 0], sizes = [16, 16], strides = [1, 1]} : vector<256x16xf32> to vector<16x16xf32>
    %c3_216 = arith.constant 3 : index
    %c1_217 = arith.constant 1 : index
    %c0_218 = arith.constant 0 : index
    %262 = vector.load %arg15[%c3_216, %c1_217, %c0_218] : memref<18x18x16xf32, #tpu.memory_space<vmem>>, vector<1x16x16xf32>
    %263 = vector.shape_cast %262 : vector<1x16x16xf32> to vector<16x16xf32>
    %264 = vector.shape_cast %261 : vector<16x16xf32> to vector<1x16x16xf32>
    tpu.vector_store %arg15[%c3_216, %c1_217, %c0_218], %264 {strides = array<i32>} : memref<18x18x16xf32, #tpu.memory_space<vmem>>, vector<1x16x16xf32>,
    %c3_219 = arith.constant 3 : index
    %c17_220 = arith.constant 17 : index
    %c0_221 = arith.constant 0 : index
    %265 = vector.load %arg15[%c3_219, %c17_220, %c0_221] : memref<18x18x16xf32, #tpu.memory_space<vmem>>, vector<1x1x16xf32>
    %266 = vector.shape_cast %265 : vector<1x1x16xf32> to vector<1x16xf32>
    %267 = vector.shape_cast %237 : vector<1x16xf32> to vector<1x1x16xf32>
    tpu.vector_store %arg15[%c3_219, %c17_220, %c0_221], %267 {strides = array<i32>} : memref<18x18x16xf32, #tpu.memory_space<vmem>>, vector<1x1x16xf32>,
    %c4_222 = arith.constant 4 : index
    %c0_223 = arith.constant 0 : index
    %c0_224 = arith.constant 0 : index
    %268 = vector.load %arg15[%c4_222, %c0_223, %c0_224] : memref<18x18x16xf32, #tpu.memory_space<vmem>>, vector<1x1x16xf32>
    %269 = vector.shape_cast %268 : vector<1x1x16xf32> to vector<1x16xf32>
    %270 = vector.shape_cast %237 : vector<1x16xf32> to vector<1x1x16xf32>
    tpu.vector_store %arg15[%c4_222, %c0_223, %c0_224], %270 {strides = array<i32>} : memref<18x18x16xf32, #tpu.memory_space<vmem>>, vector<1x1x16xf32>,
    %271 = vector.extract_strided_slice %233 {offsets = [48, 0], sizes = [16, 16], strides = [1, 1]} : vector<256x16xf32> to vector<16x16xf32>
    %c4_225 = arith.constant 4 : index
    %c1_226 = arith.constant 1 : index
    %c0_227 = arith.constant 0 : index
    %272 = vector.load %arg15[%c4_225, %c1_226, %c0_227] : memref<18x18x16xf32, #tpu.memory_space<vmem>>, vector<1x16x16xf32>
    %273 = vector.shape_cast %272 : vector<1x16x16xf32> to vector<16x16xf32>
    %274 = vector.shape_cast %271 : vector<16x16xf32> to vector<1x16x16xf32>
    tpu.vector_store %arg15[%c4_225, %c1_226, %c0_227], %274 {strides = array<i32>} : memref<18x18x16xf32, #tpu.memory_space<vmem>>, vector<1x16x16xf32>,
    %c4_228 = arith.constant 4 : index
    %c17_229 = arith.constant 17 : index
    %c0_230 = arith.constant 0 : index
    %275 = vector.load %arg15[%c4_228, %c17_229, %c0_230] : memref<18x18x16xf32, #tpu.memory_space<vmem>>, vector<1x1x16xf32>
    %276 = vector.shape_cast %275 : vector<1x1x16xf32> to vector<1x16xf32>
    %277 = vector.shape_cast %237 : vector<1x16xf32> to vector<1x1x16xf32>
    tpu.vector_store %arg15[%c4_228, %c17_229, %c0_230], %277 {strides = array<i32>} : memref<18x18x16xf32, #tpu.memory_space<vmem>>, vector<1x1x16xf32>,
    %c5 = arith.constant 5 : index
    %c0_231 = arith.constant 0 : index
    %c0_232 = arith.constant 0 : index
    %278 = vector.load %arg15[%c5, %c0_231, %c0_232] : memref<18x18x16xf32, #tpu.memory_space<vmem>>, vector<1x1x16xf32>
    %279 = vector.shape_cast %278 : vector<1x1x16xf32> to vector<1x16xf32>
    %280 = vector.shape_cast %237 : vector<1x16xf32> to vector<1x1x16xf32>
    tpu.vector_store %arg15[%c5, %c0_231, %c0_232], %280 {strides = array<i32>} : memref<18x18x16xf32, #tpu.memory_space<vmem>>, vector<1x1x16xf32>,
    %281 = vector.extract_strided_slice %233 {offsets = [64, 0], sizes = [16, 16], strides = [1, 1]} : vector<256x16xf32> to vector<16x16xf32>
    %c5_233 = arith.constant 5 : index
    %c1_234 = arith.constant 1 : index
    %c0_235 = arith.constant 0 : index
    %282 = vector.load %arg15[%c5_233, %c1_234, %c0_235] : memref<18x18x16xf32, #tpu.memory_space<vmem>>, vector<1x16x16xf32>
    %283 = vector.shape_cast %282 : vector<1x16x16xf32> to vector<16x16xf32>
    %284 = vector.shape_cast %281 : vector<16x16xf32> to vector<1x16x16xf32>
    tpu.vector_store %arg15[%c5_233, %c1_234, %c0_235], %284 {strides = array<i32>} : memref<18x18x16xf32, #tpu.memory_space<vmem>>, vector<1x16x16xf32>,
    %c5_236 = arith.constant 5 : index
    %c17_237 = arith.constant 17 : index
    %c0_238 = arith.constant 0 : index
    %285 = vector.load %arg15[%c5_236, %c17_237, %c0_238] : memref<18x18x16xf32, #tpu.memory_space<vmem>>, vector<1x1x16xf32>
    %286 = vector.shape_cast %285 : vector<1x1x16xf32> to vector<1x16xf32>
    %287 = vector.shape_cast %237 : vector<1x16xf32> to vector<1x1x16xf32>
    tpu.vector_store %arg15[%c5_236, %c17_237, %c0_238], %287 {strides = array<i32>} : memref<18x18x16xf32, #tpu.memory_space<vmem>>, vector<1x1x16xf32>,
    %c6 = arith.constant 6 : index
    %c0_239 = arith.constant 0 : index
    %c0_240 = arith.constant 0 : index
    %288 = vector.load %arg15[%c6, %c0_239, %c0_240] : memref<18x18x16xf32, #tpu.memory_space<vmem>>, vector<1x1x16xf32>
    %289 = vector.shape_cast %288 : vector<1x1x16xf32> to vector<1x16xf32>
    %290 = vector.shape_cast %237 : vector<1x16xf32> to vector<1x1x16xf32>
    tpu.vector_store %arg15[%c6, %c0_239, %c0_240], %290 {strides = array<i32>} : memref<18x18x16xf32, #tpu.memory_space<vmem>>, vector<1x1x16xf32>,
    %291 = vector.extract_strided_slice %233 {offsets = [80, 0], sizes = [16, 16], strides = [1, 1]} : vector<256x16xf32> to vector<16x16xf32>
    %c6_241 = arith.constant 6 : index
    %c1_242 = arith.constant 1 : index
    %c0_243 = arith.constant 0 : index
    %292 = vector.load %arg15[%c6_241, %c1_242, %c0_243] : memref<18x18x16xf32, #tpu.memory_space<vmem>>, vector<1x16x16xf32>
    %293 = vector.shape_cast %292 : vector<1x16x16xf32> to vector<16x16xf32>
    %294 = vector.shape_cast %291 : vector<16x16xf32> to vector<1x16x16xf32>
    tpu.vector_store %arg15[%c6_241, %c1_242, %c0_243], %294 {strides = array<i32>} : memref<18x18x16xf32, #tpu.memory_space<vmem>>, vector<1x16x16xf32>,
    %c6_244 = arith.constant 6 : index
    %c17_245 = arith.constant 17 : index
    %c0_246 = arith.constant 0 : index
    %295 = vector.load %arg15[%c6_244, %c17_245, %c0_246] : memref<18x18x16xf32, #tpu.memory_space<vmem>>, vector<1x1x16xf32>
    %296 = vector.shape_cast %295 : vector<1x1x16xf32> to vector<1x16xf32>
    %297 = vector.shape_cast %237 : vector<1x16xf32> to vector<1x1x16xf32>
    tpu.vector_store %arg15[%c6_244, %c17_245, %c0_246], %297 {strides = array<i32>} : memref<18x18x16xf32, #tpu.memory_space<vmem>>, vector<1x1x16xf32>,
    %c7 = arith.constant 7 : index
    %c0_247 = arith.constant 0 : index
    %c0_248 = arith.constant 0 : index
    %298 = vector.load %arg15[%c7, %c0_247, %c0_248] : memref<18x18x16xf32, #tpu.memory_space<vmem>>, vector<1x1x16xf32>
    %299 = vector.shape_cast %298 : vector<1x1x16xf32> to vector<1x16xf32>
    %300 = vector.shape_cast %237 : vector<1x16xf32> to vector<1x1x16xf32>
    tpu.vector_store %arg15[%c7, %c0_247, %c0_248], %300 {strides = array<i32>} : memref<18x18x16xf32, #tpu.memory_space<vmem>>, vector<1x1x16xf32>,
    %301 = vector.extract_strided_slice %233 {offsets = [96, 0], sizes = [16, 16], strides = [1, 1]} : vector<256x16xf32> to vector<16x16xf32>
    %c7_249 = arith.constant 7 : index
    %c1_250 = arith.constant 1 : index
    %c0_251 = arith.constant 0 : index
    %302 = vector.load %arg15[%c7_249, %c1_250, %c0_251] : memref<18x18x16xf32, #tpu.memory_space<vmem>>, vector<1x16x16xf32>
    %303 = vector.shape_cast %302 : vector<1x16x16xf32> to vector<16x16xf32>
    %304 = vector.shape_cast %301 : vector<16x16xf32> to vector<1x16x16xf32>
    tpu.vector_store %arg15[%c7_249, %c1_250, %c0_251], %304 {strides = array<i32>} : memref<18x18x16xf32, #tpu.memory_space<vmem>>, vector<1x16x16xf32>,
    %c7_252 = arith.constant 7 : index
    %c17_253 = arith.constant 17 : index
    %c0_254 = arith.constant 0 : index
    %305 = vector.load %arg15[%c7_252, %c17_253, %c0_254] : memref<18x18x16xf32, #tpu.memory_space<vmem>>, vector<1x1x16xf32>
    %306 = vector.shape_cast %305 : vector<1x1x16xf32> to vector<1x16xf32>
    %307 = vector.shape_cast %237 : vector<1x16xf32> to vector<1x1x16xf32>
    tpu.vector_store %arg15[%c7_252, %c17_253, %c0_254], %307 {strides = array<i32>} : memref<18x18x16xf32, #tpu.memory_space<vmem>>, vector<1x1x16xf32>,
    %c8_255 = arith.constant 8 : index
    %c0_256 = arith.constant 0 : index
    %c0_257 = arith.constant 0 : index
    %308 = vector.load %arg15[%c8_255, %c0_256, %c0_257] : memref<18x18x16xf32, #tpu.memory_space<vmem>>, vector<1x1x16xf32>
    %309 = vector.shape_cast %308 : vector<1x1x16xf32> to vector<1x16xf32>
    %310 = vector.shape_cast %237 : vector<1x16xf32> to vector<1x1x16xf32>
    tpu.vector_store %arg15[%c8_255, %c0_256, %c0_257], %310 {strides = array<i32>} : memref<18x18x16xf32, #tpu.memory_space<vmem>>, vector<1x1x16xf32>,
    %311 = vector.extract_strided_slice %233 {offsets = [112, 0], sizes = [16, 16], strides = [1, 1]} : vector<256x16xf32> to vector<16x16xf32>
    %c8_258 = arith.constant 8 : index
    %c1_259 = arith.constant 1 : index
    %c0_260 = arith.constant 0 : index
    %312 = vector.load %arg15[%c8_258, %c1_259, %c0_260] : memref<18x18x16xf32, #tpu.memory_space<vmem>>, vector<1x16x16xf32>
    %313 = vector.shape_cast %312 : vector<1x16x16xf32> to vector<16x16xf32>
    %314 = vector.shape_cast %311 : vector<16x16xf32> to vector<1x16x16xf32>
    tpu.vector_store %arg15[%c8_258, %c1_259, %c0_260], %314 {strides = array<i32>} : memref<18x18x16xf32, #tpu.memory_space<vmem>>, vector<1x16x16xf32>,
    %c8_261 = arith.constant 8 : index
    %c17_262 = arith.constant 17 : index
    %c0_263 = arith.constant 0 : index
    %315 = vector.load %arg15[%c8_261, %c17_262, %c0_263] : memref<18x18x16xf32, #tpu.memory_space<vmem>>, vector<1x1x16xf32>
    %316 = vector.shape_cast %315 : vector<1x1x16xf32> to vector<1x16xf32>
    %317 = vector.shape_cast %237 : vector<1x16xf32> to vector<1x1x16xf32>
    tpu.vector_store %arg15[%c8_261, %c17_262, %c0_263], %317 {strides = array<i32>} : memref<18x18x16xf32, #tpu.memory_space<vmem>>, vector<1x1x16xf32>,
    %c9 = arith.constant 9 : index
    %c0_264 = arith.constant 0 : index
    %c0_265 = arith.constant 0 : index
    %318 = vector.load %arg15[%c9, %c0_264, %c0_265] : memref<18x18x16xf32, #tpu.memory_space<vmem>>, vector<1x1x16xf32>
    %319 = vector.shape_cast %318 : vector<1x1x16xf32> to vector<1x16xf32>
    %320 = vector.shape_cast %237 : vector<1x16xf32> to vector<1x1x16xf32>
    tpu.vector_store %arg15[%c9, %c0_264, %c0_265], %320 {strides = array<i32>} : memref<18x18x16xf32, #tpu.memory_space<vmem>>, vector<1x1x16xf32>,
    %321 = vector.extract_strided_slice %233 {offsets = [128, 0], sizes = [16, 16], strides = [1, 1]} : vector<256x16xf32> to vector<16x16xf32>
    %c9_266 = arith.constant 9 : index
    %c1_267 = arith.constant 1 : index
    %c0_268 = arith.constant 0 : index
    %322 = vector.load %arg15[%c9_266, %c1_267, %c0_268] : memref<18x18x16xf32, #tpu.memory_space<vmem>>, vector<1x16x16xf32>
    %323 = vector.shape_cast %322 : vector<1x16x16xf32> to vector<16x16xf32>
    %324 = vector.shape_cast %321 : vector<16x16xf32> to vector<1x16x16xf32>
    tpu.vector_store %arg15[%c9_266, %c1_267, %c0_268], %324 {strides = array<i32>} : memref<18x18x16xf32, #tpu.memory_space<vmem>>, vector<1x16x16xf32>,
    %c9_269 = arith.constant 9 : index
    %c17_270 = arith.constant 17 : index
    %c0_271 = arith.constant 0 : index
    %325 = vector.load %arg15[%c9_269, %c17_270, %c0_271] : memref<18x18x16xf32, #tpu.memory_space<vmem>>, vector<1x1x16xf32>
    %326 = vector.shape_cast %325 : vector<1x1x16xf32> to vector<1x16xf32>
    %327 = vector.shape_cast %237 : vector<1x16xf32> to vector<1x1x16xf32>
    tpu.vector_store %arg15[%c9_269, %c17_270, %c0_271], %327 {strides = array<i32>} : memref<18x18x16xf32, #tpu.memory_space<vmem>>, vector<1x1x16xf32>,
    %c10 = arith.constant 10 : index
    %c0_272 = arith.constant 0 : index
    %c0_273 = arith.constant 0 : index
    %328 = vector.load %arg15[%c10, %c0_272, %c0_273] : memref<18x18x16xf32, #tpu.memory_space<vmem>>, vector<1x1x16xf32>
    %329 = vector.shape_cast %328 : vector<1x1x16xf32> to vector<1x16xf32>
    %330 = vector.shape_cast %237 : vector<1x16xf32> to vector<1x1x16xf32>
    tpu.vector_store %arg15[%c10, %c0_272, %c0_273], %330 {strides = array<i32>} : memref<18x18x16xf32, #tpu.memory_space<vmem>>, vector<1x1x16xf32>,
    %331 = vector.extract_strided_slice %233 {offsets = [144, 0], sizes = [16, 16], strides = [1, 1]} : vector<256x16xf32> to vector<16x16xf32>
    %c10_274 = arith.constant 10 : index
    %c1_275 = arith.constant 1 : index
    %c0_276 = arith.constant 0 : index
    %332 = vector.load %arg15[%c10_274, %c1_275, %c0_276] : memref<18x18x16xf32, #tpu.memory_space<vmem>>, vector<1x16x16xf32>
    %333 = vector.shape_cast %332 : vector<1x16x16xf32> to vector<16x16xf32>
    %334 = vector.shape_cast %331 : vector<16x16xf32> to vector<1x16x16xf32>
    tpu.vector_store %arg15[%c10_274, %c1_275, %c0_276], %334 {strides = array<i32>} : memref<18x18x16xf32, #tpu.memory_space<vmem>>, vector<1x16x16xf32>,
    %c10_277 = arith.constant 10 : index
    %c17_278 = arith.constant 17 : index
    %c0_279 = arith.constant 0 : index
    %335 = vector.load %arg15[%c10_277, %c17_278, %c0_279] : memref<18x18x16xf32, #tpu.memory_space<vmem>>, vector<1x1x16xf32>
    %336 = vector.shape_cast %335 : vector<1x1x16xf32> to vector<1x16xf32>
    %337 = vector.shape_cast %237 : vector<1x16xf32> to vector<1x1x16xf32>
    tpu.vector_store %arg15[%c10_277, %c17_278, %c0_279], %337 {strides = array<i32>} : memref<18x18x16xf32, #tpu.memory_space<vmem>>, vector<1x1x16xf32>,
    %c11 = arith.constant 11 : index
    %c0_280 = arith.constant 0 : index
    %c0_281 = arith.constant 0 : index
    %338 = vector.load %arg15[%c11, %c0_280, %c0_281] : memref<18x18x16xf32, #tpu.memory_space<vmem>>, vector<1x1x16xf32>
    %339 = vector.shape_cast %338 : vector<1x1x16xf32> to vector<1x16xf32>
    %340 = vector.shape_cast %237 : vector<1x16xf32> to vector<1x1x16xf32>
    tpu.vector_store %arg15[%c11, %c0_280, %c0_281], %340 {strides = array<i32>} : memref<18x18x16xf32, #tpu.memory_space<vmem>>, vector<1x1x16xf32>,
    %341 = vector.extract_strided_slice %233 {offsets = [160, 0], sizes = [16, 16], strides = [1, 1]} : vector<256x16xf32> to vector<16x16xf32>
    %c11_282 = arith.constant 11 : index
    %c1_283 = arith.constant 1 : index
    %c0_284 = arith.constant 0 : index
    %342 = vector.load %arg15[%c11_282, %c1_283, %c0_284] : memref<18x18x16xf32, #tpu.memory_space<vmem>>, vector<1x16x16xf32>
    %343 = vector.shape_cast %342 : vector<1x16x16xf32> to vector<16x16xf32>
    %344 = vector.shape_cast %341 : vector<16x16xf32> to vector<1x16x16xf32>
    tpu.vector_store %arg15[%c11_282, %c1_283, %c0_284], %344 {strides = array<i32>} : memref<18x18x16xf32, #tpu.memory_space<vmem>>, vector<1x16x16xf32>,
    %c11_285 = arith.constant 11 : index
    %c17_286 = arith.constant 17 : index
    %c0_287 = arith.constant 0 : index
    %345 = vector.load %arg15[%c11_285, %c17_286, %c0_287] : memref<18x18x16xf32, #tpu.memory_space<vmem>>, vector<1x1x16xf32>
    %346 = vector.shape_cast %345 : vector<1x1x16xf32> to vector<1x16xf32>
    %347 = vector.shape_cast %237 : vector<1x16xf32> to vector<1x1x16xf32>
    tpu.vector_store %arg15[%c11_285, %c17_286, %c0_287], %347 {strides = array<i32>} : memref<18x18x16xf32, #tpu.memory_space<vmem>>, vector<1x1x16xf32>,
    %c12 = arith.constant 12 : index
    %c0_288 = arith.constant 0 : index
    %c0_289 = arith.constant 0 : index
    %348 = vector.load %arg15[%c12, %c0_288, %c0_289] : memref<18x18x16xf32, #tpu.memory_space<vmem>>, vector<1x1x16xf32>
    %349 = vector.shape_cast %348 : vector<1x1x16xf32> to vector<1x16xf32>
    %350 = vector.shape_cast %237 : vector<1x16xf32> to vector<1x1x16xf32>
    tpu.vector_store %arg15[%c12, %c0_288, %c0_289], %350 {strides = array<i32>} : memref<18x18x16xf32, #tpu.memory_space<vmem>>, vector<1x1x16xf32>,
    %351 = vector.extract_strided_slice %233 {offsets = [176, 0], sizes = [16, 16], strides = [1, 1]} : vector<256x16xf32> to vector<16x16xf32>
    %c12_290 = arith.constant 12 : index
    %c1_291 = arith.constant 1 : index
    %c0_292 = arith.constant 0 : index
    %352 = vector.load %arg15[%c12_290, %c1_291, %c0_292] : memref<18x18x16xf32, #tpu.memory_space<vmem>>, vector<1x16x16xf32>
    %353 = vector.shape_cast %352 : vector<1x16x16xf32> to vector<16x16xf32>
    %354 = vector.shape_cast %351 : vector<16x16xf32> to vector<1x16x16xf32>
    tpu.vector_store %arg15[%c12_290, %c1_291, %c0_292], %354 {strides = array<i32>} : memref<18x18x16xf32, #tpu.memory_space<vmem>>, vector<1x16x16xf32>,
    %c12_293 = arith.constant 12 : index
    %c17_294 = arith.constant 17 : index
    %c0_295 = arith.constant 0 : index
    %355 = vector.load %arg15[%c12_293, %c17_294, %c0_295] : memref<18x18x16xf32, #tpu.memory_space<vmem>>, vector<1x1x16xf32>
    %356 = vector.shape_cast %355 : vector<1x1x16xf32> to vector<1x16xf32>
    %357 = vector.shape_cast %237 : vector<1x16xf32> to vector<1x1x16xf32>
    tpu.vector_store %arg15[%c12_293, %c17_294, %c0_295], %357 {strides = array<i32>} : memref<18x18x16xf32, #tpu.memory_space<vmem>>, vector<1x1x16xf32>,
    %c13 = arith.constant 13 : index
    %c0_296 = arith.constant 0 : index
    %c0_297 = arith.constant 0 : index
    %358 = vector.load %arg15[%c13, %c0_296, %c0_297] : memref<18x18x16xf32, #tpu.memory_space<vmem>>, vector<1x1x16xf32>
    %359 = vector.shape_cast %358 : vector<1x1x16xf32> to vector<1x16xf32>
    %360 = vector.shape_cast %237 : vector<1x16xf32> to vector<1x1x16xf32>
    tpu.vector_store %arg15[%c13, %c0_296, %c0_297], %360 {strides = array<i32>} : memref<18x18x16xf32, #tpu.memory_space<vmem>>, vector<1x1x16xf32>,
    %361 = vector.extract_strided_slice %233 {offsets = [192, 0], sizes = [16, 16], strides = [1, 1]} : vector<256x16xf32> to vector<16x16xf32>
    %c13_298 = arith.constant 13 : index
    %c1_299 = arith.constant 1 : index
    %c0_300 = arith.constant 0 : index
    %362 = vector.load %arg15[%c13_298, %c1_299, %c0_300] : memref<18x18x16xf32, #tpu.memory_space<vmem>>, vector<1x16x16xf32>
    %363 = vector.shape_cast %362 : vector<1x16x16xf32> to vector<16x16xf32>
    %364 = vector.shape_cast %361 : vector<16x16xf32> to vector<1x16x16xf32>
    tpu.vector_store %arg15[%c13_298, %c1_299, %c0_300], %364 {strides = array<i32>} : memref<18x18x16xf32, #tpu.memory_space<vmem>>, vector<1x16x16xf32>,
    %c13_301 = arith.constant 13 : index
    %c17_302 = arith.constant 17 : index
    %c0_303 = arith.constant 0 : index
    %365 = vector.load %arg15[%c13_301, %c17_302, %c0_303] : memref<18x18x16xf32, #tpu.memory_space<vmem>>, vector<1x1x16xf32>
    %366 = vector.shape_cast %365 : vector<1x1x16xf32> to vector<1x16xf32>
    %367 = vector.shape_cast %237 : vector<1x16xf32> to vector<1x1x16xf32>
    tpu.vector_store %arg15[%c13_301, %c17_302, %c0_303], %367 {strides = array<i32>} : memref<18x18x16xf32, #tpu.memory_space<vmem>>, vector<1x1x16xf32>,
    %c14 = arith.constant 14 : index
    %c0_304 = arith.constant 0 : index
    %c0_305 = arith.constant 0 : index
    %368 = vector.load %arg15[%c14, %c0_304, %c0_305] : memref<18x18x16xf32, #tpu.memory_space<vmem>>, vector<1x1x16xf32>
    %369 = vector.shape_cast %368 : vector<1x1x16xf32> to vector<1x16xf32>
    %370 = vector.shape_cast %237 : vector<1x16xf32> to vector<1x1x16xf32>
    tpu.vector_store %arg15[%c14, %c0_304, %c0_305], %370 {strides = array<i32>} : memref<18x18x16xf32, #tpu.memory_space<vmem>>, vector<1x1x16xf32>,
    %371 = vector.extract_strided_slice %233 {offsets = [208, 0], sizes = [16, 16], strides = [1, 1]} : vector<256x16xf32> to vector<16x16xf32>
    %c14_306 = arith.constant 14 : index
    %c1_307 = arith.constant 1 : index
    %c0_308 = arith.constant 0 : index
    %372 = vector.load %arg15[%c14_306, %c1_307, %c0_308] : memref<18x18x16xf32, #tpu.memory_space<vmem>>, vector<1x16x16xf32>
    %373 = vector.shape_cast %372 : vector<1x16x16xf32> to vector<16x16xf32>
    %374 = vector.shape_cast %371 : vector<16x16xf32> to vector<1x16x16xf32>
    tpu.vector_store %arg15[%c14_306, %c1_307, %c0_308], %374 {strides = array<i32>} : memref<18x18x16xf32, #tpu.memory_space<vmem>>, vector<1x16x16xf32>,
    %c14_309 = arith.constant 14 : index
    %c17_310 = arith.constant 17 : index
    %c0_311 = arith.constant 0 : index
    %375 = vector.load %arg15[%c14_309, %c17_310, %c0_311] : memref<18x18x16xf32, #tpu.memory_space<vmem>>, vector<1x1x16xf32>
    %376 = vector.shape_cast %375 : vector<1x1x16xf32> to vector<1x16xf32>
    %377 = vector.shape_cast %237 : vector<1x16xf32> to vector<1x1x16xf32>
    tpu.vector_store %arg15[%c14_309, %c17_310, %c0_311], %377 {strides = array<i32>} : memref<18x18x16xf32, #tpu.memory_space<vmem>>, vector<1x1x16xf32>,
    %c15 = arith.constant 15 : index
    %c0_312 = arith.constant 0 : index
    %c0_313 = arith.constant 0 : index
    %378 = vector.load %arg15[%c15, %c0_312, %c0_313] : memref<18x18x16xf32, #tpu.memory_space<vmem>>, vector<1x1x16xf32>
    %379 = vector.shape_cast %378 : vector<1x1x16xf32> to vector<1x16xf32>
    %380 = vector.shape_cast %237 : vector<1x16xf32> to vector<1x1x16xf32>
    tpu.vector_store %arg15[%c15, %c0_312, %c0_313], %380 {strides = array<i32>} : memref<18x18x16xf32, #tpu.memory_space<vmem>>, vector<1x1x16xf32>,
    %381 = vector.extract_strided_slice %233 {offsets = [224, 0], sizes = [16, 16], strides = [1, 1]} : vector<256x16xf32> to vector<16x16xf32>
    %c15_314 = arith.constant 15 : index
    %c1_315 = arith.constant 1 : index
    %c0_316 = arith.constant 0 : index
    %382 = vector.load %arg15[%c15_314, %c1_315, %c0_316] : memref<18x18x16xf32, #tpu.memory_space<vmem>>, vector<1x16x16xf32>
    %383 = vector.shape_cast %382 : vector<1x16x16xf32> to vector<16x16xf32>
    %384 = vector.shape_cast %381 : vector<16x16xf32> to vector<1x16x16xf32>
    tpu.vector_store %arg15[%c15_314, %c1_315, %c0_316], %384 {strides = array<i32>} : memref<18x18x16xf32, #tpu.memory_space<vmem>>, vector<1x16x16xf32>,
    %c15_317 = arith.constant 15 : index
    %c17_318 = arith.constant 17 : index
    %c0_319 = arith.constant 0 : index
    %385 = vector.load %arg15[%c15_317, %c17_318, %c0_319] : memref<18x18x16xf32, #tpu.memory_space<vmem>>, vector<1x1x16xf32>
    %386 = vector.shape_cast %385 : vector<1x1x16xf32> to vector<1x16xf32>
    %387 = vector.shape_cast %237 : vector<1x16xf32> to vector<1x1x16xf32>
    tpu.vector_store %arg15[%c15_317, %c17_318, %c0_319], %387 {strides = array<i32>} : memref<18x18x16xf32, #tpu.memory_space<vmem>>, vector<1x1x16xf32>,
    %c16_320 = arith.constant 16 : index
    %c0_321 = arith.constant 0 : index
    %c0_322 = arith.constant 0 : index
    %388 = vector.load %arg15[%c16_320, %c0_321, %c0_322] : memref<18x18x16xf32, #tpu.memory_space<vmem>>, vector<1x1x16xf32>
    %389 = vector.shape_cast %388 : vector<1x1x16xf32> to vector<1x16xf32>
    %390 = vector.shape_cast %237 : vector<1x16xf32> to vector<1x1x16xf32>
    tpu.vector_store %arg15[%c16_320, %c0_321, %c0_322], %390 {strides = array<i32>} : memref<18x18x16xf32, #tpu.memory_space<vmem>>, vector<1x1x16xf32>,
    %391 = vector.extract_strided_slice %233 {offsets = [240, 0], sizes = [16, 16], strides = [1, 1]} : vector<256x16xf32> to vector<16x16xf32>
    %c16_323 = arith.constant 16 : index
    %c1_324 = arith.constant 1 : index
    %c0_325 = arith.constant 0 : index
    %392 = vector.load %arg15[%c16_323, %c1_324, %c0_325] : memref<18x18x16xf32, #tpu.memory_space<vmem>>, vector<1x16x16xf32>
    %393 = vector.shape_cast %392 : vector<1x16x16xf32> to vector<16x16xf32>
    %394 = vector.shape_cast %391 : vector<16x16xf32> to vector<1x16x16xf32>
    tpu.vector_store %arg15[%c16_323, %c1_324, %c0_325], %394 {strides = array<i32>} : memref<18x18x16xf32, #tpu.memory_space<vmem>>, vector<1x16x16xf32>,
    %c16_326 = arith.constant 16 : index
    %c17_327 = arith.constant 17 : index
    %c0_328 = arith.constant 0 : index
    %395 = vector.load %arg15[%c16_326, %c17_327, %c0_328] : memref<18x18x16xf32, #tpu.memory_space<vmem>>, vector<1x1x16xf32>
    %396 = vector.shape_cast %395 : vector<1x1x16xf32> to vector<1x16xf32>
    %397 = vector.shape_cast %237 : vector<1x16xf32> to vector<1x1x16xf32>
    tpu.vector_store %arg15[%c16_326, %c17_327, %c0_328], %397 {strides = array<i32>} : memref<18x18x16xf32, #tpu.memory_space<vmem>>, vector<1x1x16xf32>,
    %c0_329 = arith.constant 0 : index
    %c0_330 = arith.constant 0 : index
    %398 = vector.load %arg4[%c0_329, %c0_330] : memref<144x32xbf16, #tpu.memory_space<vmem>>, vector<16x32xbf16>
    %c16_331 = arith.constant 16 : index
    %c0_332 = arith.constant 0 : index
    %399 = vector.load %arg4[%c16_331, %c0_332] : memref<144x32xbf16, #tpu.memory_space<vmem>>, vector<16x32xbf16>
    %c32_333 = arith.constant 32 : index
    %c0_334 = arith.constant 0 : index
    %400 = vector.load %arg4[%c32_333, %c0_334] : memref<144x32xbf16, #tpu.memory_space<vmem>>, vector<16x32xbf16>
    %c48_335 = arith.constant 48 : index
    %c0_336 = arith.constant 0 : index
    %401 = vector.load %arg4[%c48_335, %c0_336] : memref<144x32xbf16, #tpu.memory_space<vmem>>, vector<16x32xbf16>
    %c64_337 = arith.constant 64 : index
    %c0_338 = arith.constant 0 : index
    %402 = vector.load %arg4[%c64_337, %c0_338] : memref<144x32xbf16, #tpu.memory_space<vmem>>, vector<16x32xbf16>
    %c80 = arith.constant 80 : index
    %c0_339 = arith.constant 0 : index
    %403 = vector.load %arg4[%c80, %c0_339] : memref<144x32xbf16, #tpu.memory_space<vmem>>, vector<16x32xbf16>
    %c96 = arith.constant 96 : index
    %c0_340 = arith.constant 0 : index
    %404 = vector.load %arg4[%c96, %c0_340] : memref<144x32xbf16, #tpu.memory_space<vmem>>, vector<16x32xbf16>
    %c112 = arith.constant 112 : index
    %c0_341 = arith.constant 0 : index
    %405 = vector.load %arg4[%c112, %c0_341] : memref<144x32xbf16, #tpu.memory_space<vmem>>, vector<16x32xbf16>
    %c128 = arith.constant 128 : index
    %c0_342 = arith.constant 0 : index
    %406 = vector.load %arg4[%c128, %c0_342] : memref<144x32xbf16, #tpu.memory_space<vmem>>, vector<16x32xbf16>
    %cst_343 = arith.constant 0.000000e+00 : f32
    %407 = vector.broadcast %cst_343 : f32 to vector<16x32xf32>
    %c0_344 = arith.constant 0 : index
    %c0_345 = arith.constant 0 : index
    %c0_346 = arith.constant 0 : index
    %408 = tpu.strided_load %arg15[%c0_344, %c0_345, %c0_346] {strides = array<i32: 4, 4, 1>} : memref<18x18x16xf32, #tpu.memory_space<vmem>>, vector<4x4x16xf32>
    %409 = vector.shape_cast %408 : vector<4x4x16xf32> to vector<16x16xf32>
    %410 = arith.truncf %409 : vector<16x16xf32> to vector<16x16xbf16>
    %cst_347 = arith.constant dense<0.000000e+00> : vector<16x32xf32>
    %411 = tpu.matmul %410, %398, %cst_347 {dimension_numbers = #tpu.dot_dimension_numbers<[1], [0], [0], [1], [0, 0, 1, 1], [], []>} : vector<16x16xbf16>, vector<16x32xbf16>, vector<16x32xf32> -> vector<16x32xf32>
    %412 = arith.addf %407, %411 : vector<16x32xf32>
    %c0_348 = arith.constant 0 : index
    %c1_349 = arith.constant 1 : index
    %c0_350 = arith.constant 0 : index
    %413 = tpu.strided_load %arg15[%c0_348, %c1_349, %c0_350] {strides = array<i32: 4, 4, 1>} : memref<18x18x16xf32, #tpu.memory_space<vmem>>, vector<4x4x16xf32>
    %414 = vector.shape_cast %413 : vector<4x4x16xf32> to vector<16x16xf32>
    %415 = arith.truncf %414 : vector<16x16xf32> to vector<16x16xbf16>
    %cst_351 = arith.constant dense<0.000000e+00> : vector<16x32xf32>
    %416 = tpu.matmul %415, %399, %cst_351 {dimension_numbers = #tpu.dot_dimension_numbers<[1], [0], [0], [1], [0, 0, 1, 1], [], []>} : vector<16x16xbf16>, vector<16x32xbf16>, vector<16x32xf32> -> vector<16x32xf32>
    %417 = arith.addf %412, %416 : vector<16x32xf32>
    %c0_352 = arith.constant 0 : index
    %c2_353 = arith.constant 2 : index
    %c0_354 = arith.constant 0 : index
    %418 = tpu.strided_load %arg15[%c0_352, %c2_353, %c0_354] {strides = array<i32: 4, 4, 1>} : memref<18x18x16xf32, #tpu.memory_space<vmem>>, vector<4x4x16xf32>
    %419 = vector.shape_cast %418 : vector<4x4x16xf32> to vector<16x16xf32>
    %420 = arith.truncf %419 : vector<16x16xf32> to vector<16x16xbf16>
    %cst_355 = arith.constant dense<0.000000e+00> : vector<16x32xf32>
    %421 = tpu.matmul %420, %400, %cst_355 {dimension_numbers = #tpu.dot_dimension_numbers<[1], [0], [0], [1], [0, 0, 1, 1], [], []>} : vector<16x16xbf16>, vector<16x32xbf16>, vector<16x32xf32> -> vector<16x32xf32>
    %422 = arith.addf %417, %421 : vector<16x32xf32>
    %c1_356 = arith.constant 1 : index
    %c0_357 = arith.constant 0 : index
    %c0_358 = arith.constant 0 : index
    %423 = tpu.strided_load %arg15[%c1_356, %c0_357, %c0_358] {strides = array<i32: 4, 4, 1>} : memref<18x18x16xf32, #tpu.memory_space<vmem>>, vector<4x4x16xf32>
    %424 = vector.shape_cast %423 : vector<4x4x16xf32> to vector<16x16xf32>
    %425 = arith.truncf %424 : vector<16x16xf32> to vector<16x16xbf16>
    %cst_359 = arith.constant dense<0.000000e+00> : vector<16x32xf32>
    %426 = tpu.matmul %425, %401, %cst_359 {dimension_numbers = #tpu.dot_dimension_numbers<[1], [0], [0], [1], [0, 0, 1, 1], [], []>} : vector<16x16xbf16>, vector<16x32xbf16>, vector<16x32xf32> -> vector<16x32xf32>
    %427 = arith.addf %422, %426 : vector<16x32xf32>
    %c1_360 = arith.constant 1 : index
    %c1_361 = arith.constant 1 : index
    %c0_362 = arith.constant 0 : index
    %428 = tpu.strided_load %arg15[%c1_360, %c1_361, %c0_362] {strides = array<i32: 4, 4, 1>} : memref<18x18x16xf32, #tpu.memory_space<vmem>>, vector<4x4x16xf32>
    %429 = vector.shape_cast %428 : vector<4x4x16xf32> to vector<16x16xf32>
    %430 = arith.truncf %429 : vector<16x16xf32> to vector<16x16xbf16>
    %cst_363 = arith.constant dense<0.000000e+00> : vector<16x32xf32>
    %431 = tpu.matmul %430, %402, %cst_363 {dimension_numbers = #tpu.dot_dimension_numbers<[1], [0], [0], [1], [0, 0, 1, 1], [], []>} : vector<16x16xbf16>, vector<16x32xbf16>, vector<16x32xf32> -> vector<16x32xf32>
    %432 = arith.addf %427, %431 : vector<16x32xf32>
    %c1_364 = arith.constant 1 : index
    %c2_365 = arith.constant 2 : index
    %c0_366 = arith.constant 0 : index
    %433 = tpu.strided_load %arg15[%c1_364, %c2_365, %c0_366] {strides = array<i32: 4, 4, 1>} : memref<18x18x16xf32, #tpu.memory_space<vmem>>, vector<4x4x16xf32>
    %434 = vector.shape_cast %433 : vector<4x4x16xf32> to vector<16x16xf32>
    %435 = arith.truncf %434 : vector<16x16xf32> to vector<16x16xbf16>
    %cst_367 = arith.constant dense<0.000000e+00> : vector<16x32xf32>
    %436 = tpu.matmul %435, %403, %cst_367 {dimension_numbers = #tpu.dot_dimension_numbers<[1], [0], [0], [1], [0, 0, 1, 1], [], []>} : vector<16x16xbf16>, vector<16x32xbf16>, vector<16x32xf32> -> vector<16x32xf32>
    %437 = arith.addf %432, %436 : vector<16x32xf32>
    %c2_368 = arith.constant 2 : index
    %c0_369 = arith.constant 0 : index
    %c0_370 = arith.constant 0 : index
    %438 = tpu.strided_load %arg15[%c2_368, %c0_369, %c0_370] {strides = array<i32: 4, 4, 1>} : memref<18x18x16xf32, #tpu.memory_space<vmem>>, vector<4x4x16xf32>
    %439 = vector.shape_cast %438 : vector<4x4x16xf32> to vector<16x16xf32>
    %440 = arith.truncf %439 : vector<16x16xf32> to vector<16x16xbf16>
    %cst_371 = arith.constant dense<0.000000e+00> : vector<16x32xf32>
    %441 = tpu.matmul %440, %404, %cst_371 {dimension_numbers = #tpu.dot_dimension_numbers<[1], [0], [0], [1], [0, 0, 1, 1], [], []>} : vector<16x16xbf16>, vector<16x32xbf16>, vector<16x32xf32> -> vector<16x32xf32>
    %442 = arith.addf %437, %441 : vector<16x32xf32>
    %c2_372 = arith.constant 2 : index
    %c1_373 = arith.constant 1 : index
    %c0_374 = arith.constant 0 : index
    %443 = tpu.strided_load %arg15[%c2_372, %c1_373, %c0_374] {strides = array<i32: 4, 4, 1>} : memref<18x18x16xf32, #tpu.memory_space<vmem>>, vector<4x4x16xf32>
    %444 = vector.shape_cast %443 : vector<4x4x16xf32> to vector<16x16xf32>
    %445 = arith.truncf %444 : vector<16x16xf32> to vector<16x16xbf16>
    %cst_375 = arith.constant dense<0.000000e+00> : vector<16x32xf32>
    %446 = tpu.matmul %445, %405, %cst_375 {dimension_numbers = #tpu.dot_dimension_numbers<[1], [0], [0], [1], [0, 0, 1, 1], [], []>} : vector<16x16xbf16>, vector<16x32xbf16>, vector<16x32xf32> -> vector<16x32xf32>
    %447 = arith.addf %442, %446 : vector<16x32xf32>
    %c2_376 = arith.constant 2 : index
    %c2_377 = arith.constant 2 : index
    %c0_378 = arith.constant 0 : index
    %448 = tpu.strided_load %arg15[%c2_376, %c2_377, %c0_378] {strides = array<i32: 4, 4, 1>} : memref<18x18x16xf32, #tpu.memory_space<vmem>>, vector<4x4x16xf32>
    %449 = vector.shape_cast %448 : vector<4x4x16xf32> to vector<16x16xf32>
    %450 = arith.truncf %449 : vector<16x16xf32> to vector<16x16xbf16>
    %cst_379 = arith.constant dense<0.000000e+00> : vector<16x32xf32>
    %451 = tpu.matmul %450, %406, %cst_379 {dimension_numbers = #tpu.dot_dimension_numbers<[1], [0], [0], [1], [0, 0, 1, 1], [], []>} : vector<16x16xbf16>, vector<16x32xbf16>, vector<16x32xf32> -> vector<16x32xf32>
    %452 = arith.addf %447, %451 : vector<16x32xf32>
    %c0_380 = arith.constant 0 : index
    %c2_381 = arith.constant 2 : index
    %c0_382 = arith.constant 0 : index
    %453 = tpu.strided_load %arg15[%c0_380, %c2_381, %c0_382] {strides = array<i32: 4, 4, 1>} : memref<18x18x16xf32, #tpu.memory_space<vmem>>, vector<4x4x16xf32>
    %454 = vector.shape_cast %453 : vector<4x4x16xf32> to vector<16x16xf32>
    %455 = arith.truncf %454 : vector<16x16xf32> to vector<16x16xbf16>
    %cst_383 = arith.constant dense<0.000000e+00> : vector<16x32xf32>
    %456 = tpu.matmul %455, %398, %cst_383 {dimension_numbers = #tpu.dot_dimension_numbers<[1], [0], [0], [1], [0, 0, 1, 1], [], []>} : vector<16x16xbf16>, vector<16x32xbf16>, vector<16x32xf32> -> vector<16x32xf32>
    %457 = arith.addf %407, %456 : vector<16x32xf32>
    %c0_384 = arith.constant 0 : index
    %c3_385 = arith.constant 3 : index
    %c0_386 = arith.constant 0 : index
    %458 = tpu.strided_load %arg15[%c0_384, %c3_385, %c0_386] {strides = array<i32: 4, 4, 1>} : memref<18x18x16xf32, #tpu.memory_space<vmem>>, vector<4x4x16xf32>
    %459 = vector.shape_cast %458 : vector<4x4x16xf32> to vector<16x16xf32>
    %460 = arith.truncf %459 : vector<16x16xf32> to vector<16x16xbf16>
    %cst_387 = arith.constant dense<0.000000e+00> : vector<16x32xf32>
    %461 = tpu.matmul %460, %399, %cst_387 {dimension_numbers = #tpu.dot_dimension_numbers<[1], [0], [0], [1], [0, 0, 1, 1], [], []>} : vector<16x16xbf16>, vector<16x32xbf16>, vector<16x32xf32> -> vector<16x32xf32>
    %462 = arith.addf %457, %461 : vector<16x32xf32>
    %c0_388 = arith.constant 0 : index
    %c4_389 = arith.constant 4 : index
    %c0_390 = arith.constant 0 : index
    %463 = tpu.strided_load %arg15[%c0_388, %c4_389, %c0_390] {strides = array<i32: 4, 4, 1>} : memref<18x18x16xf32, #tpu.memory_space<vmem>>, vector<4x4x16xf32>
    %464 = vector.shape_cast %463 : vector<4x4x16xf32> to vector<16x16xf32>
    %465 = arith.truncf %464 : vector<16x16xf32> to vector<16x16xbf16>
    %cst_391 = arith.constant dense<0.000000e+00> : vector<16x32xf32>
    %466 = tpu.matmul %465, %400, %cst_391 {dimension_numbers = #tpu.dot_dimension_numbers<[1], [0], [0], [1], [0, 0, 1, 1], [], []>} : vector<16x16xbf16>, vector<16x32xbf16>, vector<16x32xf32> -> vector<16x32xf32>
    %467 = arith.addf %462, %466 : vector<16x32xf32>
    %c1_392 = arith.constant 1 : index
    %c2_393 = arith.constant 2 : index
    %c0_394 = arith.constant 0 : index
    %468 = tpu.strided_load %arg15[%c1_392, %c2_393, %c0_394] {strides = array<i32: 4, 4, 1>} : memref<18x18x16xf32, #tpu.memory_space<vmem>>, vector<4x4x16xf32>
    %469 = vector.shape_cast %468 : vector<4x4x16xf32> to vector<16x16xf32>
    %470 = arith.truncf %469 : vector<16x16xf32> to vector<16x16xbf16>
    %cst_395 = arith.constant dense<0.000000e+00> : vector<16x32xf32>
    %471 = tpu.matmul %470, %401, %cst_395 {dimension_numbers = #tpu.dot_dimension_numbers<[1], [0], [0], [1], [0, 0, 1, 1], [], []>} : vector<16x16xbf16>, vector<16x32xbf16>, vector<16x32xf32> -> vector<16x32xf32>
    %472 = arith.addf %467, %471 : vector<16x32xf32>
    %c1_396 = arith.constant 1 : index
    %c3_397 = arith.constant 3 : index
    %c0_398 = arith.constant 0 : index
    %473 = tpu.strided_load %arg15[%c1_396, %c3_397, %c0_398] {strides = array<i32: 4, 4, 1>} : memref<18x18x16xf32, #tpu.memory_space<vmem>>, vector<4x4x16xf32>
    %474 = vector.shape_cast %473 : vector<4x4x16xf32> to vector<16x16xf32>
    %475 = arith.truncf %474 : vector<16x16xf32> to vector<16x16xbf16>
    %cst_399 = arith.constant dense<0.000000e+00> : vector<16x32xf32>
    %476 = tpu.matmul %475, %402, %cst_399 {dimension_numbers = #tpu.dot_dimension_numbers<[1], [0], [0], [1], [0, 0, 1, 1], [], []>} : vector<16x16xbf16>, vector<16x32xbf16>, vector<16x32xf32> -> vector<16x32xf32>
    %477 = arith.addf %472, %476 : vector<16x32xf32>
    %c1_400 = arith.constant 1 : index
    %c4_401 = arith.constant 4 : index
    %c0_402 = arith.constant 0 : index
    %478 = tpu.strided_load %arg15[%c1_400, %c4_401, %c0_402] {strides = array<i32: 4, 4, 1>} : memref<18x18x16xf32, #tpu.memory_space<vmem>>, vector<4x4x16xf32>
    %479 = vector.shape_cast %478 : vector<4x4x16xf32> to vector<16x16xf32>
    %480 = arith.truncf %479 : vector<16x16xf32> to vector<16x16xbf16>
    %cst_403 = arith.constant dense<0.000000e+00> : vector<16x32xf32>
    %481 = tpu.matmul %480, %403, %cst_403 {dimension_numbers = #tpu.dot_dimension_numbers<[1], [0], [0], [1], [0, 0, 1, 1], [], []>} : vector<16x16xbf16>, vector<16x32xbf16>, vector<16x32xf32> -> vector<16x32xf32>
    %482 = arith.addf %477, %481 : vector<16x32xf32>
    %c2_404 = arith.constant 2 : index
    %c2_405 = arith.constant 2 : index
    %c0_406 = arith.constant 0 : index
    %483 = tpu.strided_load %arg15[%c2_404, %c2_405, %c0_406] {strides = array<i32: 4, 4, 1>} : memref<18x18x16xf32, #tpu.memory_space<vmem>>, vector<4x4x16xf32>
    %484 = vector.shape_cast %483 : vector<4x4x16xf32> to vector<16x16xf32>
    %485 = arith.truncf %484 : vector<16x16xf32> to vector<16x16xbf16>
    %cst_407 = arith.constant dense<0.000000e+00> : vector<16x32xf32>
    %486 = tpu.matmul %485, %404, %cst_407 {dimension_numbers = #tpu.dot_dimension_numbers<[1], [0], [0], [1], [0, 0, 1, 1], [], []>} : vector<16x16xbf16>, vector<16x32xbf16>, vector<16x32xf32> -> vector<16x32xf32>
    %487 = arith.addf %482, %486 : vector<16x32xf32>
    %c2_408 = arith.constant 2 : index
    %c3_409 = arith.constant 3 : index
    %c0_410 = arith.constant 0 : index
    %488 = tpu.strided_load %arg15[%c2_408, %c3_409, %c0_410] {strides = array<i32: 4, 4, 1>} : memref<18x18x16xf32, #tpu.memory_space<vmem>>, vector<4x4x16xf32>
    %489 = vector.shape_cast %488 : vector<4x4x16xf32> to vector<16x16xf32>
    %490 = arith.truncf %489 : vector<16x16xf32> to vector<16x16xbf16>
    %cst_411 = arith.constant dense<0.000000e+00> : vector<16x32xf32>
    %491 = tpu.matmul %490, %405, %cst_411 {dimension_numbers = #tpu.dot_dimension_numbers<[1], [0], [0], [1], [0, 0, 1, 1], [], []>} : vector<16x16xbf16>, vector<16x32xbf16>, vector<16x32xf32> -> vector<16x32xf32>
    %492 = arith.addf %487, %491 : vector<16x32xf32>
    %c2_412 = arith.constant 2 : index
    %c4_413 = arith.constant 4 : index
    %c0_414 = arith.constant 0 : index
    %493 = tpu.strided_load %arg15[%c2_412, %c4_413, %c0_414] {strides = array<i32: 4, 4, 1>} : memref<18x18x16xf32, #tpu.memory_space<vmem>>, vector<4x4x16xf32>
    %494 = vector.shape_cast %493 : vector<4x4x16xf32> to vector<16x16xf32>
    %495 = arith.truncf %494 : vector<16x16xf32> to vector<16x16xbf16>
    %cst_415 = arith.constant dense<0.000000e+00> : vector<16x32xf32>
    %496 = tpu.matmul %495, %406, %cst_415 {dimension_numbers = #tpu.dot_dimension_numbers<[1], [0], [0], [1], [0, 0, 1, 1], [], []>} : vector<16x16xbf16>, vector<16x32xbf16>, vector<16x32xf32> -> vector<16x32xf32>
    %497 = arith.addf %492, %496 : vector<16x32xf32>
    %498 = arith.maximumf %452, %497 : vector<16x32xf32>
    %c2_416 = arith.constant 2 : index
    %c0_417 = arith.constant 0 : index
    %c0_418 = arith.constant 0 : index
    %499 = tpu.strided_load %arg15[%c2_416, %c0_417, %c0_418] {strides = array<i32: 4, 4, 1>} : memref<18x18x16xf32, #tpu.memory_space<vmem>>, vector<4x4x16xf32>
    %500 = vector.shape_cast %499 : vector<4x4x16xf32> to vector<16x16xf32>
    %501 = arith.truncf %500 : vector<16x16xf32> to vector<16x16xbf16>
    %cst_419 = arith.constant dense<0.000000e+00> : vector<16x32xf32>
    %502 = tpu.matmul %501, %398, %cst_419 {dimension_numbers = #tpu.dot_dimension_numbers<[1], [0], [0], [1], [0, 0, 1, 1], [], []>} : vector<16x16xbf16>, vector<16x32xbf16>, vector<16x32xf32> -> vector<16x32xf32>
    %503 = arith.addf %407, %502 : vector<16x32xf32>
    %c2_420 = arith.constant 2 : index
    %c1_421 = arith.constant 1 : index
    %c0_422 = arith.constant 0 : index
    %504 = tpu.strided_load %arg15[%c2_420, %c1_421, %c0_422] {strides = array<i32: 4, 4, 1>} : memref<18x18x16xf32, #tpu.memory_space<vmem>>, vector<4x4x16xf32>
    %505 = vector.shape_cast %504 : vector<4x4x16xf32> to vector<16x16xf32>
    %506 = arith.truncf %505 : vector<16x16xf32> to vector<16x16xbf16>
    %cst_423 = arith.constant dense<0.000000e+00> : vector<16x32xf32>
    %507 = tpu.matmul %506, %399, %cst_423 {dimension_numbers = #tpu.dot_dimension_numbers<[1], [0], [0], [1], [0, 0, 1, 1], [], []>} : vector<16x16xbf16>, vector<16x32xbf16>, vector<16x32xf32> -> vector<16x32xf32>
    %508 = arith.addf %503, %507 : vector<16x32xf32>
    %c2_424 = arith.constant 2 : index
    %c2_425 = arith.constant 2 : index
    %c0_426 = arith.constant 0 : index
    %509 = tpu.strided_load %arg15[%c2_424, %c2_425, %c0_426] {strides = array<i32: 4, 4, 1>} : memref<18x18x16xf32, #tpu.memory_space<vmem>>, vector<4x4x16xf32>
    %510 = vector.shape_cast %509 : vector<4x4x16xf32> to vector<16x16xf32>
    %511 = arith.truncf %510 : vector<16x16xf32> to vector<16x16xbf16>
    %cst_427 = arith.constant dense<0.000000e+00> : vector<16x32xf32>
    %512 = tpu.matmul %511, %400, %cst_427 {dimension_numbers = #tpu.dot_dimension_numbers<[1], [0], [0], [1], [0, 0, 1, 1], [], []>} : vector<16x16xbf16>, vector<16x32xbf16>, vector<16x32xf32> -> vector<16x32xf32>
    %513 = arith.addf %508, %512 : vector<16x32xf32>
    %c3_428 = arith.constant 3 : index
    %c0_429 = arith.constant 0 : index
    %c0_430 = arith.constant 0 : index
    %514 = tpu.strided_load %arg15[%c3_428, %c0_429, %c0_430] {strides = array<i32: 4, 4, 1>} : memref<18x18x16xf32, #tpu.memory_space<vmem>>, vector<4x4x16xf32>
    %515 = vector.shape_cast %514 : vector<4x4x16xf32> to vector<16x16xf32>
    %516 = arith.truncf %515 : vector<16x16xf32> to vector<16x16xbf16>
    %cst_431 = arith.constant dense<0.000000e+00> : vector<16x32xf32>
    %517 = tpu.matmul %516, %401, %cst_431 {dimension_numbers = #tpu.dot_dimension_numbers<[1], [0], [0], [1], [0, 0, 1, 1], [], []>} : vector<16x16xbf16>, vector<16x32xbf16>, vector<16x32xf32> -> vector<16x32xf32>
    %518 = arith.addf %513, %517 : vector<16x32xf32>
    %c3_432 = arith.constant 3 : index
    %c1_433 = arith.constant 1 : index
    %c0_434 = arith.constant 0 : index
    %519 = tpu.strided_load %arg15[%c3_432, %c1_433, %c0_434] {strides = array<i32: 4, 4, 1>} : memref<18x18x16xf32, #tpu.memory_space<vmem>>, vector<4x4x16xf32>
    %520 = vector.shape_cast %519 : vector<4x4x16xf32> to vector<16x16xf32>
    %521 = arith.truncf %520 : vector<16x16xf32> to vector<16x16xbf16>
    %cst_435 = arith.constant dense<0.000000e+00> : vector<16x32xf32>
    %522 = tpu.matmul %521, %402, %cst_435 {dimension_numbers = #tpu.dot_dimension_numbers<[1], [0], [0], [1], [0, 0, 1, 1], [], []>} : vector<16x16xbf16>, vector<16x32xbf16>, vector<16x32xf32> -> vector<16x32xf32>
    %523 = arith.addf %518, %522 : vector<16x32xf32>
    %c3_436 = arith.constant 3 : index
    %c2_437 = arith.constant 2 : index
    %c0_438 = arith.constant 0 : index
    %524 = tpu.strided_load %arg15[%c3_436, %c2_437, %c0_438] {strides = array<i32: 4, 4, 1>} : memref<18x18x16xf32, #tpu.memory_space<vmem>>, vector<4x4x16xf32>
    %525 = vector.shape_cast %524 : vector<4x4x16xf32> to vector<16x16xf32>
    %526 = arith.truncf %525 : vector<16x16xf32> to vector<16x16xbf16>
    %cst_439 = arith.constant dense<0.000000e+00> : vector<16x32xf32>
    %527 = tpu.matmul %526, %403, %cst_439 {dimension_numbers = #tpu.dot_dimension_numbers<[1], [0], [0], [1], [0, 0, 1, 1], [], []>} : vector<16x16xbf16>, vector<16x32xbf16>, vector<16x32xf32> -> vector<16x32xf32>
    %528 = arith.addf %523, %527 : vector<16x32xf32>
    %c4_440 = arith.constant 4 : index
    %c0_441 = arith.constant 0 : index
    %c0_442 = arith.constant 0 : index
    %529 = tpu.strided_load %arg15[%c4_440, %c0_441, %c0_442] {strides = array<i32: 4, 4, 1>} : memref<18x18x16xf32, #tpu.memory_space<vmem>>, vector<4x4x16xf32>
    %530 = vector.shape_cast %529 : vector<4x4x16xf32> to vector<16x16xf32>
    %531 = arith.truncf %530 : vector<16x16xf32> to vector<16x16xbf16>
    %cst_443 = arith.constant dense<0.000000e+00> : vector<16x32xf32>
    %532 = tpu.matmul %531, %404, %cst_443 {dimension_numbers = #tpu.dot_dimension_numbers<[1], [0], [0], [1], [0, 0, 1, 1], [], []>} : vector<16x16xbf16>, vector<16x32xbf16>, vector<16x32xf32> -> vector<16x32xf32>
    %533 = arith.addf %528, %532 : vector<16x32xf32>
    %c4_444 = arith.constant 4 : index
    %c1_445 = arith.constant 1 : index
    %c0_446 = arith.constant 0 : index
    %534 = tpu.strided_load %arg15[%c4_444, %c1_445, %c0_446] {strides = array<i32: 4, 4, 1>} : memref<18x18x16xf32, #tpu.memory_space<vmem>>, vector<4x4x16xf32>
    %535 = vector.shape_cast %534 : vector<4x4x16xf32> to vector<16x16xf32>
    %536 = arith.truncf %535 : vector<16x16xf32> to vector<16x16xbf16>
    %cst_447 = arith.constant dense<0.000000e+00> : vector<16x32xf32>
    %537 = tpu.matmul %536, %405, %cst_447 {dimension_numbers = #tpu.dot_dimension_numbers<[1], [0], [0], [1], [0, 0, 1, 1], [], []>} : vector<16x16xbf16>, vector<16x32xbf16>, vector<16x32xf32> -> vector<16x32xf32>
    %538 = arith.addf %533, %537 : vector<16x32xf32>
    %c4_448 = arith.constant 4 : index
    %c2_449 = arith.constant 2 : index
    %c0_450 = arith.constant 0 : index
    %539 = tpu.strided_load %arg15[%c4_448, %c2_449, %c0_450] {strides = array<i32: 4, 4, 1>} : memref<18x18x16xf32, #tpu.memory_space<vmem>>, vector<4x4x16xf32>
    %540 = vector.shape_cast %539 : vector<4x4x16xf32> to vector<16x16xf32>
    %541 = arith.truncf %540 : vector<16x16xf32> to vector<16x16xbf16>
    %cst_451 = arith.constant dense<0.000000e+00> : vector<16x32xf32>
    %542 = tpu.matmul %541, %406, %cst_451 {dimension_numbers = #tpu.dot_dimension_numbers<[1], [0], [0], [1], [0, 0, 1, 1], [], []>} : vector<16x16xbf16>, vector<16x32xbf16>, vector<16x32xf32> -> vector<16x32xf32>
    %543 = arith.addf %538, %542 : vector<16x32xf32>
    %544 = arith.maximumf %498, %543 : vector<16x32xf32>
    %c2_452 = arith.constant 2 : index
    %c2_453 = arith.constant 2 : index
    %c0_454 = arith.constant 0 : index
    %545 = tpu.strided_load %arg15[%c2_452, %c2_453, %c0_454] {strides = array<i32: 4, 4, 1>} : memref<18x18x16xf32, #tpu.memory_space<vmem>>, vector<4x4x16xf32>
    %546 = vector.shape_cast %545 : vector<4x4x16xf32> to vector<16x16xf32>
    %547 = arith.truncf %546 : vector<16x16xf32> to vector<16x16xbf16>
    %cst_455 = arith.constant dense<0.000000e+00> : vector<16x32xf32>
    %548 = tpu.matmul %547, %398, %cst_455 {dimension_numbers = #tpu.dot_dimension_numbers<[1], [0], [0], [1], [0, 0, 1, 1], [], []>} : vector<16x16xbf16>, vector<16x32xbf16>, vector<16x32xf32> -> vector<16x32xf32>
    %549 = arith.addf %407, %548 : vector<16x32xf32>
    %c2_456 = arith.constant 2 : index
    %c3_457 = arith.constant 3 : index
    %c0_458 = arith.constant 0 : index
    %550 = tpu.strided_load %arg15[%c2_456, %c3_457, %c0_458] {strides = array<i32: 4, 4, 1>} : memref<18x18x16xf32, #tpu.memory_space<vmem>>, vector<4x4x16xf32>
    %551 = vector.shape_cast %550 : vector<4x4x16xf32> to vector<16x16xf32>
    %552 = arith.truncf %551 : vector<16x16xf32> to vector<16x16xbf16>
    %cst_459 = arith.constant dense<0.000000e+00> : vector<16x32xf32>
    %553 = tpu.matmul %552, %399, %cst_459 {dimension_numbers = #tpu.dot_dimension_numbers<[1], [0], [0], [1], [0, 0, 1, 1], [], []>} : vector<16x16xbf16>, vector<16x32xbf16>, vector<16x32xf32> -> vector<16x32xf32>
    %554 = arith.addf %549, %553 : vector<16x32xf32>
    %c2_460 = arith.constant 2 : index
    %c4_461 = arith.constant 4 : index
    %c0_462 = arith.constant 0 : index
    %555 = tpu.strided_load %arg15[%c2_460, %c4_461, %c0_462] {strides = array<i32: 4, 4, 1>} : memref<18x18x16xf32, #tpu.memory_space<vmem>>, vector<4x4x16xf32>
    %556 = vector.shape_cast %555 : vector<4x4x16xf32> to vector<16x16xf32>
    %557 = arith.truncf %556 : vector<16x16xf32> to vector<16x16xbf16>
    %cst_463 = arith.constant dense<0.000000e+00> : vector<16x32xf32>
    %558 = tpu.matmul %557, %400, %cst_463 {dimension_numbers = #tpu.dot_dimension_numbers<[1], [0], [0], [1], [0, 0, 1, 1], [], []>} : vector<16x16xbf16>, vector<16x32xbf16>, vector<16x32xf32> -> vector<16x32xf32>
    %559 = arith.addf %554, %558 : vector<16x32xf32>
    %c3_464 = arith.constant 3 : index
    %c2_465 = arith.constant 2 : index
    %c0_466 = arith.constant 0 : index
    %560 = tpu.strided_load %arg15[%c3_464, %c2_465, %c0_466] {strides = array<i32: 4, 4, 1>} : memref<18x18x16xf32, #tpu.memory_space<vmem>>, vector<4x4x16xf32>
    %561 = vector.shape_cast %560 : vector<4x4x16xf32> to vector<16x16xf32>
    %562 = arith.truncf %561 : vector<16x16xf32> to vector<16x16xbf16>
    %cst_467 = arith.constant dense<0.000000e+00> : vector<16x32xf32>
    %563 = tpu.matmul %562, %401, %cst_467 {dimension_numbers = #tpu.dot_dimension_numbers<[1], [0], [0], [1], [0, 0, 1, 1], [], []>} : vector<16x16xbf16>, vector<16x32xbf16>, vector<16x32xf32> -> vector<16x32xf32>
    %564 = arith.addf %559, %563 : vector<16x32xf32>
    %c3_468 = arith.constant 3 : index
    %c3_469 = arith.constant 3 : index
    %c0_470 = arith.constant 0 : index
    %565 = tpu.strided_load %arg15[%c3_468, %c3_469, %c0_470] {strides = array<i32: 4, 4, 1>} : memref<18x18x16xf32, #tpu.memory_space<vmem>>, vector<4x4x16xf32>
    %566 = vector.shape_cast %565 : vector<4x4x16xf32> to vector<16x16xf32>
    %567 = arith.truncf %566 : vector<16x16xf32> to vector<16x16xbf16>
    %cst_471 = arith.constant dense<0.000000e+00> : vector<16x32xf32>
    %568 = tpu.matmul %567, %402, %cst_471 {dimension_numbers = #tpu.dot_dimension_numbers<[1], [0], [0], [1], [0, 0, 1, 1], [], []>} : vector<16x16xbf16>, vector<16x32xbf16>, vector<16x32xf32> -> vector<16x32xf32>
    %569 = arith.addf %564, %568 : vector<16x32xf32>
    %c3_472 = arith.constant 3 : index
    %c4_473 = arith.constant 4 : index
    %c0_474 = arith.constant 0 : index
    %570 = tpu.strided_load %arg15[%c3_472, %c4_473, %c0_474] {strides = array<i32: 4, 4, 1>} : memref<18x18x16xf32, #tpu.memory_space<vmem>>, vector<4x4x16xf32>
    %571 = vector.shape_cast %570 : vector<4x4x16xf32> to vector<16x16xf32>
    %572 = arith.truncf %571 : vector<16x16xf32> to vector<16x16xbf16>
    %cst_475 = arith.constant dense<0.000000e+00> : vector<16x32xf32>
    %573 = tpu.matmul %572, %403, %cst_475 {dimension_numbers = #tpu.dot_dimension_numbers<[1], [0], [0], [1], [0, 0, 1, 1], [], []>} : vector<16x16xbf16>, vector<16x32xbf16>, vector<16x32xf32> -> vector<16x32xf32>
    %574 = arith.addf %569, %573 : vector<16x32xf32>
    %c4_476 = arith.constant 4 : index
    %c2_477 = arith.constant 2 : index
    %c0_478 = arith.constant 0 : index
    %575 = tpu.strided_load %arg15[%c4_476, %c2_477, %c0_478] {strides = array<i32: 4, 4, 1>} : memref<18x18x16xf32, #tpu.memory_space<vmem>>, vector<4x4x16xf32>
    %576 = vector.shape_cast %575 : vector<4x4x16xf32> to vector<16x16xf32>
    %577 = arith.truncf %576 : vector<16x16xf32> to vector<16x16xbf16>
    %cst_479 = arith.constant dense<0.000000e+00> : vector<16x32xf32>
    %578 = tpu.matmul %577, %404, %cst_479 {dimension_numbers = #tpu.dot_dimension_numbers<[1], [0], [0], [1], [0, 0, 1, 1], [], []>} : vector<16x16xbf16>, vector<16x32xbf16>, vector<16x32xf32> -> vector<16x32xf32>
    %579 = arith.addf %574, %578 : vector<16x32xf32>
    %c4_480 = arith.constant 4 : index
    %c3_481 = arith.constant 3 : index
    %c0_482 = arith.constant 0 : index
    %580 = tpu.strided_load %arg15[%c4_480, %c3_481, %c0_482] {strides = array<i32: 4, 4, 1>} : memref<18x18x16xf32, #tpu.memory_space<vmem>>, vector<4x4x16xf32>
    %581 = vector.shape_cast %580 : vector<4x4x16xf32> to vector<16x16xf32>
    %582 = arith.truncf %581 : vector<16x16xf32> to vector<16x16xbf16>
    %cst_483 = arith.constant dense<0.000000e+00> : vector<16x32xf32>
    %583 = tpu.matmul %582, %405, %cst_483 {dimension_numbers = #tpu.dot_dimension_numbers<[1], [0], [0], [1], [0, 0, 1, 1], [], []>} : vector<16x16xbf16>, vector<16x32xbf16>, vector<16x32xf32> -> vector<16x32xf32>
    %584 = arith.addf %579, %583 : vector<16x32xf32>
    %c4_484 = arith.constant 4 : index
    %c4_485 = arith.constant 4 : index
    %c0_486 = arith.constant 0 : index
    %585 = tpu.strided_load %arg15[%c4_484, %c4_485, %c0_486] {strides = array<i32: 4, 4, 1>} : memref<18x18x16xf32, #tpu.memory_space<vmem>>, vector<4x4x16xf32>
    %586 = vector.shape_cast %585 : vector<4x4x16xf32> to vector<16x16xf32>
    %587 = arith.truncf %586 : vector<16x16xf32> to vector<16x16xbf16>
    %cst_487 = arith.constant dense<0.000000e+00> : vector<16x32xf32>
    %588 = tpu.matmul %587, %406, %cst_487 {dimension_numbers = #tpu.dot_dimension_numbers<[1], [0], [0], [1], [0, 0, 1, 1], [], []>} : vector<16x16xbf16>, vector<16x32xbf16>, vector<16x32xf32> -> vector<16x32xf32>
    %589 = arith.addf %584, %588 : vector<16x32xf32>
    %590 = arith.maximumf %544, %589 : vector<16x32xf32>
    %c0_488 = arith.constant 0 : index
    %c0_489 = arith.constant 0 : index
    %591 = vector.load %arg5[%c0_488, %c0_489] : memref<1x32xf32, #tpu.memory_space<vmem>>, vector<1x32xf32>
    %592 = vector.broadcast %591 : vector<1x32xf32> to vector<16x32xf32>
    %593 = arith.addf %590, %592 : vector<16x32xf32>
    %cst_490 = arith.constant 0.000000e+00 : f32
    %594 = vector.broadcast %cst_490 : f32 to vector<16x32xf32>
    %595 = arith.maximumf %593, %594 : vector<16x32xf32>
    %cst_491 = arith.constant 0.000000e+00 : f32
    %596 = vector.broadcast %cst_491 : f32 to vector<1x6x32xf32>
    %c0_492 = arith.constant 0 : index
    %c0_493 = arith.constant 0 : index
    %c0_494 = arith.constant 0 : index
    %597 = vector.load %arg16[%c0_492, %c0_493, %c0_494] : memref<6x6x32xf32, #tpu.memory_space<vmem>>, vector<1x6x32xf32>
    tpu.vector_store %arg16[%c0_492, %c0_493, %c0_494], %596 {strides = array<i32>} : memref<6x6x32xf32, #tpu.memory_space<vmem>>, vector<1x6x32xf32>,
    %c5_495 = arith.constant 5 : index
    %c0_496 = arith.constant 0 : index
    %c0_497 = arith.constant 0 : index
    %598 = vector.load %arg16[%c5_495, %c0_496, %c0_497] : memref<6x6x32xf32, #tpu.memory_space<vmem>>, vector<1x6x32xf32>
    tpu.vector_store %arg16[%c5_495, %c0_496, %c0_497], %596 {strides = array<i32>} : memref<6x6x32xf32, #tpu.memory_space<vmem>>, vector<1x6x32xf32>,
    %cst_498 = arith.constant 0.000000e+00 : f32
    %599 = vector.broadcast %cst_498 : f32 to vector<1x32xf32>
    %c1_499 = arith.constant 1 : index
    %c0_500 = arith.constant 0 : index
    %c0_501 = arith.constant 0 : index
    %600 = vector.load %arg16[%c1_499, %c0_500, %c0_501] : memref<6x6x32xf32, #tpu.memory_space<vmem>>, vector<1x1x32xf32>
    %601 = vector.shape_cast %600 : vector<1x1x32xf32> to vector<1x32xf32>
    %602 = vector.shape_cast %599 : vector<1x32xf32> to vector<1x1x32xf32>
    tpu.vector_store %arg16[%c1_499, %c0_500, %c0_501], %602 {strides = array<i32>} : memref<6x6x32xf32, #tpu.memory_space<vmem>>, vector<1x1x32xf32>,
    %603 = vector.extract_strided_slice %595 {offsets = [0, 0], sizes = [4, 32], strides = [1, 1]} : vector<16x32xf32> to vector<4x32xf32>
    %c1_502 = arith.constant 1 : index
    %c1_503 = arith.constant 1 : index
    %c0_504 = arith.constant 0 : index
    %604 = vector.load %arg16[%c1_502, %c1_503, %c0_504] : memref<6x6x32xf32, #tpu.memory_space<vmem>>, vector<1x4x32xf32>
    %605 = vector.shape_cast %604 : vector<1x4x32xf32> to vector<4x32xf32>
    %606 = vector.shape_cast %603 : vector<4x32xf32> to vector<1x4x32xf32>
    tpu.vector_store %arg16[%c1_502, %c1_503, %c0_504], %606 {strides = array<i32>} : memref<6x6x32xf32, #tpu.memory_space<vmem>>, vector<1x4x32xf32>,
    %c1_505 = arith.constant 1 : index
    %c5_506 = arith.constant 5 : index
    %c0_507 = arith.constant 0 : index
    %607 = vector.load %arg16[%c1_505, %c5_506, %c0_507] : memref<6x6x32xf32, #tpu.memory_space<vmem>>, vector<1x1x32xf32>
    %608 = vector.shape_cast %607 : vector<1x1x32xf32> to vector<1x32xf32>
    %609 = vector.shape_cast %599 : vector<1x32xf32> to vector<1x1x32xf32>
    tpu.vector_store %arg16[%c1_505, %c5_506, %c0_507], %609 {strides = array<i32>} : memref<6x6x32xf32, #tpu.memory_space<vmem>>, vector<1x1x32xf32>,
    %c2_508 = arith.constant 2 : index
    %c0_509 = arith.constant 0 : index
    %c0_510 = arith.constant 0 : index
    %610 = vector.load %arg16[%c2_508, %c0_509, %c0_510] : memref<6x6x32xf32, #tpu.memory_space<vmem>>, vector<1x1x32xf32>
    %611 = vector.shape_cast %610 : vector<1x1x32xf32> to vector<1x32xf32>
    %612 = vector.shape_cast %599 : vector<1x32xf32> to vector<1x1x32xf32>
    tpu.vector_store %arg16[%c2_508, %c0_509, %c0_510], %612 {strides = array<i32>} : memref<6x6x32xf32, #tpu.memory_space<vmem>>, vector<1x1x32xf32>,
    %613 = vector.extract_strided_slice %595 {offsets = [4, 0], sizes = [4, 32], strides = [1, 1]} : vector<16x32xf32> to vector<4x32xf32>
    %c2_511 = arith.constant 2 : index
    %c1_512 = arith.constant 1 : index
    %c0_513 = arith.constant 0 : index
    %614 = vector.load %arg16[%c2_511, %c1_512, %c0_513] : memref<6x6x32xf32, #tpu.memory_space<vmem>>, vector<1x4x32xf32>
    %615 = vector.shape_cast %614 : vector<1x4x32xf32> to vector<4x32xf32>
    %616 = vector.shape_cast %613 : vector<4x32xf32> to vector<1x4x32xf32>
    tpu.vector_store %arg16[%c2_511, %c1_512, %c0_513], %616 {strides = array<i32>} : memref<6x6x32xf32, #tpu.memory_space<vmem>>, vector<1x4x32xf32>,
    %c2_514 = arith.constant 2 : index
    %c5_515 = arith.constant 5 : index
    %c0_516 = arith.constant 0 : index
    %617 = vector.load %arg16[%c2_514, %c5_515, %c0_516] : memref<6x6x32xf32, #tpu.memory_space<vmem>>, vector<1x1x32xf32>
    %618 = vector.shape_cast %617 : vector<1x1x32xf32> to vector<1x32xf32>
    %619 = vector.shape_cast %599 : vector<1x32xf32> to vector<1x1x32xf32>
    tpu.vector_store %arg16[%c2_514, %c5_515, %c0_516], %619 {strides = array<i32>} : memref<6x6x32xf32, #tpu.memory_space<vmem>>, vector<1x1x32xf32>,
    %c3_517 = arith.constant 3 : index
    %c0_518 = arith.constant 0 : index
    %c0_519 = arith.constant 0 : index
    %620 = vector.load %arg16[%c3_517, %c0_518, %c0_519] : memref<6x6x32xf32, #tpu.memory_space<vmem>>, vector<1x1x32xf32>
    %621 = vector.shape_cast %620 : vector<1x1x32xf32> to vector<1x32xf32>
    %622 = vector.shape_cast %599 : vector<1x32xf32> to vector<1x1x32xf32>
    tpu.vector_store %arg16[%c3_517, %c0_518, %c0_519], %622 {strides = array<i32>} : memref<6x6x32xf32, #tpu.memory_space<vmem>>, vector<1x1x32xf32>,
    %623 = vector.extract_strided_slice %595 {offsets = [8, 0], sizes = [4, 32], strides = [1, 1]} : vector<16x32xf32> to vector<4x32xf32>
    %c3_520 = arith.constant 3 : index
    %c1_521 = arith.constant 1 : index
    %c0_522 = arith.constant 0 : index
    %624 = vector.load %arg16[%c3_520, %c1_521, %c0_522] : memref<6x6x32xf32, #tpu.memory_space<vmem>>, vector<1x4x32xf32>
    %625 = vector.shape_cast %624 : vector<1x4x32xf32> to vector<4x32xf32>
    %626 = vector.shape_cast %623 : vector<4x32xf32> to vector<1x4x32xf32>
    tpu.vector_store %arg16[%c3_520, %c1_521, %c0_522], %626 {strides = array<i32>} : memref<6x6x32xf32, #tpu.memory_space<vmem>>, vector<1x4x32xf32>,
    %c3_523 = arith.constant 3 : index
    %c5_524 = arith.constant 5 : index
    %c0_525 = arith.constant 0 : index
    %627 = vector.load %arg16[%c3_523, %c5_524, %c0_525] : memref<6x6x32xf32, #tpu.memory_space<vmem>>, vector<1x1x32xf32>
    %628 = vector.shape_cast %627 : vector<1x1x32xf32> to vector<1x32xf32>
    %629 = vector.shape_cast %599 : vector<1x32xf32> to vector<1x1x32xf32>
    tpu.vector_store %arg16[%c3_523, %c5_524, %c0_525], %629 {strides = array<i32>} : memref<6x6x32xf32, #tpu.memory_space<vmem>>, vector<1x1x32xf32>,
    %c4_526 = arith.constant 4 : index
    %c0_527 = arith.constant 0 : index
    %c0_528 = arith.constant 0 : index
    %630 = vector.load %arg16[%c4_526, %c0_527, %c0_528] : memref<6x6x32xf32, #tpu.memory_space<vmem>>, vector<1x1x32xf32>
    %631 = vector.shape_cast %630 : vector<1x1x32xf32> to vector<1x32xf32>
    %632 = vector.shape_cast %599 : vector<1x32xf32> to vector<1x1x32xf32>
    tpu.vector_store %arg16[%c4_526, %c0_527, %c0_528], %632 {strides = array<i32>} : memref<6x6x32xf32, #tpu.memory_space<vmem>>, vector<1x1x32xf32>,
    %633 = vector.extract_strided_slice %595 {offsets = [12, 0], sizes = [4, 32], strides = [1, 1]} : vector<16x32xf32> to vector<4x32xf32>
    %c4_529 = arith.constant 4 : index
    %c1_530 = arith.constant 1 : index
    %c0_531 = arith.constant 0 : index
    %634 = vector.load %arg16[%c4_529, %c1_530, %c0_531] : memref<6x6x32xf32, #tpu.memory_space<vmem>>, vector<1x4x32xf32>
    %635 = vector.shape_cast %634 : vector<1x4x32xf32> to vector<4x32xf32>
    %636 = vector.shape_cast %633 : vector<4x32xf32> to vector<1x4x32xf32>
    tpu.vector_store %arg16[%c4_529, %c1_530, %c0_531], %636 {strides = array<i32>} : memref<6x6x32xf32, #tpu.memory_space<vmem>>, vector<1x4x32xf32>,
    %c4_532 = arith.constant 4 : index
    %c5_533 = arith.constant 5 : index
    %c0_534 = arith.constant 0 : index
    %637 = vector.load %arg16[%c4_532, %c5_533, %c0_534] : memref<6x6x32xf32, #tpu.memory_space<vmem>>, vector<1x1x32xf32>
    %638 = vector.shape_cast %637 : vector<1x1x32xf32> to vector<1x32xf32>
    %639 = vector.shape_cast %599 : vector<1x32xf32> to vector<1x1x32xf32>
    tpu.vector_store %arg16[%c4_532, %c5_533, %c0_534], %639 {strides = array<i32>} : memref<6x6x32xf32, #tpu.memory_space<vmem>>, vector<1x1x32xf32>,
    %c0_535 = arith.constant 0 : index
    %c0_536 = arith.constant 0 : index
    %640 = vector.load %arg6[%c0_535, %c0_536] : memref<288x64xbf16, #tpu.memory_space<vmem>>, vector<32x64xbf16>
    %c32_537 = arith.constant 32 : index
    %c0_538 = arith.constant 0 : index
    %641 = vector.load %arg6[%c32_537, %c0_538] : memref<288x64xbf16, #tpu.memory_space<vmem>>, vector<32x64xbf16>
    %c64_539 = arith.constant 64 : index
    %c0_540 = arith.constant 0 : index
    %642 = vector.load %arg6[%c64_539, %c0_540] : memref<288x64xbf16, #tpu.memory_space<vmem>>, vector<32x64xbf16>
    %c96_541 = arith.constant 96 : index
    %c0_542 = arith.constant 0 : index
    %643 = vector.load %arg6[%c96_541, %c0_542] : memref<288x64xbf16, #tpu.memory_space<vmem>>, vector<32x64xbf16>
    %c128_543 = arith.constant 128 : index
    %c0_544 = arith.constant 0 : index
    %644 = vector.load %arg6[%c128_543, %c0_544] : memref<288x64xbf16, #tpu.memory_space<vmem>>, vector<32x64xbf16>
    %c160 = arith.constant 160 : index
    %c0_545 = arith.constant 0 : index
    %645 = vector.load %arg6[%c160, %c0_545] : memref<288x64xbf16, #tpu.memory_space<vmem>>, vector<32x64xbf16>
    %c192 = arith.constant 192 : index
    %c0_546 = arith.constant 0 : index
    %646 = vector.load %arg6[%c192, %c0_546] : memref<288x64xbf16, #tpu.memory_space<vmem>>, vector<32x64xbf16>
    %c224 = arith.constant 224 : index
    %c0_547 = arith.constant 0 : index
    %647 = vector.load %arg6[%c224, %c0_547] : memref<288x64xbf16, #tpu.memory_space<vmem>>, vector<32x64xbf16>
    %c256 = arith.constant 256 : index
    %c0_548 = arith.constant 0 : index
    %648 = vector.load %arg6[%c256, %c0_548] : memref<288x64xbf16, #tpu.memory_space<vmem>>, vector<32x64xbf16>
    %cst_549 = arith.constant 0.000000e+00 : f32
    %649 = vector.broadcast %cst_549 : f32 to vector<4x64xf32>
    %c0_550 = arith.constant 0 : index
    %c0_551 = arith.constant 0 : index
    %c0_552 = arith.constant 0 : index
    %650 = tpu.strided_load %arg16[%c0_550, %c0_551, %c0_552] {strides = array<i32: 2, 2, 1>} : memref<6x6x32xf32, #tpu.memory_space<vmem>>, vector<2x2x32xf32>
    %651 = vector.shape_cast %650 : vector<2x2x32xf32> to vector<4x32xf32>
    %652 = arith.truncf %651 : vector<4x32xf32> to vector<4x32xbf16>
    %cst_553 = arith.constant dense<0.000000e+00> : vector<4x64xf32>
    %653 = tpu.matmul %652, %640, %cst_553 {dimension_numbers = #tpu.dot_dimension_numbers<[1], [0], [0], [1], [0, 0, 1, 1], [], []>} : vector<4x32xbf16>, vector<32x64xbf16>, vector<4x64xf32> -> vector<4x64xf32>
    %654 = arith.addf %649, %653 : vector<4x64xf32>
    %c0_554 = arith.constant 0 : index
    %c1_555 = arith.constant 1 : index
    %c0_556 = arith.constant 0 : index
    %655 = tpu.strided_load %arg16[%c0_554, %c1_555, %c0_556] {strides = array<i32: 2, 2, 1>} : memref<6x6x32xf32, #tpu.memory_space<vmem>>, vector<2x2x32xf32>
    %656 = vector.shape_cast %655 : vector<2x2x32xf32> to vector<4x32xf32>
    %657 = arith.truncf %656 : vector<4x32xf32> to vector<4x32xbf16>
    %cst_557 = arith.constant dense<0.000000e+00> : vector<4x64xf32>
    %658 = tpu.matmul %657, %641, %cst_557 {dimension_numbers = #tpu.dot_dimension_numbers<[1], [0], [0], [1], [0, 0, 1, 1], [], []>} : vector<4x32xbf16>, vector<32x64xbf16>, vector<4x64xf32> -> vector<4x64xf32>
    %659 = arith.addf %654, %658 : vector<4x64xf32>
    %c0_558 = arith.constant 0 : index
    %c2_559 = arith.constant 2 : index
    %c0_560 = arith.constant 0 : index
    %660 = tpu.strided_load %arg16[%c0_558, %c2_559, %c0_560] {strides = array<i32: 2, 2, 1>} : memref<6x6x32xf32, #tpu.memory_space<vmem>>, vector<2x2x32xf32>
    %661 = vector.shape_cast %660 : vector<2x2x32xf32> to vector<4x32xf32>
    %662 = arith.truncf %661 : vector<4x32xf32> to vector<4x32xbf16>
    %cst_561 = arith.constant dense<0.000000e+00> : vector<4x64xf32>
    %663 = tpu.matmul %662, %642, %cst_561 {dimension_numbers = #tpu.dot_dimension_numbers<[1], [0], [0], [1], [0, 0, 1, 1], [], []>} : vector<4x32xbf16>, vector<32x64xbf16>, vector<4x64xf32> -> vector<4x64xf32>
    %664 = arith.addf %659, %663 : vector<4x64xf32>
    %c1_562 = arith.constant 1 : index
    %c0_563 = arith.constant 0 : index
    %c0_564 = arith.constant 0 : index
    %665 = tpu.strided_load %arg16[%c1_562, %c0_563, %c0_564] {strides = array<i32: 2, 2, 1>} : memref<6x6x32xf32, #tpu.memory_space<vmem>>, vector<2x2x32xf32>
    %666 = vector.shape_cast %665 : vector<2x2x32xf32> to vector<4x32xf32>
    %667 = arith.truncf %666 : vector<4x32xf32> to vector<4x32xbf16>
    %cst_565 = arith.constant dense<0.000000e+00> : vector<4x64xf32>
    %668 = tpu.matmul %667, %643, %cst_565 {dimension_numbers = #tpu.dot_dimension_numbers<[1], [0], [0], [1], [0, 0, 1, 1], [], []>} : vector<4x32xbf16>, vector<32x64xbf16>, vector<4x64xf32> -> vector<4x64xf32>
    %669 = arith.addf %664, %668 : vector<4x64xf32>
    %c1_566 = arith.constant 1 : index
    %c1_567 = arith.constant 1 : index
    %c0_568 = arith.constant 0 : index
    %670 = tpu.strided_load %arg16[%c1_566, %c1_567, %c0_568] {strides = array<i32: 2, 2, 1>} : memref<6x6x32xf32, #tpu.memory_space<vmem>>, vector<2x2x32xf32>
    %671 = vector.shape_cast %670 : vector<2x2x32xf32> to vector<4x32xf32>
    %672 = arith.truncf %671 : vector<4x32xf32> to vector<4x32xbf16>
    %cst_569 = arith.constant dense<0.000000e+00> : vector<4x64xf32>
    %673 = tpu.matmul %672, %644, %cst_569 {dimension_numbers = #tpu.dot_dimension_numbers<[1], [0], [0], [1], [0, 0, 1, 1], [], []>} : vector<4x32xbf16>, vector<32x64xbf16>, vector<4x64xf32> -> vector<4x64xf32>
    %674 = arith.addf %669, %673 : vector<4x64xf32>
    %c1_570 = arith.constant 1 : index
    %c2_571 = arith.constant 2 : index
    %c0_572 = arith.constant 0 : index
    %675 = tpu.strided_load %arg16[%c1_570, %c2_571, %c0_572] {strides = array<i32: 2, 2, 1>} : memref<6x6x32xf32, #tpu.memory_space<vmem>>, vector<2x2x32xf32>
    %676 = vector.shape_cast %675 : vector<2x2x32xf32> to vector<4x32xf32>
    %677 = arith.truncf %676 : vector<4x32xf32> to vector<4x32xbf16>
    %cst_573 = arith.constant dense<0.000000e+00> : vector<4x64xf32>
    %678 = tpu.matmul %677, %645, %cst_573 {dimension_numbers = #tpu.dot_dimension_numbers<[1], [0], [0], [1], [0, 0, 1, 1], [], []>} : vector<4x32xbf16>, vector<32x64xbf16>, vector<4x64xf32> -> vector<4x64xf32>
    %679 = arith.addf %674, %678 : vector<4x64xf32>
    %c2_574 = arith.constant 2 : index
    %c0_575 = arith.constant 0 : index
    %c0_576 = arith.constant 0 : index
    %680 = tpu.strided_load %arg16[%c2_574, %c0_575, %c0_576] {strides = array<i32: 2, 2, 1>} : memref<6x6x32xf32, #tpu.memory_space<vmem>>, vector<2x2x32xf32>
    %681 = vector.shape_cast %680 : vector<2x2x32xf32> to vector<4x32xf32>
    %682 = arith.truncf %681 : vector<4x32xf32> to vector<4x32xbf16>
    %cst_577 = arith.constant dense<0.000000e+00> : vector<4x64xf32>
    %683 = tpu.matmul %682, %646, %cst_577 {dimension_numbers = #tpu.dot_dimension_numbers<[1], [0], [0], [1], [0, 0, 1, 1], [], []>} : vector<4x32xbf16>, vector<32x64xbf16>, vector<4x64xf32> -> vector<4x64xf32>
    %684 = arith.addf %679, %683 : vector<4x64xf32>
    %c2_578 = arith.constant 2 : index
    %c1_579 = arith.constant 1 : index
    %c0_580 = arith.constant 0 : index
    %685 = tpu.strided_load %arg16[%c2_578, %c1_579, %c0_580] {strides = array<i32: 2, 2, 1>} : memref<6x6x32xf32, #tpu.memory_space<vmem>>, vector<2x2x32xf32>
    %686 = vector.shape_cast %685 : vector<2x2x32xf32> to vector<4x32xf32>
    %687 = arith.truncf %686 : vector<4x32xf32> to vector<4x32xbf16>
    %cst_581 = arith.constant dense<0.000000e+00> : vector<4x64xf32>
    %688 = tpu.matmul %687, %647, %cst_581 {dimension_numbers = #tpu.dot_dimension_numbers<[1], [0], [0], [1], [0, 0, 1, 1], [], []>} : vector<4x32xbf16>, vector<32x64xbf16>, vector<4x64xf32> -> vector<4x64xf32>
    %689 = arith.addf %684, %688 : vector<4x64xf32>
    %c2_582 = arith.constant 2 : index
    %c2_583 = arith.constant 2 : index
    %c0_584 = arith.constant 0 : index
    %690 = tpu.strided_load %arg16[%c2_582, %c2_583, %c0_584] {strides = array<i32: 2, 2, 1>} : memref<6x6x32xf32, #tpu.memory_space<vmem>>, vector<2x2x32xf32>
    %691 = vector.shape_cast %690 : vector<2x2x32xf32> to vector<4x32xf32>
    %692 = arith.truncf %691 : vector<4x32xf32> to vector<4x32xbf16>
    %cst_585 = arith.constant dense<0.000000e+00> : vector<4x64xf32>
    %693 = tpu.matmul %692, %648, %cst_585 {dimension_numbers = #tpu.dot_dimension_numbers<[1], [0], [0], [1], [0, 0, 1, 1], [], []>} : vector<4x32xbf16>, vector<32x64xbf16>, vector<4x64xf32> -> vector<4x64xf32>
    %694 = arith.addf %689, %693 : vector<4x64xf32>
    %c0_586 = arith.constant 0 : index
    %c1_587 = arith.constant 1 : index
    %c0_588 = arith.constant 0 : index
    %695 = tpu.strided_load %arg16[%c0_586, %c1_587, %c0_588] {strides = array<i32: 2, 2, 1>} : memref<6x6x32xf32, #tpu.memory_space<vmem>>, vector<2x2x32xf32>
    %696 = vector.shape_cast %695 : vector<2x2x32xf32> to vector<4x32xf32>
    %697 = arith.truncf %696 : vector<4x32xf32> to vector<4x32xbf16>
    %cst_589 = arith.constant dense<0.000000e+00> : vector<4x64xf32>
    %698 = tpu.matmul %697, %640, %cst_589 {dimension_numbers = #tpu.dot_dimension_numbers<[1], [0], [0], [1], [0, 0, 1, 1], [], []>} : vector<4x32xbf16>, vector<32x64xbf16>, vector<4x64xf32> -> vector<4x64xf32>
    %699 = arith.addf %649, %698 : vector<4x64xf32>
    %c0_590 = arith.constant 0 : index
    %c2_591 = arith.constant 2 : index
    %c0_592 = arith.constant 0 : index
    %700 = tpu.strided_load %arg16[%c0_590, %c2_591, %c0_592] {strides = array<i32: 2, 2, 1>} : memref<6x6x32xf32, #tpu.memory_space<vmem>>, vector<2x2x32xf32>
    %701 = vector.shape_cast %700 : vector<2x2x32xf32> to vector<4x32xf32>
    %702 = arith.truncf %701 : vector<4x32xf32> to vector<4x32xbf16>
    %cst_593 = arith.constant dense<0.000000e+00> : vector<4x64xf32>
    %703 = tpu.matmul %702, %641, %cst_593 {dimension_numbers = #tpu.dot_dimension_numbers<[1], [0], [0], [1], [0, 0, 1, 1], [], []>} : vector<4x32xbf16>, vector<32x64xbf16>, vector<4x64xf32> -> vector<4x64xf32>
    %704 = arith.addf %699, %703 : vector<4x64xf32>
    %c0_594 = arith.constant 0 : index
    %c3_595 = arith.constant 3 : index
    %c0_596 = arith.constant 0 : index
    %705 = tpu.strided_load %arg16[%c0_594, %c3_595, %c0_596] {strides = array<i32: 2, 2, 1>} : memref<6x6x32xf32, #tpu.memory_space<vmem>>, vector<2x2x32xf32>
    %706 = vector.shape_cast %705 : vector<2x2x32xf32> to vector<4x32xf32>
    %707 = arith.truncf %706 : vector<4x32xf32> to vector<4x32xbf16>
    %cst_597 = arith.constant dense<0.000000e+00> : vector<4x64xf32>
    %708 = tpu.matmul %707, %642, %cst_597 {dimension_numbers = #tpu.dot_dimension_numbers<[1], [0], [0], [1], [0, 0, 1, 1], [], []>} : vector<4x32xbf16>, vector<32x64xbf16>, vector<4x64xf32> -> vector<4x64xf32>
    %709 = arith.addf %704, %708 : vector<4x64xf32>
    %c1_598 = arith.constant 1 : index
    %c1_599 = arith.constant 1 : index
    %c0_600 = arith.constant 0 : index
    %710 = tpu.strided_load %arg16[%c1_598, %c1_599, %c0_600] {strides = array<i32: 2, 2, 1>} : memref<6x6x32xf32, #tpu.memory_space<vmem>>, vector<2x2x32xf32>
    %711 = vector.shape_cast %710 : vector<2x2x32xf32> to vector<4x32xf32>
    %712 = arith.truncf %711 : vector<4x32xf32> to vector<4x32xbf16>
    %cst_601 = arith.constant dense<0.000000e+00> : vector<4x64xf32>
    %713 = tpu.matmul %712, %643, %cst_601 {dimension_numbers = #tpu.dot_dimension_numbers<[1], [0], [0], [1], [0, 0, 1, 1], [], []>} : vector<4x32xbf16>, vector<32x64xbf16>, vector<4x64xf32> -> vector<4x64xf32>
    %714 = arith.addf %709, %713 : vector<4x64xf32>
    %c1_602 = arith.constant 1 : index
    %c2_603 = arith.constant 2 : index
    %c0_604 = arith.constant 0 : index
    %715 = tpu.strided_load %arg16[%c1_602, %c2_603, %c0_604] {strides = array<i32: 2, 2, 1>} : memref<6x6x32xf32, #tpu.memory_space<vmem>>, vector<2x2x32xf32>
    %716 = vector.shape_cast %715 : vector<2x2x32xf32> to vector<4x32xf32>
    %717 = arith.truncf %716 : vector<4x32xf32> to vector<4x32xbf16>
    %cst_605 = arith.constant dense<0.000000e+00> : vector<4x64xf32>
    %718 = tpu.matmul %717, %644, %cst_605 {dimension_numbers = #tpu.dot_dimension_numbers<[1], [0], [0], [1], [0, 0, 1, 1], [], []>} : vector<4x32xbf16>, vector<32x64xbf16>, vector<4x64xf32> -> vector<4x64xf32>
    %719 = arith.addf %714, %718 : vector<4x64xf32>
    %c1_606 = arith.constant 1 : index
    %c3_607 = arith.constant 3 : index
    %c0_608 = arith.constant 0 : index
    %720 = tpu.strided_load %arg16[%c1_606, %c3_607, %c0_608] {strides = array<i32: 2, 2, 1>} : memref<6x6x32xf32, #tpu.memory_space<vmem>>, vector<2x2x32xf32>
    %721 = vector.shape_cast %720 : vector<2x2x32xf32> to vector<4x32xf32>
    %722 = arith.truncf %721 : vector<4x32xf32> to vector<4x32xbf16>
    %cst_609 = arith.constant dense<0.000000e+00> : vector<4x64xf32>
    %723 = tpu.matmul %722, %645, %cst_609 {dimension_numbers = #tpu.dot_dimension_numbers<[1], [0], [0], [1], [0, 0, 1, 1], [], []>} : vector<4x32xbf16>, vector<32x64xbf16>, vector<4x64xf32> -> vector<4x64xf32>
    %724 = arith.addf %719, %723 : vector<4x64xf32>
    %c2_610 = arith.constant 2 : index
    %c1_611 = arith.constant 1 : index
    %c0_612 = arith.constant 0 : index
    %725 = tpu.strided_load %arg16[%c2_610, %c1_611, %c0_612] {strides = array<i32: 2, 2, 1>} : memref<6x6x32xf32, #tpu.memory_space<vmem>>, vector<2x2x32xf32>
    %726 = vector.shape_cast %725 : vector<2x2x32xf32> to vector<4x32xf32>
    %727 = arith.truncf %726 : vector<4x32xf32> to vector<4x32xbf16>
    %cst_613 = arith.constant dense<0.000000e+00> : vector<4x64xf32>
    %728 = tpu.matmul %727, %646, %cst_613 {dimension_numbers = #tpu.dot_dimension_numbers<[1], [0], [0], [1], [0, 0, 1, 1], [], []>} : vector<4x32xbf16>, vector<32x64xbf16>, vector<4x64xf32> -> vector<4x64xf32>
    %729 = arith.addf %724, %728 : vector<4x64xf32>
    %c2_614 = arith.constant 2 : index
    %c2_615 = arith.constant 2 : index
    %c0_616 = arith.constant 0 : index
    %730 = tpu.strided_load %arg16[%c2_614, %c2_615, %c0_616] {strides = array<i32: 2, 2, 1>} : memref<6x6x32xf32, #tpu.memory_space<vmem>>, vector<2x2x32xf32>
    %731 = vector.shape_cast %730 : vector<2x2x32xf32> to vector<4x32xf32>
    %732 = arith.truncf %731 : vector<4x32xf32> to vector<4x32xbf16>
    %cst_617 = arith.constant dense<0.000000e+00> : vector<4x64xf32>
    %733 = tpu.matmul %732, %647, %cst_617 {dimension_numbers = #tpu.dot_dimension_numbers<[1], [0], [0], [1], [0, 0, 1, 1], [], []>} : vector<4x32xbf16>, vector<32x64xbf16>, vector<4x64xf32> -> vector<4x64xf32>
    %734 = arith.addf %729, %733 : vector<4x64xf32>
    %c2_618 = arith.constant 2 : index
    %c3_619 = arith.constant 3 : index
    %c0_620 = arith.constant 0 : index
    %735 = tpu.strided_load %arg16[%c2_618, %c3_619, %c0_620] {strides = array<i32: 2, 2, 1>} : memref<6x6x32xf32, #tpu.memory_space<vmem>>, vector<2x2x32xf32>
    %736 = vector.shape_cast %735 : vector<2x2x32xf32> to vector<4x32xf32>
    %737 = arith.truncf %736 : vector<4x32xf32> to vector<4x32xbf16>
    %cst_621 = arith.constant dense<0.000000e+00> : vector<4x64xf32>
    %738 = tpu.matmul %737, %648, %cst_621 {dimension_numbers = #tpu.dot_dimension_numbers<[1], [0], [0], [1], [0, 0, 1, 1], [], []>} : vector<4x32xbf16>, vector<32x64xbf16>, vector<4x64xf32> -> vector<4x64xf32>
    %739 = arith.addf %734, %738 : vector<4x64xf32>
    %740 = arith.maximumf %694, %739 : vector<4x64xf32>
    %c1_622 = arith.constant 1 : index
    %c0_623 = arith.constant 0 : index
    %c0_624 = arith.constant 0 : index
    %741 = tpu.strided_load %arg16[%c1_622, %c0_623, %c0_624] {strides = array<i32: 2, 2, 1>} : memref<6x6x32xf32, #tpu.memory_space<vmem>>, vector<2x2x32xf32>
    %742 = vector.shape_cast %741 : vector<2x2x32xf32> to vector<4x32xf32>
    %743 = arith.truncf %742 : vector<4x32xf32> to vector<4x32xbf16>
    %cst_625 = arith.constant dense<0.000000e+00> : vector<4x64xf32>
    %744 = tpu.matmul %743, %640, %cst_625 {dimension_numbers = #tpu.dot_dimension_numbers<[1], [0], [0], [1], [0, 0, 1, 1], [], []>} : vector<4x32xbf16>, vector<32x64xbf16>, vector<4x64xf32> -> vector<4x64xf32>
    %745 = arith.addf %649, %744 : vector<4x64xf32>
    %c1_626 = arith.constant 1 : index
    %c1_627 = arith.constant 1 : index
    %c0_628 = arith.constant 0 : index
    %746 = tpu.strided_load %arg16[%c1_626, %c1_627, %c0_628] {strides = array<i32: 2, 2, 1>} : memref<6x6x32xf32, #tpu.memory_space<vmem>>, vector<2x2x32xf32>
    %747 = vector.shape_cast %746 : vector<2x2x32xf32> to vector<4x32xf32>
    %748 = arith.truncf %747 : vector<4x32xf32> to vector<4x32xbf16>
    %cst_629 = arith.constant dense<0.000000e+00> : vector<4x64xf32>
    %749 = tpu.matmul %748, %641, %cst_629 {dimension_numbers = #tpu.dot_dimension_numbers<[1], [0], [0], [1], [0, 0, 1, 1], [], []>} : vector<4x32xbf16>, vector<32x64xbf16>, vector<4x64xf32> -> vector<4x64xf32>
    %750 = arith.addf %745, %749 : vector<4x64xf32>
    %c1_630 = arith.constant 1 : index
    %c2_631 = arith.constant 2 : index
    %c0_632 = arith.constant 0 : index
    %751 = tpu.strided_load %arg16[%c1_630, %c2_631, %c0_632] {strides = array<i32: 2, 2, 1>} : memref<6x6x32xf32, #tpu.memory_space<vmem>>, vector<2x2x32xf32>
    %752 = vector.shape_cast %751 : vector<2x2x32xf32> to vector<4x32xf32>
    %753 = arith.truncf %752 : vector<4x32xf32> to vector<4x32xbf16>
    %cst_633 = arith.constant dense<0.000000e+00> : vector<4x64xf32>
    %754 = tpu.matmul %753, %642, %cst_633 {dimension_numbers = #tpu.dot_dimension_numbers<[1], [0], [0], [1], [0, 0, 1, 1], [], []>} : vector<4x32xbf16>, vector<32x64xbf16>, vector<4x64xf32> -> vector<4x64xf32>
    %755 = arith.addf %750, %754 : vector<4x64xf32>
    %c2_634 = arith.constant 2 : index
    %c0_635 = arith.constant 0 : index
    %c0_636 = arith.constant 0 : index
    %756 = tpu.strided_load %arg16[%c2_634, %c0_635, %c0_636] {strides = array<i32: 2, 2, 1>} : memref<6x6x32xf32, #tpu.memory_space<vmem>>, vector<2x2x32xf32>
    %757 = vector.shape_cast %756 : vector<2x2x32xf32> to vector<4x32xf32>
    %758 = arith.truncf %757 : vector<4x32xf32> to vector<4x32xbf16>
    %cst_637 = arith.constant dense<0.000000e+00> : vector<4x64xf32>
    %759 = tpu.matmul %758, %643, %cst_637 {dimension_numbers = #tpu.dot_dimension_numbers<[1], [0], [0], [1], [0, 0, 1, 1], [], []>} : vector<4x32xbf16>, vector<32x64xbf16>, vector<4x64xf32> -> vector<4x64xf32>
    %760 = arith.addf %755, %759 : vector<4x64xf32>
    %c2_638 = arith.constant 2 : index
    %c1_639 = arith.constant 1 : index
    %c0_640 = arith.constant 0 : index
    %761 = tpu.strided_load %arg16[%c2_638, %c1_639, %c0_640] {strides = array<i32: 2, 2, 1>} : memref<6x6x32xf32, #tpu.memory_space<vmem>>, vector<2x2x32xf32>
    %762 = vector.shape_cast %761 : vector<2x2x32xf32> to vector<4x32xf32>
    %763 = arith.truncf %762 : vector<4x32xf32> to vector<4x32xbf16>
    %cst_641 = arith.constant dense<0.000000e+00> : vector<4x64xf32>
    %764 = tpu.matmul %763, %644, %cst_641 {dimension_numbers = #tpu.dot_dimension_numbers<[1], [0], [0], [1], [0, 0, 1, 1], [], []>} : vector<4x32xbf16>, vector<32x64xbf16>, vector<4x64xf32> -> vector<4x64xf32>
    %765 = arith.addf %760, %764 : vector<4x64xf32>
    %c2_642 = arith.constant 2 : index
    %c2_643 = arith.constant 2 : index
    %c0_644 = arith.constant 0 : index
    %766 = tpu.strided_load %arg16[%c2_642, %c2_643, %c0_644] {strides = array<i32: 2, 2, 1>} : memref<6x6x32xf32, #tpu.memory_space<vmem>>, vector<2x2x32xf32>
    %767 = vector.shape_cast %766 : vector<2x2x32xf32> to vector<4x32xf32>
    %768 = arith.truncf %767 : vector<4x32xf32> to vector<4x32xbf16>
    %cst_645 = arith.constant dense<0.000000e+00> : vector<4x64xf32>
    %769 = tpu.matmul %768, %645, %cst_645 {dimension_numbers = #tpu.dot_dimension_numbers<[1], [0], [0], [1], [0, 0, 1, 1], [], []>} : vector<4x32xbf16>, vector<32x64xbf16>, vector<4x64xf32> -> vector<4x64xf32>
    %770 = arith.addf %765, %769 : vector<4x64xf32>
    %c3_646 = arith.constant 3 : index
    %c0_647 = arith.constant 0 : index
    %c0_648 = arith.constant 0 : index
    %771 = tpu.strided_load %arg16[%c3_646, %c0_647, %c0_648] {strides = array<i32: 2, 2, 1>} : memref<6x6x32xf32, #tpu.memory_space<vmem>>, vector<2x2x32xf32>
    %772 = vector.shape_cast %771 : vector<2x2x32xf32> to vector<4x32xf32>
    %773 = arith.truncf %772 : vector<4x32xf32> to vector<4x32xbf16>
    %cst_649 = arith.constant dense<0.000000e+00> : vector<4x64xf32>
    %774 = tpu.matmul %773, %646, %cst_649 {dimension_numbers = #tpu.dot_dimension_numbers<[1], [0], [0], [1], [0, 0, 1, 1], [], []>} : vector<4x32xbf16>, vector<32x64xbf16>, vector<4x64xf32> -> vector<4x64xf32>
    %775 = arith.addf %770, %774 : vector<4x64xf32>
    %c3_650 = arith.constant 3 : index
    %c1_651 = arith.constant 1 : index
    %c0_652 = arith.constant 0 : index
    %776 = tpu.strided_load %arg16[%c3_650, %c1_651, %c0_652] {strides = array<i32: 2, 2, 1>} : memref<6x6x32xf32, #tpu.memory_space<vmem>>, vector<2x2x32xf32>
    %777 = vector.shape_cast %776 : vector<2x2x32xf32> to vector<4x32xf32>
    %778 = arith.truncf %777 : vector<4x32xf32> to vector<4x32xbf16>
    %cst_653 = arith.constant dense<0.000000e+00> : vector<4x64xf32>
    %779 = tpu.matmul %778, %647, %cst_653 {dimension_numbers = #tpu.dot_dimension_numbers<[1], [0], [0], [1], [0, 0, 1, 1], [], []>} : vector<4x32xbf16>, vector<32x64xbf16>, vector<4x64xf32> -> vector<4x64xf32>
    %780 = arith.addf %775, %779 : vector<4x64xf32>
    %c3_654 = arith.constant 3 : index
    %c2_655 = arith.constant 2 : index
    %c0_656 = arith.constant 0 : index
    %781 = tpu.strided_load %arg16[%c3_654, %c2_655, %c0_656] {strides = array<i32: 2, 2, 1>} : memref<6x6x32xf32, #tpu.memory_space<vmem>>, vector<2x2x32xf32>
    %782 = vector.shape_cast %781 : vector<2x2x32xf32> to vector<4x32xf32>
    %783 = arith.truncf %782 : vector<4x32xf32> to vector<4x32xbf16>
    %cst_657 = arith.constant dense<0.000000e+00> : vector<4x64xf32>
    %784 = tpu.matmul %783, %648, %cst_657 {dimension_numbers = #tpu.dot_dimension_numbers<[1], [0], [0], [1], [0, 0, 1, 1], [], []>} : vector<4x32xbf16>, vector<32x64xbf16>, vector<4x64xf32> -> vector<4x64xf32>
    %785 = arith.addf %780, %784 : vector<4x64xf32>
    %786 = arith.maximumf %740, %785 : vector<4x64xf32>
    %c1_658 = arith.constant 1 : index
    %c1_659 = arith.constant 1 : index
    %c0_660 = arith.constant 0 : index
    %787 = tpu.strided_load %arg16[%c1_658, %c1_659, %c0_660] {strides = array<i32: 2, 2, 1>} : memref<6x6x32xf32, #tpu.memory_space<vmem>>, vector<2x2x32xf32>
    %788 = vector.shape_cast %787 : vector<2x2x32xf32> to vector<4x32xf32>
    %789 = arith.truncf %788 : vector<4x32xf32> to vector<4x32xbf16>
    %cst_661 = arith.constant dense<0.000000e+00> : vector<4x64xf32>
    %790 = tpu.matmul %789, %640, %cst_661 {dimension_numbers = #tpu.dot_dimension_numbers<[1], [0], [0], [1], [0, 0, 1, 1], [], []>} : vector<4x32xbf16>, vector<32x64xbf16>, vector<4x64xf32> -> vector<4x64xf32>
    %791 = arith.addf %649, %790 : vector<4x64xf32>
    %c1_662 = arith.constant 1 : index
    %c2_663 = arith.constant 2 : index
    %c0_664 = arith.constant 0 : index
    %792 = tpu.strided_load %arg16[%c1_662, %c2_663, %c0_664] {strides = array<i32: 2, 2, 1>} : memref<6x6x32xf32, #tpu.memory_space<vmem>>, vector<2x2x32xf32>
    %793 = vector.shape_cast %792 : vector<2x2x32xf32> to vector<4x32xf32>
    %794 = arith.truncf %793 : vector<4x32xf32> to vector<4x32xbf16>
    %cst_665 = arith.constant dense<0.000000e+00> : vector<4x64xf32>
    %795 = tpu.matmul %794, %641, %cst_665 {dimension_numbers = #tpu.dot_dimension_numbers<[1], [0], [0], [1], [0, 0, 1, 1], [], []>} : vector<4x32xbf16>, vector<32x64xbf16>, vector<4x64xf32> -> vector<4x64xf32>
    %796 = arith.addf %791, %795 : vector<4x64xf32>
    %c1_666 = arith.constant 1 : index
    %c3_667 = arith.constant 3 : index
    %c0_668 = arith.constant 0 : index
    %797 = tpu.strided_load %arg16[%c1_666, %c3_667, %c0_668] {strides = array<i32: 2, 2, 1>} : memref<6x6x32xf32, #tpu.memory_space<vmem>>, vector<2x2x32xf32>
    %798 = vector.shape_cast %797 : vector<2x2x32xf32> to vector<4x32xf32>
    %799 = arith.truncf %798 : vector<4x32xf32> to vector<4x32xbf16>
    %cst_669 = arith.constant dense<0.000000e+00> : vector<4x64xf32>
    %800 = tpu.matmul %799, %642, %cst_669 {dimension_numbers = #tpu.dot_dimension_numbers<[1], [0], [0], [1], [0, 0, 1, 1], [], []>} : vector<4x32xbf16>, vector<32x64xbf16>, vector<4x64xf32> -> vector<4x64xf32>
    %801 = arith.addf %796, %800 : vector<4x64xf32>
    %c2_670 = arith.constant 2 : index
    %c1_671 = arith.constant 1 : index
    %c0_672 = arith.constant 0 : index
    %802 = tpu.strided_load %arg16[%c2_670, %c1_671, %c0_672] {strides = array<i32: 2, 2, 1>} : memref<6x6x32xf32, #tpu.memory_space<vmem>>, vector<2x2x32xf32>
    %803 = vector.shape_cast %802 : vector<2x2x32xf32> to vector<4x32xf32>
    %804 = arith.truncf %803 : vector<4x32xf32> to vector<4x32xbf16>
    %cst_673 = arith.constant dense<0.000000e+00> : vector<4x64xf32>
    %805 = tpu.matmul %804, %643, %cst_673 {dimension_numbers = #tpu.dot_dimension_numbers<[1], [0], [0], [1], [0, 0, 1, 1], [], []>} : vector<4x32xbf16>, vector<32x64xbf16>, vector<4x64xf32> -> vector<4x64xf32>
    %806 = arith.addf %801, %805 : vector<4x64xf32>
    %c2_674 = arith.constant 2 : index
    %c2_675 = arith.constant 2 : index
    %c0_676 = arith.constant 0 : index
    %807 = tpu.strided_load %arg16[%c2_674, %c2_675, %c0_676] {strides = array<i32: 2, 2, 1>} : memref<6x6x32xf32, #tpu.memory_space<vmem>>, vector<2x2x32xf32>
    %808 = vector.shape_cast %807 : vector<2x2x32xf32> to vector<4x32xf32>
    %809 = arith.truncf %808 : vector<4x32xf32> to vector<4x32xbf16>
    %cst_677 = arith.constant dense<0.000000e+00> : vector<4x64xf32>
    %810 = tpu.matmul %809, %644, %cst_677 {dimension_numbers = #tpu.dot_dimension_numbers<[1], [0], [0], [1], [0, 0, 1, 1], [], []>} : vector<4x32xbf16>, vector<32x64xbf16>, vector<4x64xf32> -> vector<4x64xf32>
    %811 = arith.addf %806, %810 : vector<4x64xf32>
    %c2_678 = arith.constant 2 : index
    %c3_679 = arith.constant 3 : index
    %c0_680 = arith.constant 0 : index
    %812 = tpu.strided_load %arg16[%c2_678, %c3_679, %c0_680] {strides = array<i32: 2, 2, 1>} : memref<6x6x32xf32, #tpu.memory_space<vmem>>, vector<2x2x32xf32>
    %813 = vector.shape_cast %812 : vector<2x2x32xf32> to vector<4x32xf32>
    %814 = arith.truncf %813 : vector<4x32xf32> to vector<4x32xbf16>
    %cst_681 = arith.constant dense<0.000000e+00> : vector<4x64xf32>
    %815 = tpu.matmul %814, %645, %cst_681 {dimension_numbers = #tpu.dot_dimension_numbers<[1], [0], [0], [1], [0, 0, 1, 1], [], []>} : vector<4x32xbf16>, vector<32x64xbf16>, vector<4x64xf32> -> vector<4x64xf32>
    %816 = arith.addf %811, %815 : vector<4x64xf32>
    %c3_682 = arith.constant 3 : index
    %c1_683 = arith.constant 1 : index
    %c0_684 = arith.constant 0 : index
    %817 = tpu.strided_load %arg16[%c3_682, %c1_683, %c0_684] {strides = array<i32: 2, 2, 1>} : memref<6x6x32xf32, #tpu.memory_space<vmem>>, vector<2x2x32xf32>
    %818 = vector.shape_cast %817 : vector<2x2x32xf32> to vector<4x32xf32>
    %819 = arith.truncf %818 : vector<4x32xf32> to vector<4x32xbf16>
    %cst_685 = arith.constant dense<0.000000e+00> : vector<4x64xf32>
    %820 = tpu.matmul %819, %646, %cst_685 {dimension_numbers = #tpu.dot_dimension_numbers<[1], [0], [0], [1], [0, 0, 1, 1], [], []>} : vector<4x32xbf16>, vector<32x64xbf16>, vector<4x64xf32> -> vector<4x64xf32>
    %821 = arith.addf %816, %820 : vector<4x64xf32>
    %c3_686 = arith.constant 3 : index
    %c2_687 = arith.constant 2 : index
    %c0_688 = arith.constant 0 : index
    %822 = tpu.strided_load %arg16[%c3_686, %c2_687, %c0_688] {strides = array<i32: 2, 2, 1>} : memref<6x6x32xf32, #tpu.memory_space<vmem>>, vector<2x2x32xf32>
    %823 = vector.shape_cast %822 : vector<2x2x32xf32> to vector<4x32xf32>
    %824 = arith.truncf %823 : vector<4x32xf32> to vector<4x32xbf16>
    %cst_689 = arith.constant dense<0.000000e+00> : vector<4x64xf32>
    %825 = tpu.matmul %824, %647, %cst_689 {dimension_numbers = #tpu.dot_dimension_numbers<[1], [0], [0], [1], [0, 0, 1, 1], [], []>} : vector<4x32xbf16>, vector<32x64xbf16>, vector<4x64xf32> -> vector<4x64xf32>
    %826 = arith.addf %821, %825 : vector<4x64xf32>
    %c3_690 = arith.constant 3 : index
    %c3_691 = arith.constant 3 : index
    %c0_692 = arith.constant 0 : index
    %827 = tpu.strided_load %arg16[%c3_690, %c3_691, %c0_692] {strides = array<i32: 2, 2, 1>} : memref<6x6x32xf32, #tpu.memory_space<vmem>>, vector<2x2x32xf32>
    %828 = vector.shape_cast %827 : vector<2x2x32xf32> to vector<4x32xf32>
    %829 = arith.truncf %828 : vector<4x32xf32> to vector<4x32xbf16>
    %cst_693 = arith.constant dense<0.000000e+00> : vector<4x64xf32>
    %830 = tpu.matmul %829, %648, %cst_693 {dimension_numbers = #tpu.dot_dimension_numbers<[1], [0], [0], [1], [0, 0, 1, 1], [], []>} : vector<4x32xbf16>, vector<32x64xbf16>, vector<4x64xf32> -> vector<4x64xf32>
    %831 = arith.addf %826, %830 : vector<4x64xf32>
    %832 = arith.maximumf %786, %831 : vector<4x64xf32>
    %c0_694 = arith.constant 0 : index
    %c0_695 = arith.constant 0 : index
    %833 = vector.load %arg7[%c0_694, %c0_695] : memref<1x64xf32, #tpu.memory_space<vmem>>, vector<1x64xf32>
    %834 = vector.broadcast %833 : vector<1x64xf32> to vector<4x64xf32>
    %835 = arith.addf %832, %834 : vector<4x64xf32>
    %cst_696 = arith.constant 0.000000e+00 : f32
    %836 = vector.broadcast %cst_696 : f32 to vector<4x64xf32>
    %837 = arith.maximumf %835, %836 : vector<4x64xf32>
    %cst_697 = arith.constant 0.000000e+00 : f32
    %838 = vector.broadcast %cst_697 : f32 to vector<1x4x64xf32>
    %c0_698 = arith.constant 0 : index
    %c0_699 = arith.constant 0 : index
    %c0_700 = arith.constant 0 : index
    %839 = vector.load %arg17[%c0_698, %c0_699, %c0_700] : memref<4x4x64xf32, #tpu.memory_space<vmem>>, vector<1x4x64xf32>
    tpu.vector_store %arg17[%c0_698, %c0_699, %c0_700], %838 {strides = array<i32>} : memref<4x4x64xf32, #tpu.memory_space<vmem>>, vector<1x4x64xf32>,
    %c3_701 = arith.constant 3 : index
    %c0_702 = arith.constant 0 : index
    %c0_703 = arith.constant 0 : index
    %840 = vector.load %arg17[%c3_701, %c0_702, %c0_703] : memref<4x4x64xf32, #tpu.memory_space<vmem>>, vector<1x4x64xf32>
    tpu.vector_store %arg17[%c3_701, %c0_702, %c0_703], %838 {strides = array<i32>} : memref<4x4x64xf32, #tpu.memory_space<vmem>>, vector<1x4x64xf32>,
    %cst_704 = arith.constant 0.000000e+00 : f32
    %841 = vector.broadcast %cst_704 : f32 to vector<1x64xf32>
    %c1_705 = arith.constant 1 : index
    %c0_706 = arith.constant 0 : index
    %c0_707 = arith.constant 0 : index
    %842 = vector.load %arg17[%c1_705, %c0_706, %c0_707] : memref<4x4x64xf32, #tpu.memory_space<vmem>>, vector<1x1x64xf32>
    %843 = vector.shape_cast %842 : vector<1x1x64xf32> to vector<1x64xf32>
    %844 = vector.shape_cast %841 : vector<1x64xf32> to vector<1x1x64xf32>
    tpu.vector_store %arg17[%c1_705, %c0_706, %c0_707], %844 {strides = array<i32>} : memref<4x4x64xf32, #tpu.memory_space<vmem>>, vector<1x1x64xf32>,
    %845 = vector.extract_strided_slice %837 {offsets = [0, 0], sizes = [2, 64], strides = [1, 1]} : vector<4x64xf32> to vector<2x64xf32>
    %c1_708 = arith.constant 1 : index
    %c1_709 = arith.constant 1 : index
    %c0_710 = arith.constant 0 : index
    %846 = vector.load %arg17[%c1_708, %c1_709, %c0_710] : memref<4x4x64xf32, #tpu.memory_space<vmem>>, vector<1x2x64xf32>
    %847 = vector.shape_cast %846 : vector<1x2x64xf32> to vector<2x64xf32>
    %848 = vector.shape_cast %845 : vector<2x64xf32> to vector<1x2x64xf32>
    tpu.vector_store %arg17[%c1_708, %c1_709, %c0_710], %848 {strides = array<i32>} : memref<4x4x64xf32, #tpu.memory_space<vmem>>, vector<1x2x64xf32>,
    %c1_711 = arith.constant 1 : index
    %c3_712 = arith.constant 3 : index
    %c0_713 = arith.constant 0 : index
    %849 = vector.load %arg17[%c1_711, %c3_712, %c0_713] : memref<4x4x64xf32, #tpu.memory_space<vmem>>, vector<1x1x64xf32>
    %850 = vector.shape_cast %849 : vector<1x1x64xf32> to vector<1x64xf32>
    %851 = vector.shape_cast %841 : vector<1x64xf32> to vector<1x1x64xf32>
    tpu.vector_store %arg17[%c1_711, %c3_712, %c0_713], %851 {strides = array<i32>} : memref<4x4x64xf32, #tpu.memory_space<vmem>>, vector<1x1x64xf32>,
    %c2_714 = arith.constant 2 : index
    %c0_715 = arith.constant 0 : index
    %c0_716 = arith.constant 0 : index
    %852 = vector.load %arg17[%c2_714, %c0_715, %c0_716] : memref<4x4x64xf32, #tpu.memory_space<vmem>>, vector<1x1x64xf32>
    %853 = vector.shape_cast %852 : vector<1x1x64xf32> to vector<1x64xf32>
    %854 = vector.shape_cast %841 : vector<1x64xf32> to vector<1x1x64xf32>
    tpu.vector_store %arg17[%c2_714, %c0_715, %c0_716], %854 {strides = array<i32>} : memref<4x4x64xf32, #tpu.memory_space<vmem>>, vector<1x1x64xf32>,
    %855 = vector.extract_strided_slice %837 {offsets = [2, 0], sizes = [2, 64], strides = [1, 1]} : vector<4x64xf32> to vector<2x64xf32>
    %c2_717 = arith.constant 2 : index
    %c1_718 = arith.constant 1 : index
    %c0_719 = arith.constant 0 : index
    %856 = vector.load %arg17[%c2_717, %c1_718, %c0_719] : memref<4x4x64xf32, #tpu.memory_space<vmem>>, vector<1x2x64xf32>
    %857 = vector.shape_cast %856 : vector<1x2x64xf32> to vector<2x64xf32>
    %858 = vector.shape_cast %855 : vector<2x64xf32> to vector<1x2x64xf32>
    tpu.vector_store %arg17[%c2_717, %c1_718, %c0_719], %858 {strides = array<i32>} : memref<4x4x64xf32, #tpu.memory_space<vmem>>, vector<1x2x64xf32>,
    %c2_720 = arith.constant 2 : index
    %c3_721 = arith.constant 3 : index
    %c0_722 = arith.constant 0 : index
    %859 = vector.load %arg17[%c2_720, %c3_721, %c0_722] : memref<4x4x64xf32, #tpu.memory_space<vmem>>, vector<1x1x64xf32>
    %860 = vector.shape_cast %859 : vector<1x1x64xf32> to vector<1x64xf32>
    %861 = vector.shape_cast %841 : vector<1x64xf32> to vector<1x1x64xf32>
    tpu.vector_store %arg17[%c2_720, %c3_721, %c0_722], %861 {strides = array<i32>} : memref<4x4x64xf32, #tpu.memory_space<vmem>>, vector<1x1x64xf32>,
    %c0_723 = arith.constant 0 : index
    %c0_724 = arith.constant 0 : index
    %862 = vector.load %arg8[%c0_723, %c0_724] : memref<576x128xbf16, #tpu.memory_space<vmem>>, vector<64x128xbf16>
    %c64_725 = arith.constant 64 : index
    %c0_726 = arith.constant 0 : index
    %863 = vector.load %arg8[%c64_725, %c0_726] : memref<576x128xbf16, #tpu.memory_space<vmem>>, vector<64x128xbf16>
    %c128_727 = arith.constant 128 : index
    %c0_728 = arith.constant 0 : index
    %864 = vector.load %arg8[%c128_727, %c0_728] : memref<576x128xbf16, #tpu.memory_space<vmem>>, vector<64x128xbf16>
    %c192_729 = arith.constant 192 : index
    %c0_730 = arith.constant 0 : index
    %865 = vector.load %arg8[%c192_729, %c0_730] : memref<576x128xbf16, #tpu.memory_space<vmem>>, vector<64x128xbf16>
    %c256_731 = arith.constant 256 : index
    %c0_732 = arith.constant 0 : index
    %866 = vector.load %arg8[%c256_731, %c0_732] : memref<576x128xbf16, #tpu.memory_space<vmem>>, vector<64x128xbf16>
    %c320 = arith.constant 320 : index
    %c0_733 = arith.constant 0 : index
    %867 = vector.load %arg8[%c320, %c0_733] : memref<576x128xbf16, #tpu.memory_space<vmem>>, vector<64x128xbf16>
    %c384 = arith.constant 384 : index
    %c0_734 = arith.constant 0 : index
    %868 = vector.load %arg8[%c384, %c0_734] : memref<576x128xbf16, #tpu.memory_space<vmem>>, vector<64x128xbf16>
    %c448 = arith.constant 448 : index
    %c0_735 = arith.constant 0 : index
    %869 = vector.load %arg8[%c448, %c0_735] : memref<576x128xbf16, #tpu.memory_space<vmem>>, vector<64x128xbf16>
    %c512 = arith.constant 512 : index
    %c0_736 = arith.constant 0 : index
    %870 = vector.load %arg8[%c512, %c0_736] : memref<576x128xbf16, #tpu.memory_space<vmem>>, vector<64x128xbf16>
    %cst_737 = arith.constant 0.000000e+00 : f32
    %871 = vector.broadcast %cst_737 : f32 to vector<1x128xf32>
    %c0_738 = arith.constant 0 : index
    %c0_739 = arith.constant 0 : index
    %c0_740 = arith.constant 0 : index
    %872 = tpu.strided_load %arg17[%c0_738, %c0_739, %c0_740] {strides = array<i32: 2, 2, 1>} : memref<4x4x64xf32, #tpu.memory_space<vmem>>, vector<1x1x64xf32>
    %873 = vector.shape_cast %872 : vector<1x1x64xf32> to vector<1x64xf32>
    %874 = arith.truncf %873 : vector<1x64xf32> to vector<1x64xbf16>
    %cst_741 = arith.constant dense<0.000000e+00> : vector<1x128xf32>
    %875 = tpu.matmul %874, %862, %cst_741 {dimension_numbers = #tpu.dot_dimension_numbers<[1], [0], [0], [1], [0, 0, 1, 1], [], []>} : vector<1x64xbf16>, vector<64x128xbf16>, vector<1x128xf32> -> vector<1x128xf32>
    %876 = arith.addf %871, %875 : vector<1x128xf32>
    %c0_742 = arith.constant 0 : index
    %c1_743 = arith.constant 1 : index
    %c0_744 = arith.constant 0 : index
    %877 = tpu.strided_load %arg17[%c0_742, %c1_743, %c0_744] {strides = array<i32: 2, 2, 1>} : memref<4x4x64xf32, #tpu.memory_space<vmem>>, vector<1x1x64xf32>
    %878 = vector.shape_cast %877 : vector<1x1x64xf32> to vector<1x64xf32>
    %879 = arith.truncf %878 : vector<1x64xf32> to vector<1x64xbf16>
    %cst_745 = arith.constant dense<0.000000e+00> : vector<1x128xf32>
    %880 = tpu.matmul %879, %863, %cst_745 {dimension_numbers = #tpu.dot_dimension_numbers<[1], [0], [0], [1], [0, 0, 1, 1], [], []>} : vector<1x64xbf16>, vector<64x128xbf16>, vector<1x128xf32> -> vector<1x128xf32>
    %881 = arith.addf %876, %880 : vector<1x128xf32>
    %c0_746 = arith.constant 0 : index
    %c2_747 = arith.constant 2 : index
    %c0_748 = arith.constant 0 : index
    %882 = tpu.strided_load %arg17[%c0_746, %c2_747, %c0_748] {strides = array<i32: 2, 2, 1>} : memref<4x4x64xf32, #tpu.memory_space<vmem>>, vector<1x1x64xf32>
    %883 = vector.shape_cast %882 : vector<1x1x64xf32> to vector<1x64xf32>
    %884 = arith.truncf %883 : vector<1x64xf32> to vector<1x64xbf16>
    %cst_749 = arith.constant dense<0.000000e+00> : vector<1x128xf32>
    %885 = tpu.matmul %884, %864, %cst_749 {dimension_numbers = #tpu.dot_dimension_numbers<[1], [0], [0], [1], [0, 0, 1, 1], [], []>} : vector<1x64xbf16>, vector<64x128xbf16>, vector<1x128xf32> -> vector<1x128xf32>
    %886 = arith.addf %881, %885 : vector<1x128xf32>
    %c1_750 = arith.constant 1 : index
    %c0_751 = arith.constant 0 : index
    %c0_752 = arith.constant 0 : index
    %887 = tpu.strided_load %arg17[%c1_750, %c0_751, %c0_752] {strides = array<i32: 2, 2, 1>} : memref<4x4x64xf32, #tpu.memory_space<vmem>>, vector<1x1x64xf32>
    %888 = vector.shape_cast %887 : vector<1x1x64xf32> to vector<1x64xf32>
    %889 = arith.truncf %888 : vector<1x64xf32> to vector<1x64xbf16>
    %cst_753 = arith.constant dense<0.000000e+00> : vector<1x128xf32>
    %890 = tpu.matmul %889, %865, %cst_753 {dimension_numbers = #tpu.dot_dimension_numbers<[1], [0], [0], [1], [0, 0, 1, 1], [], []>} : vector<1x64xbf16>, vector<64x128xbf16>, vector<1x128xf32> -> vector<1x128xf32>
    %891 = arith.addf %886, %890 : vector<1x128xf32>
    %c1_754 = arith.constant 1 : index
    %c1_755 = arith.constant 1 : index
    %c0_756 = arith.constant 0 : index
    %892 = tpu.strided_load %arg17[%c1_754, %c1_755, %c0_756] {strides = array<i32: 2, 2, 1>} : memref<4x4x64xf32, #tpu.memory_space<vmem>>, vector<1x1x64xf32>
    %893 = vector.shape_cast %892 : vector<1x1x64xf32> to vector<1x64xf32>
    %894 = arith.truncf %893 : vector<1x64xf32> to vector<1x64xbf16>
    %cst_757 = arith.constant dense<0.000000e+00> : vector<1x128xf32>
    %895 = tpu.matmul %894, %866, %cst_757 {dimension_numbers = #tpu.dot_dimension_numbers<[1], [0], [0], [1], [0, 0, 1, 1], [], []>} : vector<1x64xbf16>, vector<64x128xbf16>, vector<1x128xf32> -> vector<1x128xf32>
    %896 = arith.addf %891, %895 : vector<1x128xf32>
    %c1_758 = arith.constant 1 : index
    %c2_759 = arith.constant 2 : index
    %c0_760 = arith.constant 0 : index
    %897 = tpu.strided_load %arg17[%c1_758, %c2_759, %c0_760] {strides = array<i32: 2, 2, 1>} : memref<4x4x64xf32, #tpu.memory_space<vmem>>, vector<1x1x64xf32>
    %898 = vector.shape_cast %897 : vector<1x1x64xf32> to vector<1x64xf32>
    %899 = arith.truncf %898 : vector<1x64xf32> to vector<1x64xbf16>
    %cst_761 = arith.constant dense<0.000000e+00> : vector<1x128xf32>
    %900 = tpu.matmul %899, %867, %cst_761 {dimension_numbers = #tpu.dot_dimension_numbers<[1], [0], [0], [1], [0, 0, 1, 1], [], []>} : vector<1x64xbf16>, vector<64x128xbf16>, vector<1x128xf32> -> vector<1x128xf32>
    %901 = arith.addf %896, %900 : vector<1x128xf32>
    %c2_762 = arith.constant 2 : index
    %c0_763 = arith.constant 0 : index
    %c0_764 = arith.constant 0 : index
    %902 = tpu.strided_load %arg17[%c2_762, %c0_763, %c0_764] {strides = array<i32: 2, 2, 1>} : memref<4x4x64xf32, #tpu.memory_space<vmem>>, vector<1x1x64xf32>
    %903 = vector.shape_cast %902 : vector<1x1x64xf32> to vector<1x64xf32>
    %904 = arith.truncf %903 : vector<1x64xf32> to vector<1x64xbf16>
    %cst_765 = arith.constant dense<0.000000e+00> : vector<1x128xf32>
    %905 = tpu.matmul %904, %868, %cst_765 {dimension_numbers = #tpu.dot_dimension_numbers<[1], [0], [0], [1], [0, 0, 1, 1], [], []>} : vector<1x64xbf16>, vector<64x128xbf16>, vector<1x128xf32> -> vector<1x128xf32>
    %906 = arith.addf %901, %905 : vector<1x128xf32>
    %c2_766 = arith.constant 2 : index
    %c1_767 = arith.constant 1 : index
    %c0_768 = arith.constant 0 : index
    %907 = tpu.strided_load %arg17[%c2_766, %c1_767, %c0_768] {strides = array<i32: 2, 2, 1>} : memref<4x4x64xf32, #tpu.memory_space<vmem>>, vector<1x1x64xf32>
    %908 = vector.shape_cast %907 : vector<1x1x64xf32> to vector<1x64xf32>
    %909 = arith.truncf %908 : vector<1x64xf32> to vector<1x64xbf16>
    %cst_769 = arith.constant dense<0.000000e+00> : vector<1x128xf32>
    %910 = tpu.matmul %909, %869, %cst_769 {dimension_numbers = #tpu.dot_dimension_numbers<[1], [0], [0], [1], [0, 0, 1, 1], [], []>} : vector<1x64xbf16>, vector<64x128xbf16>, vector<1x128xf32> -> vector<1x128xf32>
    %911 = arith.addf %906, %910 : vector<1x128xf32>
    %c2_770 = arith.constant 2 : index
    %c2_771 = arith.constant 2 : index
    %c0_772 = arith.constant 0 : index
    %912 = tpu.strided_load %arg17[%c2_770, %c2_771, %c0_772] {strides = array<i32: 2, 2, 1>} : memref<4x4x64xf32, #tpu.memory_space<vmem>>, vector<1x1x64xf32>
    %913 = vector.shape_cast %912 : vector<1x1x64xf32> to vector<1x64xf32>
    %914 = arith.truncf %913 : vector<1x64xf32> to vector<1x64xbf16>
    %cst_773 = arith.constant dense<0.000000e+00> : vector<1x128xf32>
    %915 = tpu.matmul %914, %870, %cst_773 {dimension_numbers = #tpu.dot_dimension_numbers<[1], [0], [0], [1], [0, 0, 1, 1], [], []>} : vector<1x64xbf16>, vector<64x128xbf16>, vector<1x128xf32> -> vector<1x128xf32>
    %916 = arith.addf %911, %915 : vector<1x128xf32>
    %c0_774 = arith.constant 0 : index
    %c1_775 = arith.constant 1 : index
    %c0_776 = arith.constant 0 : index
    %917 = tpu.strided_load %arg17[%c0_774, %c1_775, %c0_776] {strides = array<i32: 2, 2, 1>} : memref<4x4x64xf32, #tpu.memory_space<vmem>>, vector<1x1x64xf32>
    %918 = vector.shape_cast %917 : vector<1x1x64xf32> to vector<1x64xf32>
    %919 = arith.truncf %918 : vector<1x64xf32> to vector<1x64xbf16>
    %cst_777 = arith.constant dense<0.000000e+00> : vector<1x128xf32>
    %920 = tpu.matmul %919, %862, %cst_777 {dimension_numbers = #tpu.dot_dimension_numbers<[1], [0], [0], [1], [0, 0, 1, 1], [], []>} : vector<1x64xbf16>, vector<64x128xbf16>, vector<1x128xf32> -> vector<1x128xf32>
    %921 = arith.addf %871, %920 : vector<1x128xf32>
    %c0_778 = arith.constant 0 : index
    %c2_779 = arith.constant 2 : index
    %c0_780 = arith.constant 0 : index
    %922 = tpu.strided_load %arg17[%c0_778, %c2_779, %c0_780] {strides = array<i32: 2, 2, 1>} : memref<4x4x64xf32, #tpu.memory_space<vmem>>, vector<1x1x64xf32>
    %923 = vector.shape_cast %922 : vector<1x1x64xf32> to vector<1x64xf32>
    %924 = arith.truncf %923 : vector<1x64xf32> to vector<1x64xbf16>
    %cst_781 = arith.constant dense<0.000000e+00> : vector<1x128xf32>
    %925 = tpu.matmul %924, %863, %cst_781 {dimension_numbers = #tpu.dot_dimension_numbers<[1], [0], [0], [1], [0, 0, 1, 1], [], []>} : vector<1x64xbf16>, vector<64x128xbf16>, vector<1x128xf32> -> vector<1x128xf32>
    %926 = arith.addf %921, %925 : vector<1x128xf32>
    %c0_782 = arith.constant 0 : index
    %c3_783 = arith.constant 3 : index
    %c0_784 = arith.constant 0 : index
    %927 = tpu.strided_load %arg17[%c0_782, %c3_783, %c0_784] {strides = array<i32: 2, 2, 1>} : memref<4x4x64xf32, #tpu.memory_space<vmem>>, vector<1x1x64xf32>
    %928 = vector.shape_cast %927 : vector<1x1x64xf32> to vector<1x64xf32>
    %929 = arith.truncf %928 : vector<1x64xf32> to vector<1x64xbf16>
    %cst_785 = arith.constant dense<0.000000e+00> : vector<1x128xf32>
    %930 = tpu.matmul %929, %864, %cst_785 {dimension_numbers = #tpu.dot_dimension_numbers<[1], [0], [0], [1], [0, 0, 1, 1], [], []>} : vector<1x64xbf16>, vector<64x128xbf16>, vector<1x128xf32> -> vector<1x128xf32>
    %931 = arith.addf %926, %930 : vector<1x128xf32>
    %c1_786 = arith.constant 1 : index
    %c1_787 = arith.constant 1 : index
    %c0_788 = arith.constant 0 : index
    %932 = tpu.strided_load %arg17[%c1_786, %c1_787, %c0_788] {strides = array<i32: 2, 2, 1>} : memref<4x4x64xf32, #tpu.memory_space<vmem>>, vector<1x1x64xf32>
    %933 = vector.shape_cast %932 : vector<1x1x64xf32> to vector<1x64xf32>
    %934 = arith.truncf %933 : vector<1x64xf32> to vector<1x64xbf16>
    %cst_789 = arith.constant dense<0.000000e+00> : vector<1x128xf32>
    %935 = tpu.matmul %934, %865, %cst_789 {dimension_numbers = #tpu.dot_dimension_numbers<[1], [0], [0], [1], [0, 0, 1, 1], [], []>} : vector<1x64xbf16>, vector<64x128xbf16>, vector<1x128xf32> -> vector<1x128xf32>
    %936 = arith.addf %931, %935 : vector<1x128xf32>
    %c1_790 = arith.constant 1 : index
    %c2_791 = arith.constant 2 : index
    %c0_792 = arith.constant 0 : index
    %937 = tpu.strided_load %arg17[%c1_790, %c2_791, %c0_792] {strides = array<i32: 2, 2, 1>} : memref<4x4x64xf32, #tpu.memory_space<vmem>>, vector<1x1x64xf32>
    %938 = vector.shape_cast %937 : vector<1x1x64xf32> to vector<1x64xf32>
    %939 = arith.truncf %938 : vector<1x64xf32> to vector<1x64xbf16>
    %cst_793 = arith.constant dense<0.000000e+00> : vector<1x128xf32>
    %940 = tpu.matmul %939, %866, %cst_793 {dimension_numbers = #tpu.dot_dimension_numbers<[1], [0], [0], [1], [0, 0, 1, 1], [], []>} : vector<1x64xbf16>, vector<64x128xbf16>, vector<1x128xf32> -> vector<1x128xf32>
    %941 = arith.addf %936, %940 : vector<1x128xf32>
    %c1_794 = arith.constant 1 : index
    %c3_795 = arith.constant 3 : index
    %c0_796 = arith.constant 0 : index
    %942 = tpu.strided_load %arg17[%c1_794, %c3_795, %c0_796] {strides = array<i32: 2, 2, 1>} : memref<4x4x64xf32, #tpu.memory_space<vmem>>, vector<1x1x64xf32>
    %943 = vector.shape_cast %942 : vector<1x1x64xf32> to vector<1x64xf32>
    %944 = arith.truncf %943 : vector<1x64xf32> to vector<1x64xbf16>
    %cst_797 = arith.constant dense<0.000000e+00> : vector<1x128xf32>
    %945 = tpu.matmul %944, %867, %cst_797 {dimension_numbers = #tpu.dot_dimension_numbers<[1], [0], [0], [1], [0, 0, 1, 1], [], []>} : vector<1x64xbf16>, vector<64x128xbf16>, vector<1x128xf32> -> vector<1x128xf32>
    %946 = arith.addf %941, %945 : vector<1x128xf32>
    %c2_798 = arith.constant 2 : index
    %c1_799 = arith.constant 1 : index
    %c0_800 = arith.constant 0 : index
    %947 = tpu.strided_load %arg17[%c2_798, %c1_799, %c0_800] {strides = array<i32: 2, 2, 1>} : memref<4x4x64xf32, #tpu.memory_space<vmem>>, vector<1x1x64xf32>
    %948 = vector.shape_cast %947 : vector<1x1x64xf32> to vector<1x64xf32>
    %949 = arith.truncf %948 : vector<1x64xf32> to vector<1x64xbf16>
    %cst_801 = arith.constant dense<0.000000e+00> : vector<1x128xf32>
    %950 = tpu.matmul %949, %868, %cst_801 {dimension_numbers = #tpu.dot_dimension_numbers<[1], [0], [0], [1], [0, 0, 1, 1], [], []>} : vector<1x64xbf16>, vector<64x128xbf16>, vector<1x128xf32> -> vector<1x128xf32>
    %951 = arith.addf %946, %950 : vector<1x128xf32>
    %c2_802 = arith.constant 2 : index
    %c2_803 = arith.constant 2 : index
    %c0_804 = arith.constant 0 : index
    %952 = tpu.strided_load %arg17[%c2_802, %c2_803, %c0_804] {strides = array<i32: 2, 2, 1>} : memref<4x4x64xf32, #tpu.memory_space<vmem>>, vector<1x1x64xf32>
    %953 = vector.shape_cast %952 : vector<1x1x64xf32> to vector<1x64xf32>
    %954 = arith.truncf %953 : vector<1x64xf32> to vector<1x64xbf16>
    %cst_805 = arith.constant dense<0.000000e+00> : vector<1x128xf32>
    %955 = tpu.matmul %954, %869, %cst_805 {dimension_numbers = #tpu.dot_dimension_numbers<[1], [0], [0], [1], [0, 0, 1, 1], [], []>} : vector<1x64xbf16>, vector<64x128xbf16>, vector<1x128xf32> -> vector<1x128xf32>
    %956 = arith.addf %951, %955 : vector<1x128xf32>
    %c2_806 = arith.constant 2 : index
    %c3_807 = arith.constant 3 : index
    %c0_808 = arith.constant 0 : index
    %957 = tpu.strided_load %arg17[%c2_806, %c3_807, %c0_808] {strides = array<i32: 2, 2, 1>} : memref<4x4x64xf32, #tpu.memory_space<vmem>>, vector<1x1x64xf32>
    %958 = vector.shape_cast %957 : vector<1x1x64xf32> to vector<1x64xf32>
    %959 = arith.truncf %958 : vector<1x64xf32> to vector<1x64xbf16>
    %cst_809 = arith.constant dense<0.000000e+00> : vector<1x128xf32>
    %960 = tpu.matmul %959, %870, %cst_809 {dimension_numbers = #tpu.dot_dimension_numbers<[1], [0], [0], [1], [0, 0, 1, 1], [], []>} : vector<1x64xbf16>, vector<64x128xbf16>, vector<1x128xf32> -> vector<1x128xf32>
    %961 = arith.addf %956, %960 : vector<1x128xf32>
    %962 = arith.maximumf %916, %961 : vector<1x128xf32>
    %c1_810 = arith.constant 1 : index
    %c0_811 = arith.constant 0 : index
    %c0_812 = arith.constant 0 : index
    %963 = tpu.strided_load %arg17[%c1_810, %c0_811, %c0_812] {strides = array<i32: 2, 2, 1>} : memref<4x4x64xf32, #tpu.memory_space<vmem>>, vector<1x1x64xf32>
    %964 = vector.shape_cast %963 : vector<1x1x64xf32> to vector<1x64xf32>
    %965 = arith.truncf %964 : vector<1x64xf32> to vector<1x64xbf16>
    %cst_813 = arith.constant dense<0.000000e+00> : vector<1x128xf32>
    %966 = tpu.matmul %965, %862, %cst_813 {dimension_numbers = #tpu.dot_dimension_numbers<[1], [0], [0], [1], [0, 0, 1, 1], [], []>} : vector<1x64xbf16>, vector<64x128xbf16>, vector<1x128xf32> -> vector<1x128xf32>
    %967 = arith.addf %871, %966 : vector<1x128xf32>
    %c1_814 = arith.constant 1 : index
    %c1_815 = arith.constant 1 : index
    %c0_816 = arith.constant 0 : index
    %968 = tpu.strided_load %arg17[%c1_814, %c1_815, %c0_816] {strides = array<i32: 2, 2, 1>} : memref<4x4x64xf32, #tpu.memory_space<vmem>>, vector<1x1x64xf32>
    %969 = vector.shape_cast %968 : vector<1x1x64xf32> to vector<1x64xf32>
    %970 = arith.truncf %969 : vector<1x64xf32> to vector<1x64xbf16>
    %cst_817 = arith.constant dense<0.000000e+00> : vector<1x128xf32>
    %971 = tpu.matmul %970, %863, %cst_817 {dimension_numbers = #tpu.dot_dimension_numbers<[1], [0], [0], [1], [0, 0, 1, 1], [], []>} : vector<1x64xbf16>, vector<64x128xbf16>, vector<1x128xf32> -> vector<1x128xf32>
    %972 = arith.addf %967, %971 : vector<1x128xf32>
    %c1_818 = arith.constant 1 : index
    %c2_819 = arith.constant 2 : index
    %c0_820 = arith.constant 0 : index
    %973 = tpu.strided_load %arg17[%c1_818, %c2_819, %c0_820] {strides = array<i32: 2, 2, 1>} : memref<4x4x64xf32, #tpu.memory_space<vmem>>, vector<1x1x64xf32>
    %974 = vector.shape_cast %973 : vector<1x1x64xf32> to vector<1x64xf32>
    %975 = arith.truncf %974 : vector<1x64xf32> to vector<1x64xbf16>
    %cst_821 = arith.constant dense<0.000000e+00> : vector<1x128xf32>
    %976 = tpu.matmul %975, %864, %cst_821 {dimension_numbers = #tpu.dot_dimension_numbers<[1], [0], [0], [1], [0, 0, 1, 1], [], []>} : vector<1x64xbf16>, vector<64x128xbf16>, vector<1x128xf32> -> vector<1x128xf32>
    %977 = arith.addf %972, %976 : vector<1x128xf32>
    %c2_822 = arith.constant 2 : index
    %c0_823 = arith.constant 0 : index
    %c0_824 = arith.constant 0 : index
    %978 = tpu.strided_load %arg17[%c2_822, %c0_823, %c0_824] {strides = array<i32: 2, 2, 1>} : memref<4x4x64xf32, #tpu.memory_space<vmem>>, vector<1x1x64xf32>
    %979 = vector.shape_cast %978 : vector<1x1x64xf32> to vector<1x64xf32>
    %980 = arith.truncf %979 : vector<1x64xf32> to vector<1x64xbf16>
    %cst_825 = arith.constant dense<0.000000e+00> : vector<1x128xf32>
    %981 = tpu.matmul %980, %865, %cst_825 {dimension_numbers = #tpu.dot_dimension_numbers<[1], [0], [0], [1], [0, 0, 1, 1], [], []>} : vector<1x64xbf16>, vector<64x128xbf16>, vector<1x128xf32> -> vector<1x128xf32>
    %982 = arith.addf %977, %981 : vector<1x128xf32>
    %c2_826 = arith.constant 2 : index
    %c1_827 = arith.constant 1 : index
    %c0_828 = arith.constant 0 : index
    %983 = tpu.strided_load %arg17[%c2_826, %c1_827, %c0_828] {strides = array<i32: 2, 2, 1>} : memref<4x4x64xf32, #tpu.memory_space<vmem>>, vector<1x1x64xf32>
    %984 = vector.shape_cast %983 : vector<1x1x64xf32> to vector<1x64xf32>
    %985 = arith.truncf %984 : vector<1x64xf32> to vector<1x64xbf16>
    %cst_829 = arith.constant dense<0.000000e+00> : vector<1x128xf32>
    %986 = tpu.matmul %985, %866, %cst_829 {dimension_numbers = #tpu.dot_dimension_numbers<[1], [0], [0], [1], [0, 0, 1, 1], [], []>} : vector<1x64xbf16>, vector<64x128xbf16>, vector<1x128xf32> -> vector<1x128xf32>
    %987 = arith.addf %982, %986 : vector<1x128xf32>
    %c2_830 = arith.constant 2 : index
    %c2_831 = arith.constant 2 : index
    %c0_832 = arith.constant 0 : index
    %988 = tpu.strided_load %arg17[%c2_830, %c2_831, %c0_832] {strides = array<i32: 2, 2, 1>} : memref<4x4x64xf32, #tpu.memory_space<vmem>>, vector<1x1x64xf32>
    %989 = vector.shape_cast %988 : vector<1x1x64xf32> to vector<1x64xf32>
    %990 = arith.truncf %989 : vector<1x64xf32> to vector<1x64xbf16>
    %cst_833 = arith.constant dense<0.000000e+00> : vector<1x128xf32>
    %991 = tpu.matmul %990, %867, %cst_833 {dimension_numbers = #tpu.dot_dimension_numbers<[1], [0], [0], [1], [0, 0, 1, 1], [], []>} : vector<1x64xbf16>, vector<64x128xbf16>, vector<1x128xf32> -> vector<1x128xf32>
    %992 = arith.addf %987, %991 : vector<1x128xf32>
    %c3_834 = arith.constant 3 : index
    %c0_835 = arith.constant 0 : index
    %c0_836 = arith.constant 0 : index
    %993 = tpu.strided_load %arg17[%c3_834, %c0_835, %c0_836] {strides = array<i32: 2, 2, 1>} : memref<4x4x64xf32, #tpu.memory_space<vmem>>, vector<1x1x64xf32>
    %994 = vector.shape_cast %993 : vector<1x1x64xf32> to vector<1x64xf32>
    %995 = arith.truncf %994 : vector<1x64xf32> to vector<1x64xbf16>
    %cst_837 = arith.constant dense<0.000000e+00> : vector<1x128xf32>
    %996 = tpu.matmul %995, %868, %cst_837 {dimension_numbers = #tpu.dot_dimension_numbers<[1], [0], [0], [1], [0, 0, 1, 1], [], []>} : vector<1x64xbf16>, vector<64x128xbf16>, vector<1x128xf32> -> vector<1x128xf32>
    %997 = arith.addf %992, %996 : vector<1x128xf32>
    %c3_838 = arith.constant 3 : index
    %c1_839 = arith.constant 1 : index
    %c0_840 = arith.constant 0 : index
    %998 = tpu.strided_load %arg17[%c3_838, %c1_839, %c0_840] {strides = array<i32: 2, 2, 1>} : memref<4x4x64xf32, #tpu.memory_space<vmem>>, vector<1x1x64xf32>
    %999 = vector.shape_cast %998 : vector<1x1x64xf32> to vector<1x64xf32>
    %1000 = arith.truncf %999 : vector<1x64xf32> to vector<1x64xbf16>
    %cst_841 = arith.constant dense<0.000000e+00> : vector<1x128xf32>
    %1001 = tpu.matmul %1000, %869, %cst_841 {dimension_numbers = #tpu.dot_dimension_numbers<[1], [0], [0], [1], [0, 0, 1, 1], [], []>} : vector<1x64xbf16>, vector<64x128xbf16>, vector<1x128xf32> -> vector<1x128xf32>
    %1002 = arith.addf %997, %1001 : vector<1x128xf32>
    %c3_842 = arith.constant 3 : index
    %c2_843 = arith.constant 2 : index
    %c0_844 = arith.constant 0 : index
    %1003 = tpu.strided_load %arg17[%c3_842, %c2_843, %c0_844] {strides = array<i32: 2, 2, 1>} : memref<4x4x64xf32, #tpu.memory_space<vmem>>, vector<1x1x64xf32>
    %1004 = vector.shape_cast %1003 : vector<1x1x64xf32> to vector<1x64xf32>
    %1005 = arith.truncf %1004 : vector<1x64xf32> to vector<1x64xbf16>
    %cst_845 = arith.constant dense<0.000000e+00> : vector<1x128xf32>
    %1006 = tpu.matmul %1005, %870, %cst_845 {dimension_numbers = #tpu.dot_dimension_numbers<[1], [0], [0], [1], [0, 0, 1, 1], [], []>} : vector<1x64xbf16>, vector<64x128xbf16>, vector<1x128xf32> -> vector<1x128xf32>
    %1007 = arith.addf %1002, %1006 : vector<1x128xf32>
    %1008 = arith.maximumf %962, %1007 : vector<1x128xf32>
    %c1_846 = arith.constant 1 : index
    %c1_847 = arith.constant 1 : index
    %c0_848 = arith.constant 0 : index
    %1009 = tpu.strided_load %arg17[%c1_846, %c1_847, %c0_848] {strides = array<i32: 2, 2, 1>} : memref<4x4x64xf32, #tpu.memory_space<vmem>>, vector<1x1x64xf32>
    %1010 = vector.shape_cast %1009 : vector<1x1x64xf32> to vector<1x64xf32>
    %1011 = arith.truncf %1010 : vector<1x64xf32> to vector<1x64xbf16>
    %cst_849 = arith.constant dense<0.000000e+00> : vector<1x128xf32>
    %1012 = tpu.matmul %1011, %862, %cst_849 {dimension_numbers = #tpu.dot_dimension_numbers<[1], [0], [0], [1], [0, 0, 1, 1], [], []>} : vector<1x64xbf16>, vector<64x128xbf16>, vector<1x128xf32> -> vector<1x128xf32>
    %1013 = arith.addf %871, %1012 : vector<1x128xf32>
    %c1_850 = arith.constant 1 : index
    %c2_851 = arith.constant 2 : index
    %c0_852 = arith.constant 0 : index
    %1014 = tpu.strided_load %arg17[%c1_850, %c2_851, %c0_852] {strides = array<i32: 2, 2, 1>} : memref<4x4x64xf32, #tpu.memory_space<vmem>>, vector<1x1x64xf32>
    %1015 = vector.shape_cast %1014 : vector<1x1x64xf32> to vector<1x64xf32>
    %1016 = arith.truncf %1015 : vector<1x64xf32> to vector<1x64xbf16>
    %cst_853 = arith.constant dense<0.000000e+00> : vector<1x128xf32>
    %1017 = tpu.matmul %1016, %863, %cst_853 {dimension_numbers = #tpu.dot_dimension_numbers<[1], [0], [0], [1], [0, 0, 1, 1], [], []>} : vector<1x64xbf16>, vector<64x128xbf16>, vector<1x128xf32> -> vector<1x128xf32>
    %1018 = arith.addf %1013, %1017 : vector<1x128xf32>
    %c1_854 = arith.constant 1 : index
    %c3_855 = arith.constant 3 : index
    %c0_856 = arith.constant 0 : index
    %1019 = tpu.strided_load %arg17[%c1_854, %c3_855, %c0_856] {strides = array<i32: 2, 2, 1>} : memref<4x4x64xf32, #tpu.memory_space<vmem>>, vector<1x1x64xf32>
    %1020 = vector.shape_cast %1019 : vector<1x1x64xf32> to vector<1x64xf32>
    %1021 = arith.truncf %1020 : vector<1x64xf32> to vector<1x64xbf16>
    %cst_857 = arith.constant dense<0.000000e+00> : vector<1x128xf32>
    %1022 = tpu.matmul %1021, %864, %cst_857 {dimension_numbers = #tpu.dot_dimension_numbers<[1], [0], [0], [1], [0, 0, 1, 1], [], []>} : vector<1x64xbf16>, vector<64x128xbf16>, vector<1x128xf32> -> vector<1x128xf32>
    %1023 = arith.addf %1018, %1022 : vector<1x128xf32>
    %c2_858 = arith.constant 2 : index
    %c1_859 = arith.constant 1 : index
    %c0_860 = arith.constant 0 : index
    %1024 = tpu.strided_load %arg17[%c2_858, %c1_859, %c0_860] {strides = array<i32: 2, 2, 1>} : memref<4x4x64xf32, #tpu.memory_space<vmem>>, vector<1x1x64xf32>
    %1025 = vector.shape_cast %1024 : vector<1x1x64xf32> to vector<1x64xf32>
    %1026 = arith.truncf %1025 : vector<1x64xf32> to vector<1x64xbf16>
    %cst_861 = arith.constant dense<0.000000e+00> : vector<1x128xf32>
    %1027 = tpu.matmul %1026, %865, %cst_861 {dimension_numbers = #tpu.dot_dimension_numbers<[1], [0], [0], [1], [0, 0, 1, 1], [], []>} : vector<1x64xbf16>, vector<64x128xbf16>, vector<1x128xf32> -> vector<1x128xf32>
    %1028 = arith.addf %1023, %1027 : vector<1x128xf32>
    %c2_862 = arith.constant 2 : index
    %c2_863 = arith.constant 2 : index
    %c0_864 = arith.constant 0 : index
    %1029 = tpu.strided_load %arg17[%c2_862, %c2_863, %c0_864] {strides = array<i32: 2, 2, 1>} : memref<4x4x64xf32, #tpu.memory_space<vmem>>, vector<1x1x64xf32>
    %1030 = vector.shape_cast %1029 : vector<1x1x64xf32> to vector<1x64xf32>
    %1031 = arith.truncf %1030 : vector<1x64xf32> to vector<1x64xbf16>
    %cst_865 = arith.constant dense<0.000000e+00> : vector<1x128xf32>
    %1032 = tpu.matmul %1031, %866, %cst_865 {dimension_numbers = #tpu.dot_dimension_numbers<[1], [0], [0], [1], [0, 0, 1, 1], [], []>} : vector<1x64xbf16>, vector<64x128xbf16>, vector<1x128xf32> -> vector<1x128xf32>
    %1033 = arith.addf %1028, %1032 : vector<1x128xf32>
    %c2_866 = arith.constant 2 : index
    %c3_867 = arith.constant 3 : index
    %c0_868 = arith.constant 0 : index
    %1034 = tpu.strided_load %arg17[%c2_866, %c3_867, %c0_868] {strides = array<i32: 2, 2, 1>} : memref<4x4x64xf32, #tpu.memory_space<vmem>>, vector<1x1x64xf32>
    %1035 = vector.shape_cast %1034 : vector<1x1x64xf32> to vector<1x64xf32>
    %1036 = arith.truncf %1035 : vector<1x64xf32> to vector<1x64xbf16>
    %cst_869 = arith.constant dense<0.000000e+00> : vector<1x128xf32>
    %1037 = tpu.matmul %1036, %867, %cst_869 {dimension_numbers = #tpu.dot_dimension_numbers<[1], [0], [0], [1], [0, 0, 1, 1], [], []>} : vector<1x64xbf16>, vector<64x128xbf16>, vector<1x128xf32> -> vector<1x128xf32>
    %1038 = arith.addf %1033, %1037 : vector<1x128xf32>
    %c3_870 = arith.constant 3 : index
    %c1_871 = arith.constant 1 : index
    %c0_872 = arith.constant 0 : index
    %1039 = tpu.strided_load %arg17[%c3_870, %c1_871, %c0_872] {strides = array<i32: 2, 2, 1>} : memref<4x4x64xf32, #tpu.memory_space<vmem>>, vector<1x1x64xf32>
    %1040 = vector.shape_cast %1039 : vector<1x1x64xf32> to vector<1x64xf32>
    %1041 = arith.truncf %1040 : vector<1x64xf32> to vector<1x64xbf16>
    %cst_873 = arith.constant dense<0.000000e+00> : vector<1x128xf32>
    %1042 = tpu.matmul %1041, %868, %cst_873 {dimension_numbers = #tpu.dot_dimension_numbers<[1], [0], [0], [1], [0, 0, 1, 1], [], []>} : vector<1x64xbf16>, vector<64x128xbf16>, vector<1x128xf32> -> vector<1x128xf32>
    %1043 = arith.addf %1038, %1042 : vector<1x128xf32>
    %c3_874 = arith.constant 3 : index
    %c2_875 = arith.constant 2 : index
    %c0_876 = arith.constant 0 : index
    %1044 = tpu.strided_load %arg17[%c3_874, %c2_875, %c0_876] {strides = array<i32: 2, 2, 1>} : memref<4x4x64xf32, #tpu.memory_space<vmem>>, vector<1x1x64xf32>
    %1045 = vector.shape_cast %1044 : vector<1x1x64xf32> to vector<1x64xf32>
    %1046 = arith.truncf %1045 : vector<1x64xf32> to vector<1x64xbf16>
    %cst_877 = arith.constant dense<0.000000e+00> : vector<1x128xf32>
    %1047 = tpu.matmul %1046, %869, %cst_877 {dimension_numbers = #tpu.dot_dimension_numbers<[1], [0], [0], [1], [0, 0, 1, 1], [], []>} : vector<1x64xbf16>, vector<64x128xbf16>, vector<1x128xf32> -> vector<1x128xf32>
    %1048 = arith.addf %1043, %1047 : vector<1x128xf32>
    %c3_878 = arith.constant 3 : index
    %c3_879 = arith.constant 3 : index
    %c0_880 = arith.constant 0 : index
    %1049 = tpu.strided_load %arg17[%c3_878, %c3_879, %c0_880] {strides = array<i32: 2, 2, 1>} : memref<4x4x64xf32, #tpu.memory_space<vmem>>, vector<1x1x64xf32>
    %1050 = vector.shape_cast %1049 : vector<1x1x64xf32> to vector<1x64xf32>
    %1051 = arith.truncf %1050 : vector<1x64xf32> to vector<1x64xbf16>
    %cst_881 = arith.constant dense<0.000000e+00> : vector<1x128xf32>
    %1052 = tpu.matmul %1051, %870, %cst_881 {dimension_numbers = #tpu.dot_dimension_numbers<[1], [0], [0], [1], [0, 0, 1, 1], [], []>} : vector<1x64xbf16>, vector<64x128xbf16>, vector<1x128xf32> -> vector<1x128xf32>
    %1053 = arith.addf %1048, %1052 : vector<1x128xf32>
    %1054 = arith.maximumf %1008, %1053 : vector<1x128xf32>
    %c0_882 = arith.constant 0 : index
    %c0_883 = arith.constant 0 : index
    %1055 = vector.load %arg9[%c0_882, %c0_883] : memref<1x128xf32, #tpu.memory_space<vmem>>, vector<1x128xf32>
    %1056 = arith.addf %1054, %1055 : vector<1x128xf32>
    %cst_884 = arith.constant 0.000000e+00 : f32
    %1057 = vector.broadcast %cst_884 : f32 to vector<1x128xf32>
    %1058 = arith.maximumf %1056, %1057 : vector<1x128xf32>
    %c0_885 = arith.constant 0 : index
    %c0_886 = arith.constant 0 : index
    %1059 = vector.load %arg11[%c0_885, %c0_886] : memref<1x512xf32, #tpu.memory_space<vmem>>, vector<1x512xf32>
    %1060 = arith.truncf %1058 : vector<1x128xf32> to vector<1x128xbf16>
    %c0_887 = arith.constant 0 : index
    %c0_888 = arith.constant 0 : index
    %1061 = vector.load %arg10[%c0_887, %c0_888] : memref<128x512xbf16, #tpu.memory_space<vmem>>, vector<128x512xbf16>
    %cst_889 = arith.constant dense<0.000000e+00> : vector<1x512xf32>
    %1062 = tpu.matmul %1060, %1061, %cst_889 {dimension_numbers = #tpu.dot_dimension_numbers<[1], [0], [0], [1], [0, 0, 1, 1], [], []>} : vector<1x128xbf16>, vector<128x512xbf16>, vector<1x512xf32> -> vector<1x512xf32>
    %1063 = arith.addf %1059, %1062 : vector<1x512xf32>
    %cst_890 = arith.constant 0.000000e+00 : f32
    %1064 = vector.broadcast %cst_890 : f32 to vector<1x512xf32>
    %1065 = arith.maximumf %1063, %1064 : vector<1x512xf32>
    %1066 = arith.truncf %1065 : vector<1x512xf32> to vector<1x512xbf16>
    %c0_891 = arith.constant 0 : index
    %c0_892 = arith.constant 0 : index
    %1067 = vector.load %arg12[%c0_891, %c0_892] : memref<512x64xbf16, #tpu.memory_space<vmem>>, vector<512x64xbf16>
    %cst_893 = arith.constant dense<0.000000e+00> : vector<1x64xf32>
    %1068 = tpu.matmul %1066, %1067, %cst_893 {dimension_numbers = #tpu.dot_dimension_numbers<[1], [0], [0], [1], [0, 0, 1, 1], [], []>} : vector<1x512xbf16>, vector<512x64xbf16>, vector<1x64xf32> -> vector<1x64xf32>
    %c0_894 = arith.constant 0 : index
    %c0_895 = arith.constant 0 : index
    %1069 = vector.load %arg13[%c0_894, %c0_895] : memref<1x64xf32, #tpu.memory_space<vmem>>, vector<1x64xf32>
    %1070 = arith.addf %1068, %1069 : vector<1x64xf32>
    %c0_896 = arith.constant 0 : index
    %c0_897 = arith.constant 0 : index
    %c0_898 = arith.constant 0 : index
    %1071 = vector.load %arg14[%c0_896, %c0_897, %c0_898] : memref<1x1x64xf32, #tpu.memory_space<vmem>>, vector<1x1x64xf32>
    %1072 = vector.shape_cast %1071 : vector<1x1x64xf32> to vector<1x64xf32>
    %1073 = vector.shape_cast %1070 : vector<1x64xf32> to vector<1x1x64xf32>
    tpu.vector_store %arg14[%c0_896, %c0_897, %c0_898], %1073 {strides = array<i32>} : memref<1x1x64xf32, #tpu.memory_space<vmem>>, vector<1x1x64xf32>,
    return
  }
  func.func @transform_0(%arg0: i32) -> (i32, i32, i32, i32) {
    %c0_i32 = arith.constant 0 : i32
    %c0_i32_0 = arith.constant 0 : i32
    %c0_i32_1 = arith.constant 0 : i32
    %c0_i32_2 = arith.constant 0 : i32
    return %arg0, %c0_i32, %c0_i32_0, %c0_i32_1 : i32, i32, i32, i32
  }
  func.func @transform_1(%arg0: i32) -> (i32, i32) {
    %c0_i32 = arith.constant 0 : i32
    %c0_i32_0 = arith.constant 0 : i32
    %c0_i32_1 = arith.constant 0 : i32
    return %c0_i32, %c0_i32_0 : i32, i32
  }
  func.func @transform_2(%arg0: i32) -> (i32, i32) {
    %c0_i32 = arith.constant 0 : i32
    %c0_i32_0 = arith.constant 0 : i32
    %c0_i32_1 = arith.constant 0 : i32
    return %c0_i32, %c0_i32_0 : i32, i32
  }
  func.func @transform_3(%arg0: i32) -> (i32, i32) {
    %c0_i32 = arith.constant 0 : i32
    %c0_i32_0 = arith.constant 0 : i32
    %c0_i32_1 = arith.constant 0 : i32
    return %c0_i32, %c0_i32_0 : i32, i32
  }
  func.func @transform_4(%arg0: i32) -> (i32, i32) {
    %c0_i32 = arith.constant 0 : i32
    %c0_i32_0 = arith.constant 0 : i32
    %c0_i32_1 = arith.constant 0 : i32
    return %c0_i32, %c0_i32_0 : i32, i32
  }
  func.func @transform_5(%arg0: i32) -> (i32, i32) {
    %c0_i32 = arith.constant 0 : i32
    %c0_i32_0 = arith.constant 0 : i32
    %c0_i32_1 = arith.constant 0 : i32
    return %c0_i32, %c0_i32_0 : i32, i32
  }
  func.func @transform_6(%arg0: i32) -> (i32, i32) {
    %c0_i32 = arith.constant 0 : i32
    %c0_i32_0 = arith.constant 0 : i32
    %c0_i32_1 = arith.constant 0 : i32
    return %c0_i32, %c0_i32_0 : i32, i32
  }
  func.func @transform_7(%arg0: i32) -> (i32, i32) {
    %c0_i32 = arith.constant 0 : i32
    %c0_i32_0 = arith.constant 0 : i32
    %c0_i32_1 = arith.constant 0 : i32
    return %c0_i32, %c0_i32_0 : i32, i32
  }
  func.func @transform_8(%arg0: i32) -> (i32, i32) {
    %c0_i32 = arith.constant 0 : i32
    %c0_i32_0 = arith.constant 0 : i32
    %c0_i32_1 = arith.constant 0 : i32
    return %c0_i32, %c0_i32_0 : i32, i32
  }
  func.func @transform_9(%arg0: i32) -> (i32, i32) {
    %c0_i32 = arith.constant 0 : i32
    %c0_i32_0 = arith.constant 0 : i32
    %c0_i32_1 = arith.constant 0 : i32
    return %c0_i32, %c0_i32_0 : i32, i32
  }
  func.func @transform_10(%arg0: i32) -> (i32, i32) {
    %c0_i32 = arith.constant 0 : i32
    %c0_i32_0 = arith.constant 0 : i32
    %c0_i32_1 = arith.constant 0 : i32
    return %c0_i32, %c0_i32_0 : i32, i32
  }
  func.func @transform_11(%arg0: i32) -> (i32, i32) {
    %c0_i32 = arith.constant 0 : i32
    %c0_i32_0 = arith.constant 0 : i32
    %c0_i32_1 = arith.constant 0 : i32
    return %c0_i32, %c0_i32_0 : i32, i32
  }
  func.func @transform_12(%arg0: i32) -> (i32, i32) {
    %c0_i32 = arith.constant 0 : i32
    %c0_i32_0 = arith.constant 0 : i32
    %c0_i32_1 = arith.constant 0 : i32
    return %c0_i32, %c0_i32_0 : i32, i32
  }
  func.func @transform_13(%arg0: i32) -> (i32, i32, i32) {
    %c0_i32 = arith.constant 0 : i32
    %c0_i32_0 = arith.constant 0 : i32
    %c0_i32_1 = arith.constant 0 : i32
    return %arg0, %c0_i32, %c0_i32_0 : i32, i32, i32
  }
}

</mosaic_0001>

<bundles_post_ra>
// kernel: depth_feature_extractor.1
= control target key start
LH: loop header
LB: loop body
LE: loop exit
PB: predicated region body
PF: predicated region fallthrough
CT: control target
= control target key end

     0   :  { %s28769_s0 = inlined_call_operand.vmem [shape: f32[2,66,66,8], index: 0, kind: input, shape index: {}]   ;;  %s28770_s1 = inlined_call_operand.vmem [shape: bf16[72,16], index: 1, kind: input, shape index: {}]   ;;  %s28771_s2 = inlined_call_operand.vmem [shape: f32[1,16], index: 2, kind: input, shape index: {}]   ;;  %s28772_s3 = inlined_call_operand.vmem [shape: bf16[144,32], index: 3, kind: input, shape index: {}]   ;;  %s28773_s4 = inlined_call_operand.vmem [shape: f32[1,32], index: 4, kind: input, shape index: {}]   ;;  %s28774_s5 = inlined_call_operand.vmem [shape: bf16[288,64], index: 5, kind: input, shape index: {}]   ;;  %s28775_s6 = inlined_call_operand.vmem [shape: f32[1,64], index: 6, kind: input, shape index: {}]   ;;  %s28776_s7 = inlined_call_operand.vmem [shape: bf16[576,128], index: 7, kind: input, shape index: {}]   ;;  %s28777_s8 = inlined_call_operand.vmem [shape: f32[1,128], index: 8, kind: input, shape index: {}]   ;;  %s28778_s9 = inlined_call_operand.vmem [shape: bf16[128,512], index: 9, kind: input, shape index: {}]   ;;  %s28779_s10 = inlined_call_operand.vmem [shape: f32[1,512], index: 10, kind: input, shape index: {}]   ;;  %s28780_s11 = inlined_call_operand.vmem [shape: bf16[512,64], index: 11, kind: input, shape index: {}]   ;;  %s28781_s12 = inlined_call_operand.vmem [shape: f32[1,64], index: 12, kind: input, shape index: {}]   ;;  %s28782_s13 = inlined_call_operand.hbm [shape: f32[2,1,64], index: 13, kind: output, shape index: {}]  }
   0x1   :  { %28853 = sst [smem:[#allocation45_spill]] %s28769_s0 }
   0x2   :  { %28854 = sst [smem:[#allocation46_spill]] %s28770_s1 }
   0x3   :  { %28855 = sst [smem:[#allocation47_spill]] %s28771_s2 }
   0x4   :  { %28856 = sst [smem:[#allocation48_spill]] %s28772_s3 }
   0x5   :  { %18 = vsyncpa [#allocation6], 0 }
   0x6   :  { %20 = vsyncpa [#allocation6 + $0x1], 0  ;;  %s24618_s25 = smov 0   ;;  %s24620_s26 = smov 0  }
   0x7   :  { %s24622_s27 = smov 0   ;;  %s24624_s28 = smov 0  }
   0x8 LB: > { %s24639_s29 = sadd.s32 4294967295, %s24540_s28   ;;  %s18039_s30 = sadd.s32 4294967294, %s24540_s28   ;;  %s24540_s28 = sphi %s24624_s28, %s29024_s28   ;;  %s24536_s27 = sphi %s24622_s27, %s29023_s27   ;;  %s24532_s26 = sphi %s24620_s26, %s29022_s26   ;;  %s24528_s25 = sphi %s24618_s25, %s29021_s25  }
   0x9   : > { %s24643_s14 = sadd.s32 1, %s24540_s28   ;;  %s311_s15 = sadd.s32 1, %s24536_s27 }
   0xa   : > { %s308_s16 = ssub.s32 %s24540_s28, %s24643_s14  ;;  %p321_p0 = scmp.ne.s32.totalorder %s24536_s27, %s24532_s26 }
   0xb   : > { %p309_p1 = scmp.eq.s32.totalorder %s308_s16, 0  ;;  %p322_p2 = scmp.eq.s32.totalorder %s24639_s29, 1 }
   0xc   : > { %p327_p3 = scmp.ne.s32.totalorder %s24532_s26, %s24528_s25  ;;  %p328_p4 = scmp.eq.s32.totalorder %s18039_s30, 1 }
   0xd   : > { %s24654_s17 = scalar_select %p309_p1, %s24536_s27, %s311_s15  }
   0xe   : > { %p24656_p5 = por %p322_p2, %p321_p0  ;;  %p24660_p6 = por %p328_p4, %p327_p3 }
   0xf   : > { %p18042_p7 = scmp.ge.s32.totalorder %s24540_s28, 1  ;;  %p390_p8 = scmp.lt.s32.totalorder %s24540_s28, 3 }
  0x11   : > { %p391_p9 = pnand %p18042_p7, %p390_p8 }
  0x13   : > { %394 = sbr.rel (%p391_p9) target bundleno = 3174 (0xc66), region = 72 }
  0x1a   : > { %s28859_s1 = sld [smem:[#allocation46_spill]]  ;;  %vm656_vm0 = vcmask 1043456   ;;  %p433_p10 = scmp.lt.s32.totalorder %s24639_s29, 1  ;;  %vm607_vm1 = vcmask 64512   ;;  %vm10535_vm2 = vcmask 130048   ;;  %vm10545_vm3 = vcmask 122880  }
  0x1b   : > { %s28860_s0 = sld [smem:[#allocation45_spill]]  ;;  %s28954_s3 = sld [smem:[#allocation48_spill]]  ;;  %vm10538_vm4 = vcmask 123904   ;;  %vm24543_vm5 = vmmov 0   ;;  %vm12741_vm6 = vcmask 259072   ;;  %vm12746_vm7 = vcmask 253952  }
  0x1c   : > { %s434_s24 = scalar_select %p433_p10, %s24639_s29, 1  ;;  %vm12748_vm8 = vcmask 257024   ;;  %vm12753_vm9 = vcmask 261124   ;;  %vm12843_vm10 = vcmask 261120   ;;  %vm14689_vm11 = vcmask 519168  }
  0x1d   : > { %s28956_s2 = sld [smem:[#allocation47_spill]]  ;;  %vm14805_vm12 = vcmask 523264   ;;  %vm14694_vm13 = vcmask 516096   ;;  %vm14696_vm14 = vcmask 517120   ;;  %vm14701_vm15 = vcmask 519170   ;;  %s431_s21 = sand.u32 1, %s24532_s26  }
  0x1e   : > { %s24280_s30 = smul.u32 4752, %s434_s24  ;;  %s17230_s15 = scalar_lea.sflag [#allocation6], %s431_s21 }
  0x20   : > { %v440_v0 = vld [vmem:[%s28859_s1 + $0x4] sm:$0xf]  ;;  %v439_v2 = vld [vmem:[%s28859_s1] sm:$0xf]  ;;  %v24709_v22 = vld [vmem:[%s28859_s1 + $0x8] sm:$0xf] }
  0x21   : > { %24244 = vmatprep.subr.msk.bf16.mxu0 %vm656_vm0, %v440_v0  ;;  %v24672_v1 = vsel %vm656_vm0, %v440_v0, 0  ;;  %24253 = vmatprep.subr.msk.bf16.mxu1 %vm656_vm0, %v440_v0  ;;  %v24684_v3 = vsel %vm656_vm0, %v439_v2, 0  ;;  %s24689_s20 = scalar_lea.vmem %s28860_s0, %s24280_s30 }
  0x22   : > { %20677 = vmatpush3.bf16.msra.mxu0 %v24672_v1  ;;  %20983 = vmatpush3.bf16.msra.mxu1 %v24672_v1  ;;  %v18075_v4 = vld [vmem:[%s24689_s20 + $0x1] ss:$4 sm:$0xff]  ;;  %v18475_v6 = vld [vmem:[%s24689_s20 + $0x3] ss:$4 sm:$0xff] }
  0x23   : > { %24245 = vmatprep.subr.msk.bf16.mxu0 %vm656_vm0, %v439_v2  ;;  %24254 = vmatprep.subr.msk.bf16.mxu1 %vm656_vm0, %v439_v2  ;;  %v18076_v5 = vld [vmem:[%s24689_s20 + $0x21] ss:$4 sm:$0xff]  ;;  %v18476_v8 = vld [vmem:[%s24689_s20 + $0x23] ss:$4 sm:$0xff] }
  0x24   : > { %v591_v7 = vpack.c.bf16 %v18076_v5, %v18075_v4  ;;  %v18077_v9 = vld [vmem:[%s24689_s20 + $0x121] ss:$4 sm:$0xff]  ;;  %v3365_v11 = vpack.c.bf16 %v18476_v8, %v18475_v6  ;;  %v18477_v13 = vld [vmem:[%s24689_s20 + $0x123] ss:$4 sm:$0xff] }
  0x25   : > { %v18078_v10 = vld [vmem:[%s24689_s20 + $0x141] ss:$4 sm:$0xff]  ;;  %v18478_v14 = vld [vmem:[%s24689_s20 + $0x143] ss:$4 sm:$0xff] }
  0x26   : > { %v592_v12 = vpack.c.bf16 %v18078_v10, %v18077_v9  ;;  %v18079_v15 = vld [vmem:[%s24689_s20 + $0x241] ss:$4 sm:$0xff]  ;;  %20678 = vmatprep.mubr.msk.bf16.mxu0 %vm607_vm1, %v591_v7  ;;  %v3366_v16 = vpack.c.bf16 %v18478_v14, %v18477_v13  ;;  %v18479_v18 = vld [vmem:[%s24689_s20 + $0x243] ss:$4 sm:$0xff]  ;;  %20984 = vmatprep.mubr.msk.bf16.mxu1 %vm607_vm1, %v3365_v11 }
  0x27   : > { %v18080_v17 = vld [vmem:[%s24689_s20 + $0x261] ss:$4 sm:$0xff]  ;;  %v18480_v19 = vld [vmem:[%s24689_s20 + $0x263] ss:$4 sm:$0xff] }
  0x28   : > { %20679 = vmatmul.mubr.msk.bf16.vlgmr.msra.gmra.mrb[0].mxu0 %vm607_vm1, %v592_v12  ;;  %v593_v20 = vpack.c.bf16 %v18080_v17, %v18079_v15  ;;  %v3367_v21 = vpack.c.bf16 %v18480_v19, %v18479_v18  ;;  %20985 = vmatmul.mubr.msk.bf16.vlgmr.msra.gmra.mrb[0].mxu1 %vm607_vm1, %v3366_v16  ;;  %v18081_v23 = vld [vmem:[%s24689_s20 + $0x361] ss:$4 sm:$0xff]  ;;  %v18481_v25 = vld [vmem:[%s24689_s20 + $0x363] ss:$4 sm:$0xff] }
  0x29   : > { %20711 = vmatpush3.bf16.msra.mxu0 %v24684_v3  ;;  %v18082_v24 = vld [vmem:[%s24689_s20 + $0x381] ss:$4 sm:$0xff]  ;;  %21017 = vmatpush3.bf16.msra.mxu1 %v24684_v3  ;;  %v18482_v26 = vld [vmem:[%s24689_s20 + $0x383] ss:$4 sm:$0xff] }
  0x2a   : > { %20682 = vmatprep.mubr.msk.bf16.mxu0 %vm607_vm1, %v593_v20  ;;  %v18083_v27 = vld [vmem:[%s24689_s20 + $0x481] ss:$4 sm:$0xff]  ;;  %20988 = vmatprep.mubr.msk.bf16.mxu1 %vm607_vm1, %v3367_v21  ;;  %v18483_v29 = vld [vmem:[%s24689_s20 + $0x483] ss:$4 sm:$0xff]  ;;  %v594_v31 = vpack.c.bf16 %v18082_v24, %v18081_v23  ;;  %v3368_v32 = vpack.c.bf16 %v18482_v26, %v18481_v25 }
  0x2b   : > { %v18084_v28 = vld [vmem:[%s24689_s20 + $0x4a1] ss:$4 sm:$0xff]  ;;  %v18484_v30 = vld [vmem:[%s24689_s20 + $0x4a3] ss:$4 sm:$0xff]  ;;  %24246 = vmatprep.subr.msk.bf16.mxu0 %vm656_vm0, %v24709_v22  ;;  %24255 = vmatprep.subr.msk.bf16.mxu1 %vm656_vm0, %v24709_v22 }
  0x2c   : > { %v595_v33 = vpack.c.bf16 %v18084_v28, %v18083_v27  ;;  %v3369_v34 = vpack.c.bf16 %v18484_v30, %v18483_v29  ;;  %v18085_v35 = vld [vmem:[%s24689_s20 + $0x5a1] ss:$4 sm:$0xff]  ;;  %v18485_v37 = vld [vmem:[%s24689_s20 + $0x5a3] ss:$4 sm:$0xff] }
  0x2d   : > { %v18086_v36 = vld [vmem:[%s24689_s20 + $0x5c1] ss:$4 sm:$0xff]  ;;  %v18486_v38 = vld [vmem:[%s24689_s20 + $0x5c3] ss:$4 sm:$0xff] }
  0x2e   : > { %v18087_v39 = vld [vmem:[%s24689_s20 + $0x6c1] ss:$4 sm:$0xff]  ;;  %v18487_v41 = vld [vmem:[%s24689_s20 + $0x6c3] ss:$4 sm:$0xff]  ;;  %v596_v43 = vpack.c.bf16 %v18086_v36, %v18085_v35  ;;  %v3370_v44 = vpack.c.bf16 %v18486_v38, %v18485_v37  ;;  %v448_v38 = vld [vmem:[%s24689_s20] ss:$4 sm:$0xff] }
  0x2f   : > { %v18088_v40 = vld [vmem:[%s24689_s20 + $0x6e1] ss:$4 sm:$0xff]  ;;  %v18488_v42 = vld [vmem:[%s24689_s20 + $0x6e3] ss:$4 sm:$0xff] }
  0x30   : > { %20683 = vmatmul.mubr.msk.bf16.gmra.mrb[4].mxu0 %vm607_vm1, %v594_v31  ;;  %20989 = vmatmul.mubr.msk.bf16.gmra.mrb[4].mxu1 %vm607_vm1, %v3368_v32  ;;  %v597_v45 = vpack.c.bf16 %v18088_v40, %v18087_v39  ;;  %v3371_v46 = vpack.c.bf16 %v18488_v42, %v18487_v41  ;;  %v18089_v47 = vld [vmem:[%s24689_s20 + $0x7e1] ss:$4 sm:$0xff]  ;;  %v18489_v49 = vld [vmem:[%s24689_s20 + $0x7e3] ss:$4 sm:$0xff]  ;;  %v18044_v39 = vld [vmem:[%s24689_s20 + $0x20] ss:$4 sm:$0xff] }
  0x31   : > { %20686 = vmatprep.mubr.msk.bf16.mxu0 %vm607_vm1, %v595_v33  ;;  %20992 = vmatprep.mubr.msk.bf16.mxu1 %vm607_vm1, %v3369_v34  ;;  %v18090_v48 = vld [vmem:[%s24689_s20 + $0x801] ss:$4 sm:$0xff]  ;;  %v18490_v50 = vld [vmem:[%s24689_s20 + $0x803] ss:$4 sm:$0xff]  ;;  %v18139_v40 = vld [vmem:[%s24689_s20 + $0x2] ss:$4 sm:$0xff] }
  0x32   : > { %v18091_v51 = vld [vmem:[%s24689_s20 + $0x901] ss:$4 sm:$0xff]  ;;  %v18491_v53 = vld [vmem:[%s24689_s20 + $0x903] ss:$4 sm:$0xff]  ;;  %v598_v55 = vpack.c.bf16 %v18090_v48, %v18089_v47  ;;  %v3372_v56 = vpack.c.bf16 %v18490_v50, %v18489_v49  ;;  %v18140_v41 = vld [vmem:[%s24689_s20 + $0x22] ss:$4 sm:$0xff] }
  0x33   : > { %v18092_v52 = vld [vmem:[%s24689_s20 + $0x921] ss:$4 sm:$0xff]  ;;  %v18492_v54 = vld [vmem:[%s24689_s20 + $0x923] ss:$4 sm:$0xff]  ;;  %v18046_v47 = vld [vmem:[%s24689_s20 + $0x140] ss:$4 sm:$0xff] }
  0x34   : > { %v599_v57 = vpack.c.bf16 %v18092_v52, %v18091_v51  ;;  %v3373_v58 = vpack.c.bf16 %v18492_v54, %v18491_v53  ;;  %v18093_v59 = vld [vmem:[%s24689_s20 + $0xa21] ss:$4 sm:$0xff]  ;;  %v18493_v61 = vld [vmem:[%s24689_s20 + $0xa23] ss:$4 sm:$0xff]  ;;  %v18141_v48 = vld [vmem:[%s24689_s20 + $0x122] ss:$4 sm:$0xff] }
  0x35   : > { %v18094_v60 = vld [vmem:[%s24689_s20 + $0xa41] ss:$4 sm:$0xff]  ;;  %v18494_v62 = vld [vmem:[%s24689_s20 + $0xa43] ss:$4 sm:$0xff]  ;;  %v18142_v49 = vld [vmem:[%s24689_s20 + $0x142] ss:$4 sm:$0xff] }
  0x36   : > { %v18095_v63 = vld [vmem:[%s24689_s20 + $0xb41] ss:$4 sm:$0xff]  ;;  %v18495_v2 = vld [vmem:[%s24689_s20 + $0xb43] ss:$4 sm:$0xff]  ;;  %v600_v5 = vpack.c.bf16 %v18094_v60, %v18093_v59  ;;  %v3374_v6 = vpack.c.bf16 %v18494_v62, %v18493_v61  ;;  %v18047_v50 = vld [vmem:[%s24689_s20 + $0x240] ss:$4 sm:$0xff] }
  0x37   : > { %v18096_v0 = vld [vmem:[%s24689_s20 + $0xb61] ss:$4 sm:$0xff]  ;;  %v18496_v4 = vld [vmem:[%s24689_s20 + $0xb63] ss:$4 sm:$0xff]  ;;  %v18048_v51 = vld [vmem:[%s24689_s20 + $0x260] ss:$4 sm:$0xff] }
  0x38   : > { %20687 = vmatmul.mubr.msk.bf16.gmra.mrb[8].mxu0 %vm607_vm1, %v596_v43  ;;  %20993 = vmatmul.mubr.msk.bf16.gmra.mrb[8].mxu1 %vm607_vm1, %v3370_v44  ;;  %v601_v7 = vpack.c.bf16 %v18096_v0, %v18095_v63  ;;  %v3375_v8 = vpack.c.bf16 %v18496_v4, %v18495_v2  ;;  %v18097_v9 = vld [vmem:[%s24689_s20 + $0xc61] ss:$4 sm:$0xff]  ;;  %v18497_v11 = vld [vmem:[%s24689_s20 + $0xc63] ss:$4 sm:$0xff]  ;;  %v511_v44 = vpack.c.bf16 %v18044_v39, %v448_v38  ;;  %v18143_v52 = vld [vmem:[%s24689_s20 + $0x242] ss:$4 sm:$0xff] }
  0x39   : > { %20690 = vmatprep.mubr.msk.bf16.mxu0 %vm607_vm1, %v597_v45  ;;  %20996 = vmatprep.mubr.msk.bf16.mxu1 %vm607_vm1, %v3371_v46  ;;  %v18098_v10 = vld [vmem:[%s24689_s20 + $0xc81] ss:$4 sm:$0xff]  ;;  %v18498_v12 = vld [vmem:[%s24689_s20 + $0xc83] ss:$4 sm:$0xff]  ;;  %v24800_v45 = vpack.c.bf16 %v18140_v41, %v18139_v40  ;;  %v18045_v46 = vld [vmem:[%s24689_s20 + $0x120] ss:$4 sm:$0xff] }
  0x3a   : > { %v18099_v13 = vld [vmem:[%s24689_s20 + $0xd81] ss:$4 sm:$0xff]  ;;  %v18499_v15 = vld [vmem:[%s24689_s20 + $0xd83] ss:$4 sm:$0xff]  ;;  %v602_v17 = vpack.c.bf16 %v18098_v10, %v18097_v9  ;;  %v3376_v18 = vpack.c.bf16 %v18498_v12, %v18497_v11  ;;  %v18144_v53 = vld [vmem:[%s24689_s20 + $0x262] ss:$4 sm:$0xff]  ;;  %v512_v54 = vpack.c.bf16 %v18046_v47, %v18045_v46 }
  0x3b   : > { %v18100_v14 = vld [vmem:[%s24689_s20 + $0xda1] ss:$4 sm:$0xff]  ;;  %v18500_v16 = vld [vmem:[%s24689_s20 + $0xda3] ss:$4 sm:$0xff]  ;;  %v24826_v59 = vpack.c.bf16 %v18144_v53, %v18143_v52  ;;  %v18049_v60 = vld [vmem:[%s24689_s20 + $0x360] ss:$4 sm:$0xff] }
  0x3c   : > { %v603_v19 = vpack.c.bf16 %v18100_v14, %v18099_v13  ;;  %v3377_v20 = vpack.c.bf16 %v18500_v16, %v18499_v15  ;;  %v18101_v21 = vld [vmem:[%s24689_s20 + $0xea1] ss:$4 sm:$0xff]  ;;  %v18501_v24 = vld [vmem:[%s24689_s20 + $0xea3] ss:$4 sm:$0xff]  ;;  %v18050_v61 = vld [vmem:[%s24689_s20 + $0x380] ss:$4 sm:$0xff] }
  0x3d   : > { %v18102_v23 = vld [vmem:[%s24689_s20 + $0xec1] ss:$4 sm:$0xff]  ;;  %v18502_v25 = vld [vmem:[%s24689_s20 + $0xec3] ss:$4 sm:$0xff]  ;;  %v18145_v62 = vld [vmem:[%s24689_s20 + $0x362] ss:$4 sm:$0xff] }
  0x3e   : > { %v18103_v26 = vld [vmem:[%s24689_s20 + $0xfc1] ss:$4 sm:$0xff]  ;;  %v18503_v28 = vld [vmem:[%s24689_s20 + $0xfc3] ss:$4 sm:$0xff]  ;;  %v604_v30 = vpack.c.bf16 %v18102_v23, %v18101_v21  ;;  %v3378_v31 = vpack.c.bf16 %v18502_v25, %v18501_v24  ;;  %v18051_v63 = vld [vmem:[%s24689_s20 + $0x480] ss:$4 sm:$0xff] }
  0x3f   : > { %v18104_v27 = vld [vmem:[%s24689_s20 + $0xfe1] ss:$4 sm:$0xff]  ;;  %v18504_v29 = vld [vmem:[%s24689_s20 + $0xfe3] ss:$4 sm:$0xff]  ;;  %v18052_v0 = vld [vmem:[%s24689_s20 + $0x4a0] ss:$4 sm:$0xff] }
  0x40   : > { %20691 = vmatmul.mubr.msk.bf16.gmra.mrb[12].mxu0 %vm607_vm1, %v598_v55  ;;  %20997 = vmatmul.mubr.msk.bf16.gmra.mrb[12].mxu1 %vm607_vm1, %v3372_v56  ;;  %v605_v32 = vpack.c.bf16 %v18104_v27, %v18103_v26  ;;  %v3379_v33 = vpack.c.bf16 %v18504_v29, %v18503_v28  ;;  %v18105_v34 = vld [vmem:[%s24689_s20 + $0x10e1] ss:$4 sm:$0xff]  ;;  %v18505_v36 = vld [vmem:[%s24689_s20 + $0x10e3] ss:$4 sm:$0xff]  ;;  %v24815_v55 = vpack.c.bf16 %v18142_v49, %v18141_v48  ;;  %v24819_v56 = vsel %vm656_vm0, %v24709_v22, 0 }
  0x41   : > { %20694 = vmatprep.mubr.msk.bf16.mxu0 %vm607_vm1, %v599_v57  ;;  %21000 = vmatprep.mubr.msk.bf16.mxu1 %vm607_vm1, %v3373_v58  ;;  %v18106_v35 = vld [vmem:[%s24689_s20 + $0x1101] ss:$4 sm:$0xff]  ;;  %v18506_v37 = vld [vmem:[%s24689_s20 + $0x1103] ss:$4 sm:$0xff]  ;;  %v513_v57 = vpack.c.bf16 %v18048_v51, %v18047_v50  ;;  %v18146_v22 = vld [vmem:[%s24689_s20 + $0x382] ss:$4 sm:$0xff] }
  0x42   : > { %v606_v42 = vpack.c.bf16 %v18106_v35, %v18105_v34  ;;  %v3380_v43 = vpack.c.bf16 %v18506_v37, %v18505_v36  ;;  %v24824_v58 = vld [vmem:[%s28859_s1 + $0xc] sm:$0xf] }
  0x43   : > { %v18147_v2 = vld [vmem:[%s24689_s20 + $0x482] ss:$4 sm:$0xff]  ;;  %v18053_v9 = vld [vmem:[%s24689_s20 + $0x5a0] ss:$4 sm:$0xff] }
  0x44   : > { %v18148_v4 = vld [vmem:[%s24689_s20 + $0x4a2] ss:$4 sm:$0xff]  ;;  %v18054_v10 = vld [vmem:[%s24689_s20 + $0x5c0] ss:$4 sm:$0xff] }
  0x45   : > { %v18149_v11 = vld [vmem:[%s24689_s20 + $0x5a2] ss:$4 sm:$0xff]  ;;  %v18055_v13 = vld [vmem:[%s24689_s20 + $0x6c0] ss:$4 sm:$0xff] }
  0x46   : > { %v18150_v12 = vld [vmem:[%s24689_s20 + $0x5c2] ss:$4 sm:$0xff]  ;;  %v18056_v14 = vld [vmem:[%s24689_s20 + $0x6e0] ss:$4 sm:$0xff] }
  0x47   : > { %v18151_v15 = vld [vmem:[%s24689_s20 + $0x6c2] ss:$4 sm:$0xff]  ;;  %v18057_v21 = vld [vmem:[%s24689_s20 + $0x7e0] ss:$4 sm:$0xff] }
  0x48   : > { %20695 = vmatmul.mubr.msk.bf16.gmra.mrb[16].mxu0 %vm607_vm1, %v600_v5  ;;  %21001 = vmatmul.mubr.msk.bf16.gmra.mrb[16].mxu1 %vm607_vm1, %v3374_v6  ;;  %v514_v5 = vpack.c.bf16 %v18050_v61, %v18049_v60  ;;  %v24848_v6 = vpack.c.bf16 %v18146_v22, %v18145_v62  ;;  %v18152_v16 = vld [vmem:[%s24689_s20 + $0x6e2] ss:$4 sm:$0xff]  ;;  %v18058_v23 = vld [vmem:[%s24689_s20 + $0x800] ss:$4 sm:$0xff] }
  0x49   : > { %20698 = vmatprep.mubr.msk.bf16.mxu0 %vm607_vm1, %v601_v7  ;;  %21004 = vmatprep.mubr.msk.bf16.mxu1 %vm607_vm1, %v3375_v8  ;;  %v515_v7 = vpack.c.bf16 %v18052_v0, %v18051_v63  ;;  %v24850_v8 = vpack.c.bf16 %v18148_v4, %v18147_v2  ;;  %v18153_v24 = vld [vmem:[%s24689_s20 + $0x7e2] ss:$4 sm:$0xff]  ;;  %v18059_v26 = vld [vmem:[%s24689_s20 + $0x900] ss:$4 sm:$0xff] }
  0x4a   : > { %v18154_v25 = vld [vmem:[%s24689_s20 + $0x802] ss:$4 sm:$0xff]  ;;  %v18060_v27 = vld [vmem:[%s24689_s20 + $0x920] ss:$4 sm:$0xff] }
  0x4b   : > { %v18155_v28 = vld [vmem:[%s24689_s20 + $0x902] ss:$4 sm:$0xff]  ;;  %v18061_v34 = vld [vmem:[%s24689_s20 + $0xa20] ss:$4 sm:$0xff] }
  0x4c   : > { %v18156_v29 = vld [vmem:[%s24689_s20 + $0x922] ss:$4 sm:$0xff]  ;;  %v18062_v35 = vld [vmem:[%s24689_s20 + $0xa40] ss:$4 sm:$0xff] }
  0x4d   : > { %v18157_v36 = vld [vmem:[%s24689_s20 + $0xa22] ss:$4 sm:$0xff]  ;;  %v18063_v38 = vld [vmem:[%s24689_s20 + $0xb40] ss:$4 sm:$0xff] }
  0x4e   : > { %v18158_v37 = vld [vmem:[%s24689_s20 + $0xa42] ss:$4 sm:$0xff]  ;;  %v18064_v39 = vld [vmem:[%s24689_s20 + $0xb60] ss:$4 sm:$0xff] }
  0x4f   : > { %v18159_v40 = vld [vmem:[%s24689_s20 + $0xb42] ss:$4 sm:$0xff]  ;;  %v18065_v47 = vld [vmem:[%s24689_s20 + $0xc60] ss:$4 sm:$0xff] }
  0x50   : > { %20699 = vmatmul.mubr.msk.bf16.gmra.mrb[20].mxu0 %vm607_vm1, %v602_v17  ;;  %21005 = vmatmul.mubr.msk.bf16.gmra.mrb[20].mxu1 %vm607_vm1, %v3376_v18  ;;  %v516_v17 = vpack.c.bf16 %v18054_v10, %v18053_v9  ;;  %v24866_v18 = vpack.c.bf16 %v18150_v12, %v18149_v11  ;;  %v18160_v41 = vld [vmem:[%s24689_s20 + $0xb62] ss:$4 sm:$0xff]  ;;  %v18066_v48 = vld [vmem:[%s24689_s20 + $0xc80] ss:$4 sm:$0xff] }
  0x51   : > { %20702 = vmatprep.mubr.msk.bf16.mxu0 %vm607_vm1, %v603_v19  ;;  %21008 = vmatprep.mubr.msk.bf16.mxu1 %vm607_vm1, %v3377_v20  ;;  %v517_v19 = vpack.c.bf16 %v18056_v14, %v18055_v13  ;;  %v24868_v20 = vpack.c.bf16 %v18152_v16, %v18151_v15  ;;  %v24904_v46 = vpack.c.bf16 %v18160_v41, %v18159_v40  ;;  %v18161_v49 = vld [vmem:[%s24689_s20 + $0xc62] ss:$4 sm:$0xff]  ;;  %v18067_v51 = vld [vmem:[%s24689_s20 + $0xd80] ss:$4 sm:$0xff] }
  0x52   : > { %v18162_v50 = vld [vmem:[%s24689_s20 + $0xc82] ss:$4 sm:$0xff]  ;;  %v18068_v52 = vld [vmem:[%s24689_s20 + $0xda0] ss:$4 sm:$0xff] }
  0x53   : > { %v18163_v53 = vld [vmem:[%s24689_s20 + $0xd82] ss:$4 sm:$0xff]  ;;  %v24920_v60 = vpack.c.bf16 %v18162_v50, %v18161_v49  ;;  %v523_v61 = vpack.c.bf16 %v18068_v52, %v18067_v51  ;;  %v18069_v22 = vld [vmem:[%s24689_s20 + $0xea0] ss:$4 sm:$0xff] }
  0x54   : > { %v18070_v63 = vld [vmem:[%s24689_s20 + $0xec0] ss:$4 sm:$0xff]  ;;  %v18165_v0 = vld [vmem:[%s24689_s20 + $0xea2] ss:$4 sm:$0xff] }
  0x55   : > { %v18166_v2 = vld [vmem:[%s24689_s20 + $0xec2] ss:$4 sm:$0xff]  ;;  %v18071_v4 = vld [vmem:[%s24689_s20 + $0xfc0] ss:$4 sm:$0xff]  ;;  %v524_v10 = vpack.c.bf16 %v18070_v63, %v18069_v22 }
  0x56   : > { %v18168_v9 = vld [vmem:[%s24689_s20 + $0xfe2] ss:$4 sm:$0xff]  ;;  %v24938_v11 = vpack.c.bf16 %v18166_v2, %v18165_v0  ;;  %v18073_v14 = vld [vmem:[%s24689_s20 + $0x10e0] ss:$4 sm:$0xff] }
  0x57   : > { %v18074_v15 = vld [vmem:[%s24689_s20 + $0x1100] ss:$4 sm:$0xff]  ;;  %v18169_v16 = vld [vmem:[%s24689_s20 + $0x10e2] ss:$4 sm:$0xff] }
  0x58   : > { %20703 = vmatmul.mubr.msk.bf16.gmra.mrb[24].mxu0 %vm607_vm1, %v604_v30  ;;  %21009 = vmatmul.mubr.msk.bf16.gmra.mrb[24].mxu1 %vm607_vm1, %v3378_v31  ;;  %v518_v30 = vpack.c.bf16 %v18058_v23, %v18057_v21  ;;  %v24884_v31 = vpack.c.bf16 %v18154_v25, %v18153_v24  ;;  %v18540_v21 = vld [vmem:[%s24689_s20 + $0x24] ss:$4 sm:$0xff]  ;;  %v526_v23 = vpack.c.bf16 %v18074_v15, %v18073_v14 }
  0x59   : > { %20706 = vmatprep.mubr.msk.bf16.mxu0 %vm607_vm1, %v605_v32  ;;  %21012 = vmatprep.mubr.msk.bf16.mxu1 %vm607_vm1, %v3379_v33  ;;  %v519_v32 = vpack.c.bf16 %v18060_v27, %v18059_v26  ;;  %v24886_v33 = vpack.c.bf16 %v18156_v29, %v18155_v28  ;;  %v18541_v26 = vld [vmem:[%s24689_s20 + $0x124] ss:$4 sm:$0xff] }
  0x5a   : > { %v18542_v27 = vld [vmem:[%s24689_s20 + $0x144] ss:$4 sm:$0xff] }
  0x5b   : > { %v18543_v28 = vld [vmem:[%s24689_s20 + $0x244] ss:$4 sm:$0xff] }
  0x5c   : > { %v18544_v29 = vld [vmem:[%s24689_s20 + $0x264] ss:$4 sm:$0xff] }
  0x5d   : > { %v18551_v40 = vld [vmem:[%s24689_s20 + $0x6c4] ss:$4 sm:$0xff] }
  0x5e   : > { %v18552_v41 = vld [vmem:[%s24689_s20 + $0x6e4] ss:$4 sm:$0xff] }
  0x5f   : > { %v18559_v51 = vld [vmem:[%s24689_s20 + $0xb44] ss:$4 sm:$0xff] }
  0x60   : > { %20707 = vmatmul.mubr.msk.bf16.gmra.mrb[28].mxu0 %vm607_vm1, %v606_v42  ;;  %21013 = vmatmul.mubr.msk.bf16.gmra.mrb[28].mxu1 %vm607_vm1, %v3380_v43  ;;  %v520_v42 = vpack.c.bf16 %v18062_v35, %v18061_v34  ;;  %v24902_v43 = vpack.c.bf16 %v18158_v37, %v18157_v36  ;;  %v3817_v34 = vpack.c.bf16 %v18544_v29, %v18543_v28  ;;  %v18547_v35 = vld [vmem:[%s24689_s20 + $0x484] ss:$4 sm:$0xff] }
  0x61   : > { %20712 = vmatprep.mubr.msk.bf16.mxu0 %vm607_vm1, %v511_v44  ;;  %21018 = vmatprep.mubr.msk.bf16.mxu1 %vm607_vm1, %v24800_v45  ;;  %v521_v44 = vpack.c.bf16 %v18064_v39, %v18063_v38  ;;  %v18548_v36 = vld [vmem:[%s24689_s20 + $0x4a4] ss:$4 sm:$0xff] }
  0x62   : > { %v3819_v38 = vpack.c.bf16 %v18548_v36, %v18547_v35  ;;  %v18550_v39 = vld [vmem:[%s24689_s20 + $0x5c4] ss:$4 sm:$0xff]  ;;  %v18290_v35 = vld [vmem:[%s24689_s20 + $0x3ca] ss:$4 sm:$0xff] }
  0x63   : > { %v18560_v52 = vld [vmem:[%s24689_s20 + $0xb64] ss:$4 sm:$0xff] }
  0x64   : > { %v18567_v0 = vld [vmem:[%s24689_s20 + $0xfc4] ss:$4 sm:$0xff] }
  0x65   : > { %v18568_v2 = vld [vmem:[%s24689_s20 + $0xfe4] ss:$4 sm:$0xff] }
  0x66   : > { %v18195_v36 = vld [vmem:[%s24689_s20 + $0x4c8] ss:$4 sm:$0xff] }
  0x68   : > { %20713 = vmatmul.mubr.msk.bf16.vlgmr.msra.gmra.mrb[0].mxu0 %vm607_vm1, %v512_v54  ;;  %21019 = vmatmul.mubr.msk.bf16.vlgmr.msra.gmra.mrb[0].mxu1 %vm607_vm1, %v24815_v55  ;;  %v18164_v54 = vld [vmem:[%s24689_s20 + $0xda2] ss:$4 sm:$0xff] }
  0x69   : > { %20745 = vmatpush3.bf16.msra.mxu0 %v24819_v56  ;;  %21051 = vmatpush3.bf16.msra.mxu1 %v24819_v56  ;;  %v24922_v62 = vpack.c.bf16 %v18164_v54, %v18163_v53  ;;  %v3825_v54 = vpack.c.bf16 %v18560_v52, %v18559_v51 }
  0x6a   : > { %20716 = vmatprep.mubr.msk.bf16.mxu0 %vm607_vm1, %v513_v57  ;;  %21022 = vmatprep.mubr.msk.bf16.mxu1 %vm607_vm1, %v24826_v59  ;;  %v522_v57 = vpack.c.bf16 %v18066_v48, %v18065_v47  ;;  %v18555_v47 = vld [vmem:[%s24689_s20 + $0x904] ss:$4 sm:$0xff] }
  0x6b   : > { %24247 = vmatprep.subr.msk.bf16.mxu0 %vm656_vm0, %v24824_v58  ;;  %24256 = vmatprep.subr.msk.bf16.mxu1 %vm656_vm0, %v24824_v58  ;;  %v18556_v48 = vld [vmem:[%s24689_s20 + $0x924] ss:$4 sm:$0xff] }
  0x6c   : > { %v3823_v50 = vpack.c.bf16 %v18556_v48, %v18555_v47  ;;  %v18294_v47 = vld [vmem:[%s24689_s20 + $0x60a] ss:$4 sm:$0xff]  ;;  %v18199_v48 = vld [vmem:[%s24689_s20 + $0x708] ss:$4 sm:$0xff] }
  0x70   : > { %20717 = vmatmul.mubr.msk.bf16.gmra.mrb[4].mxu0 %vm607_vm1, %v514_v5  ;;  %21023 = vmatmul.mubr.msk.bf16.gmra.mrb[4].mxu1 %vm607_vm1, %v24848_v6  ;;  %v18072_v5 = vld [vmem:[%s24689_s20 + $0xfe0] ss:$4 sm:$0xff] }
  0x71   : > { %20720 = vmatprep.mubr.msk.bf16.mxu0 %vm607_vm1, %v515_v7  ;;  %21026 = vmatprep.mubr.msk.bf16.mxu1 %vm607_vm1, %v24850_v8  ;;  %v18167_v7 = vld [vmem:[%s24689_s20 + $0xfc2] ss:$4 sm:$0xff]  ;;  %v525_v12 = vpack.c.bf16 %v18072_v5, %v18071_v4  ;;  %v3829_v5 = vpack.c.bf16 %v18568_v2, %v18567_v0 }
  0x72   : > { %v24940_v13 = vpack.c.bf16 %v18168_v9, %v18167_v7  ;;  %v18187_v7 = vld [vmem:[%s24689_s20 + $0x48] ss:$4 sm:$0xff] }
  0x73   : > { %v18188_v9 = vld [vmem:[%s24689_s20 + $0x68] ss:$4 sm:$0xff] }
  0x74   : > { %v1421_v14 = vpack.c.bf16 %v18188_v9, %v18187_v7  ;;  %v18302_v7 = vld [vmem:[%s24689_s20 + $0xa8a] ss:$4 sm:$0xff]  ;;  %v18207_v9 = vld [vmem:[%s24689_s20 + $0xb88] ss:$4 sm:$0xff] }
  0x78   : > { %20721 = vmatmul.mubr.msk.bf16.gmra.mrb[8].mxu0 %vm607_vm1, %v516_v17  ;;  %21027 = vmatmul.mubr.msk.bf16.gmra.mrb[8].mxu1 %vm607_vm1, %v24866_v18  ;;  %v18170_v17 = vld [vmem:[%s24689_s20 + $0x1102] ss:$4 sm:$0xff] }
  0x79   : > { %20724 = vmatprep.mubr.msk.bf16.mxu0 %vm607_vm1, %v517_v19  ;;  %21030 = vmatprep.mubr.msk.bf16.mxu1 %vm607_vm1, %v24868_v20  ;;  %v18539_v19 = vld [vmem:[%s24689_s20 + $0x4] ss:$4 sm:$0xff]  ;;  %v24954_v24 = vpack.c.bf16 %v18170_v17, %v18169_v16  ;;  %v18285_v17 = vld [vmem:[%s24689_s20 + $0x16a] ss:$4 sm:$0xff] }
  0x7a   : > { %v3815_v25 = vpack.c.bf16 %v18540_v21, %v18539_v19  ;;  %v18190_v16 = vld [vmem:[%s24689_s20 + $0x188] ss:$4 sm:$0xff]  ;;  %v18286_v19 = vld [vmem:[%s24689_s20 + $0x18a] ss:$4 sm:$0xff] }
  0x7b   : > { %v18191_v21 = vld [vmem:[%s24689_s20 + $0x288] ss:$4 sm:$0xff] }
  0x80   : > { %20725 = vmatmul.mubr.msk.bf16.gmra.mrb[12].mxu0 %vm607_vm1, %v518_v30  ;;  %21031 = vmatmul.mubr.msk.bf16.gmra.mrb[12].mxu1 %vm607_vm1, %v24884_v31  ;;  %v3816_v30 = vpack.c.bf16 %v18542_v27, %v18541_v26  ;;  %v18287_v26 = vld [vmem:[%s24689_s20 + $0x28a] ss:$4 sm:$0xff]  ;;  %v25069_v27 = vpack.c.bf16 %v18286_v19, %v18285_v17  ;;  %v18209_v19 = vld [vmem:[%s24689_s20 + $0xca8] ss:$4 sm:$0xff] }
  0x81   : > { %20728 = vmatprep.mubr.msk.bf16.mxu0 %vm607_vm1, %v519_v32  ;;  %21034 = vmatprep.mubr.msk.bf16.mxu1 %vm607_vm1, %v24886_v33  ;;  %v24968_v32 = vsel %vm656_vm0, %v24824_v58, 0  ;;  %v18545_v58 = vld [vmem:[%s24689_s20 + $0x364] ss:$4 sm:$0xff] }
  0x82   : > { %28861 = vst [vmem:[#allocation8_spill] sm:$0xff] %v24968_v32 }
  0x88   : > { %20729 = vmatmul.mubr.msk.bf16.gmra.mrb[16].mxu0 %vm607_vm1, %v520_v42  ;;  %21035 = vmatmul.mubr.msk.bf16.gmra.mrb[16].mxu1 %vm607_vm1, %v24902_v43 }
  0x89   : > { %20732 = vmatprep.mubr.msk.bf16.mxu0 %vm607_vm1, %v521_v44  ;;  %21038 = vmatprep.mubr.msk.bf16.mxu1 %vm607_vm1, %v24904_v46  ;;  %v3821_v44 = vpack.c.bf16 %v18552_v41, %v18551_v40 }
  0x90   : > { %20733 = vmatmul.mubr.msk.bf16.gmra.mrb[20].mxu0 %vm607_vm1, %v522_v57  ;;  %21039 = vmatmul.mubr.msk.bf16.gmra.mrb[20].mxu1 %vm607_vm1, %v24920_v60  ;;  %v18563_v57 = vld [vmem:[%s24689_s20 + $0xd84] ss:$4 sm:$0xff] }
  0x91   : > { %20736 = vmatprep.mubr.msk.bf16.mxu0 %vm607_vm1, %v523_v61  ;;  %21042 = vmatprep.mubr.msk.bf16.mxu1 %vm607_vm1, %v24922_v62  ;;  %v18564_v61 = vld [vmem:[%s24689_s20 + $0xda4] ss:$4 sm:$0xff] }
  0x92   : > { %v3827_v63 = vpack.c.bf16 %v18564_v61, %v18563_v57  ;;  %v18298_v57 = vld [vmem:[%s24689_s20 + $0x84a] ss:$4 sm:$0xff]  ;;  %v18203_v61 = vld [vmem:[%s24689_s20 + $0x948] ss:$4 sm:$0xff] }
  0x98   : > { %20737 = vmatmul.mubr.msk.bf16.gmra.mrb[24].mxu0 %vm607_vm1, %v524_v10  ;;  %21043 = vmatmul.mubr.msk.bf16.gmra.mrb[24].mxu1 %vm607_vm1, %v24938_v11  ;;  %v18283_v10 = vld [vmem:[%s24689_s20 + $0x4a] ss:$4 sm:$0xff] }
  0x99   : > { %20740 = vmatprep.mubr.msk.bf16.mxu0 %vm607_vm1, %v525_v12  ;;  %21046 = vmatprep.mubr.msk.bf16.mxu1 %vm607_vm1, %v24940_v13 }
  0xa0   : > { %20741 = vmatmul.mubr.msk.bf16.gmra.mrb[28].mxu0 %vm607_vm1, %v526_v23  ;;  %21047 = vmatmul.mubr.msk.bf16.gmra.mrb[28].mxu1 %vm607_vm1, %v24954_v24  ;;  %v18192_v23 = vld [vmem:[%s24689_s20 + $0x2a8] ss:$4 sm:$0xff] }
  0xa1   : > { %20746 = vmatprep.mubr.msk.bf16.mxu0 %vm607_vm1, %v24800_v45  ;;  %21052 = vmatprep.mubr.msk.bf16.mxu1 %vm607_vm1, %v3815_v25  ;;  %v24975_v45 = vld [vmem:[%s28859_s1 + $0x10] sm:$0xf]  ;;  %v1423_v29 = vpack.c.bf16 %v18192_v23, %v18191_v21 }
  0xa2   : > { %v25073_v28 = vsel %vm656_vm0, %v24975_v45, 0  ;;  %v18210_v21 = vld [vmem:[%s24689_s20 + $0xcc8] ss:$4 sm:$0xff]  ;;  %v18305_v23 = vld [vmem:[%s24689_s20 + $0xcaa] ss:$4 sm:$0xff] }
  0xa3   : > { %28862 = vst [vmem:[#allocation9_spill] sm:$0xff] %v25073_v28 }
  0xa8   : > { %20747 = vmatmul.mubr.msk.bf16.vlgmr.msra.gmra.mrb[0].mxu0 %vm607_vm1, %v24815_v55  ;;  %21053 = vmatmul.mubr.msk.bf16.vlgmr.msra.gmra.mrb[0].mxu1 %vm607_vm1, %v3816_v30  ;;  %v18546_v55 = vld [vmem:[%s24689_s20 + $0x384] ss:$4 sm:$0xff] }
  0xa9   : > { %20779 = vmatpush3.bf16.msra.mxu0 %v24968_v32  ;;  %21085 = vmatpush3.bf16.msra.mxu1 %v24968_v32  ;;  %v3818_v37 = vpack.c.bf16 %v18546_v55, %v18545_v58  ;;  %v18193_v58 = vld [vmem:[%s24689_s20 + $0x3a8] ss:$4 sm:$0xff]  ;;  %v18289_v55 = vld [vmem:[%s24689_s20 + $0x3aa] ss:$4 sm:$0xff] }
  0xaa   : > { %20750 = vmatprep.mubr.msk.bf16.mxu0 %vm607_vm1, %v24826_v59  ;;  %21056 = vmatprep.mubr.msk.bf16.mxu1 %vm607_vm1, %v3817_v34  ;;  %v18549_v59 = vld [vmem:[%s24689_s20 + $0x5a4] ss:$4 sm:$0xff]  ;;  %v25102_v40 = vpack.c.bf16 %v18290_v35, %v18289_v55 }
  0xab   : > { %24248 = vmatprep.subr.msk.bf16.mxu0 %vm656_vm0, %v24975_v45  ;;  %24257 = vmatprep.subr.msk.bf16.mxu1 %vm656_vm0, %v24975_v45  ;;  %v3820_v42 = vpack.c.bf16 %v18550_v39, %v18549_v59  ;;  %v25081_v34 = vld [vmem:[%s28859_s1 + $0x14] sm:$0xf] }
  0xac   : > { %v18194_v45 = vld [vmem:[%s24689_s20 + $0x3c8] ss:$4 sm:$0xff]  ;;  %v18292_v59 = vld [vmem:[%s24689_s20 + $0x4ea] ss:$4 sm:$0xff] }
  0xad   : > { %v1424_v39 = vpack.c.bf16 %v18194_v45, %v18193_v58  ;;  %v18308_v58 = vld [vmem:[%s24689_s20 + $0xdea] ss:$4 sm:$0xff]  ;;  %v1432_v45 = vpack.c.bf16 %v18210_v21, %v18209_v19 }
  0xb0   : > { %20751 = vmatmul.mubr.msk.bf16.gmra.mrb[4].mxu0 %vm607_vm1, %v24848_v6  ;;  %21057 = vmatmul.mubr.msk.bf16.gmra.mrb[4].mxu1 %vm607_vm1, %v3818_v37  ;;  %v18553_v6 = vld [vmem:[%s24689_s20 + $0x7e4] ss:$4 sm:$0xff] }
  0xb1   : > { %20754 = vmatprep.mubr.msk.bf16.mxu0 %vm607_vm1, %v24850_v8  ;;  %21060 = vmatprep.mubr.msk.bf16.mxu1 %vm607_vm1, %v3819_v38  ;;  %v18554_v8 = vld [vmem:[%s24689_s20 + $0x804] ss:$4 sm:$0xff]  ;;  %v18291_v38 = vld [vmem:[%s24689_s20 + $0x4ca] ss:$4 sm:$0xff] }
  0xb2   : > { %v3822_v49 = vpack.c.bf16 %v18554_v8, %v18553_v6  ;;  %v18196_v37 = vld [vmem:[%s24689_s20 + $0x4e8] ss:$4 sm:$0xff]  ;;  %v18293_v8 = vld [vmem:[%s24689_s20 + $0x5ea] ss:$4 sm:$0xff] }
  0xb3   : > { %v1425_v41 = vpack.c.bf16 %v18196_v37, %v18195_v36  ;;  %v18198_v6 = vld [vmem:[%s24689_s20 + $0x608] ss:$4 sm:$0xff]  ;;  %v25120_v51 = vpack.c.bf16 %v18294_v47, %v18293_v8  ;;  %v18312_v8 = vld [vmem:[%s24689_s20 + $0x102a] ss:$4 sm:$0xff] }
  0xb4   : > { %v18213_v37 = vld [vmem:[%s24689_s20 + $0xee8] ss:$4 sm:$0xff] }
  0xb8   : > { %20755 = vmatmul.mubr.msk.bf16.gmra.mrb[8].mxu0 %vm607_vm1, %v24866_v18  ;;  %21061 = vmatmul.mubr.msk.bf16.gmra.mrb[8].mxu1 %vm607_vm1, %v3820_v42  ;;  %v18557_v18 = vld [vmem:[%s24689_s20 + $0xa24] ss:$4 sm:$0xff]  ;;  %v25104_v42 = vpack.c.bf16 %v18292_v59, %v18291_v38  ;;  %v18309_v59 = vld [vmem:[%s24689_s20 + $0xeea] ss:$4 sm:$0xff] }
  0xb9   : > { %20758 = vmatprep.mubr.msk.bf16.mxu0 %vm607_vm1, %v24868_v20  ;;  %21064 = vmatprep.mubr.msk.bf16.mxu1 %vm607_vm1, %v3821_v44  ;;  %v18558_v20 = vld [vmem:[%s24689_s20 + $0xa44] ss:$4 sm:$0xff] }
  0xba   : > { %v3824_v53 = vpack.c.bf16 %v18558_v20, %v18557_v18  ;;  %v18197_v44 = vld [vmem:[%s24689_s20 + $0x5e8] ss:$4 sm:$0xff]  ;;  %v18296_v18 = vld [vmem:[%s24689_s20 + $0x72a] ss:$4 sm:$0xff] }
  0xbb   : > { %v1426_v20 = vpack.c.bf16 %v18198_v6, %v18197_v44  ;;  %v18214_v38 = vld [vmem:[%s24689_s20 + $0xf08] ss:$4 sm:$0xff]  ;;  %v18311_v6 = vld [vmem:[%s24689_s20 + $0x100a] ss:$4 sm:$0xff] }
  0xbc   : > { %v18216_v44 = vld [vmem:[%s24689_s20 + $0x1028] ss:$4 sm:$0xff]  ;;  %v1434_v47 = vpack.c.bf16 %v18214_v38, %v18213_v37 }
  0xc0   : > { %20759 = vmatmul.mubr.msk.bf16.gmra.mrb[12].mxu0 %vm607_vm1, %v24884_v31  ;;  %21065 = vmatmul.mubr.msk.bf16.gmra.mrb[12].mxu1 %vm607_vm1, %v3822_v49  ;;  %v18561_v31 = vld [vmem:[%s24689_s20 + $0xc64] ss:$4 sm:$0xff] }
  0xc1   : > { %20762 = vmatprep.mubr.msk.bf16.mxu0 %vm607_vm1, %v24886_v33  ;;  %21068 = vmatprep.mubr.msk.bf16.mxu1 %vm607_vm1, %v3823_v50  ;;  %v18562_v33 = vld [vmem:[%s24689_s20 + $0xc84] ss:$4 sm:$0xff]  ;;  %v18295_v50 = vld [vmem:[%s24689_s20 + $0x70a] ss:$4 sm:$0xff] }
  0xc2   : > { %v3826_v22 = vpack.c.bf16 %v18562_v33, %v18561_v31  ;;  %v18200_v49 = vld [vmem:[%s24689_s20 + $0x728] ss:$4 sm:$0xff]  ;;  %v18297_v33 = vld [vmem:[%s24689_s20 + $0x82a] ss:$4 sm:$0xff] }
  0xc3   : > { %v1427_v52 = vpack.c.bf16 %v18200_v49, %v18199_v48  ;;  %v18202_v31 = vld [vmem:[%s24689_s20 + $0x848] ss:$4 sm:$0xff]  ;;  %v25138_v0 = vpack.c.bf16 %v18298_v57, %v18297_v33  ;;  %v18236_v33 = vld [vmem:[%s24689_s20 + $0x69] ss:$4 sm:$0xff]  ;;  %v18603_v57 = vld [vmem:[%s24689_s20 + $0x4b] ss:$4 sm:$0xff] }
  0xc8   : > { %20763 = vmatmul.mubr.msk.bf16.gmra.mrb[16].mxu0 %vm607_vm1, %v24902_v43  ;;  %21069 = vmatmul.mubr.msk.bf16.gmra.mrb[16].mxu1 %vm607_vm1, %v3824_v53  ;;  %v18565_v43 = vld [vmem:[%s24689_s20 + $0xea4] ss:$4 sm:$0xff]  ;;  %v25122_v53 = vpack.c.bf16 %v18296_v18, %v18295_v50  ;;  %v25194_v50 = vpack.c.bf16 %v18312_v8, %v18311_v6  ;;  %v18613_v6 = vld [vmem:[%s24689_s20 + $0x5eb] ss:$4 sm:$0xff] }
  0xc9   : > { %20766 = vmatprep.mubr.msk.bf16.mxu0 %vm607_vm1, %v24904_v46  ;;  %21072 = vmatprep.mubr.msk.bf16.mxu1 %vm607_vm1, %v3825_v54  ;;  %v18566_v46 = vld [vmem:[%s24689_s20 + $0xec4] ss:$4 sm:$0xff]  ;;  %v18614_v8 = vld [vmem:[%s24689_s20 + $0x60b] ss:$4 sm:$0xff] }
  0xca   : > { %v3828_v4 = vpack.c.bf16 %v18566_v46, %v18565_v43  ;;  %v18201_v54 = vld [vmem:[%s24689_s20 + $0x828] ss:$4 sm:$0xff]  ;;  %v18300_v43 = vld [vmem:[%s24689_s20 + $0x96a] ss:$4 sm:$0xff] }
  0xcb   : > { %v1428_v46 = vpack.c.bf16 %v18202_v31, %v18201_v54  ;;  %v18217_v18 = vld [vmem:[%s24689_s20 + $0x1128] ss:$4 sm:$0xff]  ;;  %v18314_v54 = vld [vmem:[%s24689_s20 + $0x114a] ss:$4 sm:$0xff]  ;;  %v18235_v31 = vld [vmem:[%s24689_s20 + $0x49] ss:$4 sm:$0xff] }
  0xd0   : > { %20767 = vmatmul.mubr.msk.bf16.gmra.mrb[20].mxu0 %vm607_vm1, %v24920_v60  ;;  %21073 = vmatmul.mubr.msk.bf16.gmra.mrb[20].mxu1 %vm607_vm1, %v3826_v22  ;;  %v18569_v60 = vld [vmem:[%s24689_s20 + $0x10e4] ss:$4 sm:$0xff] }
  0xd1   : > { %20770 = vmatprep.mubr.msk.bf16.mxu0 %vm607_vm1, %v24922_v62  ;;  %21076 = vmatprep.mubr.msk.bf16.mxu1 %vm607_vm1, %v3827_v63  ;;  %v18570_v62 = vld [vmem:[%s24689_s20 + $0x1104] ss:$4 sm:$0xff]  ;;  %v18299_v63 = vld [vmem:[%s24689_s20 + $0x94a] ss:$4 sm:$0xff] }
  0xd2   : > { %v3830_v12 = vpack.c.bf16 %v18570_v62, %v18569_v60  ;;  %v18204_v22 = vld [vmem:[%s24689_s20 + $0x968] ss:$4 sm:$0xff]  ;;  %v18301_v62 = vld [vmem:[%s24689_s20 + $0xa6a] ss:$4 sm:$0xff] }
  0xd3   : > { %v1429_v2 = vpack.c.bf16 %v18204_v22, %v18203_v61  ;;  %v18206_v60 = vld [vmem:[%s24689_s20 + $0xa88] ss:$4 sm:$0xff]  ;;  %v18604_v61 = vld [vmem:[%s24689_s20 + $0x6b] ss:$4 sm:$0xff] }
  0xd8   : > { %20771 = vmatmul.mubr.msk.bf16.gmra.mrb[24].mxu0 %vm607_vm1, %v24938_v11  ;;  %21077 = vmatmul.mubr.msk.bf16.gmra.mrb[24].mxu1 %vm607_vm1, %v3828_v4  ;;  %v18284_v11 = vld [vmem:[%s24689_s20 + $0x6a] ss:$4 sm:$0xff]  ;;  %v25140_v4 = vpack.c.bf16 %v18300_v43, %v18299_v63  ;;  %v1745_v43 = vpack.c.bf16 %v18236_v33, %v18235_v31 }
  0xd9   : > { %20774 = vmatprep.mubr.msk.bf16.mxu0 %vm607_vm1, %v24940_v13  ;;  %21080 = vmatprep.mubr.msk.bf16.mxu1 %vm607_vm1, %v3829_v5  ;;  %v25053_v15 = vpack.c.bf16 %v18284_v11, %v18283_v10  ;;  %v18189_v13 = vld [vmem:[%s24689_s20 + $0x168] ss:$4 sm:$0xff]  ;;  %v18303_v11 = vld [vmem:[%s24689_s20 + $0xb8a] ss:$4 sm:$0xff] }
  0xda   : > { %v1422_v25 = vpack.c.bf16 %v18190_v16, %v18189_v13  ;;  %v18205_v5 = vld [vmem:[%s24689_s20 + $0xa68] ss:$4 sm:$0xff]  ;;  %v25156_v13 = vpack.c.bf16 %v18302_v7, %v18301_v62  ;;  %v18606_v62 = vld [vmem:[%s24689_s20 + $0x18b] ss:$4 sm:$0xff]  ;;  %v18239_v7 = vld [vmem:[%s24689_s20 + $0x289] ss:$4 sm:$0xff] }
  0xdb   : > { %v18208_v10 = vld [vmem:[%s24689_s20 + $0xba8] ss:$4 sm:$0xff] }
  0xdc   : > { %v1431_v16 = vpack.c.bf16 %v18208_v10, %v18207_v9  ;;  %v18240_v9 = vld [vmem:[%s24689_s20 + $0x2a9] ss:$4 sm:$0xff] }
  0xdd   : > { %v1747_v19 = vpack.c.bf16 %v18240_v9, %v18239_v7 }
  0xe0   : > { %20775 = vmatmul.mubr.msk.bf16.gmra.mrb[28].mxu0 %vm607_vm1, %v24954_v24  ;;  %21081 = vmatmul.mubr.msk.bf16.gmra.mrb[28].mxu1 %vm607_vm1, %v3830_v12  ;;  %v18288_v24 = vld [vmem:[%s24689_s20 + $0x2aa] ss:$4 sm:$0xff] }
  0xe1   : > { %20780 = vmatprep.mubr.msk.bf16.mxu0 %vm607_vm1, %v1421_v14  ;;  %21086 = vmatprep.mubr.msk.bf16.mxu1 %vm607_vm1, %v25053_v15  ;;  %v25075_v30 = vpack.c.bf16 %v18288_v24, %v18287_v26  ;;  %v18304_v12 = vld [vmem:[%s24689_s20 + $0xbaa] ss:$4 sm:$0xff]  ;;  %v1430_v14 = vpack.c.bf16 %v18206_v60, %v18205_v5  ;;  %v18211_v26 = vld [vmem:[%s24689_s20 + $0xdc8] ss:$4 sm:$0xff]  ;;  %v18238_v5 = vld [vmem:[%s24689_s20 + $0x189] ss:$4 sm:$0xff] }
  0xe2   : > { %v25158_v17 = vpack.c.bf16 %v18304_v12, %v18303_v11  ;;  %v18212_v24 = vld [vmem:[%s24689_s20 + $0xde8] ss:$4 sm:$0xff]  ;;  %v18605_v60 = vld [vmem:[%s24689_s20 + $0x16b] ss:$4 sm:$0xff] }
  0xe3   : > { %v1433_v35 = vpack.c.bf16 %v18212_v24, %v18211_v26  ;;  %v18607_v11 = vld [vmem:[%s24689_s20 + $0x28b] ss:$4 sm:$0xff]  ;;  %v18242_v26 = vld [vmem:[%s24689_s20 + $0x3c9] ss:$4 sm:$0xff] }
  0xe4   : > { %v18608_v12 = vld [vmem:[%s24689_s20 + $0x2ab] ss:$4 sm:$0xff] }
  0xe5   : > { %v4331_v21 = vpack.c.bf16 %v18608_v12, %v18607_v11  ;;  %v18609_v24 = vld [vmem:[%s24689_s20 + $0x3ab] ss:$4 sm:$0xff]  ;;  %v18253_v11 = vld [vmem:[%s24689_s20 + $0xa69] ss:$4 sm:$0xff] }
  0xe6   : > { %v18254_v12 = vld [vmem:[%s24689_s20 + $0xa89] ss:$4 sm:$0xff] }
  0xe8   : > { %20781 = vmatmul.mubr.msk.bf16.vlgmr.msra.gmra.mrb[0].mxu0 %vm607_vm1, %v1422_v25  ;;  %21087 = vmatmul.mubr.msk.bf16.vlgmr.msra.gmra.mrb[0].mxu1 %vm607_vm1, %v25069_v27  ;;  %v18306_v25 = vld [vmem:[%s24689_s20 + $0xcca] ss:$4 sm:$0xff] }
  0xe9   : > { %20813 = vmatpush3.bf16.msra.mxu0 %v25073_v28  ;;  %21119 = vmatpush3.bf16.msra.mxu1 %v25073_v28  ;;  %v25174_v55 = vpack.c.bf16 %v18306_v25, %v18305_v23  ;;  %v25233_v23 = vld [vmem:[%s28859_s1 + $0x18] sm:$0xf] }
  0xea   : > { %20784 = vmatprep.mubr.msk.bf16.mxu0 %vm607_vm1, %v1423_v29  ;;  %21090 = vmatprep.mubr.msk.bf16.mxu1 %vm607_vm1, %v25075_v30  ;;  %v18307_v29 = vld [vmem:[%s24689_s20 + $0xdca] ss:$4 sm:$0xff]  ;;  %v18241_v25 = vld [vmem:[%s24689_s20 + $0x3a9] ss:$4 sm:$0xff] }
  0xeb   : > { %24249 = vmatprep.subr.msk.bf16.mxu0 %vm656_vm0, %v25081_v34  ;;  %24258 = vmatprep.subr.msk.bf16.mxu1 %vm656_vm0, %v25081_v34  ;;  %v25176_v36 = vpack.c.bf16 %v18308_v58, %v18307_v29  ;;  %v18243_v29 = vld [vmem:[%s24689_s20 + $0x4c9] ss:$4 sm:$0xff]  ;;  %v1748_v37 = vpack.c.bf16 %v18242_v26, %v18241_v25  ;;  %v18623_v26 = vld [vmem:[%s24689_s20 + $0xb8b] ss:$4 sm:$0xff] }
  0xec   : > { %v18244_v58 = vld [vmem:[%s24689_s20 + $0x4e9] ss:$4 sm:$0xff] }
  0xed   : > { %v18256_v25 = vld [vmem:[%s24689_s20 + $0xba9] ss:$4 sm:$0xff] }
  0xee   : > { %v18398_v28 = vld [vmem:[%s24689_s20 + $0xad1] ss:$4 sm:$0xff] }
  0xf0   : > { %20785 = vmatmul.mubr.msk.bf16.gmra.mrb[4].mxu0 %vm607_vm1, %v1424_v39  ;;  %21091 = vmatmul.mubr.msk.bf16.gmra.mrb[4].mxu1 %vm607_vm1, %v25102_v40  ;;  %v18310_v39 = vld [vmem:[%s24689_s20 + $0xf0a] ss:$4 sm:$0xff] }
  0xf1   : > { %20788 = vmatprep.mubr.msk.bf16.mxu0 %vm607_vm1, %v1425_v41  ;;  %21094 = vmatprep.mubr.msk.bf16.mxu1 %vm607_vm1, %v25104_v42  ;;  %v18215_v41 = vld [vmem:[%s24689_s20 + $0x1008] ss:$4 sm:$0xff]  ;;  %v25192_v48 = vpack.c.bf16 %v18310_v39, %v18309_v59  ;;  %v1749_v59 = vpack.c.bf16 %v18244_v58, %v18243_v29 }
  0xf2   : > { %v1435_v49 = vpack.c.bf16 %v18216_v44, %v18215_v41  ;;  %v18245_v41 = vld [vmem:[%s24689_s20 + $0x5e9] ss:$4 sm:$0xff] }
  0xf3   : > { %v18246_v44 = vld [vmem:[%s24689_s20 + $0x609] ss:$4 sm:$0xff] }
  0xf8   : > { %20789 = vmatmul.mubr.msk.bf16.gmra.mrb[8].mxu0 %vm607_vm1, %v1426_v20  ;;  %21095 = vmatmul.mubr.msk.bf16.gmra.mrb[8].mxu1 %vm607_vm1, %v25120_v51  ;;  %v18218_v20 = vld [vmem:[%s24689_s20 + $0x1148] ss:$4 sm:$0xff] }
  0xf9   : > { %20792 = vmatprep.mubr.msk.bf16.mxu0 %vm607_vm1, %v1427_v52  ;;  %21098 = vmatprep.mubr.msk.bf16.mxu1 %vm607_vm1, %v25122_v53  ;;  %v18313_v52 = vld [vmem:[%s24689_s20 + $0x112a] ss:$4 sm:$0xff]  ;;  %v1436_v22 = vpack.c.bf16 %v18218_v20, %v18217_v18  ;;  %v18615_v18 = vld [vmem:[%s24689_s20 + $0x70b] ss:$4 sm:$0xff] }
  0xfa   : > { %v25210_v63 = vpack.c.bf16 %v18314_v54, %v18313_v52  ;;  %v18616_v20 = vld [vmem:[%s24689_s20 + $0x72b] ss:$4 sm:$0xff]  ;;  %v1750_v52 = vpack.c.bf16 %v18246_v44, %v18245_v41  ;;  %v4334_v54 = vpack.c.bf16 %v18614_v8, %v18613_v6  ;;  %v18260_v41 = vld [vmem:[%s24689_s20 + $0xde9] ss:$4 sm:$0xff] }
  0xfb   : > { %v4335_v33 = vpack.c.bf16 %v18616_v20, %v18615_v18  ;;  %v18627_v44 = vld [vmem:[%s24689_s20 + $0xdcb] ss:$4 sm:$0xff]  ;;  %v18261_v20 = vld [vmem:[%s24689_s20 + $0xee9] ss:$4 sm:$0xff] }
  0xfc   : > { %v18628_v6 = vld [vmem:[%s24689_s20 + $0xdeb] ss:$4 sm:$0xff] }
  0xfd   : > { %v4341_v18 = vpack.c.bf16 %v18628_v6, %v18627_v44 }
 0x100   : > { %20793 = vmatmul.mubr.msk.bf16.gmra.mrb[12].mxu0 %vm607_vm1, %v1428_v46  ;;  %21099 = vmatmul.mubr.msk.bf16.gmra.mrb[12].mxu1 %vm607_vm1, %v25138_v0  ;;  %v4329_v46 = vpack.c.bf16 %v18604_v61, %v18603_v57  ;;  %v18249_v57 = vld [vmem:[%s24689_s20 + $0x829] ss:$4 sm:$0xff] }
 0x101   : > { %20796 = vmatprep.mubr.msk.bf16.mxu0 %vm607_vm1, %v1429_v2  ;;  %21102 = vmatprep.mubr.msk.bf16.mxu1 %vm607_vm1, %v25140_v4  ;;  %v18237_v2 = vld [vmem:[%s24689_s20 + $0x169] ss:$4 sm:$0xff] }
 0x102   : > { %v1746_v10 = vpack.c.bf16 %v18238_v5, %v18237_v2  ;;  %v18250_v61 = vld [vmem:[%s24689_s20 + $0x849] ss:$4 sm:$0xff]  ;;  %v18619_v5 = vld [vmem:[%s24689_s20 + $0x94b] ss:$4 sm:$0xff] }
 0x103   : > { %v18252_v2 = vld [vmem:[%s24689_s20 + $0x969] ss:$4 sm:$0xff] }
 0x108   : > { %20797 = vmatmul.mubr.msk.bf16.gmra.mrb[16].mxu0 %vm607_vm1, %v1430_v14  ;;  %21103 = vmatmul.mubr.msk.bf16.gmra.mrb[16].mxu1 %vm607_vm1, %v25156_v13  ;;  %v4330_v14 = vpack.c.bf16 %v18606_v62, %v18605_v60  ;;  %v18620_v60 = vld [vmem:[%s24689_s20 + $0x96b] ss:$4 sm:$0xff]  ;;  %v1752_v62 = vpack.c.bf16 %v18250_v61, %v18249_v57  ;;  %v18264_v57 = vld [vmem:[%s24689_s20 + $0x1029] ss:$4 sm:$0xff] }
 0x109   : > { %20800 = vmatprep.mubr.msk.bf16.mxu0 %vm607_vm1, %v1431_v16  ;;  %21106 = vmatprep.mubr.msk.bf16.mxu1 %vm607_vm1, %v25158_v17  ;;  %v25227_v16 = vsel %vm656_vm0, %v25081_v34, 0  ;;  %v18610_v34 = vld [vmem:[%s24689_s20 + $0x3cb] ss:$4 sm:$0xff] }
 0x10a   : > { %28863 = vst [vmem:[#allocation10_spill] sm:$0xff] %v25227_v16  ;;  %v4332_v38 = vpack.c.bf16 %v18610_v34, %v18609_v24  ;;  %v18624_v24 = vld [vmem:[%s24689_s20 + $0xbab] ss:$4 sm:$0xff]  ;;  %v1754_v34 = vpack.c.bf16 %v18254_v12, %v18253_v11  ;;  %v18652_v11 = vld [vmem:[%s24689_s20 + $0x6c] ss:$4 sm:$0xff] }
 0x10b   : > { %v18631_v61 = vld [vmem:[%s24689_s20 + $0x100b] ss:$4 sm:$0xff] }
 0x110   : > { %20801 = vmatmul.mubr.msk.bf16.gmra.mrb[20].mxu0 %vm607_vm1, %v1432_v45  ;;  %21107 = vmatmul.mubr.msk.bf16.gmra.mrb[20].mxu1 %vm607_vm1, %v25174_v55  ;;  %v18611_v45 = vld [vmem:[%s24689_s20 + $0x4cb] ss:$4 sm:$0xff] }
 0x111   : > { %20804 = vmatprep.mubr.msk.bf16.mxu0 %vm607_vm1, %v1433_v35  ;;  %21110 = vmatprep.mubr.msk.bf16.mxu1 %vm607_vm1, %v25176_v36  ;;  %v18612_v35 = vld [vmem:[%s24689_s20 + $0x4eb] ss:$4 sm:$0xff] }
 0x112   : > { %v4333_v39 = vpack.c.bf16 %v18612_v35, %v18611_v45  ;;  %v4339_v45 = vpack.c.bf16 %v18624_v24, %v18623_v26  ;;  %v18257_v35 = vld [vmem:[%s24689_s20 + $0xca9] ss:$4 sm:$0xff]  ;;  %v18655_v26 = vld [vmem:[%s24689_s20 + $0x28c] ss:$4 sm:$0xff] }
 0x113   : > { %v18656_v24 = vld [vmem:[%s24689_s20 + $0x2ac] ss:$4 sm:$0xff] }
 0x118   : > { %20805 = vmatmul.mubr.msk.bf16.gmra.mrb[24].mxu0 %vm607_vm1, %v1434_v47  ;;  %21111 = vmatmul.mubr.msk.bf16.gmra.mrb[24].mxu1 %vm607_vm1, %v25192_v48  ;;  %v18247_v47 = vld [vmem:[%s24689_s20 + $0x709] ss:$4 sm:$0xff] }
 0x119   : > { %20808 = vmatprep.mubr.msk.bf16.mxu0 %vm607_vm1, %v1435_v49  ;;  %21114 = vmatprep.mubr.msk.bf16.mxu1 %vm607_vm1, %v25194_v50  ;;  %v18248_v49 = vld [vmem:[%s24689_s20 + $0x729] ss:$4 sm:$0xff] }
 0x11a   : > { %v1751_v31 = vpack.c.bf16 %v18248_v49, %v18247_v47 }
 0x120   : > { %20809 = vmatmul.mubr.msk.bf16.gmra.mrb[28].mxu0 %vm607_vm1, %v1436_v22  ;;  %21115 = vmatmul.mubr.msk.bf16.gmra.mrb[28].mxu1 %vm607_vm1, %v25210_v63  ;;  %v18617_v22 = vld [vmem:[%s24689_s20 + $0x82b] ss:$4 sm:$0xff] }
 0x121   : > { %20814 = vmatprep.mubr.msk.bf16.mxu0 %vm607_vm1, %v1745_v43  ;;  %21120 = vmatprep.mubr.msk.bf16.mxu1 %vm607_vm1, %v4329_v46  ;;  %v18618_v43 = vld [vmem:[%s24689_s20 + $0x84b] ss:$4 sm:$0xff]  ;;  %v18251_v46 = vld [vmem:[%s24689_s20 + $0x949] ss:$4 sm:$0xff] }
 0x122   : > { %v4336_v7 = vpack.c.bf16 %v18618_v43, %v18617_v22  ;;  %v1753_v9 = vpack.c.bf16 %v18252_v2, %v18251_v46  ;;  %v18632_v22 = vld [vmem:[%s24689_s20 + $0x102b] ss:$4 sm:$0xff] }
 0x128   : > { %20815 = vmatmul.mubr.msk.bf16.vlgmr.msra.gmra.mrb[0].mxu0 %vm607_vm1, %v1746_v10  ;;  %21121 = vmatmul.mubr.msk.bf16.vlgmr.msra.gmra.mrb[0].mxu1 %vm607_vm1, %v4330_v14  ;;  %v4337_v10 = vpack.c.bf16 %v18620_v60, %v18619_v5  ;;  %v18621_v14 = vld [vmem:[%s24689_s20 + $0xa6b] ss:$4 sm:$0xff]  ;;  %v4343_v5 = vpack.c.bf16 %v18632_v22, %v18631_v61  ;;  %v18265_v60 = vld [vmem:[%s24689_s20 + $0x1129] ss:$4 sm:$0xff] }
 0x129   : > { %20847 = vmatpush3.bf16.msra.mxu0 %v25227_v16  ;;  %21153 = vmatpush3.bf16.msra.mxu1 %v25227_v16  ;;  %v18397_v16 = vld [vmem:[%s24689_s20 + $0xab1] ss:$4 sm:$0xff] }
 0x12a   : > { %20818 = vmatprep.mubr.msk.bf16.mxu0 %vm607_vm1, %v1747_v19  ;;  %21124 = vmatprep.mubr.msk.bf16.mxu1 %vm607_vm1, %v4331_v21  ;;  %v18622_v19 = vld [vmem:[%s24689_s20 + $0xa8b] ss:$4 sm:$0xff]  ;;  %v18255_v21 = vld [vmem:[%s24689_s20 + $0xb89] ss:$4 sm:$0xff] }
 0x12b   : > { %24250 = vmatprep.subr.msk.bf16.mxu0 %vm656_vm0, %v25233_v23  ;;  %24259 = vmatprep.subr.msk.bf16.mxu1 %vm656_vm0, %v25233_v23  ;;  %v4338_v29 = vpack.c.bf16 %v18622_v19, %v18621_v14  ;;  %v1755_v58 = vpack.c.bf16 %v18256_v25, %v18255_v21  ;;  %v18653_v21 = vld [vmem:[%s24689_s20 + $0x16c] ss:$4 sm:$0xff] }
 0x12c   : > { %v18654_v25 = vld [vmem:[%s24689_s20 + $0x18c] ss:$4 sm:$0xff] }
 0x130   : > { %20819 = vmatmul.mubr.msk.bf16.gmra.mrb[4].mxu0 %vm607_vm1, %v1748_v37  ;;  %21125 = vmatmul.mubr.msk.bf16.gmra.mrb[4].mxu1 %vm607_vm1, %v4332_v38  ;;  %v18258_v37 = vld [vmem:[%s24689_s20 + $0xcc9] ss:$4 sm:$0xff]  ;;  %v18625_v38 = vld [vmem:[%s24689_s20 + $0xcab] ss:$4 sm:$0xff] }
 0x131   : > { %20822 = vmatprep.mubr.msk.bf16.mxu0 %vm607_vm1, %v1749_v59  ;;  %21128 = vmatprep.mubr.msk.bf16.mxu1 %vm607_vm1, %v4333_v39  ;;  %v18626_v59 = vld [vmem:[%s24689_s20 + $0xccb] ss:$4 sm:$0xff]  ;;  %v18259_v39 = vld [vmem:[%s24689_s20 + $0xdc9] ss:$4 sm:$0xff]  ;;  %v1756_v8 = vpack.c.bf16 %v18258_v37, %v18257_v35  ;;  %v18660_v35 = vld [vmem:[%s24689_s20 + $0x4ec] ss:$4 sm:$0xff] }
 0x132   : > { %v4340_v47 = vpack.c.bf16 %v18626_v59, %v18625_v38  ;;  %v1757_v49 = vpack.c.bf16 %v18260_v41, %v18259_v39  ;;  %v18662_v59 = vld [vmem:[%s24689_s20 + $0x60c] ss:$4 sm:$0xff] }
 0x133   : > { %v18663_v39 = vld [vmem:[%s24689_s20 + $0x70c] ss:$4 sm:$0xff] }
 0x134   : > { %v18664_v41 = vld [vmem:[%s24689_s20 + $0x72c] ss:$4 sm:$0xff] }
 0x135   : > { %v4656_v6 = vpack.c.bf16 %v18664_v41, %v18663_v39  ;;  %v18435_v39 = vld [vmem:[%s24689_s20 + $0x512] ss:$4 sm:$0xff] }
 0x136   : > { %v18436_v41 = vld [vmem:[%s24689_s20 + $0x532] ss:$4 sm:$0xff] }
 0x138   : > { %20823 = vmatmul.mubr.msk.bf16.gmra.mrb[8].mxu0 %vm607_vm1, %v1750_v52  ;;  %21129 = vmatmul.mubr.msk.bf16.gmra.mrb[8].mxu1 %vm607_vm1, %v4334_v54  ;;  %v18262_v52 = vld [vmem:[%s24689_s20 + $0xf09] ss:$4 sm:$0xff]  ;;  %v18629_v54 = vld [vmem:[%s24689_s20 + $0xeeb] ss:$4 sm:$0xff] }
 0x139   : > { %20826 = vmatprep.mubr.msk.bf16.mxu0 %vm607_vm1, %v1751_v31  ;;  %21132 = vmatprep.mubr.msk.bf16.mxu1 %vm607_vm1, %v4335_v33  ;;  %v18630_v31 = vld [vmem:[%s24689_s20 + $0xf0b] ss:$4 sm:$0xff]  ;;  %v18263_v33 = vld [vmem:[%s24689_s20 + $0x1009] ss:$4 sm:$0xff]  ;;  %v1758_v43 = vpack.c.bf16 %v18262_v52, %v18261_v20  ;;  %v18671_v20 = vld [vmem:[%s24689_s20 + $0xb8c] ss:$4 sm:$0xff] }
 0x13a   : > { %v4342_v46 = vpack.c.bf16 %v18630_v31, %v18629_v54  ;;  %v1759_v2 = vpack.c.bf16 %v18264_v57, %v18263_v33  ;;  %v18672_v52 = vld [vmem:[%s24689_s20 + $0xbac] ss:$4 sm:$0xff] }
 0x13b   : > { %v4660_v31 = vpack.c.bf16 %v18672_v52, %v18671_v20  ;;  %v18675_v33 = vld [vmem:[%s24689_s20 + $0xdcc] ss:$4 sm:$0xff]  ;;  %v18439_v20 = vld [vmem:[%s24689_s20 + $0x752] ss:$4 sm:$0xff] }
 0x13c   : > { %v18676_v57 = vld [vmem:[%s24689_s20 + $0xdec] ss:$4 sm:$0xff]  ;;  %v18440_v52 = vld [vmem:[%s24689_s20 + $0x772] ss:$4 sm:$0xff] }
 0x13d   : > { %v4662_v22 = vpack.c.bf16 %v18676_v57, %v18675_v33  ;;  %v18345_v33 = vld [vmem:[%s24689_s20 + $0x870] ss:$4 sm:$0xff] }
 0x13e   : > { %v18346_v57 = vld [vmem:[%s24689_s20 + $0x890] ss:$4 sm:$0xff] }
 0x140   : > { %20827 = vmatmul.mubr.msk.bf16.gmra.mrb[12].mxu0 %vm607_vm1, %v1752_v62  ;;  %21133 = vmatmul.mubr.msk.bf16.gmra.mrb[12].mxu1 %vm607_vm1, %v4336_v7  ;;  %v18266_v62 = vld [vmem:[%s24689_s20 + $0x1149] ss:$4 sm:$0xff]  ;;  %v18633_v7 = vld [vmem:[%s24689_s20 + $0x112b] ss:$4 sm:$0xff] }
 0x141   : > { %20830 = vmatprep.mubr.msk.bf16.mxu0 %vm607_vm1, %v1753_v9  ;;  %21136 = vmatprep.mubr.msk.bf16.mxu1 %vm607_vm1, %v4337_v10  ;;  %v18634_v9 = vld [vmem:[%s24689_s20 + $0x114b] ss:$4 sm:$0xff]  ;;  %v18651_v10 = vld [vmem:[%s24689_s20 + $0x4c] ss:$4 sm:$0xff]  ;;  %v1760_v12 = vpack.c.bf16 %v18266_v62, %v18265_v60 }
 0x142   : > { %v4344_v14 = vpack.c.bf16 %v18634_v9, %v18633_v7  ;;  %v4650_v19 = vpack.c.bf16 %v18652_v11, %v18651_v10  ;;  %v18331_v60 = vld [vmem:[%s24689_s20 + $0x90] ss:$4 sm:$0xff]  ;;  %v18427_v7 = vld [vmem:[%s24689_s20 + $0x92] ss:$4 sm:$0xff] }
 0x143   : > { %v18332_v62 = vld [vmem:[%s24689_s20 + $0xb0] ss:$4 sm:$0xff] }
 0x144   : > { %v25418_v10 = vpack.c.bf16 %v18332_v62, %v18331_v60  ;;  %v18349_v60 = vld [vmem:[%s24689_s20 + $0xab0] ss:$4 sm:$0xff] }
 0x145   : > { %v18350_v62 = vld [vmem:[%s24689_s20 + $0xad0] ss:$4 sm:$0xff] }
 0x148   : > { %20831 = vmatmul.mubr.msk.bf16.gmra.mrb[16].mxu0 %vm607_vm1, %v1754_v34  ;;  %21137 = vmatmul.mubr.msk.bf16.gmra.mrb[16].mxu1 %vm607_vm1, %v4338_v29  ;;  %v4651_v34 = vpack.c.bf16 %v18654_v25, %v18653_v21  ;;  %v25333_v29 = vsel %vm656_vm0, %v25233_v23, 0  ;;  %v18657_v23 = vld [vmem:[%s24689_s20 + $0x3ac] ss:$4 sm:$0xff] }
 0x149   : > { %20834 = vmatprep.mubr.msk.bf16.mxu0 %vm607_vm1, %v1755_v58  ;;  %21140 = vmatprep.mubr.msk.bf16.mxu1 %vm607_vm1, %v4339_v45  ;;  %28864 = vst [vmem:[#allocation11_spill] sm:$0xff] %v25333_v29  ;;  %v4652_v58 = vpack.c.bf16 %v18656_v24, %v18655_v26  ;;  %v18659_v45 = vld [vmem:[%s24689_s20 + $0x4cc] ss:$4 sm:$0xff]  ;;  %v18432_v24 = vld [vmem:[%s24689_s20 + $0x2f2] ss:$4 sm:$0xff] }
 0x14a   : > { %v4654_v38 = vpack.c.bf16 %v18660_v35, %v18659_v45  ;;  %v18335_v21 = vld [vmem:[%s24689_s20 + $0x2d0] ss:$4 sm:$0xff] }
 0x14b   : > { %v18336_v25 = vld [vmem:[%s24689_s20 + $0x2f0] ss:$4 sm:$0xff] }
 0x14c   : > { %v25454_v45 = vld [vmem:[%s28859_s1 + $0x20] sm:$0xf] }
 0x14d   : > { %v18338_v35 = vld [vmem:[%s24689_s20 + $0x410] ss:$4 sm:$0xff] }
 0x150   : > { %20835 = vmatmul.mubr.msk.bf16.gmra.mrb[20].mxu0 %vm607_vm1, %v1756_v8  ;;  %21141 = vmatmul.mubr.msk.bf16.gmra.mrb[20].mxu1 %vm607_vm1, %v4340_v47  ;;  %v18667_v8 = vld [vmem:[%s24689_s20 + $0x94c] ss:$4 sm:$0xff] }
 0x151   : > { %20838 = vmatprep.mubr.msk.bf16.mxu0 %vm607_vm1, %v1757_v49  ;;  %21144 = vmatprep.mubr.msk.bf16.mxu1 %vm607_vm1, %v4341_v18  ;;  %v18668_v47 = vld [vmem:[%s24689_s20 + $0x96c] ss:$4 sm:$0xff] }
 0x152   : > { %v4658_v18 = vpack.c.bf16 %v18668_v47, %v18667_v8  ;;  %v18341_v8 = vld [vmem:[%s24689_s20 + $0x630] ss:$4 sm:$0xff] }
 0x153   : > { %v18342_v47 = vld [vmem:[%s24689_s20 + $0x650] ss:$4 sm:$0xff] }
 0x158   : > { %20839 = vmatmul.mubr.msk.bf16.gmra.mrb[24].mxu0 %vm607_vm1, %v1758_v43  ;;  %21145 = vmatmul.mubr.msk.bf16.gmra.mrb[24].mxu1 %vm607_vm1, %v4342_v46  ;;  %v18679_v43 = vld [vmem:[%s24689_s20 + $0x100c] ss:$4 sm:$0xff] }
 0x159   : > { %20842 = vmatprep.mubr.msk.bf16.mxu0 %vm607_vm1, %v1759_v2  ;;  %21148 = vmatprep.mubr.msk.bf16.mxu1 %vm607_vm1, %v4343_v5  ;;  %v18680_v46 = vld [vmem:[%s24689_s20 + $0x102c] ss:$4 sm:$0xff] }
 0x15a   : > { %v4664_v5 = vpack.c.bf16 %v18680_v46, %v18679_v43  ;;  %v18443_v43 = vld [vmem:[%s24689_s20 + $0x992] ss:$4 sm:$0xff] }
 0x15b   : > { %v18444_v46 = vld [vmem:[%s24689_s20 + $0x9b2] ss:$4 sm:$0xff] }
 0x160   : > { %20843 = vmatmul.mubr.msk.bf16.gmra.mrb[28].mxu0 %vm607_vm1, %v1760_v12  ;;  %21149 = vmatmul.mubr.msk.bf16.gmra.mrb[28].mxu1 %vm607_vm1, %v4344_v14  ;;  %v18334_v12 = vld [vmem:[%s24689_s20 + $0x1d0] ss:$4 sm:$0xff]  ;;  %v18429_v14 = vld [vmem:[%s24689_s20 + $0x1b2] ss:$4 sm:$0xff] }
 0x161   : > { %20848 = vmatprep.mubr.msk.bf16.mxu0 %vm607_vm1, %v25053_v15  ;;  %21154 = vmatprep.mubr.msk.bf16.mxu1 %vm607_vm1, %v4650_v19  ;;  %v25340_v15 = vld [vmem:[%s28859_s1 + $0x1c] sm:$0xf] }
 0x162   : > { %v18430_v19 = vld [vmem:[%s24689_s20 + $0x1d2] ss:$4 sm:$0xff] }
 0x168   : > { %20849 = vmatmul.mubr.msk.bf16.vlgmr.msra.gmra.mrb[0].mxu0 %vm607_vm1, %v25069_v27  ;;  %21155 = vmatmul.mubr.msk.bf16.vlgmr.msra.gmra.mrb[0].mxu1 %vm607_vm1, %v4651_v34  ;;  %v18658_v27 = vld [vmem:[%s24689_s20 + $0x3cc] ss:$4 sm:$0xff]  ;;  %v25439_v34 = vpack.c.bf16 %v18430_v19, %v18429_v14  ;;  %v18448_v14 = vld [vmem:[%s24689_s20 + $0xbf2] ss:$4 sm:$0xff]  ;;  %v25548_v19 = vpack.c.bf16 %v18350_v62, %v18349_v60 }
 0x169   : > { %20881 = vmatpush3.bf16.msra.mxu0 %v25333_v29  ;;  %21187 = vmatpush3.bf16.msra.mxu1 %v25333_v29  ;;  %v4653_v37 = vpack.c.bf16 %v18658_v27, %v18657_v23  ;;  %v25445_v23 = vpack.c.bf16 %v18336_v25, %v18335_v21  ;;  %v18362_v60 = vld [vmem:[%s24689_s20 + $0x1190] ss:$4 sm:$0xff]  ;;  %v18457_v62 = vld [vmem:[%s24689_s20 + $0x1172] ss:$4 sm:$0xff] }
 0x16a   : > { %20852 = vmatprep.mubr.msk.bf16.mxu0 %vm607_vm1, %v25075_v30  ;;  %21158 = vmatprep.mubr.msk.bf16.mxu1 %vm607_vm1, %v4652_v58  ;;  %v18661_v30 = vld [vmem:[%s24689_s20 + $0x5ec] ss:$4 sm:$0xff]  ;;  %v25443_v58 = vsel %vm656_vm0, %v25340_v15, 0  ;;  %28869 = vst [vmem:[#allocation16_spill] sm:$0xff] %v25548_v19 }
 0x16b   : > { %24251 = vmatprep.subr.msk.bf16.mxu0 %vm656_vm0, %v25340_v15  ;;  %24260 = vmatprep.subr.msk.bf16.mxu1 %vm656_vm0, %v25340_v15  ;;  %v4655_v44 = vpack.c.bf16 %v18662_v59, %v18661_v30  ;;  %28865 = vst [vmem:[#allocation12_spill] sm:$0xff] %v25443_v58  ;;  %v18337_v15 = vld [vmem:[%s24689_s20 + $0x3f0] ss:$4 sm:$0xff] }
 0x16c   : > { %v18339_v30 = vld [vmem:[%s24689_s20 + $0x510] ss:$4 sm:$0xff] }
 0x16d   : > { %v18340_v59 = vld [vmem:[%s24689_s20 + $0x530] ss:$4 sm:$0xff] }
 0x170   : > { %20853 = vmatmul.mubr.msk.bf16.gmra.mrb[4].mxu0 %vm607_vm1, %v25102_v40  ;;  %21159 = vmatmul.mubr.msk.bf16.gmra.mrb[4].mxu1 %vm607_vm1, %v4653_v37  ;;  %v18665_v40 = vld [vmem:[%s24689_s20 + $0x82c] ss:$4 sm:$0xff]  ;;  %v18433_v37 = vld [vmem:[%s24689_s20 + $0x3f2] ss:$4 sm:$0xff] }
 0x171   : > { %20856 = vmatprep.mubr.msk.bf16.mxu0 %vm607_vm1, %v25104_v42  ;;  %21162 = vmatprep.mubr.msk.bf16.mxu1 %vm607_vm1, %v4654_v38  ;;  %v18666_v42 = vld [vmem:[%s24689_s20 + $0x84c] ss:$4 sm:$0xff]  ;;  %v18434_v38 = vld [vmem:[%s24689_s20 + $0x412] ss:$4 sm:$0xff] }
 0x172   : > { %v4657_v49 = vpack.c.bf16 %v18666_v42, %v18665_v40  ;;  %v25480_v40 = vpack.c.bf16 %v18340_v59, %v18339_v30  ;;  %v25482_v42 = vpack.c.bf16 %v18436_v41, %v18435_v39  ;;  %v18356_v30 = vld [vmem:[%s24689_s20 + $0xe30] ss:$4 sm:$0xff]  ;;  %v18451_v59 = vld [vmem:[%s24689_s20 + $0xe12] ss:$4 sm:$0xff] }
 0x173   : > { %v18452_v39 = vld [vmem:[%s24689_s20 + $0xe32] ss:$4 sm:$0xff] }
 0x178   : > { %20857 = vmatmul.mubr.msk.bf16.gmra.mrb[8].mxu0 %vm607_vm1, %v25120_v51  ;;  %21163 = vmatmul.mubr.msk.bf16.gmra.mrb[8].mxu1 %vm607_vm1, %v4655_v44  ;;  %v18669_v51 = vld [vmem:[%s24689_s20 + $0xa6c] ss:$4 sm:$0xff]  ;;  %v25474_v44 = vpack.c.bf16 %v18338_v35, %v18337_v15  ;;  %v18449_v35 = vld [vmem:[%s24689_s20 + $0xcf2] ss:$4 sm:$0xff] }
 0x179   : > { %20860 = vmatprep.mubr.msk.bf16.mxu0 %vm607_vm1, %v25122_v53  ;;  %21166 = vmatprep.mubr.msk.bf16.mxu1 %vm607_vm1, %v4656_v6  ;;  %v18670_v53 = vld [vmem:[%s24689_s20 + $0xa8c] ss:$4 sm:$0xff]  ;;  %v25478_v6 = vpack.c.bf16 %v18434_v38, %v18433_v37  ;;  %v18450_v37 = vld [vmem:[%s24689_s20 + $0xd12] ss:$4 sm:$0xff] }
 0x17a   : > { %v4659_v54 = vpack.c.bf16 %v18670_v53, %v18669_v51  ;;  %v18343_v51 = vld [vmem:[%s24689_s20 + $0x750] ss:$4 sm:$0xff] }
 0x17b   : > { %v18344_v53 = vld [vmem:[%s24689_s20 + $0x770] ss:$4 sm:$0xff] }
 0x17c   : > { %v18354_v15 = vld [vmem:[%s24689_s20 + $0xd10] ss:$4 sm:$0xff] }
 0x17d   : > { %v18355_v38 = vld [vmem:[%s24689_s20 + $0xe10] ss:$4 sm:$0xff] }
 0x180   : > { %20861 = vmatmul.mubr.msk.bf16.gmra.mrb[12].mxu0 %vm607_vm1, %v25138_v0  ;;  %21167 = vmatmul.mubr.msk.bf16.gmra.mrb[12].mxu1 %vm607_vm1, %v4657_v49  ;;  %v18673_v0 = vld [vmem:[%s24689_s20 + $0xcac] ss:$4 sm:$0xff]  ;;  %v18437_v49 = vld [vmem:[%s24689_s20 + $0x632] ss:$4 sm:$0xff] }
 0x181   : > { %20864 = vmatprep.mubr.msk.bf16.mxu0 %vm607_vm1, %v25140_v4  ;;  %21170 = vmatprep.mubr.msk.bf16.mxu1 %vm607_vm1, %v4658_v18  ;;  %v18674_v4 = vld [vmem:[%s24689_s20 + $0xccc] ss:$4 sm:$0xff]  ;;  %v18438_v18 = vld [vmem:[%s24689_s20 + $0x652] ss:$4 sm:$0xff] }
 0x182   : > { %v4661_v61 = vpack.c.bf16 %v18674_v4, %v18673_v0  ;;  %v25504_v0 = vpack.c.bf16 %v18344_v53, %v18343_v51  ;;  %v25506_v4 = vpack.c.bf16 %v18440_v52, %v18439_v20  ;;  %v18358_v51 = vld [vmem:[%s24689_s20 + $0xf50] ss:$4 sm:$0xff]  ;;  %v18453_v53 = vld [vmem:[%s24689_s20 + $0xf32] ss:$4 sm:$0xff] }
 0x183   : > { %v18454_v20 = vld [vmem:[%s24689_s20 + $0xf52] ss:$4 sm:$0xff]  ;;  %v18359_v52 = vld [vmem:[%s24689_s20 + $0x1050] ss:$4 sm:$0xff] }
 0x184   : > { %28866 = vst [vmem:[#allocation13_spill] sm:$0xff] %v25504_v0 }
 0x188   : > { %20865 = vmatmul.mubr.msk.bf16.gmra.mrb[16].mxu0 %vm607_vm1, %v25156_v13  ;;  %21171 = vmatmul.mubr.msk.bf16.gmra.mrb[16].mxu1 %vm607_vm1, %v4659_v54  ;;  %v18677_v13 = vld [vmem:[%s24689_s20 + $0xeec] ss:$4 sm:$0xff]  ;;  %v25500_v54 = vpack.c.bf16 %v18342_v47, %v18341_v8  ;;  %v25574_v8 = vpack.c.bf16 %v18450_v37, %v18449_v35  ;;  %v25576_v47 = vpack.c.bf16 %v18356_v30, %v18355_v38  ;;  %v18381_v37 = vld [vmem:[%s24689_s20 + $0x1b1] ss:$4 sm:$0xff]  ;;  %v18717_v30 = vld [vmem:[%s24689_s20 + $0x1b3] ss:$4 sm:$0xff] }
 0x189   : > { %20868 = vmatprep.mubr.msk.bf16.mxu0 %vm607_vm1, %v25158_v17  ;;  %21174 = vmatprep.mubr.msk.bf16.mxu1 %vm607_vm1, %v4660_v31  ;;  %v18678_v17 = vld [vmem:[%s24689_s20 + $0xf0c] ss:$4 sm:$0xff]  ;;  %v25502_v31 = vpack.c.bf16 %v18438_v18, %v18437_v49  ;;  %v25578_v49 = vpack.c.bf16 %v18452_v39, %v18451_v59  ;;  %v18382_v38 = vld [vmem:[%s24689_s20 + $0x1d1] ss:$4 sm:$0xff]  ;;  %v18718_v59 = vld [vmem:[%s24689_s20 + $0x1d3] ss:$4 sm:$0xff] }
 0x18a   : > { %v4663_v2 = vpack.c.bf16 %v18678_v17, %v18677_v13  ;;  %v18347_v13 = vld [vmem:[%s24689_s20 + $0x990] ss:$4 sm:$0xff]  ;;  %28873 = vst [vmem:[#allocation20_spill] sm:$0xff] %v25576_v47  ;;  %v18383_v39 = vld [vmem:[%s24689_s20 + $0x2d1] ss:$4 sm:$0xff] }
 0x18b   : > { %v18348_v17 = vld [vmem:[%s24689_s20 + $0x9b0] ss:$4 sm:$0xff] }
 0x18c   : > { %v18357_v18 = vld [vmem:[%s24689_s20 + $0xf30] ss:$4 sm:$0xff] }
 0x190   : > { %20869 = vmatmul.mubr.msk.bf16.gmra.mrb[20].mxu0 %vm607_vm1, %v25174_v55  ;;  %21175 = vmatmul.mubr.msk.bf16.gmra.mrb[20].mxu1 %vm607_vm1, %v4661_v61  ;;  %v18681_v55 = vld [vmem:[%s24689_s20 + $0x112c] ss:$4 sm:$0xff]  ;;  %v18441_v61 = vld [vmem:[%s24689_s20 + $0x872] ss:$4 sm:$0xff] }
 0x191   : > { %20872 = vmatprep.mubr.msk.bf16.mxu0 %vm607_vm1, %v25176_v36  ;;  %21178 = vmatprep.mubr.msk.bf16.mxu1 %vm607_vm1, %v4662_v22  ;;  %v18682_v36 = vld [vmem:[%s24689_s20 + $0x114c] ss:$4 sm:$0xff]  ;;  %v18442_v22 = vld [vmem:[%s24689_s20 + $0x892] ss:$4 sm:$0xff] }
 0x192   : > { %v4665_v9 = vpack.c.bf16 %v18682_v36, %v18681_v55  ;;  %v25528_v55 = vpack.c.bf16 %v18348_v17, %v18347_v13  ;;  %v25530_v36 = vpack.c.bf16 %v18444_v46, %v18443_v43  ;;  %v25598_v13 = vpack.c.bf16 %v18454_v20, %v18453_v53  ;;  %v18361_v46 = vld [vmem:[%s24689_s20 + $0x1170] ss:$4 sm:$0xff]  ;;  %v18719_v53 = vld [vmem:[%s24689_s20 + $0x2d3] ss:$4 sm:$0xff] }
 0x193   : > { %v18720_v20 = vld [vmem:[%s24689_s20 + $0x2f3] ss:$4 sm:$0xff] }
 0x194   : > { %28868 = vst [vmem:[#allocation15_spill] sm:$0xff] %v25528_v55 }
 0x198   : > { %20873 = vmatmul.mubr.msk.bf16.gmra.mrb[24].mxu0 %vm607_vm1, %v25192_v48  ;;  %21179 = vmatmul.mubr.msk.bf16.gmra.mrb[24].mxu1 %vm607_vm1, %v4663_v2  ;;  %v18428_v48 = vld [vmem:[%s24689_s20 + $0xb2] ss:$4 sm:$0xff]  ;;  %v25524_v2 = vpack.c.bf16 %v18346_v57, %v18345_v33  ;;  %v18360_v33 = vld [vmem:[%s24689_s20 + $0x1070] ss:$4 sm:$0xff] }
 0x199   : > { %20876 = vmatprep.mubr.msk.bf16.mxu0 %vm607_vm1, %v25194_v50  ;;  %21182 = vmatprep.mubr.msk.bf16.mxu1 %vm607_vm1, %v4664_v5  ;;  %v25420_v11 = vpack.c.bf16 %v18428_v48, %v18427_v7  ;;  %v18333_v50 = vld [vmem:[%s24689_s20 + $0x1b0] ss:$4 sm:$0xff]  ;;  %v25526_v5 = vpack.c.bf16 %v18442_v22, %v18441_v61  ;;  %v18445_v7 = vld [vmem:[%s24689_s20 + $0xab2] ss:$4 sm:$0xff]  ;;  %v25596_v22 = vpack.c.bf16 %v18358_v51, %v18357_v18  ;;  %v18384_v18 = vld [vmem:[%s24689_s20 + $0x2f1] ss:$4 sm:$0xff] }
 0x19a   : > { %v25435_v26 = vpack.c.bf16 %v18334_v12, %v18333_v50  ;;  %28867 = vst [vmem:[#allocation14_spill] sm:$0xff] %v25524_v2  ;;  %v18446_v48 = vld [vmem:[%s24689_s20 + $0xad2] ss:$4 sm:$0xff]  ;;  %v18352_v50 = vld [vmem:[%s24689_s20 + $0xbf0] ss:$4 sm:$0xff]  ;;  %v25600_v17 = vpack.c.bf16 %v18360_v33, %v18359_v52  ;;  %v25642_v51 = vpack.c.bf16 %v18382_v38, %v18381_v37  ;;  %v25646_v52 = vpack.c.bf16 %v18718_v59, %v18717_v30 }
 0x19b   : > { %v18447_v12 = vld [vmem:[%s24689_s20 + $0xbd2] ss:$4 sm:$0xff]  ;;  %v25550_v21 = vpack.c.bf16 %v18446_v48, %v18445_v7  ;;  %28874 = vst [vmem:[#allocation21_spill] sm:$0xff] %v25596_v22  ;;  %v18379_v48 = vld [vmem:[%s24689_s20 + $0x91] ss:$4 sm:$0xff]  ;;  %v25650_v33 = vsel %vm656_vm0, %v25454_v45, 0 }
 0x19c   : > { %v18455_v57 = vld [vmem:[%s24689_s20 + $0x1052] ss:$4 sm:$0xff]  ;;  %28875 = vst [vmem:[#allocation22_spill] sm:$0xff] %v25600_v17  ;;  %28877 = vst [vmem:[#allocation24_spill] sm:$0xff] %v25650_v33 }
 0x19d   : > { %v18456_v61 = vld [vmem:[%s24689_s20 + $0x1072] ss:$4 sm:$0xff] }
 0x19e   : > { %v25602_v43 = vpack.c.bf16 %v18456_v61, %v18455_v57  ;;  %v18458_v7 = vld [vmem:[%s24689_s20 + $0x1192] ss:$4 sm:$0xff]  ;;  %v25652_v57 = vpack.c.bf16 %v18384_v18, %v18383_v39  ;;  %v25654_v61 = vpack.c.bf16 %v18720_v20, %v18719_v53  ;;  %v18389_v39 = vld [vmem:[%s24689_s20 + $0x631] ss:$4 sm:$0xff]  ;;  %v18725_v53 = vld [vmem:[%s24689_s20 + $0x633] ss:$4 sm:$0xff] }
 0x19f   : > { %v18390_v18 = vld [vmem:[%s24689_s20 + $0x651] ss:$4 sm:$0xff]  ;;  %v18726_v20 = vld [vmem:[%s24689_s20 + $0x653] ss:$4 sm:$0xff] }
 0x1a0   : > { %20877 = vmatmul.mubr.msk.bf16.gmra.mrb[28].mxu0 %vm607_vm1, %v25210_v63  ;;  %21183 = vmatmul.mubr.msk.bf16.gmra.mrb[28].mxu1 %vm607_vm1, %v4665_v9  ;;  %v18431_v63 = vld [vmem:[%s24689_s20 + $0x2d2] ss:$4 sm:$0xff]  ;;  %v18351_v9 = vld [vmem:[%s24689_s20 + $0xbd0] ss:$4 sm:$0xff] }
 0x1a1   : > { %20882 = vmatprep.mubr.msk.bf16.mxu0 %vm607_vm1, %v25418_v10  ;;  %21188 = vmatprep.mubr.msk.bf16.mxu1 %vm607_vm1, %v25420_v11  ;;  %v25447_v27 = vpack.c.bf16 %v18432_v24, %v18431_v63  ;;  %v25552_v25 = vpack.c.bf16 %v18352_v50, %v18351_v9  ;;  %v25554_v63 = vpack.c.bf16 %v18448_v14, %v18447_v12  ;;  %v18353_v24 = vld [vmem:[%s24689_s20 + $0xcf0] ss:$4 sm:$0xff]  ;;  %v18380_v9 = vld [vmem:[%s24689_s20 + $0xb1] ss:$4 sm:$0xff]  ;;  %v18715_v50 = vld [vmem:[%s24689_s20 + $0x93] ss:$4 sm:$0xff] }
 0x1a2   : > { %v25572_v41 = vpack.c.bf16 %v18354_v15, %v18353_v24  ;;  %v18716_v12 = vld [vmem:[%s24689_s20 + $0xb3] ss:$4 sm:$0xff]  ;;  %v25620_v14 = vpack.c.bf16 %v18362_v60, %v18361_v46  ;;  %v25622_v24 = vpack.c.bf16 %v18458_v7, %v18457_v62  ;;  %v25624_v15 = vpack.c.bf16 %v18380_v9, %v18379_v48  ;;  %v18385_v46 = vld [vmem:[%s24689_s20 + $0x3f1] ss:$4 sm:$0xff] }
 0x1a3   : > { %28870 = vst [vmem:[#allocation17_spill] sm:$0xff] %v25552_v25  ;;  %28871 = vst [vmem:[#allocation18_spill] sm:$0xff] %v25554_v63  ;;  %v25626_v35 = vpack.c.bf16 %v18716_v12, %v18715_v50  ;;  %v18386_v60 = vld [vmem:[%s24689_s20 + $0x411] ss:$4 sm:$0xff]  ;;  %v18721_v62 = vld [vmem:[%s24689_s20 + $0x3f3] ss:$4 sm:$0xff] }
 0x1a4   : > { %28872 = vst [vmem:[#allocation19_spill] sm:$0xff] %v25572_v41  ;;  %28876 = vst [vmem:[#allocation23_spill] sm:$0xff] %v25620_v14  ;;  %v18387_v7 = vld [vmem:[%s24689_s20 + $0x511] ss:$4 sm:$0xff]  ;;  %v18723_v9 = vld [vmem:[%s24689_s20 + $0x513] ss:$4 sm:$0xff]  ;;  %v25678_v37 = vpack.c.bf16 %v18386_v60, %v18385_v46 }
 0x1a5   : > { %v18388_v48 = vld [vmem:[%s24689_s20 + $0x531] ss:$4 sm:$0xff]  ;;  %v18724_v50 = vld [vmem:[%s24689_s20 + $0x533] ss:$4 sm:$0xff] }
 0x1a6   : > { %v24468_v12 = vld [vmem:[%s28859_s1 + $0x4] sm:$0xf]  ;;  %v25683_v30 = vpack.c.bf16 %v18388_v48, %v18387_v7  ;;  %v25685_v59 = vpack.c.bf16 %v18724_v50, %v18723_v9  ;;  %v25703_v7 = vpack.c.bf16 %v18390_v18, %v18389_v39  ;;  %v25705_v48 = vpack.c.bf16 %v18726_v20, %v18725_v53 }
 0x1a7   : > { %v18391_v46 = vld [vmem:[%s24689_s20 + $0x751] ss:$4 sm:$0xff]  ;;  %v18729_v39 = vld [vmem:[%s24689_s20 + $0x873] ss:$4 sm:$0xff] }
 0x1a8   : > { %20883 = vmatmul.mubr.msk.bf16.vlgmr.msra.gmra.mrb[0].mxu0 %vm607_vm1, %v25435_v26  ;;  %21189 = vmatmul.mubr.msk.bf16.vlgmr.msra.gmra.mrb[0].mxu1 %vm607_vm1, %v25439_v34  ;;  %v18392_v60 = vld [vmem:[%s24689_s20 + $0x771] ss:$4 sm:$0xff]  ;;  %v18730_v18 = vld [vmem:[%s24689_s20 + $0x893] ss:$4 sm:$0xff] }
 0x1a9   : > { %20915 = vmatpush3.bf16.msra.mxu0 %v25443_v58  ;;  %21221 = vmatpush3.bf16.msra.mxu1 %v25443_v58  ;;  %v25707_v9 = vpack.c.bf16 %v18392_v60, %v18391_v46  ;;  %v18395_v53 = vld [vmem:[%s24689_s20 + $0x991] ss:$4 sm:$0xff]  ;;  %v18731_v46 = vld [vmem:[%s24689_s20 + $0x993] ss:$4 sm:$0xff] }
 0x1aa   : > { %20886 = vmatprep.mubr.msk.bf16.mxu0 %vm607_vm1, %v25445_v23  ;;  %21192 = vmatprep.mubr.msk.bf16.mxu1 %vm607_vm1, %v25447_v27  ;;  %v18396_v20 = vld [vmem:[%s24689_s20 + $0x9b1] ss:$4 sm:$0xff]  ;;  %v18732_v60 = vld [vmem:[%s24689_s20 + $0x9b3] ss:$4 sm:$0xff] }
 0x1ab   : > { %24252 = vmatprep.subr.msk.bf16.mxu0 %vm656_vm0, %v25454_v45  ;;  %24261 = vmatprep.subr.msk.bf16.mxu1 %vm656_vm0, %v25454_v45  ;;  %v18722_v45 = vld [vmem:[%s24689_s20 + $0x413] ss:$4 sm:$0xff]  ;;  %v25731_v58 = vpack.c.bf16 %v18396_v20, %v18395_v53  ;;  %v25733_v29 = vpack.c.bf16 %v18732_v60, %v18731_v46  ;;  %v25751_v46 = vpack.c.bf16 %v18398_v28, %v18397_v16 }
 0x1ac   : > { %v25681_v38 = vpack.c.bf16 %v18722_v45, %v18721_v62  ;;  %v18727_v62 = vld [vmem:[%s24689_s20 + $0x753] ss:$4 sm:$0xff] }
 0x1ad   : > { %v18728_v45 = vld [vmem:[%s24689_s20 + $0x773] ss:$4 sm:$0xff] }
 0x1ae   : > { %v25709_v50 = vpack.c.bf16 %v18728_v45, %v18727_v62  ;;  %v25729_v45 = vpack.c.bf16 %v18730_v18, %v18729_v39  ;;  %v18399_v39 = vld [vmem:[%s24689_s20 + $0xbd1] ss:$4 sm:$0xff]  ;;  %v18735_v53 = vld [vmem:[%s24689_s20 + $0xbd3] ss:$4 sm:$0xff] }
 0x1af   : > { %v18400_v18 = vld [vmem:[%s24689_s20 + $0xbf1] ss:$4 sm:$0xff]  ;;  %v18736_v20 = vld [vmem:[%s24689_s20 + $0xbf3] ss:$4 sm:$0xff] }
 0x1b0   : > { %20887 = vmatmul.mubr.msk.bf16.gmra.mrb[4].mxu0 %vm607_vm1, %v25474_v44  ;;  %21193 = vmatmul.mubr.msk.bf16.gmra.mrb[4].mxu1 %vm607_vm1, %v25478_v6  ;;  %v25755_v32 = vpack.c.bf16 %v18400_v18, %v18399_v39  ;;  %v18737_v28 = vld [vmem:[%s24689_s20 + $0xcf3] ss:$4 sm:$0xff] }
 0x1b1   : > { %20890 = vmatprep.mubr.msk.bf16.mxu0 %vm607_vm1, %v25480_v40  ;;  %21196 = vmatprep.mubr.msk.bf16.mxu1 %vm607_vm1, %v25482_v42  ;;  %v18738_v16 = vld [vmem:[%s24689_s20 + $0xd13] ss:$4 sm:$0xff] }
 0x1b2   : > { %v18739_v39 = vld [vmem:[%s24689_s20 + $0xe13] ss:$4 sm:$0xff] }
 0x1b3   : > { %v18740_v18 = vld [vmem:[%s24689_s20 + $0xe33] ss:$4 sm:$0xff] }
 0x1b8   : > { %20891 = vmatmul.mubr.msk.bf16.gmra.mrb[8].mxu0 %vm607_vm1, %v25500_v54  ;;  %21197 = vmatmul.mubr.msk.bf16.gmra.mrb[8].mxu1 %vm607_vm1, %v25502_v31 }
 0x1b9   : > { %20894 = vmatprep.mubr.msk.bf16.mxu0 %vm607_vm1, %v25504_v0  ;;  %21200 = vmatprep.mubr.msk.bf16.mxu1 %vm607_vm1, %v25506_v4  ;;  %v18409_v0 = vld [vmem:[%s24689_s20 + $0x1171] ss:$4 sm:$0xff] }
 0x1c0   : > { %20895 = vmatmul.mubr.msk.bf16.gmra.mrb[12].mxu0 %vm607_vm1, %v25524_v2  ;;  %21201 = vmatmul.mubr.msk.bf16.gmra.mrb[12].mxu1 %vm607_vm1, %v25526_v5 }
 0x1c1   : > { %20898 = vmatprep.mubr.msk.bf16.mxu0 %vm607_vm1, %v25528_v55  ;;  %21204 = vmatprep.mubr.msk.bf16.mxu1 %vm607_vm1, %v25530_v36 }
 0x1c8   : > { %20899 = vmatmul.mubr.msk.bf16.gmra.mrb[16].mxu0 %vm607_vm1, %v25548_v19  ;;  %21205 = vmatmul.mubr.msk.bf16.gmra.mrb[16].mxu1 %vm607_vm1, %v25550_v21  ;;  %v18406_v19 = vld [vmem:[%s24689_s20 + $0xf51] ss:$4 sm:$0xff] }
 0x1c9   : > { %20902 = vmatprep.mubr.msk.bf16.mxu0 %vm607_vm1, %v25552_v25  ;;  %21208 = vmatprep.mubr.msk.bf16.mxu1 %vm607_vm1, %v25554_v63  ;;  %v18405_v25 = vld [vmem:[%s24689_s20 + $0xf31] ss:$4 sm:$0xff] }
 0x1d0   : > { %20903 = vmatmul.mubr.msk.bf16.gmra.mrb[20].mxu0 %vm607_vm1, %v25572_v41  ;;  %21209 = vmatmul.mubr.msk.bf16.gmra.mrb[20].mxu1 %vm607_vm1, %v25574_v8  ;;  %v25781_v41 = vpack.c.bf16 %v18740_v18, %v18739_v39  ;;  %v25799_v39 = vpack.c.bf16 %v18406_v19, %v18405_v25  ;;  %v18410_v19 = vld [vmem:[%s24689_s20 + $0x1191] ss:$4 sm:$0xff]  ;;  %v18745_v25 = vld [vmem:[%s24689_s20 + $0x1173] ss:$4 sm:$0xff] }
 0x1d1   : > { %20906 = vmatprep.mubr.msk.bf16.mxu0 %vm607_vm1, %v25576_v47  ;;  %21212 = vmatprep.mubr.msk.bf16.mxu1 %vm607_vm1, %v25578_v49 }
 0x1d8   : > { %20907 = vmatmul.mubr.msk.bf16.gmra.mrb[24].mxu0 %vm607_vm1, %v25596_v22  ;;  %21213 = vmatmul.mubr.msk.bf16.gmra.mrb[24].mxu1 %vm607_vm1, %v25598_v13  ;;  %v18402_v22 = vld [vmem:[%s24689_s20 + $0xd11] ss:$4 sm:$0xff] }
 0x1d9   : > { %20910 = vmatprep.mubr.msk.bf16.mxu0 %vm607_vm1, %v25600_v17  ;;  %21216 = vmatprep.mubr.msk.bf16.mxu1 %vm607_vm1, %v25602_v43  ;;  %v18401_v17 = vld [vmem:[%s24689_s20 + $0xcf1] ss:$4 sm:$0xff] }
 0x1e0   : > { %20911 = vmatmul.mubr.msk.bf16.gmra.mrb[28].mxu0 %vm607_vm1, %v25620_v14  ;;  %21217 = vmatmul.mubr.msk.bf16.gmra.mrb[28].mxu1 %vm607_vm1, %v25622_v24  ;;  %v25757_v14 = vpack.c.bf16 %v18736_v20, %v18735_v53  ;;  %v25775_v53 = vpack.c.bf16 %v18402_v22, %v18401_v17  ;;  %v25777_v20 = vpack.c.bf16 %v18738_v16, %v18737_v28  ;;  %v18741_v22 = vld [vmem:[%s24689_s20 + $0xf33] ss:$4 sm:$0xff]  ;;  %v18407_v28 = vld [vmem:[%s24689_s20 + $0x1051] ss:$4 sm:$0xff] }
 0x1e1   : > { %20916 = vmatprep.mubr.msk.bf16.mxu0 %vm607_vm1, %v25624_v15  ;;  %21222 = vmatprep.mubr.msk.bf16.mxu1 %vm607_vm1, %v25626_v35  ;;  %v18742_v17 = vld [vmem:[%s24689_s20 + $0xf53] ss:$4 sm:$0xff]  ;;  %v18408_v16 = vld [vmem:[%s24689_s20 + $0x1071] ss:$4 sm:$0xff] }
 0x1e2   : > { %v25801_v18 = vpack.c.bf16 %v18742_v17, %v18741_v22  ;;  %v25803_v55 = vpack.c.bf16 %v18408_v16, %v18407_v28  ;;  %v18746_v22 = vld [vmem:[%s24689_s20 + $0x1193] ss:$4 sm:$0xff]  ;;  %v18763_v17 = vld [vmem:[%s24689_s20 + $0x94] ss:$4 sm:$0xff]  ;;  %v25821_v16 = vpack.c.bf16 %v18410_v19, %v18409_v0 }
 0x1e3   : > { %v18764_v28 = vld [vmem:[%s24689_s20 + $0xb4] ss:$4 sm:$0xff] }
 0x1e4   : > { %v18765_v0 = vld [vmem:[%s24689_s20 + $0x1b4] ss:$4 sm:$0xff] }
 0x1e5   : > { %v18766_v19 = vld [vmem:[%s24689_s20 + $0x1d4] ss:$4 sm:$0xff] }
 0x1e8   : > { %20917 = vmatmul.mubr.msk.bf16.vlgmr.msra.gmra.mrb[0].mxu0 %vm607_vm1, %v25642_v51  ;;  %21223 = vmatmul.mubr.msk.bf16.vlgmr.msra.gmra.mrb[0].mxu1 %vm607_vm1, %v25646_v52 }
 0x1e9   : > { %20949 = vmatpush3.bf16.msra.mxu0 %v25650_v33  ;;  %21255 = vmatpush3.bf16.msra.mxu1 %v25650_v33  ;;  %v18394_v33 = vld [vmem:[%s24689_s20 + $0x891] ss:$4 sm:$0xff] }
 0x1ea   : > { %20920 = vmatprep.mubr.msk.bf16.mxu0 %vm607_vm1, %v25652_v57  ;;  %21226 = vmatprep.mubr.msk.bf16.mxu1 %vm607_vm1, %v25654_v61 }
 0x1eb   : > { %24262 = vmatprep.subr.msk.bf16.mxu0 %vm656_vm0, %v24468_v12  ;;  %24271 = vmatprep.subr.msk.bf16.mxu1 %vm656_vm0, %v24468_v12  ;;  %v18393_v12 = vld [vmem:[%s24689_s20 + $0x871] ss:$4 sm:$0xff] }
 0x1ec   : > { %v25727_v62 = vpack.c.bf16 %v18394_v33, %v18393_v12  ;;  %v18733_v33 = vld [vmem:[%s24689_s20 + $0xab3] ss:$4 sm:$0xff] }
 0x1ed   : > { %v18734_v12 = vld [vmem:[%s24689_s20 + $0xad3] ss:$4 sm:$0xff] }
 0x1ee   : > { %v25753_v60 = vpack.c.bf16 %v18734_v12, %v18733_v33  ;;  %v18403_v33 = vld [vmem:[%s24689_s20 + $0xe11] ss:$4 sm:$0xff] }
 0x1ef   : > { %v18404_v12 = vld [vmem:[%s24689_s20 + $0xe31] ss:$4 sm:$0xff] }
 0x1f0   : > { %20921 = vmatmul.mubr.msk.bf16.gmra.mrb[4].mxu0 %vm607_vm1, %v25678_v37  ;;  %21227 = vmatmul.mubr.msk.bf16.gmra.mrb[4].mxu1 %vm607_vm1, %v25681_v38  ;;  %v25779_v47 = vpack.c.bf16 %v18404_v12, %v18403_v33  ;;  %v18743_v33 = vld [vmem:[%s24689_s20 + $0x1053] ss:$4 sm:$0xff] }
 0x1f1   : > { %20924 = vmatprep.mubr.msk.bf16.mxu0 %vm607_vm1, %v25683_v30  ;;  %21230 = vmatprep.mubr.msk.bf16.mxu1 %vm607_vm1, %v25685_v59  ;;  %v18744_v12 = vld [vmem:[%s24689_s20 + $0x1073] ss:$4 sm:$0xff] }
 0x1f2   : > { %v25805_v2 = vpack.c.bf16 %v18744_v12, %v18743_v33  ;;  %v25823_v33 = vpack.c.bf16 %v18746_v22, %v18745_v25  ;;  %v25825_v12 = vpack.c.bf16 %v18764_v28, %v18763_v17  ;;  %v18767_v25 = vld [vmem:[%s24689_s20 + $0x2d4] ss:$4 sm:$0xff]  ;;  %v25839_v17 = vpack.c.bf16 %v18766_v19, %v18765_v0 }
 0x1f3   : > { %v18768_v22 = vld [vmem:[%s24689_s20 + $0x2f4] ss:$4 sm:$0xff] }
 0x1f4   : > { %28878 = vst [vmem:[#allocation25_spill] sm:$0xff] %v25825_v12  ;;  %28879 = vst [vmem:[#allocation26_spill] sm:$0xff] %v25839_v17  ;;  %v25841_v28 = vpack.c.bf16 %v18768_v22, %v18767_v25  ;;  %v18770_v0 = vld [vmem:[%s24689_s20 + $0x414] ss:$4 sm:$0xff] }
 0x1f5   : > { %v18771_v19 = vld [vmem:[%s24689_s20 + $0x514] ss:$4 sm:$0xff] }
 0x1f6   : > { %28880 = vst [vmem:[#allocation27_spill] sm:$0xff] %v25841_v28  ;;  %v18772_v25 = vld [vmem:[%s24689_s20 + $0x534] ss:$4 sm:$0xff] }
 0x1f7   : > { %v24469_v22 = vld [vmem:[%s28859_s1] sm:$0xf] }
 0x1f8   : > { %20925 = vmatmul.mubr.msk.bf16.gmra.mrb[8].mxu0 %vm607_vm1, %v25703_v7  ;;  %21231 = vmatmul.mubr.msk.bf16.gmra.mrb[8].mxu1 %vm607_vm1, %v25705_v48 }
 0x1f9   : > { %20928 = vmatprep.mubr.msk.bf16.mxu0 %vm607_vm1, %v25707_v9  ;;  %21234 = vmatprep.mubr.msk.bf16.mxu1 %vm607_vm1, %v25709_v50 }
 0x200   : > { %20929 = vmatmul.mubr.msk.bf16.gmra.mrb[12].mxu0 %vm607_vm1, %v25727_v62  ;;  %21235 = vmatmul.mubr.msk.bf16.gmra.mrb[12].mxu1 %vm607_vm1, %v25729_v45 }
 0x201   : > { %20932 = vmatprep.mubr.msk.bf16.mxu0 %vm607_vm1, %v25731_v58  ;;  %21238 = vmatprep.mubr.msk.bf16.mxu1 %vm607_vm1, %v25733_v29 }
 0x208   : > { %20933 = vmatmul.mubr.msk.bf16.gmra.mrb[16].mxu0 %vm607_vm1, %v25751_v46  ;;  %21239 = vmatmul.mubr.msk.bf16.gmra.mrb[16].mxu1 %vm607_vm1, %v25753_v60 }
 0x209   : > { %20936 = vmatprep.mubr.msk.bf16.mxu0 %vm607_vm1, %v25755_v32  ;;  %21242 = vmatprep.mubr.msk.bf16.mxu1 %vm607_vm1, %v25757_v14 }
 0x210   : > { %20937 = vmatmul.mubr.msk.bf16.gmra.mrb[20].mxu0 %vm607_vm1, %v25775_v53  ;;  %21243 = vmatmul.mubr.msk.bf16.gmra.mrb[20].mxu1 %vm607_vm1, %v25777_v20 }
 0x211   : > { %20940 = vmatprep.mubr.msk.bf16.mxu0 %vm607_vm1, %v25779_v47  ;;  %21246 = vmatprep.mubr.msk.bf16.mxu1 %vm607_vm1, %v25781_v41 }
 0x218   : > { %20941 = vmatmul.mubr.msk.bf16.gmra.mrb[24].mxu0 %vm607_vm1, %v25799_v39  ;;  %21247 = vmatmul.mubr.msk.bf16.gmra.mrb[24].mxu1 %vm607_vm1, %v25801_v18 }
 0x219   : > { %20944 = vmatprep.mubr.msk.bf16.mxu0 %vm607_vm1, %v25803_v55  ;;  %21250 = vmatprep.mubr.msk.bf16.mxu1 %vm607_vm1, %v25805_v2 }
 0x220   : > { %20945 = vmatmul.mubr.msk.bf16.gmra.mrb[28].mxu0 %vm607_vm1, %v25821_v16  ;;  %21251 = vmatmul.mubr.msk.bf16.gmra.mrb[28].mxu1 %vm607_vm1, %v25823_v33 }
 0x221   : > { %20950 = vmatprep.mubr.msk.bf16.mxu0 %vm607_vm1, %v25420_v11  ;;  %21256 = vmatprep.mubr.msk.bf16.mxu1 %vm607_vm1, %v25825_v12  ;;  %v18769_v12 = vld [vmem:[%s24689_s20 + $0x3f4] ss:$4 sm:$0xff] }
 0x228   : > { %20951 = vmatmul.mubr.msk.bf16.vlgmr.msra.gmra.mrb[0].mxu0 %vm607_vm1, %v25439_v34  ;;  %21257 = vmatmul.mubr.msk.bf16.vlgmr.msra.gmra.mrb[0].mxu1 %vm607_vm1, %v25839_v17  ;;  %v25864_v17 = vpack.c.bf16 %v18772_v25, %v18771_v19  ;;  %v18776_v19 = vld [vmem:[%s24689_s20 + $0x774] ss:$4 sm:$0xff] }
 0x229   : > { %21289 = vmatpush3.bf16.msra.mxu0 %v24672_v1  ;;  %21595 = vmatpush3.bf16.msra.mxu1 %v24672_v1  ;;  %v25862_v1 = vpack.c.bf16 %v18770_v0, %v18769_v12  ;;  %v18773_v12 = vld [vmem:[%s24689_s20 + $0x634] ss:$4 sm:$0xff] }
 0x22a   : > { %20954 = vmatprep.mubr.msk.bf16.mxu0 %vm607_vm1, %v25447_v27  ;;  %21260 = vmatprep.mubr.msk.bf16.mxu1 %vm607_vm1, %v25841_v28  ;;  %28882 = vst [vmem:[#allocation29_spill] sm:$0xff] %v25864_v17  ;;  %v18774_v0 = vld [vmem:[%s24689_s20 + $0x654] ss:$4 sm:$0xff] }
 0x22b   : > { %24263 = vmatprep.subr.msk.bf16.mxu0 %vm656_vm0, %v24469_v22  ;;  %24272 = vmatprep.subr.msk.bf16.mxu1 %vm656_vm0, %v24469_v22  ;;  %28881 = vst [vmem:[#allocation28_spill] sm:$0xff] %v25862_v1  ;;  %v18775_v22 = vld [vmem:[%s24689_s20 + $0x754] ss:$4 sm:$0xff]  ;;  %v25878_v25 = vpack.c.bf16 %v18774_v0, %v18773_v12 }
 0x22c   : > { %v25880_v28 = vpack.c.bf16 %v18776_v19, %v18775_v22  ;;  %v18777_v12 = vld [vmem:[%s24689_s20 + $0x874] ss:$4 sm:$0xff] }
 0x22d   : > { %28883 = vst [vmem:[#allocation30_spill] sm:$0xff] %v25878_v25  ;;  %v18778_v0 = vld [vmem:[%s24689_s20 + $0x894] ss:$4 sm:$0xff] }
 0x22e   : > { %28884 = vst [vmem:[#allocation31_spill] sm:$0xff] %v25880_v28  ;;  %v18780_v22 = vld [vmem:[%s24689_s20 + $0x9b4] ss:$4 sm:$0xff]  ;;  %v25894_v19 = vpack.c.bf16 %v18778_v0, %v18777_v12 }
 0x22f   : > { %v18781_v12 = vld [vmem:[%s24689_s20 + $0xab4] ss:$4 sm:$0xff] }
 0x230   : > { %20955 = vmatmul.mubr.msk.bf16.gmra.mrb[4].mxu0 %vm607_vm1, %v25478_v6  ;;  %21261 = vmatmul.mubr.msk.bf16.gmra.mrb[4].mxu1 %vm607_vm1, %v25862_v1  ;;  %28885 = vst [vmem:[#allocation32_spill] sm:$0xff] %v25894_v19  ;;  %v18782_v0 = vld [vmem:[%s24689_s20 + $0xad4] ss:$4 sm:$0xff] }
 0x231   : > { %20958 = vmatprep.mubr.msk.bf16.mxu0 %vm607_vm1, %v25482_v42  ;;  %21264 = vmatprep.mubr.msk.bf16.mxu1 %vm607_vm1, %v25864_v17  ;;  %v18779_v17 = vld [vmem:[%s24689_s20 + $0x994] ss:$4 sm:$0xff] }
 0x232   : > { %v25896_v1 = vpack.c.bf16 %v18780_v22, %v18779_v17  ;;  %v18784_v17 = vld [vmem:[%s24689_s20 + $0xbf4] ss:$4 sm:$0xff]  ;;  %v25910_v22 = vpack.c.bf16 %v18782_v0, %v18781_v12 }
 0x233   : > { %v18785_v12 = vld [vmem:[%s24689_s20 + $0xcf4] ss:$4 sm:$0xff] }
 0x234   : > { %28886 = vst [vmem:[#allocation33_spill] sm:$0xff] %v25896_v1  ;;  %28887 = vst [vmem:[#allocation34_spill] sm:$0xff] %v25910_v22  ;;  %v18786_v0 = vld [vmem:[%s24689_s20 + $0xd14] ss:$4 sm:$0xff] }
 0x238   : > { %20959 = vmatmul.mubr.msk.bf16.gmra.mrb[8].mxu0 %vm607_vm1, %v25502_v31  ;;  %21265 = vmatmul.mubr.msk.bf16.gmra.mrb[8].mxu1 %vm607_vm1, %v25878_v25 }
 0x239   : > { %20962 = vmatprep.mubr.msk.bf16.mxu0 %vm607_vm1, %v25506_v4  ;;  %21268 = vmatprep.mubr.msk.bf16.mxu1 %vm607_vm1, %v25880_v28  ;;  %v18783_v28 = vld [vmem:[%s24689_s20 + $0xbd4] ss:$4 sm:$0xff] }
 0x23a   : > { %v25912_v25 = vpack.c.bf16 %v18784_v17, %v18783_v28  ;;  %v18788_v28 = vld [vmem:[%s24689_s20 + $0xe34] ss:$4 sm:$0xff]  ;;  %v25926_v17 = vpack.c.bf16 %v18786_v0, %v18785_v12 }
 0x23b   : > { %v18791_v12 = vld [vmem:[%s24689_s20 + $0x1054] ss:$4 sm:$0xff] }
 0x23c   : > { %28888 = vst [vmem:[#allocation35_spill] sm:$0xff] %v25912_v25  ;;  %28889 = vst [vmem:[#allocation36_spill] sm:$0xff] %v25926_v17  ;;  %v18792_v0 = vld [vmem:[%s24689_s20 + $0x1074] ss:$4 sm:$0xff] }
 0x240   : > { %20963 = vmatmul.mubr.msk.bf16.gmra.mrb[12].mxu0 %vm607_vm1, %v25526_v5  ;;  %21269 = vmatmul.mubr.msk.bf16.gmra.mrb[12].mxu1 %vm607_vm1, %v25894_v19 }
 0x241   : > { %20966 = vmatprep.mubr.msk.bf16.mxu0 %vm607_vm1, %v25530_v36  ;;  %21272 = vmatprep.mubr.msk.bf16.mxu1 %vm607_vm1, %v25896_v1  ;;  %v18787_v1 = vld [vmem:[%s24689_s20 + $0xe14] ss:$4 sm:$0xff] }
 0x242   : > { %v25928_v19 = vpack.c.bf16 %v18788_v28, %v18787_v1  ;;  %v25944_v1 = vpack.c.bf16 %v18792_v0, %v18791_v12  ;;  %v18793_v28 = vld [vmem:[%s24689_s20 + $0x1174] ss:$4 sm:$0xff] }
 0x244   : > { %28890 = vst [vmem:[#allocation37_spill] sm:$0xff] %v25928_v19 }
 0x248   : > { %20967 = vmatmul.mubr.msk.bf16.gmra.mrb[16].mxu0 %vm607_vm1, %v25550_v21  ;;  %21273 = vmatmul.mubr.msk.bf16.gmra.mrb[16].mxu1 %vm607_vm1, %v25910_v22  ;;  %v18790_v22 = vld [vmem:[%s24689_s20 + $0xf54] ss:$4 sm:$0xff] }
 0x249   : > { %20970 = vmatprep.mubr.msk.bf16.mxu0 %vm607_vm1, %v25554_v63  ;;  %21276 = vmatprep.mubr.msk.bf16.mxu1 %vm607_vm1, %v25912_v25  ;;  %v18789_v25 = vld [vmem:[%s24689_s20 + $0xf34] ss:$4 sm:$0xff] }
 0x24a   : > { %v25942_v63 = vpack.c.bf16 %v18790_v22, %v18789_v25  ;;  %v28913_v25 = vld [vmem:[#allocation35_spill] sm:$0xff] }
 0x250   : > { %20971 = vmatmul.mubr.msk.bf16.gmra.mrb[20].mxu0 %vm607_vm1, %v25574_v8  ;;  %21277 = vmatmul.mubr.msk.bf16.gmra.mrb[20].mxu1 %vm607_vm1, %v25926_v17 }
 0x251   : > { %20974 = vmatprep.mubr.msk.bf16.mxu0 %vm607_vm1, %v25578_v49  ;;  %21280 = vmatprep.mubr.msk.bf16.mxu1 %vm607_vm1, %v25928_v19  ;;  %v18794_v19 = vld [vmem:[%s24689_s20 + $0x1194] ss:$4 sm:$0xff] }
 0x252   : > { %v25956_v17 = vpack.c.bf16 %v18794_v19, %v18793_v28 }
 0x258   : > { %20975 = vmatmul.mubr.msk.bf16.gmra.mrb[24].mxu0 %vm607_vm1, %v25598_v13  ;;  %21281 = vmatmul.mubr.msk.bf16.gmra.mrb[24].mxu1 %vm607_vm1, %v25942_v63 }
 0x259   : > { %20978 = vmatprep.mubr.msk.bf16.mxu0 %vm607_vm1, %v25602_v43  ;;  %21284 = vmatprep.mubr.msk.bf16.mxu1 %vm607_vm1, %v25944_v1 }
 0x260   : > { %20979 = vmatmul.mubr.msk.bf16.gmra.mrb[28].mxu0 %vm607_vm1, %v25622_v24  ;;  %21285 = vmatmul.mubr.msk.bf16.gmra.mrb[28].mxu1 %vm607_vm1, %v25956_v17 }
 0x261   : > { %21290 = vmatprep.mubr.msk.bf16.mxu0 %vm607_vm1, %v25624_v15  ;;  %21596 = vmatprep.mubr.msk.bf16.mxu1 %vm607_vm1, %v25626_v35  ;;  %v24470_v15 = vld [vmem:[%s28859_s1 + $0x8] sm:$0xf] }
 0x262   : > { %v28908_v35 = vld [vmem:[#allocation30_spill] sm:$0xff] }
 0x268   : > { %21291 = vmatmul.mubr.msk.bf16.vlgmr.msra.gmra.mrb[32].mxu0 %vm607_vm1, %v25642_v51  ;;  %21597 = vmatmul.mubr.msk.bf16.vlgmr.msra.gmra.mrb[32].mxu1 %vm607_vm1, %v25646_v52  ;;  %v28909_v51 = vld [vmem:[#allocation31_spill] sm:$0xff] }
 0x269   : > { %21323 = vmatpush3.bf16.msra.mxu0 %v24684_v3  ;;  %21629 = vmatpush3.bf16.msra.mxu1 %v24684_v3  ;;  %v24471_v3 = vld [vmem:[%s28859_s1 + $0xc] sm:$0xf] }
 0x26a   : > { %21294 = vmatprep.mubr.msk.bf16.mxu0 %vm607_vm1, %v25652_v57  ;;  %21600 = vmatprep.mubr.msk.bf16.mxu1 %vm607_vm1, %v25654_v61 }
 0x26b   : > { %24264 = vmatprep.subr.msk.bf16.mxu0 %vm656_vm0, %v24470_v15  ;;  %24273 = vmatprep.subr.msk.bf16.mxu1 %vm656_vm0, %v24470_v15 }
 0x270   : > { %21295 = vmatmul.mubr.msk.bf16.gmra.mrb[36].mxu0 %vm607_vm1, %v25678_v37  ;;  %21601 = vmatmul.mubr.msk.bf16.gmra.mrb[36].mxu1 %vm607_vm1, %v25681_v38  ;;  %v24473_v37 = vld [vmem:[%s28859_s1 + $0x14] sm:$0xf] }
 0x271   : > { %21298 = vmatprep.mubr.msk.bf16.mxu0 %vm607_vm1, %v25683_v30  ;;  %21604 = vmatprep.mubr.msk.bf16.mxu1 %vm607_vm1, %v25685_v59 }
 0x278   : > { %21299 = vmatmul.mubr.msk.bf16.gmra.mrb[40].mxu0 %vm607_vm1, %v25703_v7  ;;  %21605 = vmatmul.mubr.msk.bf16.gmra.mrb[40].mxu1 %vm607_vm1, %v25705_v48  ;;  %v28910_v48 = vld [vmem:[#allocation32_spill] sm:$0xff] }
 0x279   : > { %21302 = vmatprep.mubr.msk.bf16.mxu0 %vm607_vm1, %v25707_v9  ;;  %21608 = vmatprep.mubr.msk.bf16.mxu1 %vm607_vm1, %v25709_v50  ;;  %v28911_v9 = vld [vmem:[#allocation33_spill] sm:$0xff] }
 0x280   : > { %21303 = vmatmul.mubr.msk.bf16.gmra.mrb[44].mxu0 %vm607_vm1, %v25727_v62  ;;  %21609 = vmatmul.mubr.msk.bf16.gmra.mrb[44].mxu1 %vm607_vm1, %v25729_v45 }
 0x281   : > { %21306 = vmatprep.mubr.msk.bf16.mxu0 %vm607_vm1, %v25731_v58  ;;  %21612 = vmatprep.mubr.msk.bf16.mxu1 %vm607_vm1, %v25733_v29  ;;  %v28893_v29 = vld [vmem:[#allocation15_spill] sm:$0xff]  ;;  %v28896_v58 = vld [vmem:[#allocation18_spill] sm:$0xff] }
 0x288   : > { %21307 = vmatmul.mubr.msk.bf16.gmra.mrb[48].mxu0 %vm607_vm1, %v25751_v46  ;;  %21613 = vmatmul.mubr.msk.bf16.gmra.mrb[48].mxu1 %vm607_vm1, %v25753_v60 }
 0x289   : > { %21310 = vmatprep.mubr.msk.bf16.mxu0 %vm607_vm1, %v25755_v32  ;;  %21616 = vmatprep.mubr.msk.bf16.mxu1 %vm607_vm1, %v25757_v14  ;;  %v28892_v32 = vld [vmem:[#allocation14_spill] sm:$0xff]  ;;  %v28905_v14 = vld [vmem:[#allocation27_spill] sm:$0xff] }
 0x290   : > { %21311 = vmatmul.mubr.msk.bf16.gmra.mrb[52].mxu0 %vm607_vm1, %v25775_v53  ;;  %21617 = vmatmul.mubr.msk.bf16.gmra.mrb[52].mxu1 %vm607_vm1, %v25777_v20 }
 0x291   : > { %21314 = vmatprep.mubr.msk.bf16.mxu0 %vm607_vm1, %v25779_v47  ;;  %21620 = vmatprep.mubr.msk.bf16.mxu1 %vm607_vm1, %v25781_v41  ;;  %v28903_v41 = vld [vmem:[#allocation8_spill] sm:$0xff]  ;;  %v28904_v47 = vld [vmem:[#allocation26_spill] sm:$0xff] }
 0x298   : > { %21315 = vmatmul.mubr.msk.bf16.gmra.mrb[56].mxu0 %vm607_vm1, %v25799_v39  ;;  %21621 = vmatmul.mubr.msk.bf16.gmra.mrb[56].mxu1 %vm607_vm1, %v25801_v18  ;;  %v18961_v39 = vld [vmem:[%s24689_s20 + $0x43a] ss:$4 sm:$0xff] }
 0x299   : > { %21318 = vmatprep.mubr.msk.bf16.mxu0 %vm607_vm1, %v25803_v55  ;;  %21624 = vmatprep.mubr.msk.bf16.mxu1 %vm607_vm1, %v25805_v2  ;;  %v28901_v2 = vld [vmem:[#allocation23_spill] sm:$0xff]  ;;  %v28902_v55 = vld [vmem:[#allocation25_spill] sm:$0xff] }
 0x2a0   : > { %21319 = vmatmul.mubr.msk.bf16.gmra.mrb[60].mxu0 %vm607_vm1, %v25821_v16  ;;  %21625 = vmatmul.mubr.msk.bf16.gmra.mrb[60].mxu1 %vm607_vm1, %v25823_v33  ;;  %v28912_v33 = vld [vmem:[#allocation34_spill] sm:$0xff] }
 0x2a1   : > { %21324 = vmatprep.mubr.msk.bf16.mxu0 %vm607_vm1, %v25418_v10  ;;  %21630 = vmatprep.mubr.msk.bf16.mxu1 %vm607_vm1, %v25420_v11  ;;  %v28894_v10 = vld [vmem:[#allocation16_spill] sm:$0xff] }
 0x2a8   : > { %21325 = vmatmul.mubr.msk.bf16.vlgmr.msra.gmra.mrb[32].mxu0 %vm607_vm1, %v25435_v26  ;;  %21631 = vmatmul.mubr.msk.bf16.vlgmr.msra.gmra.mrb[32].mxu1 %vm607_vm1, %v25439_v34  ;;  %v28895_v26 = vld [vmem:[#allocation17_spill] sm:$0xff] }
 0x2a9   : > { %21357 = vmatpush3.bf16.msra.mxu0 %v24819_v56  ;;  %21663 = vmatpush3.bf16.msra.mxu1 %v24819_v56  ;;  %v28891_v56 = vld [vmem:[#allocation13_spill] sm:$0xff] }
 0x2aa   : > { %21328 = vmatprep.mubr.msk.bf16.mxu0 %vm607_vm1, %v25445_v23  ;;  %21634 = vmatprep.mubr.msk.bf16.mxu1 %vm607_vm1, %v25447_v27  ;;  %v28897_v23 = vld [vmem:[#allocation19_spill] sm:$0xff] }
 0x2ab   : > { %24265 = vmatprep.subr.msk.bf16.mxu0 %vm656_vm0, %v24471_v3  ;;  %24274 = vmatprep.subr.msk.bf16.mxu1 %vm656_vm0, %v24471_v3 }
 0x2b0   : > { %21329 = vmatmul.mubr.msk.bf16.gmra.mrb[36].mxu0 %vm607_vm1, %v25474_v44  ;;  %21635 = vmatmul.mubr.msk.bf16.gmra.mrb[36].mxu1 %vm607_vm1, %v25478_v6  ;;  %v28898_v44 = vld [vmem:[#allocation20_spill] sm:$0xff] }
 0x2b1   : > { %21332 = vmatprep.mubr.msk.bf16.mxu0 %vm607_vm1, %v25480_v40  ;;  %21638 = vmatprep.mubr.msk.bf16.mxu1 %vm607_vm1, %v25482_v42  ;;  %v28899_v40 = vld [vmem:[#allocation21_spill] sm:$0xff] }
 0x2b8   : > { %21333 = vmatmul.mubr.msk.bf16.gmra.mrb[40].mxu0 %vm607_vm1, %v25500_v54  ;;  %21639 = vmatmul.mubr.msk.bf16.gmra.mrb[40].mxu1 %vm607_vm1, %v25502_v31  ;;  %v28900_v54 = vld [vmem:[#allocation22_spill] sm:$0xff] }
 0x2b9   : > { %21336 = vmatprep.mubr.msk.bf16.mxu0 %vm607_vm1, %v28891_v56  ;;  %21642 = vmatprep.mubr.msk.bf16.mxu1 %vm607_vm1, %v25506_v4 }
 0x2c0   : > { %21337 = vmatmul.mubr.msk.bf16.gmra.mrb[44].mxu0 %vm607_vm1, %v28892_v32  ;;  %21643 = vmatmul.mubr.msk.bf16.gmra.mrb[44].mxu1 %vm607_vm1, %v25526_v5  ;;  %v18959_v32 = vld [vmem:[%s24689_s20 + $0x31a] ss:$4 sm:$0xff] }
 0x2c1   : > { %21340 = vmatprep.mubr.msk.bf16.mxu0 %vm607_vm1, %v28893_v29  ;;  %21646 = vmatprep.mubr.msk.bf16.mxu1 %vm607_vm1, %v25530_v36 }
 0x2c8   : > { %21341 = vmatmul.mubr.msk.bf16.gmra.mrb[48].mxu0 %vm607_vm1, %v28894_v10  ;;  %21647 = vmatmul.mubr.msk.bf16.gmra.mrb[48].mxu1 %vm607_vm1, %v25550_v21 }
 0x2c9   : > { %21344 = vmatprep.mubr.msk.bf16.mxu0 %vm607_vm1, %v28895_v26  ;;  %21650 = vmatprep.mubr.msk.bf16.mxu1 %vm607_vm1, %v28896_v58  ;;  %v28914_v26 = vld [vmem:[#allocation36_spill] sm:$0xff] }
 0x2d0   : > { %21345 = vmatmul.mubr.msk.bf16.gmra.mrb[52].mxu0 %vm607_vm1, %v28897_v23  ;;  %21651 = vmatmul.mubr.msk.bf16.gmra.mrb[52].mxu1 %vm607_vm1, %v25574_v8 }
 0x2d1   : > { %21348 = vmatprep.mubr.msk.bf16.mxu0 %vm607_vm1, %v28898_v44  ;;  %21654 = vmatprep.mubr.msk.bf16.mxu1 %vm607_vm1, %v25578_v49 }
 0x2d8   : > { %21349 = vmatmul.mubr.msk.bf16.gmra.mrb[56].mxu0 %vm607_vm1, %v28899_v40  ;;  %21655 = vmatmul.mubr.msk.bf16.gmra.mrb[56].mxu1 %vm607_vm1, %v25598_v13 }
 0x2d9   : > { %21352 = vmatprep.mubr.msk.bf16.mxu0 %vm607_vm1, %v28900_v54  ;;  %21658 = vmatprep.mubr.msk.bf16.mxu1 %vm607_vm1, %v25602_v43 }
 0x2e0   : > { %21353 = vmatmul.mubr.msk.bf16.gmra.mrb[60].mxu0 %vm607_vm1, %v28901_v2  ;;  %21659 = vmatmul.mubr.msk.bf16.gmra.mrb[60].mxu1 %vm607_vm1, %v25622_v24 }
 0x2e1   : > { %21358 = vmatprep.mubr.msk.bf16.mxu0 %vm607_vm1, %v25420_v11  ;;  %21664 = vmatprep.mubr.msk.bf16.mxu1 %vm607_vm1, %v28902_v55  ;;  %v24472_v11 = vld [vmem:[%s28859_s1 + $0x10] sm:$0xf] }
 0x2e8   : > { %21359 = vmatmul.mubr.msk.bf16.vlgmr.msra.gmra.mrb[32].mxu0 %vm607_vm1, %v25439_v34  ;;  %21665 = vmatmul.mubr.msk.bf16.vlgmr.msra.gmra.mrb[32].mxu1 %vm607_vm1, %v28904_v47  ;;  %v28906_v34 = vld [vmem:[#allocation28_spill] sm:$0xff] }
 0x2e9   : > { %21391 = vmatpush3.bf16.msra.mxu0 %v28903_v41  ;;  %21697 = vmatpush3.bf16.msra.mxu1 %v28903_v41 }
 0x2ea   : > { %21362 = vmatprep.mubr.msk.bf16.mxu0 %vm607_vm1, %v25447_v27  ;;  %21668 = vmatprep.mubr.msk.bf16.mxu1 %vm607_vm1, %v28905_v14  ;;  %v28907_v27 = vld [vmem:[#allocation29_spill] sm:$0xff] }
 0x2eb   : > { %24266 = vmatprep.subr.msk.bf16.mxu0 %vm656_vm0, %v24472_v11  ;;  %24275 = vmatprep.subr.msk.bf16.mxu1 %vm656_vm0, %v24472_v11 }
 0x2f0   : > { %21363 = vmatmul.mubr.msk.bf16.gmra.mrb[36].mxu0 %vm607_vm1, %v25478_v6  ;;  %21669 = vmatmul.mubr.msk.bf16.gmra.mrb[36].mxu1 %vm607_vm1, %v28906_v34  ;;  %v18859_v34 = vld [vmem:[%s24689_s20 + $0xd8] ss:$4 sm:$0xff] }
 0x2f1   : > { %21366 = vmatprep.mubr.msk.bf16.mxu0 %vm607_vm1, %v25482_v42  ;;  %21672 = vmatprep.mubr.msk.bf16.mxu1 %vm607_vm1, %v28907_v27  ;;  %v18860_v27 = vld [vmem:[%s24689_s20 + $0xf8] ss:$4 sm:$0xff] }
 0x2f8   : > { %21367 = vmatmul.mubr.msk.bf16.gmra.mrb[40].mxu0 %vm607_vm1, %v25502_v31  ;;  %21673 = vmatmul.mubr.msk.bf16.gmra.mrb[40].mxu1 %vm607_vm1, %v28908_v35 }
 0x2f9   : > { %21370 = vmatprep.mubr.msk.bf16.mxu0 %vm607_vm1, %v25506_v4  ;;  %21676 = vmatprep.mubr.msk.bf16.mxu1 %vm607_vm1, %v28909_v51  ;;  %v18955_v51 = vld [vmem:[%s24689_s20 + $0xda] ss:$4 sm:$0xff] }
 0x2fb   : > { %v26139_v6 = vpop.f32.mrb[0].mxu0  ;;  %v26141_v52 = vpop.f32.mrb[0].mxu1 }
 0x2fc   : > { %v26143_v42 = vpop.f32.mrb[1].mxu0  ;;  %v26147_v61 = vpop.f32.mrb[1].mxu1 }
 0x2fd   : > { %v26149_v31 = vpop.f32.mrb[2].mxu0  ;;  %v26153_v4 = vpop.f32.mrb[2].mxu1 }
 0x2fe   : > { %v26155_v38 = vpop.f32.mrb[3].mxu0  ;;  %v26159_v59 = vpop.f32.mrb[3].mxu1 }
 0x300   : > { %21371 = vmatmul.mubr.msk.bf16.gmra.mrb[44].mxu0 %vm607_vm1, %v25526_v5  ;;  %21677 = vmatmul.mubr.msk.bf16.gmra.mrb[44].mxu1 %vm607_vm1, %v28910_v48  ;;  %v18956_v48 = vld [vmem:[%s24689_s20 + $0xfa] ss:$4 sm:$0xff] }
 0x301   : > { %21374 = vmatprep.mubr.msk.bf16.mxu0 %vm607_vm1, %v25530_v36  ;;  %21680 = vmatprep.mubr.msk.bf16.mxu1 %vm607_vm1, %v28911_v9  ;;  %v26289_v11 = vpack.c.bf16 %v18956_v48, %v18955_v51  ;;  %v18862_v51 = vld [vmem:[%s24689_s20 + $0x218] ss:$4 sm:$0xff]  ;;  %v18957_v48 = vld [vmem:[%s24689_s20 + $0x1fa] ss:$4 sm:$0xff] }
 0x303   : > { %v26171_v50 = vpop.f32.mrb[4].mxu0  ;;  %v26173_v62 = vpop.f32.mrb[4].mxu1 }
 0x304   : > { %v26175_v45 = vpop.f32.mrb[5].mxu0  ;;  %v26179_v60 = vpop.f32.mrb[5].mxu1 }
 0x305   : > { %v26181_v5 = vpop.f32.mrb[6].mxu0  ;;  %v26185_v36 = vpop.f32.mrb[6].mxu1 }
 0x306   : > { %v26187_v20 = vpop.f32.mrb[7].mxu0  ;;  %v26191_v18 = vpop.f32.mrb[7].mxu1 }
 0x308   : > { %21375 = vmatmul.mubr.msk.bf16.gmra.mrb[48].mxu0 %vm607_vm1, %v25550_v21  ;;  %21681 = vmatmul.mubr.msk.bf16.gmra.mrb[48].mxu1 %vm607_vm1, %v28912_v33 }
 0x309   : > { %21378 = vmatprep.mubr.msk.bf16.mxu0 %vm607_vm1, %v28896_v58  ;;  %21684 = vmatprep.mubr.msk.bf16.mxu1 %vm607_vm1, %v28913_v25  ;;  %v28915_v58 = vld [vmem:[#allocation37_spill] sm:$0xff] }
 0x30b   : > { %v26203_v19 = vpop.f32.mrb[8].mxu0  ;;  %v26205_v22 = vpop.f32.mrb[8].mxu1 }
 0x30c   : > { %v26207_v12 = vpop.f32.mrb[9].mxu0  ;;  %v26211_v28 = vpop.f32.mrb[9].mxu1 }
 0x30d   : > { %v26213_v21 = vpop.f32.mrb[10].mxu0  ;;  %v26217_v3 = vpop.f32.mrb[10].mxu1 }
 0x30e   : > { %v26219_v56 = vpop.f32.mrb[11].mxu0  ;;  %v26223_v29 = vpop.f32.mrb[11].mxu1 }
 0x310   : > { %21379 = vmatmul.mubr.msk.bf16.gmra.mrb[52].mxu0 %vm607_vm1, %v25574_v8  ;;  %21685 = vmatmul.mubr.msk.bf16.gmra.mrb[52].mxu1 %vm607_vm1, %v28914_v26 }
 0x311   : > { %21382 = vmatprep.mubr.msk.bf16.mxu0 %vm607_vm1, %v25578_v49  ;;  %21688 = vmatprep.mubr.msk.bf16.mxu1 %vm607_vm1, %v28915_v58  ;;  %v18863_v49 = vld [vmem:[%s24689_s20 + $0x318] ss:$4 sm:$0xff] }
 0x313   : > { %v26235_v23 = vpop.f32.mrb[12].mxu0  ;;  %v26237_v44 = vpop.f32.mrb[12].mxu1 }
 0x314   : > { %v26239_v40 = vpop.f32.mrb[13].mxu0  ;;  %v26243_v54 = vpop.f32.mrb[13].mxu1 }
 0x315   : > { %v26245_v2 = vpop.f32.mrb[14].mxu0  ;;  %v26249_v55 = vpop.f32.mrb[14].mxu1 }
 0x316   : > { %v26251_v41 = vpop.f32.mrb[15].mxu0  ;;  %v26255_v14 = vpop.f32.mrb[15].mxu1 }
 0x317   : > { %28916 = vst [vmem:[#allocation13_spill] sm:$0xff] %v26255_v14  ;;  %v19330_v14 = vld [vmem:[%s24689_s20 + $0x4a3] ss:$4 sm:$0xff] }
 0x318   : > { %21383 = vmatmul.mubr.msk.bf16.gmra.mrb[56].mxu0 %vm607_vm1, %v25598_v13  ;;  %21689 = vmatmul.mubr.msk.bf16.gmra.mrb[56].mxu1 %vm607_vm1, %v25942_v63  ;;  %v18958_v63 = vld [vmem:[%s24689_s20 + $0x21a] ss:$4 sm:$0xff] }
 0x319   : > { %21386 = vmatprep.mubr.msk.bf16.mxu0 %vm607_vm1, %v25602_v43  ;;  %21692 = vmatprep.mubr.msk.bf16.mxu1 %vm607_vm1, %v25944_v1  ;;  %v6353_v1 = vpack.c.bf16 %v18860_v27, %v18859_v34  ;;  %v18861_v27 = vld [vmem:[%s24689_s20 + $0x1f8] ss:$4 sm:$0xff]  ;;  %v26324_v16 = vpack.c.bf16 %v18958_v63, %v18957_v48  ;;  %v18964_v63 = vld [vmem:[%s24689_s20 + $0x57a] ss:$4 sm:$0xff] }
 0x31a   : > { %v18864_v34 = vld [vmem:[%s24689_s20 + $0x338] ss:$4 sm:$0xff] }
 0x31b   : > { %v26269_v35 = vpop.f32.mrb[16].mxu0  ;;  %v26273_v9 = vpop.f32.mrb[16].mxu1  ;;  %v28933_v48 = vld [vmem:[#allocation9_spill] sm:$0xff] }
 0x31c   : > { %28917 = vst [vmem:[#allocation14_spill] sm:$0xff] %v26269_v35  ;;  %28918 = vst [vmem:[#allocation15_spill] sm:$0xff] %v26273_v9  ;;  %v26275_v33 = vpop.f32.mrb[17].mxu0  ;;  %v26279_v13 = vpop.f32.mrb[17].mxu1  ;;  %v18914_v9 = vld [vmem:[%s24689_s20 + $0x459] ss:$4 sm:$0xff] }
 0x31d   : > { %28919 = vst [vmem:[#allocation16_spill] sm:$0xff] %v26275_v33  ;;  %28920 = vst [vmem:[#allocation17_spill] sm:$0xff] %v26279_v13  ;;  %v26281_v43 = vpop.f32.mrb[18].mxu0  ;;  %v26285_v26 = vpop.f32.mrb[18].mxu1  ;;  %v18910_v13 = vld [vmem:[%s24689_s20 + $0x219] ss:$4 sm:$0xff] }
 0x31e   : > { %28921 = vst [vmem:[#allocation18_spill] sm:$0xff] %v26281_v43  ;;  %28922 = vst [vmem:[#allocation19_spill] sm:$0xff] %v26285_v26  ;;  %v26287_v58 = vpop.f32.mrb[19].mxu0  ;;  %v26293_v47 = vpop.f32.mrb[19].mxu1  ;;  %v18890_v26 = vld [vmem:[%s24689_s20 + $0x11d8] ss:$4 sm:$0xff] }
 0x31f   : > { %28923 = vst [vmem:[#allocation20_spill] sm:$0xff] %v26287_v58  ;;  %28924 = vst [vmem:[#allocation21_spill] sm:$0xff] %v26293_v47  ;;  %v18886_v47 = vld [vmem:[%s24689_s20 + $0xf98] ss:$4 sm:$0xff]  ;;  %v18981_v58 = vld [vmem:[%s24689_s20 + $0xf7a] ss:$4 sm:$0xff] }
 0x320   : > { %21387 = vmatmul.mubr.msk.bf16.gmra.mrb[60].mxu0 %vm607_vm1, %v25622_v24  ;;  %21693 = vmatmul.mubr.msk.bf16.gmra.mrb[60].mxu1 %vm607_vm1, %v25956_v17  ;;  %v6354_v24 = vpack.c.bf16 %v18862_v51, %v18861_v27  ;;  %v18960_v17 = vld [vmem:[%s24689_s20 + $0x33a] ss:$4 sm:$0xff]  ;;  %v6355_v51 = vpack.c.bf16 %v18864_v34, %v18863_v49  ;;  %v18865_v49 = vld [vmem:[%s24689_s20 + $0x438] ss:$4 sm:$0xff]  ;;  %v19217_v35 = vld [vmem:[%s24689_s20 + $0x43b] ss:$4 sm:$0xff] }
 0x321   : > { %21392 = vmatprep.mubr.msk.bf16.mxu0 %vm607_vm1, %v6353_v1  ;;  %21698 = vmatprep.mubr.msk.bf16.mxu1 %vm607_vm1, %v26289_v11  ;;  %v26336_v7 = vpack.c.bf16 %v18960_v17, %v18959_v32  ;;  %v18866_v34 = vld [vmem:[%s24689_s20 + $0x458] ss:$4 sm:$0xff]  ;;  %v18962_v32 = vld [vmem:[%s24689_s20 + $0x45a] ss:$4 sm:$0xff] }
 0x322   : > { %v18867_v17 = vld [vmem:[%s24689_s20 + $0x558] ss:$4 sm:$0xff]  ;;  %v18985_v43 = vld [vmem:[%s24689_s20 + $0x11ba] ss:$4 sm:$0xff] }
 0x323   : > { %v26308_v25 = vpop.f32.mrb[20].mxu0  ;;  %v26312_v8 = vpop.f32.mrb[20].mxu1  ;;  %v18868_v1 = vld [vmem:[%s24689_s20 + $0x578] ss:$4 sm:$0xff] }
 0x324   : > { %28925 = vst [vmem:[#allocation22_spill] sm:$0xff] %v26308_v25  ;;  %28926 = vst [vmem:[#allocation23_spill] sm:$0xff] %v26312_v8  ;;  %v26314_v10 = vpop.f32.mrb[21].mxu0  ;;  %v26320_v15 = vpop.f32.mrb[21].mxu1  ;;  %v18972_v8 = vld [vmem:[%s24689_s20 + $0x9fa] ss:$4 sm:$0xff] }
 0x325   : > { %28927 = vst [vmem:[#allocation25_spill] sm:$0xff] %v26314_v10  ;;  %28928 = vst [vmem:[#allocation8_spill] sm:$0xff] %v26320_v15  ;;  %v26322_v0 = vpop.f32.mrb[22].mxu0  ;;  %v26328_v53 = vpop.f32.mrb[22].mxu1  ;;  %v6357_v15 = vpack.c.bf16 %v18868_v1, %v18867_v17  ;;  %v18870_v17 = vld [vmem:[%s24689_s20 + $0x698] ss:$4 sm:$0xff] }
 0x326   : > { %28929 = vst [vmem:[#allocation26_spill] sm:$0xff] %v26322_v0  ;;  %28930 = vst [vmem:[#allocation27_spill] sm:$0xff] %v26328_v53  ;;  %v26330_v27 = vpop.f32.mrb[23].mxu0  ;;  %v26334_v46 = vpop.f32.mrb[23].mxu1  ;;  %v26373_v0 = vpack.c.bf16 %v18962_v32, %v18961_v39  ;;  %v18869_v32 = vld [vmem:[%s24689_s20 + $0x678] ss:$4 sm:$0xff] }
 0x327   : > { %28931 = vst [vmem:[#allocation28_spill] sm:$0xff] %v26330_v27  ;;  %28932 = vst [vmem:[#allocation29_spill] sm:$0xff] %v26334_v46  ;;  %v18968_v1 = vld [vmem:[%s24689_s20 + $0x7ba] ss:$4 sm:$0xff] }
 0x328   : > { %21393 = vmatmul.mubr.msk.bf16.vlgmr.msra.gmra.mrb[32].mxu0 %vm607_vm1, %v6354_v24  ;;  %21699 = vmatmul.mubr.msk.bf16.vlgmr.msra.gmra.mrb[32].mxu1 %vm607_vm1, %v26324_v16  ;;  %v18963_v24 = vld [vmem:[%s24689_s20 + $0x55a] ss:$4 sm:$0xff] }
 0x329   : > { %21425 = vmatpush3.bf16.msra.mxu0 %v28933_v48  ;;  %21731 = vmatpush3.bf16.msra.mxu1 %v28933_v48  ;;  %v26381_v46 = vpack.c.bf16 %v18964_v63, %v18963_v24  ;;  %v18965_v63 = vld [vmem:[%s24689_s20 + $0x67a] ss:$4 sm:$0xff] }
 0x32a   : > { %21396 = vmatprep.mubr.msk.bf16.mxu0 %vm607_vm1, %v6355_v51  ;;  %21702 = vmatprep.mubr.msk.bf16.mxu1 %vm607_vm1, %v26336_v7  ;;  %v6356_v51 = vpack.c.bf16 %v18866_v34, %v18865_v49  ;;  %v18966_v24 = vld [vmem:[%s24689_s20 + $0x69a] ss:$4 sm:$0xff]  ;;  %v18872_v49 = vld [vmem:[%s24689_s20 + $0x7b8] ss:$4 sm:$0xff] }
 0x32b   : > { %v26352_v30 = vpop.f32.mrb[24].mxu0  ;;  %24267 = vmatprep.subr.msk.bf16.mxu0 %vm656_vm0, %v24473_v37  ;;  %v26362_v57 = vpop.f32.mrb[24].mxu1  ;;  %24276 = vmatprep.subr.msk.bf16.mxu1 %vm656_vm0, %v24473_v37  ;;  %v18977_v25 = vld [vmem:[%s24689_s20 + $0xd3a] ss:$4 sm:$0xff] }
 0x32c   : > { %28934 = vst [vmem:[#allocation30_spill] sm:$0xff] %v26352_v30  ;;  %28935 = vst [vmem:[#allocation31_spill] sm:$0xff] %v26362_v57  ;;  %v26364_v48 = vpop.f32.mrb[25].mxu0  ;;  %v26369_v27 = vpop.f32.mrb[25].mxu1  ;;  %v18871_v57 = vld [vmem:[%s24689_s20 + $0x798] ss:$4 sm:$0xff]  ;;  %v26415_v30 = vpack.c.bf16 %v18966_v24, %v18965_v63 }
 0x32d   : > { %28936 = vst [vmem:[#allocation32_spill] sm:$0xff] %v26364_v48  ;;  %28937 = vst [vmem:[#allocation33_spill] sm:$0xff] %v26369_v27  ;;  %v26371_v53 = vpop.f32.mrb[26].mxu0  ;;  %v26377_v37 = vpop.f32.mrb[26].mxu1  ;;  %v6359_v10 = vpack.c.bf16 %v18872_v49, %v18871_v57  ;;  %v18873_v49 = vld [vmem:[%s24689_s20 + $0x8b8] ss:$4 sm:$0xff] }
 0x32e   : > { %28938 = vst [vmem:[#allocation34_spill] sm:$0xff] %v26371_v53  ;;  %28939 = vst [vmem:[#allocation35_spill] sm:$0xff] %v26377_v37  ;;  %v26379_v34 = vpop.f32.mrb[27].mxu0  ;;  %v26385_v39 = vpop.f32.mrb[27].mxu1  ;;  %v18967_v53 = vld [vmem:[%s24689_s20 + $0x79a] ss:$4 sm:$0xff] }
 0x32f   : > { %28940 = vst [vmem:[#allocation36_spill] sm:$0xff] %v26379_v34  ;;  %28941 = vst [vmem:[#allocation37_spill] sm:$0xff] %v26385_v39  ;;  %v6358_v34 = vpack.c.bf16 %v18870_v17, %v18869_v32  ;;  %v18874_v24 = vld [vmem:[%s24689_s20 + $0x8d8] ss:$4 sm:$0xff] }
 0x330   : > { %21397 = vmatmul.mubr.msk.bf16.gmra.mrb[36].mxu0 %vm607_vm1, %v6356_v51  ;;  %21703 = vmatmul.mubr.msk.bf16.gmra.mrb[36].mxu1 %vm607_vm1, %v26373_v0  ;;  %v18876_v57 = vld [vmem:[%s24689_s20 + $0x9f8] ss:$4 sm:$0xff] }
 0x331   : > { %21400 = vmatprep.mubr.msk.bf16.mxu0 %vm607_vm1, %v6357_v15  ;;  %21706 = vmatprep.mubr.msk.bf16.mxu1 %vm607_vm1, %v26381_v46  ;;  %v26423_v15 = vpack.c.bf16 %v18968_v1, %v18967_v53  ;;  %v18969_v53 = vld [vmem:[%s24689_s20 + $0x8ba] ss:$4 sm:$0xff] }
 0x332   : > { %v18970_v1 = vld [vmem:[%s24689_s20 + $0x8da] ss:$4 sm:$0xff] }
 0x333   : > { %v26401_v37 = vpop.f32.mrb[28].mxu0  ;;  %v26405_v39 = vpop.f32.mrb[28].mxu1  ;;  %v28950_v33 = vld [vmem:[#allocation10_spill] sm:$0xff] }
 0x334   : > { %28942 = vst [vmem:[#allocation9_spill] sm:$0xff] %v26401_v37  ;;  %28943 = vst [vmem:[#allocation38_spill] sm:$0xff] %v26405_v39  ;;  %v26407_v51 = vpop.f32.mrb[29].mxu0  ;;  %v26411_v27 = vpop.f32.mrb[29].mxu1  ;;  %v18875_v39 = vld [vmem:[%s24689_s20 + $0x9d8] ss:$4 sm:$0xff] }
 0x335   : > { %28944 = vst [vmem:[#allocation39_spill] sm:$0xff] %v26407_v51  ;;  %28945 = vst [vmem:[#allocation40_spill] sm:$0xff] %v26411_v27  ;;  %v26413_v48 = vpop.f32.mrb[30].mxu0  ;;  %v26419_v32 = vpop.f32.mrb[30].mxu1  ;;  %v18878_v27 = vld [vmem:[%s24689_s20 + $0xb18] ss:$4 sm:$0xff] }
 0x336   : > { %28946 = vst [vmem:[#allocation41_spill] sm:$0xff] %v26413_v48  ;;  %28947 = vst [vmem:[#allocation42_spill] sm:$0xff] %v26419_v32  ;;  %v26421_v17 = vpop.f32.mrb[31].mxu0  ;;  %v26427_v63 = vpop.f32.mrb[31].mxu1  ;;  %v18877_v48 = vld [vmem:[%s24689_s20 + $0xaf8] ss:$4 sm:$0xff] }
 0x337   : > { %28948 = vst [vmem:[#allocation43_spill] sm:$0xff] %v26421_v17  ;;  %28949 = vst [vmem:[#allocation44_spill] sm:$0xff] %v26427_v63  ;;  %v26445_v63 = vpack.c.bf16 %v18970_v1, %v18969_v53  ;;  %v6361_v17 = vpack.c.bf16 %v18876_v57, %v18875_v39  ;;  %v18973_v51 = vld [vmem:[%s24689_s20 + $0xafa] ss:$4 sm:$0xff]  ;;  %v18880_v39 = vld [vmem:[%s24689_s20 + $0xc38] ss:$4 sm:$0xff] }
 0x338   : > { %21401 = vmatmul.mubr.msk.bf16.gmra.mrb[40].mxu0 %vm607_vm1, %v6358_v34  ;;  %21707 = vmatmul.mubr.msk.bf16.gmra.mrb[40].mxu1 %vm607_vm1, %v26415_v30  ;;  %v18971_v34 = vld [vmem:[%s24689_s20 + $0x9da] ss:$4 sm:$0xff]  ;;  %v18882_v37 = vld [vmem:[%s24689_s20 + $0xd58] ss:$4 sm:$0xff] }
 0x339   : > { %21404 = vmatprep.mubr.msk.bf16.mxu0 %vm607_vm1, %v6359_v10  ;;  %21710 = vmatprep.mubr.msk.bf16.mxu1 %vm607_vm1, %v26423_v15  ;;  %v6360_v10 = vpack.c.bf16 %v18874_v24, %v18873_v49  ;;  %v26447_v32 = vpack.c.bf16 %v18972_v8, %v18971_v34  ;;  %v18974_v49 = vld [vmem:[%s24689_s20 + $0xb1a] ss:$4 sm:$0xff]  ;;  %v18879_v8 = vld [vmem:[%s24689_s20 + $0xc18] ss:$4 sm:$0xff] }
 0x33a   : > { %v18975_v57 = vld [vmem:[%s24689_s20 + $0xc1a] ss:$4 sm:$0xff]  ;;  %v26463_v53 = vpack.c.bf16 %v18974_v49, %v18973_v51  ;;  %v6363_v1 = vpack.c.bf16 %v18880_v39, %v18879_v8  ;;  %v18884_v51 = vld [vmem:[%s24689_s20 + $0xe78] ss:$4 sm:$0xff] }
 0x33b   : > { %v18976_v24 = vld [vmem:[%s24689_s20 + $0xc3a] ss:$4 sm:$0xff] }
 0x33c   : > { %v26465_v34 = vpack.c.bf16 %v18976_v24, %v18975_v57  ;;  %v18979_v49 = vld [vmem:[%s24689_s20 + $0xe5a] ss:$4 sm:$0xff] }
 0x33d   : > { %v18980_v8 = vld [vmem:[%s24689_s20 + $0xe7a] ss:$4 sm:$0xff] }
 0x340   : > { %21405 = vmatmul.mubr.msk.bf16.gmra.mrb[44].mxu0 %vm607_vm1, %v6360_v10  ;;  %21711 = vmatmul.mubr.msk.bf16.gmra.mrb[44].mxu1 %vm607_vm1, %v26445_v63  ;;  %v18881_v10 = vld [vmem:[%s24689_s20 + $0xd38] ss:$4 sm:$0xff] }
 0x341   : > { %21408 = vmatprep.mubr.msk.bf16.mxu0 %vm607_vm1, %v6361_v17  ;;  %21714 = vmatprep.mubr.msk.bf16.mxu1 %vm607_vm1, %v26447_v32  ;;  %v6362_v17 = vpack.c.bf16 %v18878_v27, %v18877_v48  ;;  %v18978_v27 = vld [vmem:[%s24689_s20 + $0xd5a] ss:$4 sm:$0xff]  ;;  %v18883_v48 = vld [vmem:[%s24689_s20 + $0xe58] ss:$4 sm:$0xff]  ;;  %v6364_v39 = vpack.c.bf16 %v18882_v37, %v18881_v10 }
 0x342   : > { %v26481_v57 = vpack.c.bf16 %v18978_v27, %v18977_v25  ;;  %v6365_v24 = vpack.c.bf16 %v18884_v51, %v18883_v48  ;;  %v18982_v25 = vld [vmem:[%s24689_s20 + $0xf9a] ss:$4 sm:$0xff]  ;;  %v18887_v37 = vld [vmem:[%s24689_s20 + $0x1098] ss:$4 sm:$0xff] }
 0x343   : > { %v18888_v10 = vld [vmem:[%s24689_s20 + $0x10b8] ss:$4 sm:$0xff]  ;;  %v18983_v27 = vld [vmem:[%s24689_s20 + $0x109a] ss:$4 sm:$0xff] }
 0x344   : > { %v18984_v48 = vld [vmem:[%s24689_s20 + $0x10ba] ss:$4 sm:$0xff] }
 0x348   : > { %21409 = vmatmul.mubr.msk.bf16.gmra.mrb[48].mxu0 %vm607_vm1, %v6362_v17  ;;  %21715 = vmatmul.mubr.msk.bf16.gmra.mrb[48].mxu1 %vm607_vm1, %v26463_v53  ;;  %v26483_v17 = vpack.c.bf16 %v18980_v8, %v18979_v49  ;;  %v26499_v49 = vpack.c.bf16 %v18982_v25, %v18981_v58  ;;  %v6367_v8 = vpack.c.bf16 %v18888_v10, %v18887_v37  ;;  %v18907_v58 = vld [vmem:[%s24689_s20 + $0xd9] ss:$4 sm:$0xff]  ;;  %v19211_v25 = vld [vmem:[%s24689_s20 + $0xdb] ss:$4 sm:$0xff] }
 0x349   : > { %21412 = vmatprep.mubr.msk.bf16.mxu0 %vm607_vm1, %v6363_v1  ;;  %21718 = vmatprep.mubr.msk.bf16.mxu1 %vm607_vm1, %v26465_v34  ;;  %v18885_v1 = vld [vmem:[%s24689_s20 + $0xf78] ss:$4 sm:$0xff]  ;;  %v19212_v37 = vld [vmem:[%s24689_s20 + $0xfb] ss:$4 sm:$0xff] }
 0x34a   : > { %v6366_v51 = vpack.c.bf16 %v18886_v47, %v18885_v1  ;;  %v18986_v47 = vld [vmem:[%s24689_s20 + $0x11da] ss:$4 sm:$0xff]  ;;  %v18908_v1 = vld [vmem:[%s24689_s20 + $0xf9] ss:$4 sm:$0xff] }
 0x350   : > { %21413 = vmatmul.mubr.msk.bf16.gmra.mrb[52].mxu0 %vm607_vm1, %v6364_v39  ;;  %21719 = vmatmul.mubr.msk.bf16.gmra.mrb[52].mxu1 %vm607_vm1, %v26481_v57  ;;  %v26501_v39 = vpack.c.bf16 %v18984_v48, %v18983_v27  ;;  %v26517_v27 = vpack.c.bf16 %v18986_v47, %v18985_v43  ;;  %v6674_v48 = vpack.c.bf16 %v18908_v1, %v18907_v58  ;;  %v18911_v43 = vld [vmem:[%s24689_s20 + $0x319] ss:$4 sm:$0xff]  ;;  %v19215_v1 = vld [vmem:[%s24689_s20 + $0x31b] ss:$4 sm:$0xff] }
 0x351   : > { %21416 = vmatprep.mubr.msk.bf16.mxu0 %vm607_vm1, %v6365_v24  ;;  %21722 = vmatprep.mubr.msk.bf16.mxu1 %vm607_vm1, %v26483_v17  ;;  %v18889_v24 = vld [vmem:[%s24689_s20 + $0x11b8] ss:$4 sm:$0xff]  ;;  %v18912_v47 = vld [vmem:[%s24689_s20 + $0x339] ss:$4 sm:$0xff] }
 0x352   : > { %v6368_v10 = vpack.c.bf16 %v18890_v26, %v18889_v24  ;;  %v19213_v26 = vld [vmem:[%s24689_s20 + $0x1fb] ss:$4 sm:$0xff] }
 0x353   : > { %v19214_v24 = vld [vmem:[%s24689_s20 + $0x21b] ss:$4 sm:$0xff] }
 0x358   : > { %21417 = vmatmul.mubr.msk.bf16.gmra.mrb[56].mxu0 %vm607_vm1, %v6366_v51  ;;  %21723 = vmatmul.mubr.msk.bf16.gmra.mrb[56].mxu1 %vm607_vm1, %v26499_v49  ;;  %v9019_v51 = vpack.c.bf16 %v19212_v37, %v19211_v25  ;;  %v19216_v25 = vld [vmem:[%s24689_s20 + $0x33b] ss:$4 sm:$0xff]  ;;  %v9020_v37 = vpack.c.bf16 %v19214_v24, %v19213_v26  ;;  %v18916_v26 = vld [vmem:[%s24689_s20 + $0x579] ss:$4 sm:$0xff] }
 0x359   : > { %21420 = vmatprep.mubr.msk.bf16.mxu0 %vm607_vm1, %v6367_v8  ;;  %21726 = vmatprep.mubr.msk.bf16.mxu1 %vm607_vm1, %v26501_v39  ;;  %v18909_v8 = vld [vmem:[%s24689_s20 + $0x1f9] ss:$4 sm:$0xff]  ;;  %v19219_v24 = vld [vmem:[%s24689_s20 + $0x55b] ss:$4 sm:$0xff] }
 0x35a   : > { %v6675_v58 = vpack.c.bf16 %v18910_v13, %v18909_v8  ;;  %v19218_v13 = vld [vmem:[%s24689_s20 + $0x45b] ss:$4 sm:$0xff]  ;;  %v18915_v8 = vld [vmem:[%s24689_s20 + $0x559] ss:$4 sm:$0xff] }
 0x360   : > { %21421 = vmatmul.mubr.msk.bf16.gmra.mrb[60].mxu0 %vm607_vm1, %v6368_v10  ;;  %21727 = vmatmul.mubr.msk.bf16.gmra.mrb[60].mxu1 %vm607_vm1, %v26517_v27  ;;  %v6676_v10 = vpack.c.bf16 %v18912_v47, %v18911_v43  ;;  %v19220_v43 = vld [vmem:[%s24689_s20 + $0x57b] ss:$4 sm:$0xff] }
 0x361   : > { %21426 = vmatprep.mubr.msk.bf16.mxu0 %vm607_vm1, %v6674_v48  ;;  %21732 = vmatprep.mubr.msk.bf16.mxu1 %vm607_vm1, %v9019_v51  ;;  %v9021_v48 = vpack.c.bf16 %v19216_v25, %v19215_v1  ;;  %v18913_v51 = vld [vmem:[%s24689_s20 + $0x439] ss:$4 sm:$0xff]  ;;  %v6678_v1 = vpack.c.bf16 %v18916_v26, %v18915_v8  ;;  %v9023_v25 = vpack.c.bf16 %v19220_v43, %v19219_v24  ;;  %v19224_v8 = vld [vmem:[%s24689_s20 + $0x7bb] ss:$4 sm:$0xff] }
 0x362   : > { %v24474_v47 = vld [vmem:[%s28859_s1 + $0x18] sm:$0xf] }
 0x368   : > { %21427 = vmatmul.mubr.msk.bf16.vlgmr.msra.gmra.mrb[32].mxu0 %vm607_vm1, %v6675_v58  ;;  %21733 = vmatmul.mubr.msk.bf16.vlgmr.msra.gmra.mrb[32].mxu1 %vm607_vm1, %v9020_v37  ;;  %v9022_v58 = vpack.c.bf16 %v19218_v13, %v19217_v35  ;;  %v18917_v37 = vld [vmem:[%s24689_s20 + $0x679] ss:$4 sm:$0xff]  ;;  %v19223_v13 = vld [vmem:[%s24689_s20 + $0x79b] ss:$4 sm:$0xff] }
 0x369   : > { %21459 = vmatpush3.bf16.msra.mxu0 %v28950_v33  ;;  %21765 = vmatpush3.bf16.msra.mxu1 %v28950_v33  ;;  %v6677_v33 = vpack.c.bf16 %v18914_v9, %v18913_v51  ;;  %v19222_v9 = vld [vmem:[%s24689_s20 + $0x69b] ss:$4 sm:$0xff]  ;;  %v18919_v51 = vld [vmem:[%s24689_s20 + $0x799] ss:$4 sm:$0xff] }
 0x36a   : > { %21430 = vmatprep.mubr.msk.bf16.mxu0 %vm607_vm1, %v6676_v10  ;;  %21736 = vmatprep.mubr.msk.bf16.mxu1 %vm607_vm1, %v9021_v48  ;;  %v18918_v10 = vld [vmem:[%s24689_s20 + $0x699] ss:$4 sm:$0xff]  ;;  %v19221_v48 = vld [vmem:[%s24689_s20 + $0x67b] ss:$4 sm:$0xff] }
 0x36b   : > { %24268 = vmatprep.subr.msk.bf16.mxu0 %vm656_vm0, %v24474_v47  ;;  %24277 = vmatprep.subr.msk.bf16.mxu1 %vm656_vm0, %v24474_v47  ;;  %v18920_v35 = vld [vmem:[%s24689_s20 + $0x7b9] ss:$4 sm:$0xff]  ;;  %v6679_v26 = vpack.c.bf16 %v18918_v10, %v18917_v37  ;;  %v9024_v24 = vpack.c.bf16 %v19222_v9, %v19221_v48  ;;  %v9025_v47 = vpack.c.bf16 %v19224_v8, %v19223_v13  ;;  %v19227_v48 = vld [vmem:[%s24689_s20 + $0x9db] ss:$4 sm:$0xff] }
 0x36c   : > { %v6680_v43 = vpack.c.bf16 %v18920_v35, %v18919_v51  ;;  %v18923_v37 = vld [vmem:[%s24689_s20 + $0x9d9] ss:$4 sm:$0xff]  ;;  %v19228_v9 = vld [vmem:[%s24689_s20 + $0x9fb] ss:$4 sm:$0xff] }
 0x36d   : > { %v18924_v10 = vld [vmem:[%s24689_s20 + $0x9f9] ss:$4 sm:$0xff]  ;;  %v9027_v8 = vpack.c.bf16 %v19228_v9, %v19227_v48 }
 0x36e   : > { %v6682_v13 = vpack.c.bf16 %v18924_v10, %v18923_v37 }
 0x370   : > { %21431 = vmatmul.mubr.msk.bf16.gmra.mrb[36].mxu0 %vm607_vm1, %v6677_v33  ;;  %21737 = vmatmul.mubr.msk.bf16.gmra.mrb[36].mxu1 %vm607_vm1, %v9022_v58  ;;  %v18921_v33 = vld [vmem:[%s24689_s20 + $0x8b9] ss:$4 sm:$0xff] }
 0x371   : > { %21434 = vmatprep.mubr.msk.bf16.mxu0 %vm607_vm1, %v6678_v1  ;;  %21740 = vmatprep.mubr.msk.bf16.mxu1 %vm607_vm1, %v9023_v25  ;;  %v18922_v58 = vld [vmem:[%s24689_s20 + $0x8d9] ss:$4 sm:$0xff]  ;;  %v19225_v1 = vld [vmem:[%s24689_s20 + $0x8bb] ss:$4 sm:$0xff] }
 0x372   : > { %v19226_v25 = vld [vmem:[%s24689_s20 + $0x8db] ss:$4 sm:$0xff]  ;;  %v6681_v51 = vpack.c.bf16 %v18922_v58, %v18921_v33  ;;  %v18927_v33 = vld [vmem:[%s24689_s20 + $0xc19] ss:$4 sm:$0xff] }
 0x373   : > { %v9026_v35 = vpack.c.bf16 %v19226_v25, %v19225_v1  ;;  %v18928_v58 = vld [vmem:[%s24689_s20 + $0xc39] ss:$4 sm:$0xff]  ;;  %v19231_v1 = vld [vmem:[%s24689_s20 + $0xc1b] ss:$4 sm:$0xff] }
 0x374   : > { %v19232_v25 = vld [vmem:[%s24689_s20 + $0xc3b] ss:$4 sm:$0xff]  ;;  %v6684_v48 = vpack.c.bf16 %v18928_v58, %v18927_v33 }
 0x375   : > { %v9029_v9 = vpack.c.bf16 %v19232_v25, %v19231_v1 }
 0x378   : > { %21435 = vmatmul.mubr.msk.bf16.gmra.mrb[40].mxu0 %vm607_vm1, %v6679_v26  ;;  %21741 = vmatmul.mubr.msk.bf16.gmra.mrb[40].mxu1 %vm607_vm1, %v9024_v24  ;;  %v18925_v26 = vld [vmem:[%s24689_s20 + $0xaf9] ss:$4 sm:$0xff] }
 0x379   : > { %21438 = vmatprep.mubr.msk.bf16.mxu0 %vm607_vm1, %v6680_v43  ;;  %21744 = vmatprep.mubr.msk.bf16.mxu1 %vm607_vm1, %v9025_v47  ;;  %v18926_v24 = vld [vmem:[%s24689_s20 + $0xb19] ss:$4 sm:$0xff]  ;;  %v19229_v43 = vld [vmem:[%s24689_s20 + $0xafb] ss:$4 sm:$0xff] }
 0x37a   : > { %v19230_v47 = vld [vmem:[%s24689_s20 + $0xb1b] ss:$4 sm:$0xff]  ;;  %v6683_v37 = vpack.c.bf16 %v18926_v24, %v18925_v26  ;;  %v18931_v26 = vld [vmem:[%s24689_s20 + $0xe59] ss:$4 sm:$0xff] }
 0x37b   : > { %v9028_v10 = vpack.c.bf16 %v19230_v47, %v19229_v43  ;;  %v18932_v24 = vld [vmem:[%s24689_s20 + $0xe79] ss:$4 sm:$0xff]  ;;  %v19235_v43 = vld [vmem:[%s24689_s20 + $0xe5b] ss:$4 sm:$0xff] }
 0x37c   : > { %v19236_v47 = vld [vmem:[%s24689_s20 + $0xe7b] ss:$4 sm:$0xff]  ;;  %v6686_v1 = vpack.c.bf16 %v18932_v24, %v18931_v26 }
 0x37d   : > { %v9031_v25 = vpack.c.bf16 %v19236_v47, %v19235_v43 }
 0x380   : > { %21439 = vmatmul.mubr.msk.bf16.gmra.mrb[44].mxu0 %vm607_vm1, %v6681_v51  ;;  %21745 = vmatmul.mubr.msk.bf16.gmra.mrb[44].mxu1 %vm607_vm1, %v9026_v35  ;;  %v18929_v51 = vld [vmem:[%s24689_s20 + $0xd39] ss:$4 sm:$0xff] }
 0x381   : > { %21442 = vmatprep.mubr.msk.bf16.mxu0 %vm607_vm1, %v6682_v13  ;;  %21748 = vmatprep.mubr.msk.bf16.mxu1 %vm607_vm1, %v9027_v8  ;;  %v18930_v35 = vld [vmem:[%s24689_s20 + $0xd59] ss:$4 sm:$0xff]  ;;  %v19233_v13 = vld [vmem:[%s24689_s20 + $0xd3b] ss:$4 sm:$0xff] }
 0x382   : > { %v19234_v8 = vld [vmem:[%s24689_s20 + $0xd5b] ss:$4 sm:$0xff]  ;;  %v6685_v33 = vpack.c.bf16 %v18930_v35, %v18929_v51  ;;  %v18935_v51 = vld [vmem:[%s24689_s20 + $0x1099] ss:$4 sm:$0xff] }
 0x383   : > { %v9030_v58 = vpack.c.bf16 %v19234_v8, %v19233_v13  ;;  %v18936_v35 = vld [vmem:[%s24689_s20 + $0x10b9] ss:$4 sm:$0xff]  ;;  %v19239_v13 = vld [vmem:[%s24689_s20 + $0x109b] ss:$4 sm:$0xff] }
 0x384   : > { %v19240_v8 = vld [vmem:[%s24689_s20 + $0x10bb] ss:$4 sm:$0xff]  ;;  %v6688_v43 = vpack.c.bf16 %v18936_v35, %v18935_v51  ;;  %v19261_v35 = vld [vmem:[%s24689_s20 + $0x1fc] ss:$4 sm:$0xff] }
 0x385   : > { %v9033_v47 = vpack.c.bf16 %v19240_v8, %v19239_v13  ;;  %v19262_v13 = vld [vmem:[%s24689_s20 + $0x21c] ss:$4 sm:$0xff] }
 0x386   : > { %v19263_v8 = vld [vmem:[%s24689_s20 + $0x31c] ss:$4 sm:$0xff] }
 0x388   : > { %21443 = vmatmul.mubr.msk.bf16.gmra.mrb[48].mxu0 %vm607_vm1, %v6683_v37  ;;  %21749 = vmatmul.mubr.msk.bf16.gmra.mrb[48].mxu1 %vm607_vm1, %v9028_v10  ;;  %v18933_v37 = vld [vmem:[%s24689_s20 + $0xf79] ss:$4 sm:$0xff] }
 0x389   : > { %21446 = vmatprep.mubr.msk.bf16.mxu0 %vm607_vm1, %v6684_v48  ;;  %21752 = vmatprep.mubr.msk.bf16.mxu1 %vm607_vm1, %v9029_v9  ;;  %v18934_v10 = vld [vmem:[%s24689_s20 + $0xf99] ss:$4 sm:$0xff]  ;;  %v19237_v48 = vld [vmem:[%s24689_s20 + $0xf7b] ss:$4 sm:$0xff] }
 0x38a   : > { %v19238_v9 = vld [vmem:[%s24689_s20 + $0xf9b] ss:$4 sm:$0xff]  ;;  %v6687_v26 = vpack.c.bf16 %v18934_v10, %v18933_v37  ;;  %v19259_v37 = vld [vmem:[%s24689_s20 + $0xdc] ss:$4 sm:$0xff] }
 0x38b   : > { %v9032_v24 = vpack.c.bf16 %v19238_v9, %v19237_v48  ;;  %v19260_v10 = vld [vmem:[%s24689_s20 + $0xfc] ss:$4 sm:$0xff] }
 0x38c   : > { %v9340_v51 = vpack.c.bf16 %v19260_v10, %v19259_v37  ;;  %v19269_v37 = vld [vmem:[%s24689_s20 + $0x67c] ss:$4 sm:$0xff] }
 0x38d   : > { %v19270_v10 = vld [vmem:[%s24689_s20 + $0x69c] ss:$4 sm:$0xff] }
 0x390   : > { %21447 = vmatmul.mubr.msk.bf16.gmra.mrb[52].mxu0 %vm607_vm1, %v6685_v33  ;;  %21753 = vmatmul.mubr.msk.bf16.gmra.mrb[52].mxu1 %vm607_vm1, %v9030_v58  ;;  %v18937_v33 = vld [vmem:[%s24689_s20 + $0x11b9] ss:$4 sm:$0xff] }
 0x391   : > { %21450 = vmatprep.mubr.msk.bf16.mxu0 %vm607_vm1, %v6686_v1  ;;  %21756 = vmatprep.mubr.msk.bf16.mxu1 %vm607_vm1, %v9031_v25  ;;  %v18938_v58 = vld [vmem:[%s24689_s20 + $0x11d9] ss:$4 sm:$0xff]  ;;  %v19241_v1 = vld [vmem:[%s24689_s20 + $0x11bb] ss:$4 sm:$0xff] }
 0x392   : > { %v19242_v25 = vld [vmem:[%s24689_s20 + $0x11db] ss:$4 sm:$0xff]  ;;  %v6689_v48 = vpack.c.bf16 %v18938_v58, %v18937_v33  ;;  %v19266_v33 = vld [vmem:[%s24689_s20 + $0x45c] ss:$4 sm:$0xff] }
 0x393   : > { %v9034_v9 = vpack.c.bf16 %v19242_v25, %v19241_v1  ;;  %v19267_v58 = vld [vmem:[%s24689_s20 + $0x55c] ss:$4 sm:$0xff] }
 0x394   : > { %v19268_v1 = vld [vmem:[%s24689_s20 + $0x57c] ss:$4 sm:$0xff] }
 0x398   : > { %21451 = vmatmul.mubr.msk.bf16.gmra.mrb[56].mxu0 %vm607_vm1, %v6687_v26  ;;  %21757 = vmatmul.mubr.msk.bf16.gmra.mrb[56].mxu1 %vm607_vm1, %v9032_v24  ;;  %v19264_v26 = vld [vmem:[%s24689_s20 + $0x33c] ss:$4 sm:$0xff]  ;;  %v9341_v24 = vpack.c.bf16 %v19262_v13, %v19261_v35 }
 0x399   : > { %21454 = vmatprep.mubr.msk.bf16.mxu0 %vm607_vm1, %v6688_v43  ;;  %21760 = vmatprep.mubr.msk.bf16.mxu1 %vm607_vm1, %v9033_v47  ;;  %v9342_v43 = vpack.c.bf16 %v19264_v26, %v19263_v8  ;;  %v28951_v47 = vld [vmem:[#allocation11_spill] sm:$0xff] }
 0x39a   : > { %v19275_v13 = vld [vmem:[%s24689_s20 + $0x9dc] ss:$4 sm:$0xff] }
 0x39b   : > { %v19276_v8 = vld [vmem:[%s24689_s20 + $0x9fc] ss:$4 sm:$0xff] }
 0x3a0   : > { %21455 = vmatmul.mubr.msk.bf16.gmra.mrb[60].mxu0 %vm607_vm1, %v6689_v48  ;;  %21761 = vmatmul.mubr.msk.bf16.gmra.mrb[60].mxu1 %vm607_vm1, %v9034_v9  ;;  %v19271_v48 = vld [vmem:[%s24689_s20 + $0x79c] ss:$4 sm:$0xff] }
 0x3a1   : > { %21460 = vmatprep.mubr.msk.bf16.mxu0 %vm607_vm1, %v26289_v11  ;;  %21766 = vmatprep.mubr.msk.bf16.mxu1 %vm607_vm1, %v9340_v51  ;;  %v19265_v11 = vld [vmem:[%s24689_s20 + $0x43c] ss:$4 sm:$0xff]  ;;  %v9345_v51 = vpack.c.bf16 %v19270_v10, %v19269_v37 }
 0x3a2   : > { %v9343_v25 = vpack.c.bf16 %v19266_v33, %v19265_v11  ;;  %v19272_v9 = vld [vmem:[%s24689_s20 + $0x7bc] ss:$4 sm:$0xff] }
 0x3a3   : > { %v9346_v35 = vpack.c.bf16 %v19272_v9, %v19271_v48  ;;  %v19288_v37 = vld [vmem:[%s24689_s20 + $0x10bc] ss:$4 sm:$0xff] }
 0x3a4   : > { %v19003_v9 = vld [vmem:[%s24689_s20 + $0x120] ss:$4 sm:$0xff] }
 0x3a8   : > { %21461 = vmatmul.mubr.msk.bf16.vlgmr.msra.gmra.mrb[32].mxu0 %vm607_vm1, %v26324_v16  ;;  %21767 = vmatmul.mubr.msk.bf16.vlgmr.msra.gmra.mrb[32].mxu1 %vm607_vm1, %v9341_v24  ;;  %v24475_v16 = vld [vmem:[%s28859_s1 + $0x1c] sm:$0xf]  ;;  %v9348_v24 = vpack.c.bf16 %v19276_v8, %v19275_v13 }
 0x3a9   : > { %21493 = vmatpush3.bf16.msra.mxu0 %v28951_v47  ;;  %21799 = vmatpush3.bf16.msra.mxu1 %v28951_v47  ;;  %v19280_v47 = vld [vmem:[%s24689_s20 + $0xc3c] ss:$4 sm:$0xff] }
 0x3aa   : > { %21464 = vmatprep.mubr.msk.bf16.mxu0 %vm607_vm1, %v26336_v7  ;;  %21770 = vmatprep.mubr.msk.bf16.mxu1 %vm607_vm1, %v9342_v43  ;;  %v9344_v7 = vpack.c.bf16 %v19268_v1, %v19267_v58  ;;  %v19279_v43 = vld [vmem:[%s24689_s20 + $0xc1c] ss:$4 sm:$0xff] }
 0x3ab   : > { %24269 = vmatprep.subr.msk.bf16.mxu0 %vm656_vm0, %v24475_v16  ;;  %24278 = vmatprep.subr.msk.bf16.mxu1 %vm656_vm0, %v24475_v16  ;;  %v9350_v33 = vpack.c.bf16 %v19280_v47, %v19279_v43  ;;  %v19283_v58 = vld [vmem:[%s24689_s20 + $0xe5c] ss:$4 sm:$0xff]  ;;  %v19104_v47 = vld [vmem:[%s24689_s20 + $0x382] ss:$4 sm:$0xff] }
 0x3ac   : > { %v19284_v1 = vld [vmem:[%s24689_s20 + $0xe7c] ss:$4 sm:$0xff] }
 0x3ad   : > { %v19006_v8 = vld [vmem:[%s24689_s20 + $0x260] ss:$4 sm:$0xff] }
 0x3b0   : > { %21465 = vmatmul.mubr.msk.bf16.gmra.mrb[36].mxu0 %vm607_vm1, %v26373_v0  ;;  %21771 = vmatmul.mubr.msk.bf16.gmra.mrb[36].mxu1 %vm607_vm1, %v9343_v25  ;;  %v19274_v0 = vld [vmem:[%s24689_s20 + $0x8dc] ss:$4 sm:$0xff]  ;;  %v9352_v25 = vpack.c.bf16 %v19284_v1, %v19283_v58 }
 0x3b1   : > { %21468 = vmatprep.mubr.msk.bf16.mxu0 %vm607_vm1, %v26381_v46  ;;  %21774 = vmatprep.mubr.msk.bf16.mxu1 %vm607_vm1, %v9344_v7  ;;  %v19273_v46 = vld [vmem:[%s24689_s20 + $0x8bc] ss:$4 sm:$0xff] }
 0x3b2   : > { %v9347_v26 = vpack.c.bf16 %v19274_v0, %v19273_v46  ;;  %v19287_v7 = vld [vmem:[%s24689_s20 + $0x109c] ss:$4 sm:$0xff] }
 0x3b3   : > { %v9354_v48 = vpack.c.bf16 %v19288_v37, %v19287_v7  ;;  %v19009_v58 = vld [vmem:[%s24689_s20 + $0x480] ss:$4 sm:$0xff]  ;;  %v19107_v7 = vld [vmem:[%s24689_s20 + $0x5a2] ss:$4 sm:$0xff] }
 0x3b4   : > { %v19010_v1 = vld [vmem:[%s24689_s20 + $0x4a0] ss:$4 sm:$0xff]  ;;  %v19108_v37 = vld [vmem:[%s24689_s20 + $0x5c2] ss:$4 sm:$0xff] }
 0x3b8   : > { %21469 = vmatmul.mubr.msk.bf16.gmra.mrb[40].mxu0 %vm607_vm1, %v26415_v30  ;;  %21775 = vmatmul.mubr.msk.bf16.gmra.mrb[40].mxu1 %vm607_vm1, %v9345_v51  ;;  %v19277_v30 = vld [vmem:[%s24689_s20 + $0xafc] ss:$4 sm:$0xff] }
 0x3b9   : > { %21472 = vmatprep.mubr.msk.bf16.mxu0 %vm607_vm1, %v26423_v15  ;;  %21778 = vmatprep.mubr.msk.bf16.mxu1 %vm607_vm1, %v9346_v35  ;;  %v19278_v15 = vld [vmem:[%s24689_s20 + $0xb1c] ss:$4 sm:$0xff]  ;;  %v19099_v35 = vld [vmem:[%s24689_s20 + $0x122] ss:$4 sm:$0xff] }
 0x3ba   : > { %v9349_v11 = vpack.c.bf16 %v19278_v15, %v19277_v30  ;;  %v19004_v51 = vld [vmem:[%s24689_s20 + $0x140] ss:$4 sm:$0xff] }
 0x3bb   : > { %v7316_v0 = vpack.c.bf16 %v19004_v51, %v19003_v9  ;;  %v19007_v30 = vld [vmem:[%s24689_s20 + $0x360] ss:$4 sm:$0xff]  ;;  %v26752_v9 = vpack.c.bf16 %v19108_v37, %v19107_v7 }
 0x3bc   : > { %v19008_v15 = vld [vmem:[%s24689_s20 + $0x380] ss:$4 sm:$0xff] }
 0x3bd   : > { %v19013_v51 = vld [vmem:[%s24689_s20 + $0x6c0] ss:$4 sm:$0xff] }
 0x3c0   : > { %21473 = vmatmul.mubr.msk.bf16.gmra.mrb[44].mxu0 %vm607_vm1, %v26445_v63  ;;  %21779 = vmatmul.mubr.msk.bf16.gmra.mrb[44].mxu1 %vm607_vm1, %v9347_v26  ;;  %v19282_v63 = vld [vmem:[%s24689_s20 + $0xd5c] ss:$4 sm:$0xff]  ;;  %v19101_v26 = vld [vmem:[%s24689_s20 + $0x242] ss:$4 sm:$0xff] }
 0x3c1   : > { %21476 = vmatprep.mubr.msk.bf16.mxu0 %vm607_vm1, %v26447_v32  ;;  %21782 = vmatprep.mubr.msk.bf16.mxu1 %vm607_vm1, %v9348_v24  ;;  %v19281_v32 = vld [vmem:[%s24689_s20 + $0xd3c] ss:$4 sm:$0xff]  ;;  %v19102_v24 = vld [vmem:[%s24689_s20 + $0x262] ss:$4 sm:$0xff] }
 0x3c2   : > { %v9351_v16 = vpack.c.bf16 %v19282_v63, %v19281_v32  ;;  %v28952_v63 = vld [vmem:[#allocation12_spill] sm:$0xff] }
 0x3c8   : > { %21477 = vmatmul.mubr.msk.bf16.gmra.mrb[48].mxu0 %vm607_vm1, %v26463_v53  ;;  %21783 = vmatmul.mubr.msk.bf16.gmra.mrb[48].mxu1 %vm607_vm1, %v9349_v11  ;;  %v19285_v53 = vld [vmem:[%s24689_s20 + $0xf7c] ss:$4 sm:$0xff]  ;;  %v26725_v11 = vpack.c.bf16 %v19102_v24, %v19101_v26  ;;  %v19112_v26 = vld [vmem:[%s24689_s20 + $0x802] ss:$4 sm:$0xff] }
 0x3c9   : > { %21480 = vmatprep.mubr.msk.bf16.mxu0 %vm607_vm1, %v26465_v34  ;;  %21786 = vmatprep.mubr.msk.bf16.mxu1 %vm607_vm1, %v9350_v33  ;;  %v19286_v34 = vld [vmem:[%s24689_s20 + $0xf9c] ss:$4 sm:$0xff]  ;;  %v7318_v33 = vpack.c.bf16 %v19008_v15, %v19007_v30 }
 0x3ca   : > { %v9353_v10 = vpack.c.bf16 %v19286_v34, %v19285_v53  ;;  %v19011_v53 = vld [vmem:[%s24689_s20 + $0x5a0] ss:$4 sm:$0xff] }
 0x3cb   : > { %v19012_v34 = vld [vmem:[%s24689_s20 + $0x5c0] ss:$4 sm:$0xff] }
 0x3d0   : > { %21481 = vmatmul.mubr.msk.bf16.gmra.mrb[52].mxu0 %vm607_vm1, %v26481_v57  ;;  %21787 = vmatmul.mubr.msk.bf16.gmra.mrb[52].mxu1 %vm607_vm1, %v9351_v16  ;;  %v19289_v57 = vld [vmem:[%s24689_s20 + $0x11bc] ss:$4 sm:$0xff]  ;;  %v19105_v16 = vld [vmem:[%s24689_s20 + $0x482] ss:$4 sm:$0xff] }
 0x3d1   : > { %21484 = vmatprep.mubr.msk.bf16.mxu0 %vm607_vm1, %v26483_v17  ;;  %21790 = vmatprep.mubr.msk.bf16.mxu1 %vm607_vm1, %v9352_v25  ;;  %v19290_v17 = vld [vmem:[%s24689_s20 + $0x11dc] ss:$4 sm:$0xff]  ;;  %v19106_v25 = vld [vmem:[%s24689_s20 + $0x4a2] ss:$4 sm:$0xff] }
 0x3d2   : > { %v9355_v46 = vpack.c.bf16 %v19290_v17, %v19289_v57  ;;  %v26750_v57 = vpack.c.bf16 %v19106_v25, %v19105_v16  ;;  %v7320_v17 = vpack.c.bf16 %v19012_v34, %v19011_v53  ;;  %v19115_v16 = vld [vmem:[%s24689_s20 + $0xa22] ss:$4 sm:$0xff] }
 0x3d3   : > { %v19116_v25 = vld [vmem:[%s24689_s20 + $0xa42] ss:$4 sm:$0xff] }
 0x3d4   : > { %v26788_v37 = vpack.c.bf16 %v19116_v25, %v19115_v16  ;;  %v19124_v16 = vld [vmem:[%s24689_s20 + $0xec2] ss:$4 sm:$0xff] }
 0x3d8   : > { %21485 = vmatmul.mubr.msk.bf16.gmra.mrb[56].mxu0 %vm607_vm1, %v26499_v49  ;;  %21791 = vmatmul.mubr.msk.bf16.gmra.mrb[56].mxu1 %vm607_vm1, %v9353_v10  ;;  %v19100_v49 = vld [vmem:[%s24689_s20 + $0x142] ss:$4 sm:$0xff] }
 0x3d9   : > { %21488 = vmatprep.mubr.msk.bf16.mxu0 %vm607_vm1, %v26501_v39  ;;  %21794 = vmatprep.mubr.msk.bf16.mxu1 %vm607_vm1, %v9354_v48  ;;  %v26709_v13 = vpack.c.bf16 %v19100_v49, %v19099_v35  ;;  %v19005_v39 = vld [vmem:[%s24689_s20 + $0x240] ss:$4 sm:$0xff]  ;;  %v7319_v48 = vpack.c.bf16 %v19010_v1, %v19009_v58  ;;  %v19109_v49 = vld [vmem:[%s24689_s20 + $0x6c2] ss:$4 sm:$0xff] }
 0x3da   : > { %v7317_v43 = vpack.c.bf16 %v19006_v8, %v19005_v39  ;;  %v24476_v10 = vld [vmem:[%s28859_s1 + $0x20] sm:$0xf]  ;;  %s432_s1 = scalar_lea.vmem [#allocation5], %s431_s21 }
 0x3db   : > { %v19014_v35 = vld [vmem:[%s24689_s20 + $0x6e0] ss:$4 sm:$0xff]  ;;  %v19111_v8 = vld [vmem:[%s24689_s20 + $0x7e2] ss:$4 sm:$0xff]  ;;  %s17242_s23 = sshll.u32 %s432_s1, 4  ;;  %s28728_s23 = int_to_ptr.vmem [resolvable:$true] %s17242_s23 }
 0x3dc   : > { %v19016_v39 = vld [vmem:[%s24689_s20 + $0x800] ss:$4 sm:$0xff]  ;;  %v7321_v24 = vpack.c.bf16 %v19014_v35, %v19013_v51  ;;  %v19118_v51 = vld [vmem:[%s24689_s20 + $0xb62] ss:$4 sm:$0xff] }
 0x3dd   : > { %v19019_v58 = vld [vmem:[%s24689_s20 + $0xa20] ss:$4 sm:$0xff] }
 0x3de   : > { %v19020_v1 = vld [vmem:[%s24689_s20 + $0xa40] ss:$4 sm:$0xff] }
 0x3df   : > { %v7324_v7 = vpack.c.bf16 %v19020_v1, %v19019_v58  ;;  %v19023_v35 = vld [vmem:[%s24689_s20 + $0xc60] ss:$4 sm:$0xff]  ;;  %v19123_v1 = vld [vmem:[%s24689_s20 + $0xea2] ss:$4 sm:$0xff] }
 0x3e0   : > { %21489 = vmatmul.mubr.msk.bf16.gmra.mrb[60].mxu0 %vm607_vm1, %v26517_v27  ;;  %21795 = vmatmul.mubr.msk.bf16.gmra.mrb[60].mxu1 %vm607_vm1, %v9355_v46  ;;  %v19103_v27 = vld [vmem:[%s24689_s20 + $0x362] ss:$4 sm:$0xff]  ;;  %v19028_v58 = vld [vmem:[%s24689_s20 + $0xec0] ss:$4 sm:$0xff] }
 0x3e1   : > { %21494 = vmatprep.mubr.msk.bf16.mxu0 %vm607_vm1, %v7316_v0  ;;  %21800 = vmatprep.mubr.msk.bf16.mxu1 %vm607_vm1, %v26709_v13  ;;  %v26727_v32 = vpack.c.bf16 %v19104_v47, %v19103_v27  ;;  %v19110_v46 = vld [vmem:[%s24689_s20 + $0x6e2] ss:$4 sm:$0xff]  ;;  %v19015_v0 = vld [vmem:[%s24689_s20 + $0x7e0] ss:$4 sm:$0xff] }
 0x3e2   : > { %v26768_v30 = vpack.c.bf16 %v19110_v46, %v19109_v49  ;;  %v7322_v15 = vpack.c.bf16 %v19016_v39, %v19015_v0  ;;  %v19017_v27 = vld [vmem:[%s24689_s20 + $0x900] ss:$4 sm:$0xff]  ;;  %v19119_v46 = vld [vmem:[%s24689_s20 + $0xc62] ss:$4 sm:$0xff] }
 0x3e3   : > { %v19018_v47 = vld [vmem:[%s24689_s20 + $0x920] ss:$4 sm:$0xff]  ;;  %v19120_v0 = vld [vmem:[%s24689_s20 + $0xc82] ss:$4 sm:$0xff] }
 0x3e4   : > { %v7323_v53 = vpack.c.bf16 %v19018_v47, %v19017_v27  ;;  %v19024_v49 = vld [vmem:[%s24689_s20 + $0xc80] ss:$4 sm:$0xff]  ;;  %v19121_v47 = vld [vmem:[%s24689_s20 + $0xd82] ss:$4 sm:$0xff] }
 0x3e5   : > { %v19026_v27 = vld [vmem:[%s24689_s20 + $0xda0] ss:$4 sm:$0xff] }
 0x3e8   : > { %21495 = vmatmul.mubr.msk.bf16.vlgmr.msra.gmra.mrb[32].mxu0 %vm607_vm1, %v7317_v43  ;;  %21801 = vmatmul.mubr.msk.bf16.vlgmr.msra.gmra.mrb[32].mxu1 %vm607_vm1, %v26725_v11  ;;  %v26770_v43 = vpack.c.bf16 %v19112_v26, %v19111_v8  ;;  %v7326_v26 = vpack.c.bf16 %v19024_v49, %v19023_v35  ;;  %v19126_v35 = vld [vmem:[%s24689_s20 + $0xfe2] ss:$4 sm:$0xff]  ;;  %v19031_v49 = vld [vmem:[%s24689_s20 + $0x10e0] ss:$4 sm:$0xff] }
 0x3e9   : > { %21527 = vmatpush3.bf16.msra.mxu0 %v28952_v63  ;;  %21833 = vmatpush3.bf16.msra.mxu1 %v28952_v63  ;;  %v19114_v63 = vld [vmem:[%s24689_s20 + $0x922] ss:$4 sm:$0xff] }
 0x3ea   : > { %21498 = vmatprep.mubr.msk.bf16.mxu0 %vm607_vm1, %v7318_v33  ;;  %21804 = vmatprep.mubr.msk.bf16.mxu1 %vm607_vm1, %v26727_v32  ;;  %v19113_v33 = vld [vmem:[%s24689_s20 + $0x902] ss:$4 sm:$0xff] }
 0x3eb   : > { %24270 = vmatprep.subr.msk.bf16.mxu0 %vm656_vm0, %v24476_v10  ;;  %24279 = vmatprep.subr.msk.bf16.mxu1 %vm656_vm0, %v24476_v10  ;;  %v26786_v34 = vpack.c.bf16 %v19114_v63, %v19113_v33  ;;  %v19021_v10 = vld [vmem:[%s24689_s20 + $0xb40] ss:$4 sm:$0xff]  ;;  %v19122_v33 = vld [vmem:[%s24689_s20 + $0xda2] ss:$4 sm:$0xff] }
 0x3ec   : > { %v19027_v63 = vld [vmem:[%s24689_s20 + $0xea0] ss:$4 sm:$0xff] }
 0x3f0   : > { %21499 = vmatmul.mubr.msk.bf16.gmra.mrb[36].mxu0 %vm607_vm1, %v7319_v48  ;;  %21805 = vmatmul.mubr.msk.bf16.gmra.mrb[36].mxu1 %vm607_vm1, %v26750_v57  ;;  %v19022_v48 = vld [vmem:[%s24689_s20 + $0xb60] ss:$4 sm:$0xff] }
 0x3f1   : > { %21502 = vmatprep.mubr.msk.bf16.mxu0 %vm607_vm1, %v7320_v17  ;;  %21808 = vmatprep.mubr.msk.bf16.mxu1 %vm607_vm1, %v26752_v9  ;;  %v19117_v17 = vld [vmem:[%s24689_s20 + $0xb42] ss:$4 sm:$0xff]  ;;  %v7325_v39 = vpack.c.bf16 %v19022_v48, %v19021_v10  ;;  %v26824_v10 = vpack.c.bf16 %v19124_v16, %v19123_v1  ;;  %v19029_v48 = vld [vmem:[%s24689_s20 + $0xfc0] ss:$4 sm:$0xff]  ;;  %v19051_v16 = vld [vmem:[%s24689_s20 + $0x121] ss:$4 sm:$0xff] }
 0x3f2   : > { %v26804_v8 = vpack.c.bf16 %v19118_v51, %v19117_v17  ;;  %v19030_v17 = vld [vmem:[%s24689_s20 + $0xfe0] ss:$4 sm:$0xff]  ;;  %v19125_v51 = vld [vmem:[%s24689_s20 + $0xfc2] ss:$4 sm:$0xff] }
 0x3f3   : > { %v19130_v1 = vld [vmem:[%s24689_s20 + $0x1222] ss:$4 sm:$0xff] }
 0x3f8   : > { %21503 = vmatmul.mubr.msk.bf16.gmra.mrb[40].mxu0 %vm607_vm1, %v7321_v24  ;;  %21809 = vmatmul.mubr.msk.bf16.gmra.mrb[40].mxu1 %vm607_vm1, %v26768_v30  ;;  %v26806_v24 = vpack.c.bf16 %v19120_v0, %v19119_v46  ;;  %v19032_v46 = vld [vmem:[%s24689_s20 + $0x1100] ss:$4 sm:$0xff]  ;;  %v19127_v0 = vld [vmem:[%s24689_s20 + $0x10e2] ss:$4 sm:$0xff] }
 0x3f9   : > { %21506 = vmatprep.mubr.msk.bf16.mxu0 %vm607_vm1, %v7322_v15  ;;  %21812 = vmatprep.mubr.msk.bf16.mxu1 %vm607_vm1, %v26770_v43  ;;  %v19025_v15 = vld [vmem:[%s24689_s20 + $0xd80] ss:$4 sm:$0xff] }
 0x3fa   : > { %v7327_v25 = vpack.c.bf16 %v19026_v27, %v19025_v15  ;;  %v26840_v15 = vpack.c.bf16 %v19126_v35, %v19125_v51  ;;  %v7330_v27 = vpack.c.bf16 %v19032_v46, %v19031_v49  ;;  %v19053_v46 = vld [vmem:[%s24689_s20 + $0x241] ss:$4 sm:$0xff] }
 0x400   : > { %21507 = vmatmul.mubr.msk.bf16.gmra.mrb[44].mxu0 %vm607_vm1, %v7323_v53  ;;  %21813 = vmatmul.mubr.msk.bf16.gmra.mrb[44].mxu1 %vm607_vm1, %v26786_v34  ;;  %v26822_v53 = vpack.c.bf16 %v19122_v33, %v19121_v47  ;;  %v19033_v33 = vld [vmem:[%s24689_s20 + $0x1200] ss:$4 sm:$0xff] }
 0x401   : > { %21510 = vmatprep.mubr.msk.bf16.mxu0 %vm607_vm1, %v7324_v7  ;;  %21816 = vmatprep.mubr.msk.bf16.mxu1 %vm607_vm1, %v26788_v37  ;;  %v7328_v7 = vpack.c.bf16 %v19028_v58, %v19027_v63  ;;  %v19034_v63 = vld [vmem:[%s24689_s20 + $0x1220] ss:$4 sm:$0xff]  ;;  %v19129_v58 = vld [vmem:[%s24689_s20 + $0x1202] ss:$4 sm:$0xff] }
 0x402   : > { %v26858_v51 = vpack.c.bf16 %v19130_v1, %v19129_v58  ;;  %v19327_v58 = vld [vmem:[%s24689_s20 + $0x363] ss:$4 sm:$0xff] }
 0x403   : > { %v19328_v1 = vld [vmem:[%s24689_s20 + $0x383] ss:$4 sm:$0xff] }
 0x408   : > { %21511 = vmatmul.mubr.msk.bf16.gmra.mrb[48].mxu0 %vm607_vm1, %v7325_v39  ;;  %21817 = vmatmul.mubr.msk.bf16.gmra.mrb[48].mxu1 %vm607_vm1, %v26804_v8  ;;  %v19128_v39 = vld [vmem:[%s24689_s20 + $0x1102] ss:$4 sm:$0xff] }
 0x409   : > { %21514 = vmatprep.mubr.msk.bf16.mxu0 %vm607_vm1, %v7326_v26  ;;  %21820 = vmatprep.mubr.msk.bf16.mxu1 %vm607_vm1, %v26806_v24  ;;  %v7329_v26 = vpack.c.bf16 %v19030_v17, %v19029_v48  ;;  %v26842_v47 = vpack.c.bf16 %v19128_v39, %v19127_v0  ;;  %v19324_v48 = vld [vmem:[%s24689_s20 + $0x143] ss:$4 sm:$0xff]  ;;  %v7331_v17 = vpack.c.bf16 %v19034_v63, %v19033_v33  ;;  %v19054_v0 = vld [vmem:[%s24689_s20 + $0x261] ss:$4 sm:$0xff] }
 0x40a   : > { %v19325_v39 = vld [vmem:[%s24689_s20 + $0x243] ss:$4 sm:$0xff]  ;;  %v19056_v33 = vld [vmem:[%s24689_s20 + $0x381] ss:$4 sm:$0xff]  ;;  %v7638_v63 = vpack.c.bf16 %v19054_v0, %v19053_v46 }
 0x40b   : > { %v19059_v46 = vld [vmem:[%s24689_s20 + $0x5a1] ss:$4 sm:$0xff] }
 0x40c   : > { %v19060_v0 = vld [vmem:[%s24689_s20 + $0x5c1] ss:$4 sm:$0xff] }
 0x410   : > { %21515 = vmatmul.mubr.msk.bf16.gmra.mrb[52].mxu0 %vm607_vm1, %v7327_v25  ;;  %21821 = vmatmul.mubr.msk.bf16.gmra.mrb[52].mxu1 %vm607_vm1, %v26822_v53  ;;  %v19052_v25 = vld [vmem:[%s24689_s20 + $0x141] ss:$4 sm:$0xff] }
 0x411   : > { %21518 = vmatprep.mubr.msk.bf16.mxu0 %vm607_vm1, %v7328_v7  ;;  %21824 = vmatprep.mubr.msk.bf16.mxu1 %vm607_vm1, %v26824_v10  ;;  %v19323_v7 = vld [vmem:[%s24689_s20 + $0x123] ss:$4 sm:$0xff]  ;;  %v7637_v35 = vpack.c.bf16 %v19052_v25, %v19051_v16 }
 0x412   : > { %v9854_v49 = vpack.c.bf16 %v19324_v48, %v19323_v7  ;;  %v9856_v7 = vpack.c.bf16 %v19328_v1, %v19327_v58  ;;  %v19057_v48 = vld [vmem:[%s24689_s20 + $0x481] ss:$4 sm:$0xff]  ;;  %v7641_v58 = vpack.c.bf16 %v19060_v0, %v19059_v46 }
 0x418   : > { %21519 = vmatmul.mubr.msk.bf16.gmra.mrb[56].mxu0 %vm607_vm1, %v7329_v26  ;;  %21825 = vmatmul.mubr.msk.bf16.gmra.mrb[56].mxu1 %vm607_vm1, %v26840_v15  ;;  %v19326_v26 = vld [vmem:[%s24689_s20 + $0x263] ss:$4 sm:$0xff] }
 0x419   : > { %21522 = vmatprep.mubr.msk.bf16.mxu0 %vm607_vm1, %v7330_v27  ;;  %21828 = vmatprep.mubr.msk.bf16.mxu1 %vm607_vm1, %v26842_v47  ;;  %v19055_v27 = vld [vmem:[%s24689_s20 + $0x361] ss:$4 sm:$0xff]  ;;  %v9855_v16 = vpack.c.bf16 %v19326_v26, %v19325_v39  ;;  %v19331_v39 = vld [vmem:[%s24689_s20 + $0x5a3] ss:$4 sm:$0xff] }
 0x41a   : > { %v7639_v25 = vpack.c.bf16 %v19056_v33, %v19055_v27  ;;  %v19332_v26 = vld [vmem:[%s24689_s20 + $0x5c3] ss:$4 sm:$0xff]  ;;  %v24542_v27 = vmov 0.0  }
 0x41b   : > { %v9858_v1 = vpack.c.bf16 %v19332_v26, %v19331_v39  ;;  %10536 = vst.msk [vmem:[#allocation2] sm:$0xff] %vm10535_vm2, %v24542_v27  ;;  %10537 = vst.msk [vmem:[#allocation2 + $0x8] sm:$0xff] %vm10535_vm2, %v24542_v27 }
 0x41c   : > { %10561 = vst.msk [vmem:[#allocation2 + $0x60] sm:$0x1] %vm10545_vm3, %v24542_v27  ;;  %10581 = vst.msk [vmem:[#allocation2 + $0xc0] sm:$0x1] %vm10545_vm3, %v24542_v27 }
 0x41d   : > { %10601 = vst.msk [vmem:[#allocation2 + $0x120] sm:$0x1] %vm10545_vm3, %v24542_v27  ;;  %10546 = vst.msk [vmem:[#allocation2 + $0x18] sm:$0x1] %vm10545_vm3, %v24542_v27 }
 0x41e   : > { %10551 = vst.msk [vmem:[#allocation2 + $0x30] sm:$0x1] %vm10545_vm3, %v24542_v27  ;;  %10556 = vst.msk [vmem:[#allocation2 + $0x48] sm:$0x1] %vm10545_vm3, %v24542_v27 }
 0x41f   : > { %10566 = vst.msk [vmem:[#allocation2 + $0x78] sm:$0x1] %vm10545_vm3, %v24542_v27  ;;  %10571 = vst.msk [vmem:[#allocation2 + $0x90] sm:$0x1] %vm10545_vm3, %v24542_v27 }
 0x420   : > { %21523 = vmatmul.mubr.msk.bf16.gmra.mrb[60].mxu0 %vm607_vm1, %v7331_v17  ;;  %21829 = vmatmul.mubr.msk.bf16.gmra.mrb[60].mxu1 %vm607_vm1, %v26858_v51  ;;  %v28953_v17 = vld [vmem:[#allocation24_spill] sm:$0xff]  ;;  %10576 = vst.msk [vmem:[#allocation2 + $0xa8] sm:$0x1] %vm10545_vm3, %v24542_v27  ;;  %10586 = vst.msk [vmem:[#allocation2 + $0xd8] sm:$0x1] %vm10545_vm3, %v24542_v27 }
 0x421   : > { %21528 = vmatprep.mubr.msk.bf16.mxu0 %vm607_vm1, %v7637_v35  ;;  %21834 = vmatprep.mubr.msk.bf16.mxu1 %vm607_vm1, %v9854_v49  ;;  %v19058_v35 = vld [vmem:[%s24689_s20 + $0x4a1] ss:$4 sm:$0xff]  ;;  %v19329_v49 = vld [vmem:[%s24689_s20 + $0x483] ss:$4 sm:$0xff]  ;;  %10591 = vst.msk [vmem:[#allocation2 + $0xf0] sm:$0x1] %vm10545_vm3, %v24542_v27 }
 0x422   : > { %v7640_v33 = vpack.c.bf16 %v19058_v35, %v19057_v48  ;;  %v19334_v48 = vld [vmem:[%s24689_s20 + $0x6e3] ss:$4 sm:$0xff]  ;;  %10596 = vst.msk [vmem:[#allocation2 + $0x108] sm:$0x1] %vm10545_vm3, %v24542_v27  ;;  %10606 = vst.msk [vmem:[#allocation2 + $0x138] sm:$0x1] %vm10545_vm3, %v24542_v27 }
 0x423   : > { %v19335_v35 = vld [vmem:[%s24689_s20 + $0x7e3] ss:$4 sm:$0xff]  ;;  %10611 = vst.msk [vmem:[#allocation2 + $0x150] sm:$0x1] %vm10545_vm3, %v24542_v27  ;;  %10616 = vst.msk [vmem:[#allocation2 + $0x168] sm:$0x1] %vm10545_vm3, %v24542_v27 }
 0x424   : > { %10621 = vst.msk [vmem:[#allocation2 + $0x180] sm:$0x1] %vm10545_vm3, %v24542_v27 }
 0x425   : > { %10539 = vst.msk [vmem:[#allocation2 + $0x10] sm:$0x3] %vm10538_vm4, %v24542_v27 }
 0x426   : > { %12742 = vst.msk [vmem:[#allocation3] sm:$0x3f] %vm12741_vm6, %v24542_v27  ;;  %12744 = vst.msk [vmem:[#allocation3 + $0x28] sm:$0x3f] %vm12741_vm6, %v24542_v27 }
 0x427   : > { %12752 = vst.msk [vmem:[#allocation3 + $0x10] sm:$0x1] %vm12746_vm7, %v24542_v27  ;;  %12747 = vst.msk [vmem:[#allocation3 + $0x8] sm:$0x1] %vm12746_vm7, %v24542_v27 }
 0x428   : > { %21529 = vmatmul.mubr.msk.bf16.vlgmr.msra.gmra.mrb[32].mxu0 %vm607_vm1, %v7638_v63  ;;  %21835 = vmatmul.mubr.msk.bf16.vlgmr.msra.gmra.mrb[32].mxu1 %vm607_vm1, %v9855_v16  ;;  %v9857_v63 = vpack.c.bf16 %v19330_v14, %v19329_v49  ;;  %v19061_v16 = vld [vmem:[%s24689_s20 + $0x6c1] ss:$4 sm:$0xff]  ;;  %v19336_v49 = vld [vmem:[%s24689_s20 + $0x803] ss:$4 sm:$0xff]  ;;  %12750 = vst.msk [vmem:[#allocation3 + $0xd] sm:$0x1] %vm12746_vm7, %v24542_v27 }
 0x429   : > { %21561 = vmatpush3.bf16.msra.mxu0 %v28953_v17  ;;  %21867 = vmatpush3.bf16.msra.mxu1 %v28953_v17  ;;  %v19063_v17 = vld [vmem:[%s24689_s20 + $0x7e1] ss:$4 sm:$0xff]  ;;  %v9860_v26 = vpack.c.bf16 %v19336_v49, %v19335_v35  ;;  %12755 = vst.msk [vmem:[#allocation3 + $0x15] sm:$0x1] %vm12746_vm7, %v24542_v27  ;;  %12757 = vst.msk [vmem:[#allocation3 + $0x18] sm:$0x1] %vm12746_vm7, %v24542_v27 }
 0x42a   : > { %21532 = vmatprep.mubr.msk.bf16.mxu0 %vm607_vm1, %v7639_v25  ;;  %21838 = vmatprep.mubr.msk.bf16.mxu1 %vm607_vm1, %v9856_v7  ;;  %v19062_v25 = vld [vmem:[%s24689_s20 + $0x6e1] ss:$4 sm:$0xff]  ;;  %v19333_v7 = vld [vmem:[%s24689_s20 + $0x6c3] ss:$4 sm:$0xff]  ;;  %12759 = vst.msk [vmem:[#allocation3 + $0x1d] sm:$0x1] %vm12746_vm7, %v24542_v27 }
 0x42b   : > { %21900 = vmatprep.subr.bf16.mxu0 %v24542_v27  ;;  %21954 = vmatprep.subr.bf16.mxu1 %v24542_v27  ;;  %v19064_v14 = vld [vmem:[%s24689_s20 + $0x801] ss:$4 sm:$0xff]  ;;  %v7642_v46 = vpack.c.bf16 %v19062_v25, %v19061_v16  ;;  %v9859_v0 = vpack.c.bf16 %v19334_v48, %v19333_v7  ;;  %v19339_v7 = vld [vmem:[%s24689_s20 + $0xa23] ss:$4 sm:$0xff]  ;;  %12761 = vst.msk [vmem:[#allocation3 + $0x20] sm:$0x1] %vm12746_vm7, %v24542_v27 }
 0x42c   : > { %v7643_v39 = vpack.c.bf16 %v19064_v14, %v19063_v17  ;;  %v19067_v16 = vld [vmem:[%s24689_s20 + $0xa21] ss:$4 sm:$0xff]  ;;  %v19340_v48 = vld [vmem:[%s24689_s20 + $0xa43] ss:$4 sm:$0xff]  ;;  %12763 = vst.msk [vmem:[#allocation3 + $0x25] sm:$0x1] %vm12746_vm7, %v24542_v27 }
 0x42d   : > { %v19068_v25 = vld [vmem:[%s24689_s20 + $0xa41] ss:$4 sm:$0xff]  ;;  %v9862_v49 = vpack.c.bf16 %v19340_v48, %v19339_v7  ;;  %14690 = vst.msk [vmem:[#allocation4] sm:$0xf] %vm14689_vm11, %v24542_v27  ;;  %14692 = vst.msk [vmem:[#allocation4 + $0xc] sm:$0xf] %vm14689_vm11, %v24542_v27 }
 0x42e   : > { %v7645_v35 = vpack.c.bf16 %v19068_v25, %v19067_v16  ;;  %14695 = vst.msk [vmem:[#allocation4 + $0x4] sm:$0x1] %vm14694_vm13, %v24542_v27  ;;  %14698 = vst.msk [vmem:[#allocation4 + $0x7] sm:$0x1] %vm14694_vm13, %v24542_v27 }
 0x42f   : > { %14700 = vst.msk [vmem:[#allocation4 + $0x8] sm:$0x1] %vm14694_vm13, %v24542_v27  ;;  %14703 = vst.msk [vmem:[#allocation4 + $0xb] sm:$0x1] %vm14694_vm13, %v24542_v27 }
 0x430   : > { %21533 = vmatmul.mubr.msk.bf16.gmra.mrb[36].mxu0 %vm607_vm1, %v7640_v33  ;;  %21839 = vmatmul.mubr.msk.bf16.gmra.mrb[36].mxu1 %vm607_vm1, %v9857_v63  ;;  %v19065_v33 = vld [vmem:[%s24689_s20 + $0x901] ss:$4 sm:$0xff] }
 0x431   : > { %21536 = vmatprep.mubr.msk.bf16.mxu0 %vm607_vm1, %v7641_v58  ;;  %21842 = vmatprep.mubr.msk.bf16.mxu1 %vm607_vm1, %v9858_v1  ;;  %v19066_v63 = vld [vmem:[%s24689_s20 + $0x921] ss:$4 sm:$0xff]  ;;  %v19337_v58 = vld [vmem:[%s24689_s20 + $0x903] ss:$4 sm:$0xff] }
 0x432   : > { %v19338_v1 = vld [vmem:[%s24689_s20 + $0x923] ss:$4 sm:$0xff]  ;;  %v7644_v17 = vpack.c.bf16 %v19066_v63, %v19065_v33  ;;  %v19071_v33 = vld [vmem:[%s24689_s20 + $0xc61] ss:$4 sm:$0xff] }
 0x433   : > { %v9861_v14 = vpack.c.bf16 %v19338_v1, %v19337_v58  ;;  %v19072_v63 = vld [vmem:[%s24689_s20 + $0xc81] ss:$4 sm:$0xff]  ;;  %v19343_v58 = vld [vmem:[%s24689_s20 + $0xc63] ss:$4 sm:$0xff] }
 0x434   : > { %v19344_v1 = vld [vmem:[%s24689_s20 + $0xc83] ss:$4 sm:$0xff]  ;;  %v7647_v7 = vpack.c.bf16 %v19072_v63, %v19071_v33 }
 0x435   : > { %v9864_v48 = vpack.c.bf16 %v19344_v1, %v19343_v58 }
 0x438   : > { %21537 = vmatmul.mubr.msk.bf16.gmra.mrb[40].mxu0 %vm607_vm1, %v7642_v46  ;;  %21843 = vmatmul.mubr.msk.bf16.gmra.mrb[40].mxu1 %vm607_vm1, %v9859_v0  ;;  %v19069_v46 = vld [vmem:[%s24689_s20 + $0xb41] ss:$4 sm:$0xff] }
 0x439   : > { %21540 = vmatprep.mubr.msk.bf16.mxu0 %vm607_vm1, %v7643_v39  ;;  %21846 = vmatprep.mubr.msk.bf16.mxu1 %vm607_vm1, %v9860_v26  ;;  %v19070_v0 = vld [vmem:[%s24689_s20 + $0xb61] ss:$4 sm:$0xff]  ;;  %v19341_v39 = vld [vmem:[%s24689_s20 + $0xb43] ss:$4 sm:$0xff] }
 0x43a   : > { %v19342_v26 = vld [vmem:[%s24689_s20 + $0xb63] ss:$4 sm:$0xff]  ;;  %v7646_v16 = vpack.c.bf16 %v19070_v0, %v19069_v46  ;;  %v19075_v46 = vld [vmem:[%s24689_s20 + $0xea1] ss:$4 sm:$0xff] }
 0x43b   : > { %v9863_v25 = vpack.c.bf16 %v19342_v26, %v19341_v39  ;;  %v19076_v0 = vld [vmem:[%s24689_s20 + $0xec1] ss:$4 sm:$0xff]  ;;  %v19347_v39 = vld [vmem:[%s24689_s20 + $0xea3] ss:$4 sm:$0xff] }
 0x43c   : > { %v19348_v26 = vld [vmem:[%s24689_s20 + $0xec3] ss:$4 sm:$0xff]  ;;  %v7649_v58 = vpack.c.bf16 %v19076_v0, %v19075_v46 }
 0x43d   : > { %v9866_v1 = vpack.c.bf16 %v19348_v26, %v19347_v39 }
 0x440   : > { %21541 = vmatmul.mubr.msk.bf16.gmra.mrb[44].mxu0 %vm607_vm1, %v7644_v17  ;;  %21847 = vmatmul.mubr.msk.bf16.gmra.mrb[44].mxu1 %vm607_vm1, %v9861_v14  ;;  %v19073_v17 = vld [vmem:[%s24689_s20 + $0xd81] ss:$4 sm:$0xff] }
 0x441   : > { %21544 = vmatprep.mubr.msk.bf16.mxu0 %vm607_vm1, %v7645_v35  ;;  %21850 = vmatprep.mubr.msk.bf16.mxu1 %vm607_vm1, %v9862_v49  ;;  %v19074_v14 = vld [vmem:[%s24689_s20 + $0xda1] ss:$4 sm:$0xff]  ;;  %v19345_v35 = vld [vmem:[%s24689_s20 + $0xd83] ss:$4 sm:$0xff] }
 0x442   : > { %v19346_v49 = vld [vmem:[%s24689_s20 + $0xda3] ss:$4 sm:$0xff]  ;;  %v7648_v33 = vpack.c.bf16 %v19074_v14, %v19073_v17  ;;  %v19079_v17 = vld [vmem:[%s24689_s20 + $0x10e1] ss:$4 sm:$0xff] }
 0x443   : > { %v9865_v63 = vpack.c.bf16 %v19346_v49, %v19345_v35  ;;  %v19080_v14 = vld [vmem:[%s24689_s20 + $0x1101] ss:$4 sm:$0xff]  ;;  %v19351_v35 = vld [vmem:[%s24689_s20 + $0x10e3] ss:$4 sm:$0xff] }
 0x444   : > { %v19352_v49 = vld [vmem:[%s24689_s20 + $0x1103] ss:$4 sm:$0xff]  ;;  %v7651_v39 = vpack.c.bf16 %v19080_v14, %v19079_v17  ;;  %v19373_v14 = vld [vmem:[%s24689_s20 + $0x244] ss:$4 sm:$0xff] }
 0x445   : > { %v9868_v26 = vpack.c.bf16 %v19352_v49, %v19351_v35  ;;  %v19374_v35 = vld [vmem:[%s24689_s20 + $0x264] ss:$4 sm:$0xff] }
 0x446   : > { %v19375_v49 = vld [vmem:[%s24689_s20 + $0x364] ss:$4 sm:$0xff] }
 0x448   : > { %21545 = vmatmul.mubr.msk.bf16.gmra.mrb[48].mxu0 %vm607_vm1, %v7646_v16  ;;  %21851 = vmatmul.mubr.msk.bf16.gmra.mrb[48].mxu1 %vm607_vm1, %v9863_v25  ;;  %v19077_v16 = vld [vmem:[%s24689_s20 + $0xfc1] ss:$4 sm:$0xff] }
 0x449   : > { %21548 = vmatprep.mubr.msk.bf16.mxu0 %vm607_vm1, %v7647_v7  ;;  %21854 = vmatprep.mubr.msk.bf16.mxu1 %vm607_vm1, %v9864_v48  ;;  %v19078_v25 = vld [vmem:[%s24689_s20 + $0xfe1] ss:$4 sm:$0xff]  ;;  %v19349_v7 = vld [vmem:[%s24689_s20 + $0xfc3] ss:$4 sm:$0xff] }
 0x44a   : > { %v19350_v48 = vld [vmem:[%s24689_s20 + $0xfe3] ss:$4 sm:$0xff]  ;;  %v7650_v46 = vpack.c.bf16 %v19078_v25, %v19077_v16  ;;  %v19371_v16 = vld [vmem:[%s24689_s20 + $0x124] ss:$4 sm:$0xff] }
 0x44b   : > { %v9867_v0 = vpack.c.bf16 %v19350_v48, %v19349_v7  ;;  %v19372_v25 = vld [vmem:[%s24689_s20 + $0x144] ss:$4 sm:$0xff] }
 0x44c   : > { %v10175_v17 = vpack.c.bf16 %v19372_v25, %v19371_v16  ;;  %v19382_v16 = vld [vmem:[%s24689_s20 + $0x6e4] ss:$4 sm:$0xff] }
 0x44d   : > { %v19383_v25 = vld [vmem:[%s24689_s20 + $0x7e4] ss:$4 sm:$0xff] }
 0x450   : > { %21549 = vmatmul.mubr.msk.bf16.gmra.mrb[52].mxu0 %vm607_vm1, %v7648_v33  ;;  %21855 = vmatmul.mubr.msk.bf16.gmra.mrb[52].mxu1 %vm607_vm1, %v9865_v63  ;;  %v19081_v33 = vld [vmem:[%s24689_s20 + $0x1201] ss:$4 sm:$0xff] }
 0x451   : > { %21552 = vmatprep.mubr.msk.bf16.mxu0 %vm607_vm1, %v7649_v58  ;;  %21858 = vmatprep.mubr.msk.bf16.mxu1 %vm607_vm1, %v9866_v1  ;;  %v19082_v63 = vld [vmem:[%s24689_s20 + $0x1221] ss:$4 sm:$0xff]  ;;  %v19353_v58 = vld [vmem:[%s24689_s20 + $0x1203] ss:$4 sm:$0xff] }
 0x452   : > { %v19354_v1 = vld [vmem:[%s24689_s20 + $0x1223] ss:$4 sm:$0xff]  ;;  %v7652_v7 = vpack.c.bf16 %v19082_v63, %v19081_v33  ;;  %v19378_v33 = vld [vmem:[%s24689_s20 + $0x4a4] ss:$4 sm:$0xff] }
 0x453   : > { %v9869_v48 = vpack.c.bf16 %v19354_v1, %v19353_v58  ;;  %v19379_v63 = vld [vmem:[%s24689_s20 + $0x5a4] ss:$4 sm:$0xff] }
 0x454   : > { %v19380_v58 = vld [vmem:[%s24689_s20 + $0x5c4] ss:$4 sm:$0xff] }
 0x455   : > { %v10179_v1 = vpack.c.bf16 %v19380_v58, %v19379_v63  ;;  %v19396_v63 = vld [vmem:[%s24689_s20 + $0xec4] ss:$4 sm:$0xff] }
 0x458   : > { %21553 = vmatmul.mubr.msk.bf16.gmra.mrb[56].mxu0 %vm607_vm1, %v7650_v46  ;;  %21859 = vmatmul.mubr.msk.bf16.gmra.mrb[56].mxu1 %vm607_vm1, %v9867_v0  ;;  %v19376_v46 = vld [vmem:[%s24689_s20 + $0x384] ss:$4 sm:$0xff]  ;;  %v10176_v0 = vpack.c.bf16 %v19374_v35, %v19373_v14 }
 0x459   : > { %21556 = vmatprep.mubr.msk.bf16.mxu0 %vm607_vm1, %v7651_v39  ;;  %21862 = vmatprep.mubr.msk.bf16.mxu1 %vm607_vm1, %v9868_v26  ;;  %v10177_v39 = vpack.c.bf16 %v19376_v46, %v19375_v49  ;;  %v24325_v26 = vld [vmem:[%s28954_s3 + $0x8] sm:$0xff]  }
 0x45a   : > { %v19387_v14 = vld [vmem:[%s24689_s20 + $0xa24] ss:$4 sm:$0xff] }
 0x45b   : > { %v19388_v35 = vld [vmem:[%s24689_s20 + $0xa44] ss:$4 sm:$0xff] }
 0x45c   : > { %v10183_v46 = vpack.c.bf16 %v19388_v35, %v19387_v14 }
 0x460   : > { %21557 = vmatmul.mubr.msk.bf16.gmra.mrb[60].mxu0 %vm607_vm1, %v7652_v7  ;;  %21863 = vmatmul.mubr.msk.bf16.gmra.mrb[60].mxu1 %vm607_vm1, %v9869_v48  ;;  %v19384_v7 = vld [vmem:[%s24689_s20 + $0x804] ss:$4 sm:$0xff] }
 0x461   : > { %21562 = vmatprep.mubr.msk.bf16.mxu0 %vm607_vm1, %v26709_v13  ;;  %21868 = vmatprep.mubr.msk.bf16.mxu1 %vm607_vm1, %v10175_v17  ;;  %v19377_v13 = vld [vmem:[%s24689_s20 + $0x484] ss:$4 sm:$0xff]  ;;  %v10181_v17 = vpack.c.bf16 %v19384_v7, %v19383_v25 }
 0x468   : > { %21563 = vmatmul.mubr.msk.bf16.vlgmr.msra.gmra.mrb[32].mxu0 %vm607_vm1, %v26725_v11  ;;  %21869 = vmatmul.mubr.msk.bf16.vlgmr.msra.gmra.mrb[32].mxu1 %vm607_vm1, %v10176_v0  ;;  %v10178_v11 = vpack.c.bf16 %v19378_v33, %v19377_v13  ;;  %v19391_v0 = vld [vmem:[%s24689_s20 + $0xc64] ss:$4 sm:$0xff] }
 0x469   : > { %21566 = vmatprep.mubr.msk.bf16.mxu0 %vm607_vm1, %v26727_v32  ;;  %21872 = vmatprep.mubr.msk.bf16.mxu1 %vm607_vm1, %v10177_v39  ;;  %v19381_v32 = vld [vmem:[%s24689_s20 + $0x6c4] ss:$4 sm:$0xff] }
 0x46a   : > { %21901 = vmatpush3.bf16.msra.mxu0 %v24325_v26  ;;  %21955 = vmatpush3.bf16.msra.mxu1 %v24325_v26  ;;  %v10180_v48 = vpack.c.bf16 %v19382_v16, %v19381_v32  ;;  %v19392_v39 = vld [vmem:[%s24689_s20 + $0xc84] ss:$4 sm:$0xff] }
 0x46b   : > { %21906 = vmatprep.subr.bf16.mxu0 %v24542_v27  ;;  %21960 = vmatprep.subr.bf16.mxu1 %v24542_v27  ;;  %v10185_v13 = vpack.c.bf16 %v19392_v39, %v19391_v0  ;;  %v19395_v33 = vld [vmem:[%s24689_s20 + $0xea4] ss:$4 sm:$0xff]  ;;  %v28959_v39 = vmax.f32 %v26155_v38, %v26159_v59  ;;  %v28960_v38 = vmax.f32 %v26171_v50, %v26173_v62 }
 0x46c   : > { %v19400_v32 = vld [vmem:[%s24689_s20 + $0x1104] ss:$4 sm:$0xff] }
 0x470   : > { %21567 = vmatmul.mubr.msk.bf16.gmra.mrb[36].mxu0 %vm607_vm1, %v26750_v57  ;;  %21873 = vmatmul.mubr.msk.bf16.gmra.mrb[36].mxu1 %vm607_vm1, %v10178_v11  ;;  %v19385_v57 = vld [vmem:[%s24689_s20 + $0x904] ss:$4 sm:$0xff]  ;;  %v10187_v11 = vpack.c.bf16 %v19396_v63, %v19395_v33 }
 0x471   : > { %21570 = vmatprep.mubr.msk.bf16.mxu0 %vm607_vm1, %v26752_v9  ;;  %21876 = vmatprep.mubr.msk.bf16.mxu1 %vm607_vm1, %v10179_v1  ;;  %v19386_v9 = vld [vmem:[%s24689_s20 + $0x924] ss:$4 sm:$0xff] }
 0x472   : > { %v10182_v49 = vpack.c.bf16 %v19386_v9, %v19385_v57  ;;  %v19399_v1 = vld [vmem:[%s24689_s20 + $0x10e4] ss:$4 sm:$0xff]  ;;  %v28957_v9 = vmax.f32 %v26143_v42, %v26147_v61 }
 0x473   : > { %v10189_v25 = vpack.c.bf16 %v19400_v32, %v19399_v1  ;;  %v27091_v57 = vld [vmem:[%s28956_s2] ss:$0 sm:$0xff]  ;;  %v28961_v32 = vmax.f32 %v26175_v45, %v26179_v60  ;;  %s19657_s2 = sshll.u32 %s24639_s29, 4  ;;  %s24547_s29 = smov [#allocation5]  }
 0x474   : > { %s24482_s16 = sshll.u32 %s24547_s29, 4  ;;  %s24483_s16 = int_to_ptr.vmem [resolvable:$false] %s24482_s16 }
 0x475   : > { %s24484_s22 = scalar_lea.vmem %s24483_s16, 32  ;;  %p24485_p0 = scmp.lt.s32.totalorder %s28728_s23, %s24483_s16 }
 0x478   : > { %21571 = vmatmul.mubr.msk.bf16.gmra.mrb[40].mxu0 %vm607_vm1, %v26768_v30  ;;  %21877 = vmatmul.mubr.msk.bf16.gmra.mrb[40].mxu1 %vm607_vm1, %v10180_v48  ;;  %v19389_v30 = vld [vmem:[%s24689_s20 + $0xb44] ss:$4 sm:$0xff] }
 0x479   : > { %21574 = vmatprep.mubr.msk.bf16.mxu0 %vm607_vm1, %v26770_v43  ;;  %21880 = vmatprep.mubr.msk.bf16.mxu1 %vm607_vm1, %v10181_v17  ;;  %v19390_v43 = vld [vmem:[%s24689_s20 + $0xb64] ss:$4 sm:$0xff] }
 0x47a   : > { %v10184_v26 = vpack.c.bf16 %v19390_v43, %v19389_v30  ;;  %v28958_v30 = vmax.f32 %v26149_v31, %v26153_v4 }
 0x480   : > { %21575 = vmatmul.mubr.msk.bf16.gmra.mrb[44].mxu0 %vm607_vm1, %v26786_v34  ;;  %21881 = vmatmul.mubr.msk.bf16.gmra.mrb[44].mxu1 %vm607_vm1, %v10182_v49  ;;  %v19393_v34 = vld [vmem:[%s24689_s20 + $0xd84] ss:$4 sm:$0xff] }
 0x481   : > { %21578 = vmatprep.mubr.msk.bf16.mxu0 %vm607_vm1, %v26788_v37  ;;  %21884 = vmatprep.mubr.msk.bf16.mxu1 %vm607_vm1, %v10183_v46  ;;  %v19394_v37 = vld [vmem:[%s24689_s20 + $0xda4] ss:$4 sm:$0xff] }
 0x482   : > { %v10186_v58 = vpack.c.bf16 %v19394_v37, %v19393_v34 }
 0x488   : > { %21579 = vmatmul.mubr.msk.bf16.gmra.mrb[48].mxu0 %vm607_vm1, %v26804_v8  ;;  %21885 = vmatmul.mubr.msk.bf16.gmra.mrb[48].mxu1 %vm607_vm1, %v10184_v26  ;;  %v19397_v8 = vld [vmem:[%s24689_s20 + $0xfc4] ss:$4 sm:$0xff] }
 0x489   : > { %21582 = vmatprep.mubr.msk.bf16.mxu0 %vm607_vm1, %v26806_v24  ;;  %21888 = vmatprep.mubr.msk.bf16.mxu1 %vm607_vm1, %v10185_v13  ;;  %v19398_v24 = vld [vmem:[%s24689_s20 + $0xfe4] ss:$4 sm:$0xff] }
 0x48a   : > { %v10188_v16 = vpack.c.bf16 %v19398_v24, %v19397_v8 }
 0x490   : > { %21583 = vmatmul.mubr.msk.bf16.gmra.mrb[52].mxu0 %vm607_vm1, %v26822_v53  ;;  %21889 = vmatmul.mubr.msk.bf16.gmra.mrb[52].mxu1 %vm607_vm1, %v10186_v58  ;;  %v19401_v53 = vld [vmem:[%s24689_s20 + $0x1204] ss:$4 sm:$0xff] }
 0x491   : > { %21586 = vmatprep.mubr.msk.bf16.mxu0 %vm607_vm1, %v26824_v10  ;;  %21892 = vmatprep.mubr.msk.bf16.mxu1 %vm607_vm1, %v10187_v11  ;;  %v19402_v10 = vld [vmem:[%s24689_s20 + $0x1224] ss:$4 sm:$0xff]  ;;  %s24478_s20 = scalar_lea.vmem %s28728_s23, 16 }
 0x492   : > { %v10190_v7 = vpack.c.bf16 %v19402_v10, %v19401_v53  ;;  %p24479_p11 = scmp.ne.s32.totalorder %s28728_s23, %s24478_s20  ;;  %p24486_p1 = scmp.lt.s32.totalorder %s24484_s22, %s24478_s20 }
 0x494   : > { %p24480_p12 = pnand %p24479_p11, %p24656_p5  ;;  %p24487_p2 = por %p24486_p1, %p24485_p0 }
 0x496   : > { %p24481_p13 = pneg %p24480_p12 }
 0x498   : > { %21587 = vmatmul.mubr.msk.bf16.gmra.mrb[56].mxu0 %vm607_vm1, %v26840_v15  ;;  %21893 = vmatmul.mubr.msk.bf16.gmra.mrb[56].mxu1 %vm607_vm1, %v10188_v16  ;;  %p24488_p3 = pnand %p24487_p2, %p24481_p13 }
 0x499   : > { %21590 = vmatprep.mubr.msk.bf16.mxu0 %vm607_vm1, %v26842_v47  ;;  %21896 = vmatprep.mubr.msk.bf16.mxu1 %vm607_vm1, %v10189_v25  ;;  %v28955_v47 = vmax.f32 %v26139_v6, %v26141_v52 }
 0x4a0   : > { %21591 = vmatmul.mubr.msk.bf16.gmra.mrb[60].mxu0 %vm607_vm1, %v26858_v51  ;;  %21897 = vmatmul.mubr.msk.bf16.gmra.mrb[60].mxu1 %vm607_vm1, %v10190_v7  ;;  %v28962_v7 = vmax.f32 %v26181_v5, %v26185_v36 }
 0x4a1   : > { %21902 = vmatprep.mubr.msk.bf16.mxu0 %vm24543_vm5, %v24542_v27  ;;  %21956 = vmatprep.mubr.msk.bf16.mxu1 %vm24543_vm5, %v24542_v27 }
 0x53b   : > { %v21564_v15 = vpop.f32.mrb[32].mxu0  ;;  %v21870_v48 = vpop.f32.mrb[32].mxu1 }
 0x53c   : > { %v8217_v51 = vmax.f32 %v28955_v47, %v21564_v15  ;;  %v8056_v17 = vpop.f32.mrb[33].mxu0  ;;  %v10273_v35 = vpop.f32.mrb[33].mxu1 }
 0x53d   : > { %v8215_v14 = vmax.f32 %v28957_v9, %v8056_v17  ;;  %v21565_v49 = vpop.f32.mrb[34].mxu0  ;;  %v21871_v6 = vpop.f32.mrb[34].mxu1 }
 0x53e   : > { %v10434_v46 = vmax.f32 %v8217_v51, %v21870_v48  ;;  %v8218_v43 = vmax.f32 %v28958_v30, %v21565_v49  ;;  %v8059_v52 = vpop.f32.mrb[35].mxu0  ;;  %v10276_v13 = vpop.f32.mrb[35].mxu1  ;;  %v28963_v51 = vmax.f32 %v26187_v20, %v26191_v18  ;;  %v28964_v20 = vmax.f32 %v26203_v19, %v26205_v22 }
 0x53f   : > { %v10432_v0 = vmax.f32 %v8215_v14, %v10273_v35  ;;  %v8216_v26 = vmax.f32 %v28959_v39, %v8059_v52 }
 0x540   : > { %v10473_v34 = vadd.f32 %v27091_v57, %v10434_v46  ;;  %v10435_v37 = vmax.f32 %v8218_v43, %v21871_v6 }
 0x541   : > { %v10471_v42 = vadd.f32 %v27091_v57, %v10432_v0  ;;  %v10433_v61 = vmax.f32 %v8216_v26, %v10276_v13  ;;  %v28965_v0 = vmax.f32 %v26207_v12, %v26211_v28 }
 0x542   : > { %v10505_v33 = vmax.f32 %v10473_v34, 0.0  ;;  %v10474_v63 = vadd.f32 %v27091_v57, %v10435_v37  ;;  %v28966_v37 = vmax.f32 %v26213_v21, %v26217_v3 }
 0x543   : > { %v10503_v58 = vmax.f32 %v10471_v42, 0.0  ;;  %v10472_v31 = vadd.f32 %v27091_v57, %v10433_v61  ;;  %v21568_v4 = vpop.f32.mrb[36].mxu0  ;;  %v21874_v8 = vpop.f32.mrb[36].mxu1 }
 0x544   : > { %10552 = vst.msk [vmem:[#allocation2 + $0x31] sm:$0xff] %vm10535_vm2, %v10505_v33  ;;  %v10506_v11 = vmax.f32 %v10474_v63, 0.0  ;;  %v8221_v59 = vmax.f32 %v28960_v38, %v21568_v4  ;;  %v8072_v24 = vpop.f32.mrb[37].mxu0  ;;  %v10289_v25 = vpop.f32.mrb[37].mxu1  ;;  %v28967_v33 = vmax.f32 %v26219_v56, %v26223_v29  ;;  %v28968_v56 = vmax.f32 %v26235_v23, %v26237_v44 }
 0x545   : > { %10547 = vst.msk [vmem:[#allocation2 + $0x19] sm:$0xff] %vm10535_vm2, %v10503_v58  ;;  %v10504_v1 = vmax.f32 %v10472_v31, 0.0  ;;  %v8219_v16 = vmax.f32 %v28961_v32, %v8072_v24  ;;  %v21569_v53 = vpop.f32.mrb[38].mxu0  ;;  %v21875_v50 = vpop.f32.mrb[38].mxu1 }
 0x546   : > { %10553 = vst.msk [vmem:[#allocation2 + $0x39] sm:$0xff] %vm10535_vm2, %v10506_v11  ;;  %v10438_v10 = vmax.f32 %v8221_v59, %v21874_v8  ;;  %v8222_v15 = vmax.f32 %v28962_v7, %v21569_v53  ;;  %v8075_v62 = vpop.f32.mrb[39].mxu0  ;;  %v10292_v45 = vpop.f32.mrb[39].mxu1 }
 0x547   : > { %10548 = vst.msk [vmem:[#allocation2 + $0x21] sm:$0xff] %vm10535_vm2, %v10504_v1  ;;  %v10436_v47 = vmax.f32 %v8219_v16, %v10289_v25  ;;  %v8220_v48 = vmax.f32 %v28963_v51, %v8075_v62  ;;  %v28969_v16 = vmax.f32 %v26239_v40, %v26243_v54 }
 0x548   : > { %v10477_v60 = vadd.f32 %v27091_v57, %v10438_v10  ;;  %v10439_v17 = vmax.f32 %v8222_v15, %v21875_v50  ;;  %v28970_v15 = vmax.f32 %v26245_v2, %v26249_v55 }
 0x549   : > { %v10475_v9 = vadd.f32 %v27091_v57, %v10436_v47  ;;  %v10437_v14 = vmax.f32 %v8220_v48, %v10292_v45  ;;  %v28971_v47 = vld [vmem:[#allocation13_spill] sm:$0xff] }
 0x54a   : > { %v10509_v35 = vmax.f32 %v10477_v60, 0.0  ;;  %v10478_v5 = vadd.f32 %v27091_v57, %v10439_v17  ;;  %v28972_v51 = vmax.f32 %v26251_v41, %v28971_v47  ;;  %v28974_v41 = vld [vmem:[#allocation15_spill] sm:$0xff] }
 0x54b   : > { %v10507_v36 = vmax.f32 %v10475_v9, 0.0  ;;  %v10476_v49 = vadd.f32 %v27091_v57, %v10437_v14  ;;  %v21572_v46 = vpop.f32.mrb[40].mxu0  ;;  %v21878_v43 = vpop.f32.mrb[40].mxu1 }
 0x54c   : > { %10562 = vst.msk [vmem:[#allocation2 + $0x61] sm:$0xff] %vm10535_vm2, %v10509_v35  ;;  %v10510_v30 = vmax.f32 %v10478_v5, 0.0  ;;  %v8225_v18 = vmax.f32 %v28964_v20, %v21572_v46  ;;  %v8088_v6 = vpop.f32.mrb[41].mxu0  ;;  %v10305_v26 = vpop.f32.mrb[41].mxu1 }
 0x54d   : > { %10557 = vst.msk [vmem:[#allocation2 + $0x49] sm:$0xff] %vm10535_vm2, %v10507_v36  ;;  %v10508_v52 = vmax.f32 %v10476_v49, 0.0  ;;  %v8223_v39 = vmax.f32 %v28965_v0, %v8088_v6  ;;  %v21573_v13 = vpop.f32.mrb[42].mxu0  ;;  %v21879_v19 = vpop.f32.mrb[42].mxu1  ;;  %v28973_v36 = vld [vmem:[#allocation14_spill] sm:$0xff]  ;;  %v28977_v6 = vld [vmem:[#allocation17_spill] sm:$0xff] }
 0x54e   : > { %10563 = vst.msk [vmem:[#allocation2 + $0x69] sm:$0xff] %vm10535_vm2, %v10510_v30  ;;  %v10442_v34 = vmax.f32 %v8225_v18, %v21878_v43  ;;  %v8226_v42 = vmax.f32 %v28966_v37, %v21573_v13  ;;  %v8091_v22 = vpop.f32.mrb[43].mxu0  ;;  %v10308_v12 = vpop.f32.mrb[43].mxu1  ;;  %v28975_v49 = vmax.f32 %v28973_v36, %v28974_v41  ;;  %v28976_v43 = vld [vmem:[#allocation16_spill] sm:$0xff]  ;;  %v28980_v37 = vld [vmem:[#allocation19_spill] sm:$0xff] }
 0x54f   : > { %10558 = vst.msk [vmem:[#allocation2 + $0x51] sm:$0xff] %vm10535_vm2, %v10508_v52  ;;  %v10440_v61 = vmax.f32 %v8223_v39, %v10305_v26  ;;  %v8224_v63 = vmax.f32 %v28967_v33, %v8091_v22  ;;  %v28978_v52 = vmax.f32 %v28976_v43, %v28977_v6 }
 0x550   : > { %v10481_v28 = vadd.f32 %v27091_v57, %v10442_v34  ;;  %v10443_v58 = vmax.f32 %v8226_v42, %v21879_v19  ;;  %v28979_v34 = vld [vmem:[#allocation18_spill] sm:$0xff] }
 0x551   : > { %v10479_v31 = vadd.f32 %v27091_v57, %v10440_v61  ;;  %v10441_v4 = vmax.f32 %v8224_v63, %v10308_v12  ;;  %v28981_v42 = vmax.f32 %v28979_v34, %v28980_v37  ;;  %v28982_v63 = vld [vmem:[#allocation20_spill] sm:$0xff]  ;;  %v28983_v12 = vld [vmem:[#allocation21_spill] sm:$0xff] }
 0x552   : > { %v10513_v11 = vmax.f32 %v10481_v28, 0.0  ;;  %v10482_v21 = vadd.f32 %v27091_v57, %v10443_v58  ;;  %v28984_v28 = vmax.f32 %v28982_v63, %v28983_v12 }
 0x553   : > { %v10511_v3 = vmax.f32 %v10479_v31, 0.0  ;;  %v10480_v38 = vadd.f32 %v27091_v57, %v10441_v4  ;;  %v21576_v59 = vpop.f32.mrb[44].mxu0  ;;  %v21882_v24 = vpop.f32.mrb[44].mxu1 }
 0x554   : > { %10572 = vst.msk [vmem:[#allocation2 + $0x91] sm:$0xff] %vm10535_vm2, %v10513_v11  ;;  %v10514_v8 = vmax.f32 %v10482_v21, 0.0  ;;  %v8229_v29 = vmax.f32 %v28968_v56, %v21576_v59  ;;  %v8104_v1 = vpop.f32.mrb[45].mxu0  ;;  %v10321_v53 = vpop.f32.mrb[45].mxu1 }
 0x555   : > { %10567 = vst.msk [vmem:[#allocation2 + $0x79] sm:$0xff] %vm10535_vm2, %v10511_v3  ;;  %v10512_v32 = vmax.f32 %v10480_v38, 0.0  ;;  %v8227_v25 = vmax.f32 %v28969_v16, %v8104_v1  ;;  %v21577_v10 = vpop.f32.mrb[46].mxu0  ;;  %v21883_v23 = vpop.f32.mrb[46].mxu1  ;;  %v28985_v1 = vld [vmem:[#allocation22_spill] sm:$0xff] }
 0x556   : > { %10573 = vst.msk [vmem:[#allocation2 + $0x99] sm:$0xff] %vm10535_vm2, %v10514_v8  ;;  %v10446_v7 = vmax.f32 %v8229_v29, %v21882_v24  ;;  %v8230_v50 = vmax.f32 %v28970_v15, %v21577_v10  ;;  %v8107_v44 = vpop.f32.mrb[47].mxu0  ;;  %v10324_v40 = vpop.f32.mrb[47].mxu1  ;;  %v28988_v15 = vld [vmem:[#allocation25_spill] sm:$0xff] }
 0x557   : > { %10568 = vst.msk [vmem:[#allocation2 + $0x81] sm:$0xff] %vm10535_vm2, %v10512_v32  ;;  %v10444_v62 = vmax.f32 %v8227_v25, %v10321_v53  ;;  %v8228_v48 = vmax.f32 %v28972_v51, %v8107_v44  ;;  %v28986_v32 = vld [vmem:[#allocation23_spill] sm:$0xff] }
 0x558   : > { %v10485_v54 = vadd.f32 %v27091_v57, %v10446_v7  ;;  %v10447_v45 = vmax.f32 %v8230_v50, %v21883_v23  ;;  %v28987_v16 = vmax.f32 %v28985_v1, %v28986_v32  ;;  %v28989_v50 = vld [vmem:[#allocation8_spill] sm:$0xff] }
 0x559   : > { %v10483_v60 = vadd.f32 %v27091_v57, %v10444_v62  ;;  %v10445_v17 = vmax.f32 %v8228_v48, %v10324_v40  ;;  %v28990_v23 = vmax.f32 %v28988_v15, %v28989_v50  ;;  %v28991_v48 = vld [vmem:[#allocation26_spill] sm:$0xff]  ;;  %v28992_v40 = vld [vmem:[#allocation27_spill] sm:$0xff] }
 0x55a   : > { %v10517_v9 = vmax.f32 %v10485_v54, 0.0  ;;  %v10486_v2 = vadd.f32 %v27091_v57, %v10447_v45  ;;  %v28993_v54 = vmax.f32 %v28991_v48, %v28992_v40  ;;  %v11258_v50 = vld [vmem:[#allocation2 + $0x3] ss:$4 sm:$0xf]  ;;  %v29009_v40 = vld [vmem:[#allocation9_spill] sm:$0xff] }
 0x55b   : > { %v10515_v55 = vmax.f32 %v10483_v60, 0.0  ;;  %v10484_v14 = vadd.f32 %v27091_v57, %v10445_v17  ;;  %v21580_v35 = vpop.f32.mrb[48].mxu0  ;;  %v21886_v30 = vpop.f32.mrb[48].mxu1 }
 0x55c   : > { %10582 = vst.msk [vmem:[#allocation2 + $0xc1] sm:$0xff] %vm10535_vm2, %v10517_v9  ;;  %v10518_v5 = vmax.f32 %v10486_v2, 0.0  ;;  %v8233_v46 = vmax.f32 %v28975_v49, %v21580_v35  ;;  %v8120_v20 = vpop.f32.mrb[49].mxu0  ;;  %v10337_v39 = vpop.f32.mrb[49].mxu1  ;;  %v28994_v2 = vld [vmem:[#allocation28_spill] sm:$0xff] }
 0x55d   : > { %10577 = vst.msk [vmem:[#allocation2 + $0xa9] sm:$0xff] %vm10535_vm2, %v10515_v55  ;;  %v10516_v18 = vmax.f32 %v10484_v14, 0.0  ;;  %v8231_v0 = vmax.f32 %v28978_v52, %v8120_v20  ;;  %v21581_v26 = vpop.f32.mrb[50].mxu0  ;;  %v21887_v22 = vpop.f32.mrb[50].mxu1  ;;  %v28995_v55 = vld [vmem:[#allocation29_spill] sm:$0xff] }
 0x55e   : > { %10583 = vst.msk [vmem:[#allocation2 + $0xc9] sm:$0xff] %vm10535_vm2, %v10518_v5  ;;  %v10450_v13 = vmax.f32 %v8233_v46, %v21886_v30  ;;  %v8234_v19 = vmax.f32 %v28981_v42, %v21581_v26  ;;  %v8123_v61 = vpop.f32.mrb[51].mxu0  ;;  %v10340_v31 = vpop.f32.mrb[51].mxu1  ;;  %v28996_v14 = vmax.f32 %v28994_v2, %v28995_v55 }
 0x55f   : > { %10578 = vst.msk [vmem:[#allocation2 + $0xb1] sm:$0xff] %vm10535_vm2, %v10516_v18  ;;  %v10448_v33 = vmax.f32 %v8231_v0, %v10337_v39  ;;  %v8232_v58 = vmax.f32 %v28984_v28, %v8123_v61  ;;  %v28997_v0 = vld [vmem:[#allocation30_spill] sm:$0xff]  ;;  %v28998_v39 = vld [vmem:[#allocation31_spill] sm:$0xff] }
 0x560   : > { %v10489_v4 = vadd.f32 %v27091_v57, %v10450_v13  ;;  %v10451_v11 = vmax.f32 %v8234_v19, %v21887_v22  ;;  %v28999_v26 = vmax.f32 %v28997_v0, %v28998_v39  ;;  %v29000_v19 = vld [vmem:[#allocation32_spill] sm:$0xff]  ;;  %v29001_v22 = vld [vmem:[#allocation33_spill] sm:$0xff] }
 0x561   : > { %v10487_v21 = vadd.f32 %v27091_v57, %v10448_v33  ;;  %v10449_v3 = vmax.f32 %v8232_v58, %v10340_v31  ;;  %v29002_v61 = vmax.f32 %v29000_v19, %v29001_v22  ;;  %v29003_v58 = vld [vmem:[#allocation34_spill] sm:$0xff]  ;;  %v29004_v31 = vld [vmem:[#allocation35_spill] sm:$0xff] }
 0x562   : > { %v10521_v38 = vmax.f32 %v10489_v4, 0.0  ;;  %v10490_v59 = vadd.f32 %v27091_v57, %v10451_v11  ;;  %v29005_v4 = vmax.f32 %v29003_v58, %v29004_v31 }
 0x563   : > { %v10519_v8 = vmax.f32 %v10487_v21, 0.0  ;;  %v10488_v56 = vadd.f32 %v27091_v57, %v10449_v3  ;;  %v21584_v29 = vpop.f32.mrb[52].mxu0  ;;  %v21890_v53 = vpop.f32.mrb[52].mxu1 }
 0x564   : > { %10592 = vst.msk [vmem:[#allocation2 + $0xf1] sm:$0xff] %vm10535_vm2, %v10521_v38  ;;  %v10522_v24 = vmax.f32 %v10490_v59, 0.0  ;;  %v8237_v25 = vmax.f32 %v28987_v16, %v21584_v29  ;;  %v8136_v10 = vpop.f32.mrb[53].mxu0  ;;  %v10353_v62 = vpop.f32.mrb[53].mxu1  ;;  %v29006_v59 = vld [vmem:[#allocation36_spill] sm:$0xff] }
 0x565   : > { %10587 = vst.msk [vmem:[#allocation2 + $0xd9] sm:$0xff] %vm10535_vm2, %v10519_v8  ;;  %v10520_v7 = vmax.f32 %v10488_v56, 0.0  ;;  %v8235_v44 = vmax.f32 %v28990_v23, %v8136_v10  ;;  %v21585_v47 = vpop.f32.mrb[54].mxu0  ;;  %v21891_v60 = vpop.f32.mrb[54].mxu1  ;;  %v29007_v8 = vld [vmem:[#allocation37_spill] sm:$0xff] }
 0x566   : > { %10593 = vst.msk [vmem:[#allocation2 + $0xf9] sm:$0xff] %vm10535_vm2, %v10522_v24  ;;  %v10454_v51 = vmax.f32 %v8237_v25, %v21890_v53  ;;  %v8238_v45 = vmax.f32 %v28993_v54, %v21585_v47  ;;  %v8139_v17 = vpop.f32.mrb[55].mxu0  ;;  %v10356_v5 = vpop.f32.mrb[55].mxu1  ;;  %v29008_v56 = vmax.f32 %v29006_v59, %v29007_v8  ;;  %v10660_v53 = vld [vmem:[#allocation2 + $0x1] ss:$4 sm:$0xf] }
 0x567   : > { %10588 = vst.msk [vmem:[#allocation2 + $0xe1] sm:$0xff] %vm10535_vm2, %v10520_v7  ;;  %v10452_v9 = vmax.f32 %v8235_v44, %v10353_v62  ;;  %v8236_v35 = vmax.f32 %v28996_v14, %v8139_v17  ;;  %v10662_v10 = vld [vmem:[#allocation2 + $0x61] ss:$4 sm:$0xf] }
 0x568   : > { %v10493_v36 = vadd.f32 %v27091_v57, %v10454_v51  ;;  %v10455_v41 = vmax.f32 %v8238_v45, %v21891_v60  ;;  %v11260_v23 = vld [vmem:[#allocation2 + $0x63] ss:$4 sm:$0xf]  ;;  %v10664_v51 = vld [vmem:[#allocation2 + $0xc1] ss:$4 sm:$0xf]  ;;  %v10671_v39 = vcombine.low %v10660_v53, %v10662_v10 }
 0x569   : > { %v10491_v49 = vadd.f32 %v27091_v57, %v10452_v9  ;;  %v10453_v46 = vmax.f32 %v8236_v35, %v10356_v5  ;;  %v29010_v54 = vld [vmem:[#allocation38_spill] sm:$0xff]  ;;  %v29012_v14 = vld [vmem:[#allocation39_spill] sm:$0xff]  ;;  %v29013_v35 = vld [vmem:[#allocation40_spill] sm:$0xff] }
 0x56a   : > { %v10525_v30 = vmax.f32 %v10493_v36, 0.0  ;;  %v10494_v20 = vadd.f32 %v27091_v57, %v10455_v41  ;;  %v29011_v45 = vmax.f32 %v29009_v40, %v29010_v54  ;;  %v11262_v2 = vld [vmem:[#allocation2 + $0xc3] ss:$4 sm:$0xf]  ;;  %v29014_v5 = vmax.f32 %v29012_v14, %v29013_v35 }
 0x56b   : > { %v10523_v18 = vmax.f32 %v10491_v49, 0.0  ;;  %v10492_v43 = vadd.f32 %v27091_v57, %v10453_v46  ;;  %v21588_v6 = vpop.f32.mrb[56].mxu0  ;;  %v21894_v34 = vpop.f32.mrb[56].mxu1  ;;  %v10779_v10 = vld [vmem:[#allocation2 + $0x62] ss:$4 sm:$0xf] }
 0x56c   : > { %10602 = vst.msk [vmem:[#allocation2 + $0x121] sm:$0xff] %vm10535_vm2, %v10525_v30  ;;  %v10526_v52 = vmax.f32 %v10494_v20, 0.0  ;;  %v8241_v13 = vmax.f32 %v28999_v26, %v21588_v6  ;;  %v8152_v37 = vpop.f32.mrb[57].mxu0  ;;  %v10369_v63 = vpop.f32.mrb[57].mxu1  ;;  %v29015_v20 = vld [vmem:[#allocation41_spill] sm:$0xff] }
 0x56d   : > { %10597 = vst.msk [vmem:[#allocation2 + $0x109] sm:$0xff] %vm10535_vm2, %v10523_v18  ;;  %v10524_v42 = vmax.f32 %v10492_v43, 0.0  ;;  %v8239_v33 = vmax.f32 %v29002_v61, %v8152_v37  ;;  %v21589_v12 = vpop.f32.mrb[58].mxu0  ;;  %v21895_v21 = vpop.f32.mrb[58].mxu1  ;;  %v29016_v18 = vld [vmem:[#allocation42_spill] sm:$0xff]  ;;  %v29018_v37 = vld [vmem:[#allocation43_spill] sm:$0xff] }
 0x56e   : > { %10603 = vst.msk [vmem:[#allocation2 + $0x129] sm:$0xff] %vm10535_vm2, %v10526_v52  ;;  %v10458_v28 = vmax.f32 %v8241_v13, %v21894_v34  ;;  %v8242_v11 = vmax.f32 %v29005_v4, %v21589_v12  ;;  %v8155_v3 = vpop.f32.mrb[59].mxu0  ;;  %v10372_v24 = vpop.f32.mrb[59].mxu1  ;;  %v29017_v43 = vmax.f32 %v29015_v20, %v29016_v18  ;;  %v11362_v40 = vld [vmem:[#allocation2 + $0x64] ss:$4 sm:$0xf] }
 0x56f   : > { %10598 = vst.msk [vmem:[#allocation2 + $0x111] sm:$0xff] %vm10535_vm2, %v10524_v42  ;;  %v10456_v38 = vmax.f32 %v8239_v33, %v10369_v63  ;;  %v8240_v29 = vmax.f32 %v29008_v56, %v8155_v3  ;;  %v29019_v42 = vld [vmem:[#allocation44_spill] sm:$0xff]  ;;  %v27245_v33 = vld [vmem:[%s28954_s3] sm:$0xff]   ;;  %v11269_v63 = vcombine.low %v11258_v50, %v11260_v23 }
 0x570   : > { %v10497_v1 = vadd.f32 %v27091_v57, %v10458_v28  ;;  %v10459_v32 = vmax.f32 %v8242_v11, %v21895_v21  ;;  %v29020_v19 = vmax.f32 %v29018_v37, %v29019_v42  ;;  %v27268_v23 = vld [vmem:[%s28954_s3 + $0x10] sm:$0xff]   ;;  %v10847_v14 = vld [vmem:[#allocation2 + $0x78] ss:$4 sm:$0xf] }
 0x571   : > { %v10495_v16 = vadd.f32 %v27091_v57, %v10456_v38  ;;  %v10457_v25 = vmax.f32 %v8240_v29, %v10372_v24  ;;  %v11364_v54 = vld [vmem:[#allocation2 + $0xc4] ss:$4 sm:$0xf]  ;;  %v10983_v20 = vld [vmem:[#allocation2 + $0x1a] ss:$4 sm:$0xf] }
 0x572   : > { %v10529_v7 = vmax.f32 %v10497_v1, 0.0  ;;  %v10498_v15 = vadd.f32 %v27091_v57, %v10459_v32  ;;  %v10777_v1 = vld [vmem:[#allocation2 + $0x2] ss:$4 sm:$0xf] }
 0x573   : > { %v10527_v44 = vmax.f32 %v10495_v16, 0.0  ;;  %v10496_v62 = vadd.f32 %v27091_v57, %v10457_v25  ;;  %v21592_v47 = vpop.f32.mrb[60].mxu0  ;;  %v21898_v17 = vpop.f32.mrb[60].mxu1  ;;  %v10645_v16 = vld [vmem:[#allocation2 + $0x60] ss:$4 sm:$0xf] }
 0x574   : > { %10612 = vst.msk [vmem:[#allocation2 + $0x151] sm:$0xff] %vm10535_vm2, %v10529_v7  ;;  %v10530_v48 = vmax.f32 %v10498_v15, 0.0  ;;  %v8245_v60 = vmax.f32 %v29011_v45, %v21592_v47  ;;  %v8168_v9 = vpop.f32.mrb[61].mxu0  ;;  %v10385_v41 = vpop.f32.mrb[61].mxu1  ;;  %v27298_v18 = vld [vmem:[%s28954_s3 + $0x20] sm:$0xff]  }
 0x575   : > { %10607 = vst.msk [vmem:[#allocation2 + $0x139] sm:$0xff] %vm10535_vm2, %v10527_v44  ;;  %v10528_v55 = vmax.f32 %v10496_v62, 0.0  ;;  %v8243_v36 = vmax.f32 %v29014_v5, %v8168_v9  ;;  %v21593_v49 = vpop.f32.mrb[62].mxu0  ;;  %v10666_v46 = vld [vmem:[#allocation2 + $0x121] ss:$4 sm:$0xf]  ;;  %v10788_v44 = vcombine.low %v10777_v1, %v10779_v10 }
 0x576   : > { %10613 = vst.msk [vmem:[#allocation2 + $0x159] sm:$0xff] %vm10535_vm2, %v10530_v48  ;;  %v10462_v30 = vmax.f32 %v8245_v60, %v21898_v17  ;;  %v8246_v6 = vmax.f32 %v29017_v43, %v21593_v49  ;;  %v21899_v52 = vpop.f32.mrb[62].mxu1  ;;  %v8171_v0 = vpop.f32.mrb[63].mxu0  ;;  %v10672_v26 = vcombine.low %v10664_v51, %v10666_v46  ;;  %v11264_v13 = vld [vmem:[#allocation2 + $0x123] ss:$4 sm:$0xf] }
 0x577   : > { %10608 = vst.msk [vmem:[#allocation2 + $0x141] sm:$0xff] %vm10535_vm2, %v10528_v55  ;;  %v10460_v34 = vmax.f32 %v8243_v36, %v10385_v41  ;;  %v8244_v22 = vmax.f32 %v29020_v19, %v8171_v0  ;;  %v10388_v61 = vpop.f32.mrb[63].mxu1  ;;  %v11270_v12 = vcombine.low %v11262_v2, %v11264_v13  ;;  %v10649_v24 = vld [vmem:[#allocation2 + $0x120] ss:$4 sm:$0xf]  ;;  %v27283_v60 = vld [vmem:[%s28954_s3 + $0x18] sm:$0xff]  }
 0x578   : > { %v10501_v28 = vadd.f32 %v27091_v57, %v10462_v30  ;;  %v10463_v58 = vmax.f32 %v8246_v6, %v21899_v52  ;;  %v10675_v31 = vpack.c.bf16 %v10672_v26, %v10671_v39  ;;  %v10783_v32 = vld [vmem:[#allocation2 + $0x122] ss:$4 sm:$0xf]  ;;  %v10647_v25 = vld [vmem:[#allocation2 + $0xc0] ss:$4 sm:$0xf] }
 0x579   : > { %v10499_v4 = vadd.f32 %v27091_v57, %v10460_v34  ;;  %v10461_v11 = vmax.f32 %v8244_v22, %v10388_v61  ;;  %v11273_v21 = vpack.c.bf16 %v11270_v12, %v11269_v63  ;;  %v10655_v53 = vcombine.low %v10647_v25, %v10649_v24  ;;  %v10781_v7 = vld [vmem:[#allocation2 + $0xc2] ss:$4 sm:$0xf]  ;;  %v11366_v51 = vld [vmem:[#allocation2 + $0x124] ss:$4 sm:$0xf] }
 0x57a   : > { %v10533_v3 = vmax.f32 %v10501_v28, 0.0  ;;  %v10502_v38 = vadd.f32 %v27091_v57, %v10463_v58  ;;  %21903 = vmatmul.mubr.msk.bf16.vlgmr.msra.gmra.mrb[64].mxu0 %vm10535_vm2, %v10675_v31  ;;  %v10789_v15 = vcombine.low %v10781_v7, %v10783_v32  ;;  %v11360_v48 = vld [vmem:[#allocation2 + $0x4] ss:$4 sm:$0xf]  ;;  %v11372_v45 = vcombine.low %v11364_v54, %v11366_v51 }
 0x57b   : > { %v10531_v59 = vmax.f32 %v10499_v4, 0.0  ;;  %v10500_v8 = vadd.f32 %v27091_v57, %v10461_v11  ;;  %21907 = vmatpush3.bf16.msra.mxu0 %v27245_v33  ;;  %21957 = vmatmul.mubr.msk.bf16.vlgmr.msra.gmra.mrb[64].mxu1 %vm10535_vm2, %v11273_v21  ;;  %v10643_v57 = vld [vmem:[#allocation2] ss:$4 sm:$0xf]  ;;  %v11371_v17 = vcombine.low %v11360_v48, %v11362_v40 }
 0x57c   : > { %10622 = vst.msk [vmem:[#allocation2 + $0x181] sm:$0xff] %vm10535_vm2, %v10533_v3  ;;  %v10534_v56 = vmax.f32 %v10502_v38, 0.0  ;;  %21961 = vmatpush3.bf16.msra.mxu1 %v27245_v33  ;;  %21908 = vmatprep.mubr.msk.bf16.mxu0 %vm24543_vm5, %v24542_v27  ;;  %v10654_v50 = vcombine.low %v10643_v57, %v10645_v16  ;;  %v10792_v47 = vpack.c.bf16 %v10789_v15, %v10788_v44  ;;  %v10849_v35 = vld [vmem:[#allocation2 + $0xd8] ss:$4 sm:$0xf]  ;;  %v27313_v12 = vld [vmem:[%s28954_s3 + $0x28] sm:$0xff]  }
 0x57d   : > { %10617 = vst.msk [vmem:[#allocation2 + $0x169] sm:$0xff] %vm10535_vm2, %v10531_v59  ;;  %v10532_v29 = vmax.f32 %v10500_v8, 0.0  ;;  %21912 = vmatprep.subr.bf16.mxu0 %v24542_v27  ;;  %21962 = vmatprep.mubr.msk.bf16.mxu1 %vm24543_vm5, %v24542_v27  ;;  %v11375_v9 = vpack.c.bf16 %v11372_v45, %v11371_v17  ;;  %v10985_v36 = vld [vmem:[#allocation2 + $0x7a] ss:$4 sm:$0xf]  ;;  %v27328_v59 = vld [vmem:[%s28954_s3 + $0x30] sm:$0xff]  }
 0x57e   : > { %10623 = vst.msk [vmem:[#allocation2 + $0x189] sm:$0xff] %vm10535_vm2, %v10534_v56  ;;  %21966 = vmatprep.subr.bf16.mxu1 %v24542_v27  ;;  %v10658_v62 = vpack.c.bf16 %v10655_v53, %v10654_v50  ;;  %v10851_v2 = vld [vmem:[#allocation2 + $0x138] ss:$4 sm:$0xf]  ;;  %v10994_v43 = vcombine.low %v10983_v20, %v10985_v36 }
 0x57f   : > { %10618 = vst.msk [vmem:[#allocation2 + $0x171] sm:$0xff] %vm10535_vm2, %v10532_v29  ;;  %v10989_v55 = vld [vmem:[#allocation2 + $0x13a] ss:$4 sm:$0xf]  ;;  %v10857_v5 = vcombine.low %v10849_v35, %v10851_v2 }
 0x580   : > { %v10987_v41 = vld [vmem:[#allocation2 + $0xda] ss:$4 sm:$0xf]  ;;  %v10845_v49 = vld [vmem:[#allocation2 + $0x18] ss:$4 sm:$0xf] }
 0x581   : > { %v10995_v46 = vcombine.low %v10987_v41, %v10989_v55  ;;  %v10856_v30 = vcombine.low %v10845_v49, %v10847_v14  ;;  %v10920_v0 = vld [vmem:[#allocation2 + $0x139] ss:$4 sm:$0xf]  ;;  %v11472_v39 = vld [vmem:[#allocation2 + $0x13b] ss:$4 sm:$0xf] }
 0x582   : > { %v10916_v26 = vld [vmem:[#allocation2 + $0x79] ss:$4 sm:$0xf]  ;;  %v11468_v37 = vld [vmem:[#allocation2 + $0x7b] ss:$4 sm:$0xf] }
 0x583   : > { %v10860_v6 = vpack.c.bf16 %v10857_v5, %v10856_v30  ;;  %v10998_v52 = vpack.c.bf16 %v10995_v46, %v10994_v43  ;;  %v10918_v13 = vld [vmem:[#allocation2 + $0xd9] ss:$4 sm:$0xf]  ;;  %v11470_v42 = vld [vmem:[#allocation2 + $0xdb] ss:$4 sm:$0xf] }
 0x584   : > { %v10926_v34 = vcombine.low %v10918_v13, %v10920_v0  ;;  %v10914_v19 = vld [vmem:[#allocation2 + $0x19] ss:$4 sm:$0xf]  ;;  %v11478_v22 = vcombine.low %v11470_v42, %v11472_v39  ;;  %v11466_v63 = vld [vmem:[#allocation2 + $0x1b] ss:$4 sm:$0xf] }
 0x585   : > { %v10925_v61 = vcombine.low %v10914_v19, %v10916_v26  ;;  %v11477_v28 = vcombine.low %v11466_v63, %v11468_v37  ;;  %v11535_v4 = vld [vmem:[#allocation2 + $0x13c] ss:$4 sm:$0xf]  ;;  %v11195_v57 = vld [vmem:[#allocation2 + $0x152] ss:$4 sm:$0xf] }
 0x586   : > { %21909 = vmatmul.mubr.msk.bf16.vlgmr.msra.gmra.mrb[64].mxu0 %vm10535_vm2, %v10658_v62  ;;  %v11531_v11 = vld [vmem:[#allocation2 + $0x7c] ss:$4 sm:$0xf]  ;;  %v11191_v16 = vld [vmem:[#allocation2 + $0x92] ss:$4 sm:$0xf] }
 0x587   : > { %21913 = vmatpush3.bf16.msra.mxu0 %v27268_v23  ;;  %21963 = vmatmul.mubr.msk.bf16.vlgmr.msra.gmra.mrb[64].mxu1 %vm10535_vm2, %v10792_v47  ;;  %v10929_v58 = vpack.c.bf16 %v10926_v34, %v10925_v61  ;;  %v11481_v31 = vpack.c.bf16 %v11478_v22, %v11477_v28  ;;  %v11533_v21 = vld [vmem:[#allocation2 + $0xdc] ss:$4 sm:$0xf]  ;;  %v11193_v25 = vld [vmem:[#allocation2 + $0xf2] ss:$4 sm:$0xf] }
 0x588   : > { %21967 = vmatpush3.bf16.msra.mxu1 %v27268_v23  ;;  %21914 = vmatprep.mubr.msk.bf16.mxu0 %vm24543_vm5, %v24542_v27  ;;  %v11541_v3 = vcombine.low %v11533_v21, %v11535_v4  ;;  %v11529_v38 = vld [vmem:[#allocation2 + $0x1c] ss:$4 sm:$0xf]  ;;  %v11201_v10 = vcombine.low %v11193_v25, %v11195_v57  ;;  %v11189_v15 = vld [vmem:[#allocation2 + $0x32] ss:$4 sm:$0xf] }
 0x589   : > { %21918 = vmatprep.subr.bf16.mxu0 %v24542_v27  ;;  %21968 = vmatprep.mubr.msk.bf16.mxu1 %vm24543_vm5, %v24542_v27  ;;  %v11540_v8 = vcombine.low %v11529_v38, %v11531_v11  ;;  %v11057_v29 = vld [vmem:[#allocation2 + $0x150] ss:$4 sm:$0xf]  ;;  %v11200_v44 = vcombine.low %v11189_v15, %v11191_v16  ;;  %v11126_v51 = vld [vmem:[#allocation2 + $0x151] ss:$4 sm:$0xf] }
 0x58a   : > { %21972 = vmatprep.subr.bf16.mxu1 %v24542_v27  ;;  %v11053_v24 = vld [vmem:[#allocation2 + $0x90] ss:$4 sm:$0xf]  ;;  %v11641_v48 = vld [vmem:[#allocation2 + $0x153] ss:$4 sm:$0xf] }
 0x58b   : > { %v11544_v56 = vpack.c.bf16 %v11541_v3, %v11540_v8  ;;  %v11055_v1 = vld [vmem:[#allocation2 + $0xf0] ss:$4 sm:$0xf]  ;;  %v11122_v40 = vld [vmem:[#allocation2 + $0x91] ss:$4 sm:$0xf] }
 0x58c   : > { %v11063_v32 = vcombine.low %v11055_v1, %v11057_v29  ;;  %v11051_v53 = vld [vmem:[#allocation2 + $0x30] ss:$4 sm:$0xf]  ;;  %v11124_v54 = vld [vmem:[#allocation2 + $0xf1] ss:$4 sm:$0xf] }
 0x58d   : > { %v11062_v7 = vcombine.low %v11051_v53, %v11053_v24  ;;  %v27343_v50 = vld [vmem:[%s28954_s3 + $0x38] sm:$0xff]   ;;  %v11132_v45 = vcombine.low %v11124_v54, %v11126_v51  ;;  %v27361_v5 = vld [vmem:[%s28954_s3 + $0x40] sm:$0xff]   ;;  %v24477_v39 = vld [vmem:[%s28954_s3 + $0x8] sm:$0xff]   ;;  %s28726_s3 = scalar_lea.hbm %s28782_s13, %s19657_s2 }
 0x58e   : > { %v11637_v17 = vld [vmem:[#allocation2 + $0x93] ss:$4 sm:$0xf]  ;;  %v11120_v2 = vld [vmem:[#allocation2 + $0x31] ss:$4 sm:$0xf] }
 0x58f   : > { %v11066_v62 = vpack.c.bf16 %v11063_v32, %v11062_v7  ;;  %v11131_v14 = vcombine.low %v11120_v2, %v11122_v40  ;;  %v11635_v35 = vld [vmem:[#allocation2 + $0x33] ss:$4 sm:$0xf]  ;;  %v11704_v46 = vld [vmem:[#allocation2 + $0x154] ss:$4 sm:$0xf] }
 0x590   : > { %v11646_v36 = vcombine.low %v11635_v35, %v11637_v17  ;;  %v11700_v30 = vld [vmem:[#allocation2 + $0x94] ss:$4 sm:$0xf]  ;;  %v12015_v37 = vld [vmem:[#allocation2 + $0xaa] ss:$4 sm:$0xf] }
 0x591   : > { %v11135_v41 = vpack.c.bf16 %v11132_v45, %v11131_v14  ;;  %v11702_v20 = vld [vmem:[#allocation2 + $0xf4] ss:$4 sm:$0xf]  ;;  %v12017_v42 = vld [vmem:[#allocation2 + $0x10a] ss:$4 sm:$0xf] }
 0x592   : > { %21915 = vmatmul.mubr.msk.bf16.vlgmr.msra.gmra.mrb[64].mxu0 %vm10535_vm2, %v10792_v47  ;;  %v27345_v47 = vpack.c.bf16 %v11201_v10, %v11200_v44  ;;  %v11710_v43 = vcombine.low %v11702_v20, %v11704_v46  ;;  %v11889_v26 = vld [vmem:[#allocation2 + $0xa8] ss:$4 sm:$0xf]  ;;  %v12013_v61 = vld [vmem:[#allocation2 + $0x4a] ss:$4 sm:$0xf] }
 0x593   : > { %21919 = vmatpush3.bf16.msra.mxu0 %v27283_v60  ;;  %21969 = vmatmul.mubr.msk.bf16.vlgmr.msra.gmra.mrb[64].mxu1 %vm10535_vm2, %v11375_v9  ;;  %v11639_v9 = vld [vmem:[#allocation2 + $0xf3] ss:$4 sm:$0xf]  ;;  %v11891_v13 = vld [vmem:[#allocation2 + $0x108] ss:$4 sm:$0xf]  ;;  %v12024_v63 = vcombine.low %v12013_v61, %v12015_v37 }
 0x594   : > { %21973 = vmatpush3.bf16.msra.mxu1 %v27283_v60  ;;  %21920 = vmatprep.mubr.msk.bf16.mxu0 %vm24543_vm5, %v24542_v27  ;;  %v11647_v55 = vcombine.low %v11639_v9, %v11641_v48  ;;  %v11887_v19 = vld [vmem:[#allocation2 + $0x48] ss:$4 sm:$0xf]  ;;  %v12440_v4 = vld [vmem:[#allocation2 + $0x16b] ss:$4 sm:$0xf] }
 0x595   : > { %21924 = vmatprep.subr.bf16.mxu0 %v24542_v27  ;;  %21974 = vmatprep.mubr.msk.bf16.mxu1 %vm24543_vm5, %v24542_v27  ;;  %v11952_v11 = vld [vmem:[#allocation2 + $0xa9] ss:$4 sm:$0xf]  ;;  %v12436_v38 = vld [vmem:[#allocation2 + $0xab] ss:$4 sm:$0xf] }
 0x596   : > { %21978 = vmatprep.subr.bf16.mxu1 %v24542_v27  ;;  %v11650_v49 = vpack.c.bf16 %v11647_v55, %v11646_v36  ;;  %v11954_v21 = vld [vmem:[#allocation2 + $0x109] ss:$4 sm:$0xf]  ;;  %v12438_v8 = vld [vmem:[#allocation2 + $0x10b] ss:$4 sm:$0xf] }
 0x597   : > { %v12446_v29 = vcombine.low %v12438_v8, %v12440_v4  ;;  %v12434_v57 = vld [vmem:[#allocation2 + $0x4b] ss:$4 sm:$0xf]  ;;  %v12503_v16 = vld [vmem:[#allocation2 + $0x16c] ss:$4 sm:$0xf] }
 0x598   : > { %v12445_v24 = vcombine.low %v12434_v57, %v12436_v38  ;;  %v12499_v25 = vld [vmem:[#allocation2 + $0xac] ss:$4 sm:$0xf]  ;;  %v12203_v40 = vld [vmem:[#allocation2 + $0xc2] ss:$4 sm:$0xf] }
 0x599   : > { %v12501_v53 = vld [vmem:[#allocation2 + $0x10c] ss:$4 sm:$0xf]  ;;  %v12205_v54 = vld [vmem:[#allocation2 + $0x122] ss:$4 sm:$0xf] }
 0x59a   : > { %v12449_v32 = vpack.c.bf16 %v12446_v29, %v12445_v24  ;;  %v12509_v10 = vcombine.low %v12501_v53, %v12503_v16  ;;  %v12497_v7 = vld [vmem:[#allocation2 + $0x4c] ss:$4 sm:$0xf]  ;;  %v12201_v9 = vld [vmem:[#allocation2 + $0x62] ss:$4 sm:$0xf] }
 0x59b   : > { %v12508_v15 = vcombine.low %v12497_v7, %v12499_v25  ;;  %v12079_v51 = vld [vmem:[#allocation2 + $0x120] ss:$4 sm:$0xf]  ;;  %v12212_v2 = vcombine.low %v12201_v9, %v12203_v40  ;;  %v12144_v35 = vld [vmem:[#allocation2 + $0x181] ss:$4 sm:$0xf] }
 0x59c   : > { %v12075_v45 = vld [vmem:[#allocation2 + $0x60] ss:$4 sm:$0xf]  ;;  %v12609_v36 = vld [vmem:[#allocation2 + $0x183] ss:$4 sm:$0xf] }
 0x59d   : > { %v12512_v44 = vpack.c.bf16 %v12509_v10, %v12508_v15  ;;  %v12607_v20 = vld [vmem:[#allocation2 + $0x123] ss:$4 sm:$0xf]  ;;  %v12666_v37 = vld [vmem:[#allocation2 + $0x64] ss:$4 sm:$0xf] }
 0x59e   : > { %21921 = vmatmul.mubr.msk.bf16.vlgmr.msra.gmra.mrb[64].mxu0 %vm10535_vm2, %v10860_v6  ;;  %v11698_v6 = vld [vmem:[#allocation2 + $0x34] ss:$4 sm:$0xf] }
 0x59f   : > { %21925 = vmatpush3.bf16.msra.mxu0 %v27298_v18  ;;  %21975 = vmatmul.mubr.msk.bf16.vlgmr.msra.gmra.mrb[64].mxu1 %vm10535_vm2, %v10998_v52 }
 0x5a0   : > { %21979 = vmatpush3.bf16.msra.mxu1 %v27298_v18  ;;  %21926 = vmatprep.mubr.msk.bf16.mxu0 %vm24543_vm5, %v24542_v27 }
 0x5a1   : > { %21930 = vmatprep.subr.bf16.mxu0 %v24542_v27  ;;  %21980 = vmatprep.mubr.msk.bf16.mxu1 %vm24543_vm5, %v24542_v27 }
 0x5a2   : > { %21984 = vmatprep.subr.bf16.mxu1 %v24542_v27 }
 0x5aa   : > { %21927 = vmatmul.mubr.msk.bf16.vlgmr.msra.gmra.mrb[64].mxu0 %vm10535_vm2, %v10929_v58 }
 0x5ab   : > { %21931 = vmatpush3.bf16.msra.mxu0 %v27313_v12  ;;  %21981 = vmatmul.mubr.msk.bf16.vlgmr.msra.gmra.mrb[64].mxu1 %vm10535_vm2, %v11481_v31  ;;  %v11956_v31 = vld [vmem:[#allocation2 + $0x169] ss:$4 sm:$0xf] }
 0x5ac   : > { %21985 = vmatpush3.bf16.msra.mxu1 %v27313_v12  ;;  %21932 = vmatprep.mubr.msk.bf16.mxu0 %vm24543_vm5, %v24542_v27  ;;  %v11962_v3 = vcombine.low %v11954_v21, %v11956_v31 }
 0x5ad   : > { %21936 = vmatprep.subr.bf16.mxu0 %v24542_v27  ;;  %21986 = vmatprep.mubr.msk.bf16.mxu1 %vm24543_vm5, %v24542_v27 }
 0x5ae   : > { %21990 = vmatprep.subr.bf16.mxu1 %v24542_v27 }
 0x5b6   : > { %21933 = vmatmul.mubr.msk.bf16.vlgmr.msra.gmra.mrb[64].mxu0 %vm10535_vm2, %v10998_v52  ;;  %v11709_v52 = vcombine.low %v11698_v6, %v11700_v30  ;;  %v12605_v30 = vld [vmem:[#allocation2 + $0xc3] ss:$4 sm:$0xf]  ;;  %v12615_v6 = vcombine.low %v12607_v20, %v12609_v36 }
 0x5b7   : > { %21937 = vmatpush3.bf16.msra.mxu0 %v27328_v59  ;;  %21987 = vmatmul.mubr.msk.bf16.vlgmr.msra.gmra.mrb[64].mxu1 %vm10535_vm2, %v11544_v56  ;;  %v11950_v56 = vld [vmem:[#allocation2 + $0x49] ss:$4 sm:$0xf]  ;;  %v27514_v36 = vld [vmem:[%s28774_s5] sm:$0xff]  }
 0x5b8   : > { %21991 = vmatpush3.bf16.msra.mxu1 %v27328_v59  ;;  %21938 = vmatprep.mubr.msk.bf16.mxu0 %vm24543_vm5, %v24542_v27  ;;  %v11713_v0 = vpack.c.bf16 %v11710_v43, %v11709_v52  ;;  %v12138_v43 = vld [vmem:[#allocation2 + $0x61] ss:$4 sm:$0xf]  ;;  %v12603_v52 = vld [vmem:[#allocation2 + $0x63] ss:$4 sm:$0xf] }
 0x5b9   : > { %21942 = vmatprep.subr.bf16.mxu0 %v24542_v27  ;;  %21992 = vmatprep.mubr.msk.bf16.mxu1 %vm24543_vm5, %v24542_v27  ;;  %v27523_v20 = vld [vmem:[%s28774_s5 + $0x8] sm:$0xff]  }
 0x5ba   : > { %21996 = vmatprep.subr.bf16.mxu1 %v24542_v27 }
 0x5c2   : > { %21939 = vmatmul.mubr.msk.bf16.vlgmr.msra.gmra.mrb[64].mxu0 %vm10535_vm2, %v11066_v62 }
 0x5c3   : > { %21943 = vmatpush3.bf16.msra.mxu0 %v27343_v50  ;;  %21993 = vmatmul.mubr.msk.bf16.vlgmr.msra.gmra.mrb[64].mxu1 %vm10535_vm2, %v27345_v47 }
 0x5c4   : > { %21997 = vmatpush3.bf16.msra.mxu1 %v27343_v50  ;;  %21944 = vmatprep.mubr.msk.bf16.mxu0 %vm24543_vm5, %v24542_v27 }
 0x5c5   : > { %21948 = vmatprep.subr.bf16.mxu0 %v24542_v27  ;;  %21998 = vmatprep.mubr.msk.bf16.mxu1 %vm24543_vm5, %v24542_v27 }
 0x5c6   : > { %22002 = vmatprep.subr.bf16.mxu1 %v24542_v27 }
 0x5ce   : > { %21945 = vmatmul.mubr.msk.bf16.vlgmr.msra.gmra.mrb[64].mxu0 %vm10535_vm2, %v11135_v41 }
 0x5cf   : > { %21949 = vmatpush3.bf16.msra.mxu0 %v27361_v5  ;;  %21999 = vmatmul.mubr.msk.bf16.vlgmr.msra.gmra.mrb[64].mxu1 %vm10535_vm2, %v11650_v49 }
 0x5d0   : > { %22003 = vmatpush3.bf16.msra.mxu1 %v27361_v5  ;;  %21950 = vmatprep.mubr.msk.bf16.mxu0 %vm24543_vm5, %v24542_v27 }
 0x5d1   : > { %22004 = vmatprep.mubr.msk.bf16.mxu1 %vm24543_vm5, %v24542_v27  ;;  %22008 = vmatprep.subr.bf16.mxu0 %v24542_v27 }
 0x5d2   : > { %22062 = vmatprep.subr.bf16.mxu1 %v24542_v27 }
 0x5da   : > { %21951 = vmatmul.mubr.msk.bf16.vlgmr.msra.gmra.mrb[64].mxu0 %vm10535_vm2, %v27345_v47 }
 0x5db   : > { %22005 = vmatmul.mubr.msk.bf16.vlgmr.msra.gmra.mrb[64].mxu1 %vm10535_vm2, %v11713_v0  ;;  %22009 = vmatpush3.bf16.msra.mxu0 %v24477_v39 }
 0x5dc   : > { %22063 = vmatpush3.bf16.msra.mxu1 %v24477_v39  ;;  %22010 = vmatprep.mubr.msk.bf16.mxu0 %vm24543_vm5, %v24542_v27 }
 0x5dd   : > { %22014 = vmatprep.subr.bf16.mxu0 %v24542_v27  ;;  %22064 = vmatprep.mubr.msk.bf16.mxu1 %vm24543_vm5, %v24542_v27 }
 0x5de   : > { %22068 = vmatprep.subr.bf16.mxu1 %v24542_v27 }
 0x5e2   : > { %22011 = vmatmul.mubr.msk.bf16.vlgmr.msra.gmra.mrb[68].mxu0 %vm10535_vm2, %v11135_v41  ;;  %v12140_v41 = vld [vmem:[#allocation2 + $0xc1] ss:$4 sm:$0xf] }
 0x5e3   : > { %22015 = vmatpush3.bf16.msra.mxu0 %v27245_v33  ;;  %22065 = vmatmul.mubr.msk.bf16.vlgmr.msra.gmra.mrb[68].mxu1 %vm10535_vm2, %v11650_v49  ;;  %v12142_v49 = vld [vmem:[#allocation2 + $0x121] ss:$4 sm:$0xf] }
 0x5e4   : > { %22069 = vmatpush3.bf16.msra.mxu1 %v27245_v33  ;;  %22016 = vmatprep.mubr.msk.bf16.mxu0 %vm24543_vm5, %v24542_v27  ;;  %v11893_v33 = vld [vmem:[#allocation2 + $0x168] ss:$4 sm:$0xf]  ;;  %v12150_v46 = vcombine.low %v12142_v49, %v12144_v35 }
 0x5e5   : > { %22020 = vmatprep.subr.bf16.mxu0 %v24542_v27  ;;  %22070 = vmatprep.mubr.msk.bf16.mxu1 %vm24543_vm5, %v24542_v27  ;;  %v11899_v34 = vcombine.low %v11891_v13, %v11893_v33  ;;  %v12670_v13 = vld [vmem:[#allocation2 + $0x124] ss:$4 sm:$0xf] }
 0x5e6   : > { %22074 = vmatprep.subr.bf16.mxu1 %v24542_v27 }
 0x5ee   : > { %22017 = vmatmul.mubr.msk.bf16.vlgmr.msra.gmra.mrb[68].mxu0 %vm10535_vm2, %v11066_v62  ;;  %v12207_v62 = vld [vmem:[#allocation2 + $0x182] ss:$4 sm:$0xf] }
 0x5ef   : > { %22021 = vmatpush3.bf16.msra.mxu0 %v27268_v23  ;;  %22071 = vmatmul.mubr.msk.bf16.vlgmr.msra.gmra.mrb[68].mxu1 %vm10535_vm2, %v27345_v47  ;;  %v12213_v17 = vcombine.low %v12205_v54, %v12207_v62  ;;  %v12816_v54 = vld [vmem:[#allocation3 + $0x1] ss:$2 sm:$0x3] }
 0x5f0   : > { %22075 = vmatpush3.bf16.msra.mxu1 %v27268_v23  ;;  %22022 = vmatprep.mubr.msk.bf16.mxu0 %vm24543_vm5, %v24542_v27  ;;  %v12019_v23 = vld [vmem:[#allocation2 + $0x16a] ss:$4 sm:$0xf] }
 0x5f1   : > { %22026 = vmatprep.subr.bf16.mxu0 %v24542_v27  ;;  %22076 = vmatprep.mubr.msk.bf16.mxu1 %vm24543_vm5, %v24542_v27  ;;  %v12025_v22 = vcombine.low %v12017_v42, %v12019_v23  ;;  %v12216_v14 = vpack.c.bf16 %v12213_v17, %v12212_v2  ;;  %v12672_v23 = vld [vmem:[#allocation2 + $0x184] ss:$4 sm:$0xf] }
 0x5f2   : > { %22080 = vmatprep.subr.bf16.mxu1 %v24542_v27 }
 0x5f3   : > { %v12028_v58 = vpack.c.bf16 %v12025_v22, %v12024_v63  ;;  %v27485_v22 = vld [vmem:[%s28774_s5 + $0x18] sm:$0xff]  }
 0x5fa   : > { %22023 = vmatmul.mubr.msk.bf16.vlgmr.msra.gmra.mrb[68].mxu0 %vm10535_vm2, %v27345_v47  ;;  %v12077_v47 = vld [vmem:[#allocation2 + $0xc0] ss:$4 sm:$0xf] }
 0x5fb   : > { %22027 = vmatpush3.bf16.msra.mxu0 %v27283_v60  ;;  %22077 = vmatmul.mubr.msk.bf16.vlgmr.msra.gmra.mrb[68].mxu1 %vm10535_vm2, %v11713_v0  ;;  %v12614_v0 = vcombine.low %v12603_v52, %v12605_v30 }
 0x5fc   : > { %22081 = vmatpush3.bf16.msra.mxu1 %v27283_v60  ;;  %22028 = vmatprep.mubr.msk.bf16.mxu0 %vm24543_vm5, %v24542_v27  ;;  %v11898_v60 = vcombine.low %v11887_v19, %v11889_v26  ;;  %v12668_v26 = vld [vmem:[#allocation2 + $0xc4] ss:$4 sm:$0xf] }
 0x5fd   : > { %22032 = vmatprep.subr.bf16.mxu0 %v24542_v27  ;;  %22082 = vmatprep.mubr.msk.bf16.mxu1 %vm24543_vm5, %v24542_v27  ;;  %v12618_v33 = vpack.c.bf16 %v12615_v6, %v12614_v0  ;;  %v12677_v42 = vcombine.low %v12666_v37, %v12668_v26  ;;  %v13525_v0 = vld [vmem:[#allocation3 + $0x3] ss:$2 sm:$0x3] }
 0x5fe   : > { %22086 = vmatprep.subr.bf16.mxu1 %v24542_v27  ;;  %v11902_v28 = vpack.c.bf16 %v11899_v34, %v11898_v60  ;;  %v12678_v34 = vcombine.low %v12670_v13, %v12672_v23  ;;  %v27564_v13 = vld [vmem:[%s28774_s5 + $0x30] sm:$0xff]  }
 0x600   : > { %v12681_v19 = vpack.c.bf16 %v12678_v34, %v12677_v42 }
 0x606   : > { %22029 = vmatmul.mubr.msk.bf16.vlgmr.msra.gmra.mrb[68].mxu0 %vm10535_vm2, %v11902_v28 }
 0x607   : > { %22033 = vmatpush3.bf16.msra.mxu0 %v27298_v18  ;;  %22083 = vmatmul.mubr.msk.bf16.vlgmr.msra.gmra.mrb[68].mxu1 %vm10535_vm2, %v12028_v58 }
 0x608   : > { %22087 = vmatpush3.bf16.msra.mxu1 %v27298_v18  ;;  %22034 = vmatprep.mubr.msk.bf16.mxu0 %vm24543_vm5, %v24542_v27  ;;  %v11961_v18 = vcombine.low %v11950_v56, %v11952_v11 }
 0x609   : > { %22038 = vmatprep.subr.bf16.mxu0 %v24542_v27  ;;  %22088 = vmatprep.mubr.msk.bf16.mxu1 %vm24543_vm5, %v24542_v27 }
 0x60a   : > { %22092 = vmatprep.subr.bf16.mxu1 %v24542_v27  ;;  %v11965_v1 = vpack.c.bf16 %v11962_v3, %v11961_v18  ;;  %v19465_v18 = vld [vmem:[%s28773_s4] ss:$0 sm:$0xff] }
 0x612   : > { %22035 = vmatmul.mubr.msk.bf16.vlgmr.msra.gmra.mrb[68].mxu0 %vm10535_vm2, %v11965_v1 }
 0x613   : > { %22039 = vmatpush3.bf16.msra.mxu0 %v27313_v12  ;;  %22089 = vmatmul.mubr.msk.bf16.vlgmr.msra.gmra.mrb[68].mxu1 %vm10535_vm2, %v12449_v32 }
 0x614   : > { %22093 = vmatpush3.bf16.msra.mxu1 %v27313_v12  ;;  %22040 = vmatprep.mubr.msk.bf16.mxu0 %vm24543_vm5, %v24542_v27  ;;  %v12081_v12 = vld [vmem:[#allocation2 + $0x180] ss:$4 sm:$0xf] }
 0x615   : > { %22044 = vmatprep.subr.bf16.mxu0 %v24542_v27  ;;  %22094 = vmatprep.mubr.msk.bf16.mxu1 %vm24543_vm5, %v24542_v27  ;;  %v12087_v48 = vcombine.low %v12079_v51, %v12081_v12  ;;  %v24544_v12 = vmov 1983009808  }
 0x616   : > { %22098 = vmatprep.subr.bf16.mxu1 %v24542_v27  ;;  %v12807_v62 = vunpack.c.l.s4 %v24544_v12 }
 0x61e   : > { %22041 = vmatmul.mubr.msk.bf16.vlgmr.msra.gmra.mrb[68].mxu0 %vm10535_vm2, %v12028_v58 }
 0x61f   : > { %22045 = vmatpush3.bf16.msra.mxu0 %v27328_v59  ;;  %22095 = vmatmul.mubr.msk.bf16.vlgmr.msra.gmra.mrb[68].mxu1 %vm10535_vm2, %v12512_v44 }
 0x620   : > { %22099 = vmatpush3.bf16.msra.mxu1 %v27328_v59  ;;  %22046 = vmatprep.mubr.msk.bf16.mxu0 %vm24543_vm5, %v24542_v27  ;;  %v12086_v59 = vcombine.low %v12075_v45, %v12077_v47  ;;  %v12809_v47 = vlaneseq  ;;  %v12943_v45 = vld [vmem:[#allocation3 + $0x2] ss:$2 sm:$0x3] }
 0x621   : > { %22050 = vmatprep.subr.bf16.mxu0 %v24542_v27  ;;  %22100 = vmatprep.mubr.msk.bf16.mxu1 %vm24543_vm5, %v24542_v27 }
 0x622   : > { %22104 = vmatprep.subr.bf16.mxu1 %v24542_v27  ;;  %v12090_v55 = vpack.c.bf16 %v12087_v48, %v12086_v59  ;;  %v12808_v48 = vunpack.c.0.s8 %v12807_v62  ;;  %v27504_v40 = vshrl.u32 %v12809_v47, 7 }
 0x624   : > { %v27507_v17 = vsub.s32 %v12808_v48, %v27504_v40 }
 0x62a   : > { %22047 = vmatmul.mubr.msk.bf16.vlgmr.msra.gmra.mrb[68].mxu0 %vm10535_vm2, %v12090_v55 }
 0x62b   : > { %22051 = vmatpush3.bf16.msra.mxu0 %v27343_v50  ;;  %22101 = vmatmul.mubr.msk.bf16.vlgmr.msra.gmra.mrb[68].mxu1 %vm10535_vm2, %v12216_v14 }
 0x62c   : > { %22105 = vmatpush3.bf16.msra.mxu1 %v27343_v50  ;;  %22052 = vmatprep.mubr.msk.bf16.mxu0 %vm24543_vm5, %v24542_v27  ;;  %v12149_v50 = vcombine.low %v12138_v43, %v12140_v41 }
 0x62d   : > { %22056 = vmatprep.subr.bf16.mxu0 %v24542_v27  ;;  %22106 = vmatprep.mubr.msk.bf16.mxu1 %vm24543_vm5, %v24542_v27 }
 0x62e   : > { %22110 = vmatprep.subr.bf16.mxu1 %v24542_v27  ;;  %v12153_v39 = vpack.c.bf16 %v12150_v46, %v12149_v50  ;;  %v12800_v46 = vld [vmem:[#allocation3] ss:$2 sm:$0x3]  ;;  %v27539_v50 = vld [vmem:[%s28774_s5 + $0x20] sm:$0xff]  }
 0x636   : > { %22053 = vmatmul.mubr.msk.bf16.vlgmr.msra.gmra.mrb[68].mxu0 %vm10535_vm2, %v12153_v39 }
 0x637   : > { %22057 = vmatpush3.bf16.msra.mxu0 %v27361_v5  ;;  %22107 = vmatmul.mubr.msk.bf16.vlgmr.msra.gmra.mrb[68].mxu1 %vm10535_vm2, %v12618_v33  ;;  %v27548_v33 = vld [vmem:[%s28774_s5 + $0x28] sm:$0xff]  }
 0x638   : > { %22111 = vmatpush3.bf16.msra.mxu1 %v27361_v5  ;;  %22058 = vmatprep.mubr.msk.bf16.mxu0 %vm24543_vm5, %v24542_v27  ;;  %v27476_v5 = vld [vmem:[%s28774_s5 + $0x10] sm:$0xff]  }
 0x639   : > { %22112 = vmatprep.mubr.msk.bf16.mxu1 %vm24543_vm5, %v24542_v27  ;;  %22116 = vmatprep.subr.bf16.mxu0 %v24542_v27 }
 0x63a   : > { %22188 = vmatprep.subr.bf16.mxu1 %v24542_v27 }
 0x642   : > { %22059 = vmatmul.mubr.msk.bf16.vlgmr.msra.gmra.mrb[68].mxu0 %vm10535_vm2, %v12216_v14 }
 0x643   : > { %22113 = vmatmul.mubr.msk.bf16.vlgmr.msra.gmra.mrb[68].mxu1 %vm10535_vm2, %v12681_v19  ;;  %22120 = vmatprep.mubr.msk.bf16.mxu0 %vm24543_vm5, %v24542_v27  ;;  %v27571_v19 = vld [vmem:[%s28774_s5 + $0x38] sm:$0xff]  }
 0x644   : > { %22192 = vmatprep.mubr.msk.bf16.mxu1 %vm24543_vm5, %v24542_v27  ;;  %22117 = vmatpush3.bf16.msra.mxu0 %v27476_v5 }
 0x645   : > { %22189 = vmatpush3.bf16.msra.mxu1 %v27476_v5  ;;  %22118 = vmatprep.subr.bf16.mxu0 %v24542_v27 }
 0x646   : > { %22190 = vmatprep.subr.bf16.mxu1 %v24542_v27 }
 0x648   : > { %22119 = vmatpush3.bf16.msra.mxu0 %v27485_v22 }
 0x649   : > { %22191 = vmatpush3.bf16.msra.mxu1 %v27485_v22  ;;  %22124 = vmatprep.subr.bf16.mxu0 %v24542_v27 }
 0x64a   : > { %22196 = vmatprep.subr.bf16.mxu1 %v24542_v27 }
 0x6ad   : > { %v11248_v60 = vpop.f32.mrb[64].mxu0 }
 0x6ae   : > { %v11751_v61 = vpop.f32.mrb[64].mxu1  ;;  %v21952_v63 = vpop.f32.mrb[65].mxu0 }
 0x6af   : > { %v11760_v28 = vmax.f32 %v11248_v60, %v11751_v61  ;;  %v22006_v58 = vpop.f32.mrb[65].mxu1  ;;  %v11251_v31 = vpop.f32.mrb[66].mxu0 }
 0x6b0   : > { %v11754_v4 = vpop.f32.mrb[66].mxu1  ;;  %v21953_v11 = vpop.f32.mrb[67].mxu0 }
 0x6b1   : > { %v11761_v21 = vmax.f32 %v11251_v31, %v11754_v4  ;;  %v22007_v3 = vpop.f32.mrb[67].mxu1  ;;  %v27590_v4 = vld [vmem:[%s28774_s5 + $0x40] sm:$0xff]  }
 0x715   : > { %v12254_v38 = vpop.f32.mrb[68].mxu0 }
 0x716   : > { %v12263_v8 = vmax.f32 %v11760_v28, %v12254_v38  ;;  %v12719_v56 = vpop.f32.mrb[68].mxu1  ;;  %v22060_v29 = vpop.f32.mrb[69].mxu0  ;;  %v27605_v38 = vld [vmem:[%s28774_s5 + $0x48] sm:$0xff]  }
 0x717   : > { %v22114_v57 = vpop.f32.mrb[69].mxu1  ;;  %v12257_v24 = vpop.f32.mrb[70].mxu0 }
 0x718   : > { %v12728_v1 = vmax.f32 %v12263_v8, %v12719_v56  ;;  %v12264_v32 = vmax.f32 %v11761_v21, %v12257_v24  ;;  %v12722_v16 = vpop.f32.mrb[70].mxu1  ;;  %v22061_v25 = vpop.f32.mrb[71].mxu0 }
 0x719   : > { %v22115_v53 = vpop.f32.mrb[71].mxu1 }
 0x71a   : > { %v12737_v10 = vadd.f32 %v19465_v18, %v12728_v1  ;;  %v12729_v7 = vmax.f32 %v12264_v32, %v12722_v16  ;;  %v27634_v1 = vld [vmem:[%s28774_s5 + $0x58] sm:$0xff]   ;;  %v27650_v53 = vld [vmem:[%s28774_s5 + $0x60] sm:$0xff]  }
 0x71c   : > { %v12739_v15 = vmax.f32 %v12737_v10, 0.0  ;;  %v12738_v44 = vadd.f32 %v19465_v18, %v12729_v7  ;;  %v27621_v18 = vld [vmem:[%s28774_s5 + $0x50] sm:$0xff]  }
 0x71e   : > { %12749 = vst.msk [vmem:[#allocation3 + $0x9] sm:$0xf] %vm12748_vm8, %v12739_v15  ;;  %v12740_v51 = vmax.f32 %v12738_v44, 0.0  ;;  %v27661_v44 = vld [vmem:[%s28774_s5 + $0x68] sm:$0xff]  }
 0x71f   : > { %12754 = vst.msk [vmem:[#allocation3 + $0xd] sm:$0xf0] %vm12753_vm9, %v12739_v15 }
 0x720   : > { %12758 = vst.msk [vmem:[#allocation3 + $0x19] sm:$0xf] %vm12748_vm8, %v12740_v51 }
 0x721   : > { %12762 = vst.msk [vmem:[#allocation3 + $0x1d] sm:$0xf0] %vm12753_vm9, %v12740_v51 }
 0x725   : > { %v13014_v60 = vld [vmem:[#allocation3 + $0x8] ss:$2 sm:$0x3]  ;;  %v13086_v61 = vld [vmem:[#allocation3 + $0x9] ss:$2 sm:$0x3] }
 0x726   : > { %v12818_v59 = vld [vmem:[#allocation3 + $0x11] ss:$2 sm:$0x3]  ;;  %v12945_v9 = vld [vmem:[#allocation3 + $0x12] ss:$2 sm:$0x3] }
 0x727   : > { %v12821_v2 = vcombine.low %v12816_v54, %v12818_v59  ;;  %v12948_v55 = vcombine.low %v12943_v45, %v12945_v9  ;;  %v12802_v30 = vld [vmem:[#allocation3 + $0x10] ss:$2 sm:$0x3]  ;;  %v13527_v39 = vld [vmem:[#allocation3 + $0x13] ss:$2 sm:$0x3] }
 0x728   : > { %v12805_v43 = vcombine.low %v12800_v46, %v12802_v30  ;;  %v13530_v23 = vcombine.low %v13525_v0, %v13527_v39  ;;  %v13016_v37 = vld [vmem:[#allocation3 + $0x18] ss:$2 sm:$0x3]  ;;  %v13088_v42 = vld [vmem:[#allocation3 + $0x19] ss:$2 sm:$0x3] }
 0x729   : > { %v12828_v14 = vrot.slane %v12821_v2, %v27507_v17  ;;  %v12955_v35 = vrot.slane %v12948_v55, %v27507_v17  ;;  %v13019_v63 = vcombine.low %v13014_v60, %v13016_v37  ;;  %v13091_v28 = vcombine.low %v13086_v61, %v13088_v42  ;;  %v13160_v3 = vld [vmem:[#allocation3 + $0x1a] ss:$2 sm:$0x3]  ;;  %v13158_v8 = vld [vmem:[#allocation3 + $0xa] ss:$2 sm:$0x3] }
 0x72a   : > { %v12812_v6 = vrot.slane %v12805_v43, %v27507_v17  ;;  %v13537_v26 = vrot.slane %v13530_v23, %v27507_v17  ;;  %v13163_v56 = vcombine.low %v13158_v8, %v13160_v3  ;;  %v13669_v24 = vld [vmem:[#allocation3 + $0x1b] ss:$2 sm:$0x3]  ;;  %v13667_v32 = vld [vmem:[#allocation3 + $0xb] ss:$2 sm:$0x3] }
 0x72b   : > { %v12830_v41 = vpack.c.bf16 %v12828_v14, %v12828_v14  ;;  %v12957_v49 = vpack.c.bf16 %v12955_v35, %v12955_v35  ;;  %v13026_v58 = vrot.slane %v13019_v63, %v27507_v17  ;;  %v13098_v31 = vrot.slane %v13091_v28, %v27507_v17  ;;  %v13231_v7 = vld [vmem:[#allocation3 + $0x20] ss:$2 sm:$0x3]  ;;  %v13303_v15 = vld [vmem:[#allocation3 + $0x21] ss:$2 sm:$0x3] }
 0x72c   : > { %v12814_v52 = vpack.c.bf16 %v12812_v6, %v12812_v6  ;;  %v13539_v34 = vpack.c.bf16 %v13537_v26, %v13537_v26  ;;  %v13170_v29 = vrot.slane %v13163_v56, %v27507_v17  ;;  %v13672_v16 = vcombine.low %v13667_v32, %v13669_v24  ;;  %v13229_v12 = vld [vmem:[#allocation3 + $0x10] ss:$2 sm:$0x3]  ;;  %v13301_v62 = vld [vmem:[#allocation3 + $0x11] ss:$2 sm:$0x3] }
 0x72d   : > { %22121 = vmatmul.mubr.msk.bf16.vlgmr.msra.gmra.mrb[72].mxu0 %vm12843_vm10, %v12830_v41  ;;  %22193 = vmatmul.mubr.msk.bf16.vlgmr.msra.gmra.mrb[72].mxu1 %vm12843_vm10, %v12957_v49  ;;  %v27592_v11 = vpack.c.bf16 %v13026_v58, %v13026_v58  ;;  %v27594_v21 = vpack.c.bf16 %v13098_v31, %v13098_v31  ;;  %v13234_v47 = vcombine.low %v13229_v12, %v13231_v7  ;;  %v27680_v45 = vld [vmem:[%s28774_s5 + $0x70] sm:$0xff]   ;;  %v27695_v55 = vld [vmem:[%s28774_s5 + $0x78] sm:$0xff]   ;;  %v13373_v14 = vld [vmem:[#allocation3 + $0x12] ss:$2 sm:$0x3] }
 0x72e   : > { %22125 = vmatpush3.bf16.msra.mxu0 %v27514_v36  ;;  %22197 = vmatpush3.bf16.msra.mxu1 %v27514_v36  ;;  %v27623_v57 = vpack.c.bf16 %v13170_v29, %v13170_v29  ;;  %v13679_v25 = vrot.slane %v13672_v16, %v27507_v17  ;;  %v13306_v51 = vcombine.low %v13301_v62, %v13303_v15  ;;  %v13375_v2 = vld [vmem:[#allocation3 + $0x22] ss:$2 sm:$0x3]  ;;  %v13811_v30 = vld [vmem:[#allocation3 + $0x23] ss:$2 sm:$0x3] }
 0x72f   : > { %22126 = vmatprep.subr.bf16.mxu0 %v24542_v27  ;;  %22198 = vmatprep.subr.bf16.mxu1 %v24542_v27  ;;  %v13241_v48 = vrot.slane %v13234_v47, %v27507_v17  ;;  %v13378_v35 = vcombine.low %v13373_v14, %v13375_v2  ;;  %v27724_v43 = vld [vmem:[%s28774_s5 + $0x88] sm:$0xff]   ;;  %v13809_v6 = vld [vmem:[#allocation3 + $0x13] ss:$2 sm:$0x3]  ;;  %v27918_v3 = vld [vmem:[%s28776_s7 + $0x38] sm:$0xff]  }
 0x730   : > { %22128 = vmatprep.mubr.msk.bf16.mxu0 %vm24543_vm5, %v24542_v27  ;;  %22200 = vmatprep.mubr.msk.bf16.mxu1 %vm24543_vm5, %v24542_v27  ;;  %v27652_v10 = vpack.c.bf16 %v13679_v25, %v13679_v25  ;;  %v13313_v54 = vrot.slane %v13306_v51, %v27507_v17  ;;  %v14233_v37 = vld [vmem:[#allocation3 + $0x1a] ss:$2 sm:$0x3]  ;;  %v14235_v42 = vld [vmem:[#allocation3 + $0x2a] ss:$2 sm:$0x3] }
 0x731   : > { %v27682_v59 = vpack.c.bf16 %v13241_v48, %v13241_v48  ;;  %v14620_v63 = vld [vmem:[#allocation3 + $0x1b] ss:$2 sm:$0x3]  ;;  %v14622_v28 = vld [vmem:[#allocation3 + $0x2b] ss:$2 sm:$0x3] }
 0x732   : > { %22127 = vmatpush3.bf16.msra.mxu0 %v27523_v20  ;;  %22199 = vmatpush3.bf16.msra.mxu1 %v27523_v20  ;;  %v27684_v9 = vpack.c.bf16 %v13313_v54, %v13313_v54  ;;  %v14625_v58 = vcombine.low %v14620_v63, %v14622_v28  ;;  %v14917_v8 = vld [vmem:[#allocation4 + $0x2] ss:$2 sm:$0x1]  ;;  %v27951_v24 = vld [vmem:[%s28776_s7 + $0x10] sm:$0xff]   ;;  %v28002_v7 = vld [vmem:[%s28776_s7 + $0x58] sm:$0xff]  }
 0x733   : > { %22132 = vmatprep.subr.bf16.mxu0 %v24542_v27  ;;  %22204 = vmatprep.subr.bf16.mxu1 %v24542_v27  ;;  %v27927_v29 = vld [vmem:[%s28776_s7] sm:$0xff]   ;;  %v28030_v12 = vld [vmem:[%s28776_s7 + $0x70] sm:$0xff]   ;;  %v28037_v62 = vld [vmem:[%s28776_s7 + $0x78] sm:$0xff]  }
 0x734   : > { %v14632_v31 = vrot.slane %v14625_v58, %v27507_v17  ;;  %v14776_v32 = vld [vmem:[#allocation4] ss:$2 sm:$0x1]  ;;  %v15492_v47 = vld [vmem:[#allocation4 + $0x3] ss:$2 sm:$0x1] }
 0x735   : > { %v14777_v16 = vpack.c.bf16 %v14776_v32, %v14776_v32  ;;  %v27969_v25 = vld [vmem:[%s28776_s7 + $0x40] sm:$0xff]   ;;  %v15493_v51 = vpack.c.bf16 %v15492_v47, %v15492_v47  ;;  %v28136_v63 = vld [vmem:[%s28776_s7 + $0xb8] sm:$0xff]  }
 0x736   : > { %v28011_v15 = vld [vmem:[%s28776_s7 + $0x60] sm:$0xff]  }
 0x737   : > { %v14987_v48 = vld [vmem:[#allocation4 + $0x4] ss:$2 sm:$0x1] }
 0x738   : > { %v28058_v54 = vld [vmem:[%s28776_s7 + $0x80] sm:$0xff]  }
 0x739   : > { %22129 = vmatmul.mubr.msk.bf16.vlgmr.msra.gmra.mrb[72].mxu0 %vm12843_vm10, %v12814_v52  ;;  %22201 = vmatmul.mubr.msk.bf16.vlgmr.msra.gmra.mrb[72].mxu1 %vm12843_vm10, %v12830_v41  ;;  %v13385_v41 = vrot.slane %v13378_v35, %v27507_v17  ;;  %v13814_v52 = vcombine.low %v13809_v6, %v13811_v30  ;;  %v28090_v6 = vld [vmem:[%s28776_s7 + $0x98] sm:$0xff]   ;;  %v28145_v58 = vld [vmem:[%s28776_s7 + $0xc0] sm:$0xff]  }
 0x73a   : > { %22133 = vmatpush3.bf16.msra.mxu0 %v27539_v50  ;;  %22205 = vmatpush3.bf16.msra.mxu1 %v27539_v50  ;;  %v28195_v47 = vld [vmem:[%s28776_s7 + $0xe0] sm:$0xff]  }
 0x73b   : > { %22134 = vmatprep.subr.bf16.mxu0 %v24542_v27  ;;  %22206 = vmatprep.subr.bf16.mxu1 %v24542_v27  ;;  %v27713_v46 = vpack.c.bf16 %v13385_v41, %v13385_v41  ;;  %v13821_v0 = vrot.slane %v13814_v52, %v27507_v17  ;;  %v28081_v41 = vld [vmem:[%s28776_s7 + $0x90] sm:$0xff]  }
 0x73c   : > { %22136 = vmatprep.mubr.msk.bf16.mxu0 %vm24543_vm5, %v24542_v27  ;;  %22208 = vmatprep.mubr.msk.bf16.mxu1 %vm24543_vm5, %v24542_v27 }
 0x73d   : > { %v27737_v39 = vpack.c.bf16 %v13821_v0, %v13821_v0 }
 0x73e   : > { %22135 = vmatpush3.bf16.msra.mxu0 %v27548_v33  ;;  %22207 = vmatpush3.bf16.msra.mxu1 %v27548_v33 }
 0x73f   : > { %22140 = vmatprep.subr.bf16.mxu0 %v24542_v27  ;;  %22212 = vmatprep.subr.bf16.mxu1 %v24542_v27 }
 0x745   : > { %22137 = vmatmul.mubr.msk.bf16.vlgmr.msra.gmra.mrb[72].mxu0 %vm12843_vm10, %v12957_v49  ;;  %22209 = vmatmul.mubr.msk.bf16.vlgmr.msra.gmra.mrb[72].mxu1 %vm12843_vm10, %v13539_v34  ;;  %v27711_v49 = vld [vmem:[%s28774_s5 + $0x80] sm:$0xff]  }
 0x746   : > { %22141 = vmatpush3.bf16.msra.mxu0 %v27564_v13  ;;  %22213 = vmatpush3.bf16.msra.mxu1 %v27564_v13 }
 0x747   : > { %22142 = vmatprep.subr.bf16.mxu0 %v24542_v27  ;;  %22214 = vmatprep.subr.bf16.mxu1 %v24542_v27 }
 0x748   : > { %22144 = vmatprep.mubr.msk.bf16.mxu0 %vm24543_vm5, %v24542_v27  ;;  %22216 = vmatprep.mubr.msk.bf16.mxu1 %vm24543_vm5, %v24542_v27 }
 0x74a   : > { %22143 = vmatpush3.bf16.msra.mxu0 %v27571_v19  ;;  %22215 = vmatpush3.bf16.msra.mxu1 %v27571_v19 }
 0x74b   : > { %22148 = vmatprep.subr.bf16.mxu0 %v24542_v27  ;;  %22220 = vmatprep.subr.bf16.mxu1 %v24542_v27 }
 0x751   : > { %22145 = vmatmul.mubr.msk.bf16.vlgmr.msra.gmra.mrb[72].mxu0 %vm12843_vm10, %v27592_v11  ;;  %22217 = vmatmul.mubr.msk.bf16.vlgmr.msra.gmra.mrb[72].mxu1 %vm12843_vm10, %v27594_v21 }
 0x752   : > { %22149 = vmatpush3.bf16.msra.mxu0 %v27590_v4  ;;  %22221 = vmatpush3.bf16.msra.mxu1 %v27590_v4 }
 0x753   : > { %22150 = vmatprep.subr.bf16.mxu0 %v24542_v27  ;;  %22222 = vmatprep.subr.bf16.mxu1 %v24542_v27 }
 0x754   : > { %22152 = vmatprep.mubr.msk.bf16.mxu0 %vm24543_vm5, %v24542_v27  ;;  %22224 = vmatprep.mubr.msk.bf16.mxu1 %vm24543_vm5, %v24542_v27 }
 0x756   : > { %22151 = vmatpush3.bf16.msra.mxu0 %v27605_v38  ;;  %22223 = vmatpush3.bf16.msra.mxu1 %v27605_v38 }
 0x757   : > { %22156 = vmatprep.subr.bf16.mxu0 %v24542_v27  ;;  %22228 = vmatprep.subr.bf16.mxu1 %v24542_v27 }
 0x75d   : > { %22153 = vmatmul.mubr.msk.bf16.vlgmr.msra.gmra.mrb[72].mxu0 %vm12843_vm10, %v27594_v21  ;;  %22225 = vmatmul.mubr.msk.bf16.vlgmr.msra.gmra.mrb[72].mxu1 %vm12843_vm10, %v27623_v57 }
 0x75e   : > { %22157 = vmatpush3.bf16.msra.mxu0 %v27621_v18  ;;  %22229 = vmatpush3.bf16.msra.mxu1 %v27621_v18 }
 0x75f   : > { %22158 = vmatprep.subr.bf16.mxu0 %v24542_v27  ;;  %22230 = vmatprep.subr.bf16.mxu1 %v24542_v27 }
 0x760   : > { %22160 = vmatprep.mubr.msk.bf16.mxu0 %vm24543_vm5, %v24542_v27  ;;  %22232 = vmatprep.mubr.msk.bf16.mxu1 %vm24543_vm5, %v24542_v27 }
 0x762   : > { %22159 = vmatpush3.bf16.msra.mxu0 %v27634_v1  ;;  %22231 = vmatpush3.bf16.msra.mxu1 %v27634_v1 }
 0x763   : > { %22164 = vmatprep.subr.bf16.mxu0 %v24542_v27  ;;  %22236 = vmatprep.subr.bf16.mxu1 %v24542_v27 }
 0x769   : > { %22161 = vmatmul.mubr.msk.bf16.vlgmr.msra.gmra.mrb[72].mxu0 %vm12843_vm10, %v27623_v57  ;;  %22233 = vmatmul.mubr.msk.bf16.vlgmr.msra.gmra.mrb[72].mxu1 %vm12843_vm10, %v27652_v10 }
 0x76a   : > { %22165 = vmatpush3.bf16.msra.mxu0 %v27650_v53  ;;  %22237 = vmatpush3.bf16.msra.mxu1 %v27650_v53 }
 0x76b   : > { %22166 = vmatprep.subr.bf16.mxu0 %v24542_v27  ;;  %22238 = vmatprep.subr.bf16.mxu1 %v24542_v27 }
 0x76c   : > { %22168 = vmatprep.mubr.msk.bf16.mxu0 %vm24543_vm5, %v24542_v27  ;;  %22240 = vmatprep.mubr.msk.bf16.mxu1 %vm24543_vm5, %v24542_v27 }
 0x76e   : > { %22167 = vmatpush3.bf16.msra.mxu0 %v27661_v44  ;;  %22239 = vmatpush3.bf16.msra.mxu1 %v27661_v44 }
 0x76f   : > { %22172 = vmatprep.subr.bf16.mxu0 %v24542_v27  ;;  %22244 = vmatprep.subr.bf16.mxu1 %v24542_v27 }
 0x775   : > { %22169 = vmatmul.mubr.msk.bf16.vlgmr.msra.gmra.mrb[72].mxu0 %vm12843_vm10, %v27682_v59  ;;  %22241 = vmatmul.mubr.msk.bf16.vlgmr.msra.gmra.mrb[72].mxu1 %vm12843_vm10, %v27684_v9 }
 0x776   : > { %22173 = vmatpush3.bf16.msra.mxu0 %v27680_v45  ;;  %22245 = vmatpush3.bf16.msra.mxu1 %v27680_v45 }
 0x777   : > { %22174 = vmatprep.subr.bf16.mxu0 %v24542_v27  ;;  %22246 = vmatprep.subr.bf16.mxu1 %v24542_v27 }
 0x778   : > { %22176 = vmatprep.mubr.msk.bf16.mxu0 %vm24543_vm5, %v24542_v27  ;;  %22248 = vmatprep.mubr.msk.bf16.mxu1 %vm24543_vm5, %v24542_v27 }
 0x77a   : > { %22175 = vmatpush3.bf16.msra.mxu0 %v27695_v55  ;;  %22247 = vmatpush3.bf16.msra.mxu1 %v27695_v55 }
 0x77b   : > { %22180 = vmatprep.subr.bf16.mxu0 %v24542_v27  ;;  %22252 = vmatprep.subr.bf16.mxu1 %v24542_v27 }
 0x781   : > { %22177 = vmatmul.mubr.msk.bf16.vlgmr.msra.gmra.mrb[72].mxu0 %vm12843_vm10, %v27684_v9  ;;  %22249 = vmatmul.mubr.msk.bf16.vlgmr.msra.gmra.mrb[72].mxu1 %vm12843_vm10, %v27713_v46 }
 0x782   : > { %22181 = vmatpush3.bf16.msra.mxu0 %v27711_v49  ;;  %22253 = vmatpush3.bf16.msra.mxu1 %v27711_v49 }
 0x783   : > { %22182 = vmatprep.subr.bf16.mxu0 %v24542_v27  ;;  %22254 = vmatprep.subr.bf16.mxu1 %v24542_v27 }
 0x784   : > { %22184 = vmatprep.mubr.msk.bf16.mxu0 %vm24543_vm5, %v24542_v27  ;;  %22256 = vmatprep.mubr.msk.bf16.mxu1 %vm24543_vm5, %v24542_v27 }
 0x786   : > { %22183 = vmatpush3.bf16.msra.mxu0 %v27724_v43  ;;  %22255 = vmatpush3.bf16.msra.mxu1 %v27724_v43 }
 0x787   : > { %22260 = vmatprep.subr.bf16.mxu0 %v24542_v27  ;;  %22332 = vmatprep.subr.bf16.mxu1 %v24542_v27 }
 0x78d   : > { %22185 = vmatmul.mubr.msk.bf16.vlgmr.msra.gmra.mrb[72].mxu0 %vm12843_vm10, %v27713_v46  ;;  %22257 = vmatmul.mubr.msk.bf16.vlgmr.msra.gmra.mrb[72].mxu1 %vm12843_vm10, %v27737_v39 }
 0x78e   : > { %22261 = vmatpush3.bf16.msra.mxu0 %v27476_v5  ;;  %22333 = vmatpush3.bf16.msra.mxu1 %v27476_v5  ;;  %v14115_v5 = vld [vmem:[#allocation3 + $0x28] ss:$2 sm:$0x3] }
 0x78f   : > { %22262 = vmatprep.subr.bf16.mxu0 %v24542_v27  ;;  %22334 = vmatprep.subr.bf16.mxu1 %v24542_v27 }
 0x790   : > { %22264 = vmatprep.mubr.msk.bf16.mxu0 %vm24543_vm5, %v24542_v27  ;;  %22336 = vmatprep.mubr.msk.bf16.mxu1 %vm24543_vm5, %v24542_v27 }
 0x792   : > { %22263 = vmatpush3.bf16.msra.mxu0 %v27485_v22  ;;  %22335 = vmatpush3.bf16.msra.mxu1 %v27485_v22  ;;  %v14175_v22 = vld [vmem:[#allocation3 + $0x29] ss:$2 sm:$0x3] }
 0x793   : > { %22268 = vmatprep.subr.bf16.mxu0 %v24542_v27  ;;  %22340 = vmatprep.subr.bf16.mxu1 %v24542_v27 }
 0x795   : > { %22265 = vmatmul.mubr.msk.bf16.vlgmr.msra.gmra.mrb[76].mxu0 %vm12843_vm10, %v27594_v21  ;;  %22337 = vmatmul.mubr.msk.bf16.vlgmr.msra.gmra.mrb[76].mxu1 %vm12843_vm10, %v27623_v57 }
 0x796   : > { %22269 = vmatpush3.bf16.msra.mxu0 %v27514_v36  ;;  %22341 = vmatpush3.bf16.msra.mxu1 %v27514_v36  ;;  %v14113_v36 = vld [vmem:[#allocation3 + $0x18] ss:$2 sm:$0x3] }
 0x797   : > { %22270 = vmatprep.subr.bf16.mxu0 %v24542_v27  ;;  %22342 = vmatprep.subr.bf16.mxu1 %v24542_v27 }
 0x798   : > { %22272 = vmatprep.mubr.msk.bf16.mxu0 %vm24543_vm5, %v24542_v27  ;;  %22344 = vmatprep.mubr.msk.bf16.mxu1 %vm24543_vm5, %v24542_v27 }
 0x79a   : > { %22271 = vmatpush3.bf16.msra.mxu0 %v27523_v20  ;;  %22343 = vmatpush3.bf16.msra.mxu1 %v27523_v20  ;;  %v14173_v20 = vld [vmem:[#allocation3 + $0x19] ss:$2 sm:$0x3] }
 0x79b   : > { %22276 = vmatprep.subr.bf16.mxu0 %v24542_v27  ;;  %22348 = vmatprep.subr.bf16.mxu1 %v24542_v27 }
 0x7a1   : > { %22273 = vmatmul.mubr.msk.bf16.vlgmr.msra.gmra.mrb[76].mxu0 %vm12843_vm10, %v27592_v11  ;;  %22345 = vmatmul.mubr.msk.bf16.vlgmr.msra.gmra.mrb[76].mxu1 %vm12843_vm10, %v27594_v21  ;;  %v14634_v11 = vpack.c.bf16 %v14632_v31, %v14632_v31  ;;  %v27909_v21 = vld [vmem:[%s28776_s7 + $0x30] sm:$0xff]  }
 0x7a2   : > { %22277 = vmatpush3.bf16.msra.mxu0 %v27539_v50  ;;  %22349 = vmatpush3.bf16.msra.mxu1 %v27539_v50  ;;  %v14118_v50 = vcombine.low %v14113_v36, %v14115_v5  ;;  %v19520_v36 = vld [vmem:[%s28775_s6] ss:$0 sm:$0xff] }
 0x7a3   : > { %22278 = vmatprep.subr.bf16.mxu0 %v24542_v27  ;;  %22350 = vmatprep.subr.bf16.mxu1 %v24542_v27 }
 0x7a4   : > { %22280 = vmatprep.mubr.msk.bf16.mxu0 %vm24543_vm5, %v24542_v27  ;;  %22352 = vmatprep.mubr.msk.bf16.mxu1 %vm24543_vm5, %v24542_v27  ;;  %v14125_v23 = vrot.slane %v14118_v50, %v27507_v17 }
 0x7a6   : > { %22279 = vmatpush3.bf16.msra.mxu0 %v27548_v33  ;;  %22351 = vmatpush3.bf16.msra.mxu1 %v27548_v33  ;;  %v14178_v33 = vcombine.low %v14173_v20, %v14175_v22 }
 0x7a7   : > { %22284 = vmatprep.subr.bf16.mxu0 %v24542_v27  ;;  %22356 = vmatprep.subr.bf16.mxu1 %v24542_v27 }
 0x7a8   : > { %v14185_v26 = vrot.slane %v14178_v33, %v27507_v17 }
 0x7aa   : > { %v14187_v34 = vpack.c.bf16 %v14185_v26, %v14185_v26 }
 0x7ad   : > { %22281 = vmatmul.mubr.msk.bf16.vlgmr.msra.gmra.mrb[76].mxu0 %vm12843_vm10, %v27623_v57  ;;  %22353 = vmatmul.mubr.msk.bf16.vlgmr.msra.gmra.mrb[76].mxu1 %vm12843_vm10, %v27652_v10  ;;  %v27937_v57 = vld [vmem:[%s28776_s7 + $0x8] sm:$0xff]   ;;  %v27993_v10 = vld [vmem:[%s28776_s7 + $0x50] sm:$0xff]  }
 0x7ae   : > { %22285 = vmatpush3.bf16.msra.mxu0 %v27564_v13  ;;  %22357 = vmatpush3.bf16.msra.mxu1 %v27564_v13  ;;  %v14127_v13 = vpack.c.bf16 %v14125_v23, %v14125_v23 }
 0x7af   : > { %22286 = vmatprep.subr.bf16.mxu0 %v24542_v27  ;;  %22358 = vmatprep.subr.bf16.mxu1 %v24542_v27 }
 0x7b0   : > { %22288 = vmatprep.mubr.msk.bf16.mxu0 %vm24543_vm5, %v24542_v27  ;;  %22360 = vmatprep.mubr.msk.bf16.mxu1 %vm24543_vm5, %v24542_v27 }
 0x7b2   : > { %22287 = vmatpush3.bf16.msra.mxu0 %v27571_v19  ;;  %22359 = vmatpush3.bf16.msra.mxu1 %v27571_v19  ;;  %v14238_v19 = vcombine.low %v14233_v37, %v14235_v42  ;;  %v28101_v42 = vld [vmem:[%s28776_s7 + $0xa0] sm:$0xff]  }
 0x7b3   : > { %22292 = vmatprep.subr.bf16.mxu0 %v24542_v27  ;;  %22364 = vmatprep.subr.bf16.mxu1 %v24542_v27 }
 0x7b4   : > { %v14245_v60 = vrot.slane %v14238_v19, %v27507_v17  ;;  %v27896_v17 = vld [vmem:[%s28776_s7 + $0x28] sm:$0xff]  }
 0x7b6   : > { %v14247_v61 = vpack.c.bf16 %v14245_v60, %v14245_v60  ;;  %v28114_v60 = vld [vmem:[%s28776_s7 + $0xa8] sm:$0xff]  }
 0x7b9   : > { %22289 = vmatmul.mubr.msk.bf16.vlgmr.msra.gmra.mrb[76].mxu0 %vm12843_vm10, %v27682_v59  ;;  %22361 = vmatmul.mubr.msk.bf16.vlgmr.msra.gmra.mrb[76].mxu1 %vm12843_vm10, %v27684_v9  ;;  %v28070_v59 = vld [vmem:[%s28776_s7 + $0x88] sm:$0xff]  }
 0x7ba   : > { %22293 = vmatpush3.bf16.msra.mxu0 %v27590_v4  ;;  %22365 = vmatpush3.bf16.msra.mxu1 %v27590_v4  ;;  %v27888_v4 = vld [vmem:[%s28776_s7 + $0x20] sm:$0xff]  }
 0x7bb   : > { %22294 = vmatprep.subr.bf16.mxu0 %v24542_v27  ;;  %22366 = vmatprep.subr.bf16.mxu1 %v24542_v27 }
 0x7bc   : > { %22296 = vmatprep.mubr.msk.bf16.mxu0 %vm24543_vm5, %v24542_v27  ;;  %22368 = vmatprep.mubr.msk.bf16.mxu1 %vm24543_vm5, %v24542_v27 }
 0x7be   : > { %22295 = vmatpush3.bf16.msra.mxu0 %v27605_v38  ;;  %22367 = vmatpush3.bf16.msra.mxu1 %v27605_v38  ;;  %v14779_v38 = vld [vmem:[#allocation4 + $0x1] ss:$2 sm:$0x1] }
 0x7bf   : > { %22300 = vmatprep.subr.bf16.mxu0 %v24542_v27  ;;  %22372 = vmatprep.subr.bf16.mxu1 %v24542_v27  ;;  %v14780_v56 = vpack.c.bf16 %v14779_v38, %v14779_v38  ;;  %v28173_v38 = vld [vmem:[%s28776_s7 + $0xd0] sm:$0xff]  }
 0x7c5   : > { %22297 = vmatmul.mubr.msk.bf16.vlgmr.msra.gmra.mrb[76].mxu0 %vm12843_vm10, %v27684_v9  ;;  %22369 = vmatmul.mubr.msk.bf16.vlgmr.msra.gmra.mrb[76].mxu1 %vm12843_vm10, %v27713_v46 }
 0x7c6   : > { %22301 = vmatpush3.bf16.msra.mxu0 %v27621_v18  ;;  %22373 = vmatpush3.bf16.msra.mxu1 %v27621_v18  ;;  %v14918_v18 = vpack.c.bf16 %v14917_v8, %v14917_v8  ;;  %v28180_v8 = vld [vmem:[%s28776_s7 + $0xd8] sm:$0xff]  }
 0x7c7   : > { %22302 = vmatprep.subr.bf16.mxu0 %v24542_v27  ;;  %22374 = vmatprep.subr.bf16.mxu1 %v24542_v27 }
 0x7c8   : > { %22304 = vmatprep.mubr.msk.bf16.mxu0 %vm24543_vm5, %v24542_v27  ;;  %22376 = vmatprep.mubr.msk.bf16.mxu1 %vm24543_vm5, %v24542_v27 }
 0x7ca   : > { %22303 = vmatpush3.bf16.msra.mxu0 %v27634_v1  ;;  %22375 = vmatpush3.bf16.msra.mxu1 %v27634_v1  ;;  %v27960_v1 = vld [vmem:[%s28776_s7 + $0x18] sm:$0xff]  }
 0x7cb   : > { %22308 = vmatprep.subr.bf16.mxu0 %v24542_v27  ;;  %22380 = vmatprep.subr.bf16.mxu1 %v24542_v27 }
 0x7d1   : > { %22305 = vmatmul.mubr.msk.bf16.vlgmr.msra.gmra.mrb[76].mxu0 %vm12843_vm10, %v27713_v46  ;;  %22377 = vmatmul.mubr.msk.bf16.vlgmr.msra.gmra.mrb[76].mxu1 %vm12843_vm10, %v27737_v39 }
 0x7d2   : > { %22309 = vmatpush3.bf16.msra.mxu0 %v27650_v53  ;;  %22381 = vmatpush3.bf16.msra.mxu1 %v27650_v53  ;;  %v27979_v53 = vld [vmem:[%s28776_s7 + $0x48] sm:$0xff]  }
 0x7d3   : > { %22310 = vmatprep.subr.bf16.mxu0 %v24542_v27  ;;  %22382 = vmatprep.subr.bf16.mxu1 %v24542_v27 }
 0x7d4   : > { %22312 = vmatprep.mubr.msk.bf16.mxu0 %vm24543_vm5, %v24542_v27  ;;  %22384 = vmatprep.mubr.msk.bf16.mxu1 %vm24543_vm5, %v24542_v27 }
 0x7d6   : > { %22311 = vmatpush3.bf16.msra.mxu0 %v27661_v44  ;;  %22383 = vmatpush3.bf16.msra.mxu1 %v27661_v44  ;;  %v28021_v44 = vld [vmem:[%s28776_s7 + $0x68] sm:$0xff]  }
 0x7d7   : > { %22316 = vmatprep.subr.bf16.mxu0 %v24542_v27  ;;  %22388 = vmatprep.subr.bf16.mxu1 %v24542_v27 }
 0x7dd   : > { %22313 = vmatmul.mubr.msk.bf16.vlgmr.msra.gmra.mrb[76].mxu0 %vm12843_vm10, %v14127_v13  ;;  %22385 = vmatmul.mubr.msk.bf16.vlgmr.msra.gmra.mrb[76].mxu1 %vm12843_vm10, %v14187_v34 }
 0x7de   : > { %22317 = vmatpush3.bf16.msra.mxu0 %v27680_v45  ;;  %22389 = vmatpush3.bf16.msra.mxu1 %v27680_v45  ;;  %v28061_v45 = vpack.c.bf16 %v14987_v48, %v14987_v48  ;;  %v28221_v48 = vld [vmem:[%s28776_s7 + $0xf0] sm:$0xff]  }
 0x7df   : > { %22318 = vmatprep.subr.bf16.mxu0 %v24542_v27  ;;  %22390 = vmatprep.subr.bf16.mxu1 %v24542_v27 }
 0x7e0   : > { %22320 = vmatprep.mubr.msk.bf16.mxu0 %vm24543_vm5, %v24542_v27  ;;  %22392 = vmatprep.mubr.msk.bf16.mxu1 %vm24543_vm5, %v24542_v27 }
 0x7e2   : > { %22319 = vmatpush3.bf16.msra.mxu0 %v27695_v55  ;;  %22391 = vmatpush3.bf16.msra.mxu1 %v27695_v55 }
 0x7e3   : > { %22324 = vmatprep.subr.bf16.mxu0 %v24542_v27  ;;  %22396 = vmatprep.subr.bf16.mxu1 %v24542_v27 }
 0x7e9   : > { %22321 = vmatmul.mubr.msk.bf16.vlgmr.msra.gmra.mrb[76].mxu0 %vm12843_vm10, %v14187_v34  ;;  %22393 = vmatmul.mubr.msk.bf16.vlgmr.msra.gmra.mrb[76].mxu1 %vm12843_vm10, %v14247_v61 }
 0x7ea   : > { %22325 = vmatpush3.bf16.msra.mxu0 %v27711_v49  ;;  %22397 = vmatpush3.bf16.msra.mxu1 %v27711_v49 }
 0x7eb   : > { %22326 = vmatprep.subr.bf16.mxu0 %v24542_v27  ;;  %22398 = vmatprep.subr.bf16.mxu1 %v24542_v27 }
 0x7ec   : > { %22328 = vmatprep.mubr.msk.bf16.mxu0 %vm24543_vm5, %v24542_v27  ;;  %22400 = vmatprep.mubr.msk.bf16.mxu1 %vm24543_vm5, %v24542_v27 }
 0x7ee   : > { %22327 = vmatpush3.bf16.msra.mxu0 %v27724_v43  ;;  %22399 = vmatpush3.bf16.msra.mxu1 %v27724_v43 }
 0x7ef   : > { %22404 = vmatprep.subr.bf16.mxu0 %v24542_v27  ;;  %22512 = vmatprep.subr.bf16.mxu1 %v24542_v27 }
 0x7f5   : > { %22329 = vmatmul.mubr.msk.bf16.vlgmr.msra.gmra.mrb[76].mxu0 %vm12843_vm10, %v14247_v61  ;;  %22401 = vmatmul.mubr.msk.bf16.vlgmr.msra.gmra.mrb[76].mxu1 %vm12843_vm10, %v14634_v11  ;;  %v28127_v61 = vld [vmem:[%s28776_s7 + $0xb0] sm:$0xff]   ;;  %v28160_v11 = vld [vmem:[%s28776_s7 + $0xc8] sm:$0xff]  }
 0x7f6   : > { %22405 = vmatpush3.bf16.msra.mxu0 %v27888_v4  ;;  %22412 = vmatprep.mubr.msk.bf16.mxu0 %vm24543_vm5, %v24542_v27 }
 0x7f7   : > { %22406 = vmatprep.subr.bf16.mxu0 %v24542_v27  ;;  %22513 = vmatpush3.bf16.msra.mxu1 %v27888_v4 }
 0x7f8   : > { %22514 = vmatprep.subr.bf16.mxu1 %v24542_v27  ;;  %22520 = vmatprep.mubr.msk.bf16.mxu1 %vm24543_vm5, %v24542_v27 }
 0x7fa   : > { %22407 = vmatpush3.bf16.msra.mxu0 %v27896_v17 }
 0x7fb   : > { %22408 = vmatprep.subr.bf16.mxu0 %v24542_v27  ;;  %22515 = vmatpush3.bf16.msra.mxu1 %v27896_v17 }
 0x7fc   : > { %22516 = vmatprep.subr.bf16.mxu1 %v24542_v27 }
 0x7fe   : > { %22409 = vmatpush3.bf16.msra.mxu0 %v27909_v21 }
 0x7ff   : > { %22410 = vmatprep.subr.bf16.mxu0 %v24542_v27  ;;  %22517 = vmatpush3.bf16.msra.mxu1 %v27909_v21 }
 0x800   : > { %22518 = vmatprep.subr.bf16.mxu1 %v24542_v27 }
 0x802   : > { %22411 = vmatpush3.bf16.msra.mxu0 %v27918_v3 }
 0x803   : > { %22416 = vmatprep.subr.bf16.mxu0 %v24542_v27  ;;  %22519 = vmatpush3.bf16.msra.mxu1 %v27918_v3 }
 0x804   : > { %22524 = vmatprep.subr.bf16.mxu1 %v24542_v27 }
 0x805   : > { %22413 = vmatmul.mubr.msk.bf16.vlgmr.msra.gmra.mrb[80].mxu0 %vm14805_vm12, %v14780_v56 }
 0x806   : > { %22417 = vmatpush3.bf16.msra.mxu0 %v27927_v29  ;;  %22424 = vmatprep.mubr.msk.bf16.mxu0 %vm24543_vm5, %v24542_v27 }
 0x807   : > { %22418 = vmatprep.subr.bf16.mxu0 %v24542_v27  ;;  %22521 = vmatmul.mubr.msk.bf16.vlgmr.msra.gmra.mrb[80].mxu1 %vm14805_vm12, %v14918_v18 }
 0x808   : > { %22525 = vmatpush3.bf16.msra.mxu1 %v27927_v29  ;;  %22532 = vmatprep.mubr.msk.bf16.mxu1 %vm24543_vm5, %v24542_v27 }
 0x809   : > { %22526 = vmatprep.subr.bf16.mxu1 %v24542_v27 }
 0x80a   : > { %22419 = vmatpush3.bf16.msra.mxu0 %v27937_v57 }
 0x80b   : > { %22420 = vmatprep.subr.bf16.mxu0 %v24542_v27 }
 0x80c   : > { %22527 = vmatpush3.bf16.msra.mxu1 %v27937_v57 }
 0x80d   : > { %22528 = vmatprep.subr.bf16.mxu1 %v24542_v27 }
 0x80e   : > { %22421 = vmatpush3.bf16.msra.mxu0 %v27951_v24 }
 0x80f   : > { %22422 = vmatprep.subr.bf16.mxu0 %v24542_v27 }
 0x810   : > { %22529 = vmatpush3.bf16.msra.mxu1 %v27951_v24 }
 0x811   : > { %22530 = vmatprep.subr.bf16.mxu1 %v24542_v27 }
 0x812   : > { %22423 = vmatpush3.bf16.msra.mxu0 %v27960_v1 }
 0x813   : > { %22428 = vmatprep.subr.bf16.mxu0 %v24542_v27 }
 0x814   : > { %22531 = vmatpush3.bf16.msra.mxu1 %v27960_v1 }
 0x815   : > { %22425 = vmatmul.mubr.msk.bf16.vlgmr.msra.gmra.mrb[80].mxu0 %vm14805_vm12, %v14777_v16  ;;  %22536 = vmatprep.subr.bf16.mxu1 %v24542_v27 }
 0x816   : > { %22429 = vmatpush3.bf16.msra.mxu0 %v27969_v25  ;;  %22436 = vmatprep.mubr.msk.bf16.mxu0 %vm24543_vm5, %v24542_v27 }
 0x817   : > { %22430 = vmatprep.subr.bf16.mxu0 %v24542_v27  ;;  %22533 = vmatmul.mubr.msk.bf16.vlgmr.msra.gmra.mrb[80].mxu1 %vm14805_vm12, %v14780_v56  ;;  %v15199_v56 = vld [vmem:[#allocation4 + $0x8] ss:$2 sm:$0x1] }
 0x818   : > { %22537 = vmatpush3.bf16.msra.mxu1 %v27969_v25  ;;  %22544 = vmatprep.mubr.msk.bf16.mxu1 %vm24543_vm5, %v24542_v27  ;;  %v28186_v32 = vpack.c.bf16 %v15199_v56, %v15199_v56  ;;  %v24432_v56 = vld [vmem:[%s28778_s9 + $0xe4] ss:$16 sps:$4 sm:$0xff]  }
 0x819   : > { %22538 = vmatprep.subr.bf16.mxu1 %v24542_v27 }
 0x81a   : > { %22431 = vmatpush3.bf16.msra.mxu0 %v27979_v53 }
 0x81b   : > { %22432 = vmatprep.subr.bf16.mxu0 %v24542_v27 }
 0x81c   : > { %22539 = vmatpush3.bf16.msra.mxu1 %v27979_v53 }
 0x81d   : > { %22540 = vmatprep.subr.bf16.mxu1 %v24542_v27 }
 0x81e   : > { %22433 = vmatpush3.bf16.msra.mxu0 %v27993_v10 }
 0x81f   : > { %22434 = vmatprep.subr.bf16.mxu0 %v24542_v27 }
 0x820   : > { %22541 = vmatpush3.bf16.msra.mxu1 %v27993_v10 }
 0x821   : > { %22542 = vmatprep.subr.bf16.mxu1 %v24542_v27 }
 0x822   : > { %22435 = vmatpush3.bf16.msra.mxu0 %v28002_v7 }
 0x823   : > { %22440 = vmatprep.subr.bf16.mxu0 %v24542_v27 }
 0x824   : > { %22543 = vmatpush3.bf16.msra.mxu1 %v28002_v7 }
 0x825   : > { %22437 = vmatmul.mubr.msk.bf16.vlgmr.msra.gmra.mrb[80].mxu0 %vm14805_vm12, %v14918_v18  ;;  %22548 = vmatprep.subr.bf16.mxu1 %v24542_v27  ;;  %v15621_v18 = vld [vmem:[#allocation4 + $0x7] ss:$2 sm:$0x1] }
 0x826   : > { %22441 = vmatpush3.bf16.msra.mxu0 %v28011_v15  ;;  %22448 = vmatprep.mubr.msk.bf16.mxu0 %vm24543_vm5, %v24542_v27  ;;  %v28188_v16 = vpack.c.bf16 %v15621_v18, %v15621_v18  ;;  %v24435_v18 = vld [vmem:[%s28778_s9 + $0xec] ss:$16 sps:$4 sm:$0xff]  }
 0x827   : > { %22442 = vmatprep.subr.bf16.mxu0 %v24542_v27  ;;  %22545 = vmatmul.mubr.msk.bf16.vlgmr.msra.gmra.mrb[80].mxu1 %vm14805_vm12, %v15493_v51  ;;  %v28208_v51 = vld [vmem:[%s28776_s7 + $0xe8] sm:$0xff]  }
 0x828   : > { %22549 = vmatpush3.bf16.msra.mxu1 %v28011_v15  ;;  %22556 = vmatprep.mubr.msk.bf16.mxu1 %vm24543_vm5, %v24542_v27 }
 0x829   : > { %22550 = vmatprep.subr.bf16.mxu1 %v24542_v27 }
 0x82a   : > { %22443 = vmatpush3.bf16.msra.mxu0 %v28021_v44 }
 0x82b   : > { %22444 = vmatprep.subr.bf16.mxu0 %v24542_v27 }
 0x82c   : > { %22551 = vmatpush3.bf16.msra.mxu1 %v28021_v44 }
 0x82d   : > { %22552 = vmatprep.subr.bf16.mxu1 %v24542_v27 }
 0x82e   : > { %22445 = vmatpush3.bf16.msra.mxu0 %v28030_v12 }
 0x82f   : > { %22446 = vmatprep.subr.bf16.mxu0 %v24542_v27 }
 0x830   : > { %22553 = vmatpush3.bf16.msra.mxu1 %v28030_v12 }
 0x831   : > { %22554 = vmatprep.subr.bf16.mxu1 %v24542_v27 }
 0x832   : > { %22447 = vmatpush3.bf16.msra.mxu0 %v28037_v62 }
 0x833   : > { %22452 = vmatprep.subr.bf16.mxu0 %v24542_v27 }
 0x834   : > { %22555 = vmatpush3.bf16.msra.mxu1 %v28037_v62 }
 0x835   : > { %22449 = vmatmul.mubr.msk.bf16.vlgmr.msra.gmra.mrb[80].mxu0 %vm14805_vm12, %v28061_v45  ;;  %22560 = vmatprep.subr.bf16.mxu1 %v24542_v27 }
 0x836   : > { %22453 = vmatpush3.bf16.msra.mxu0 %v28058_v54  ;;  %22460 = vmatprep.mubr.msk.bf16.mxu0 %vm24543_vm5, %v24542_v27 }
 0x837   : > { %22454 = vmatprep.subr.bf16.mxu0 %v24542_v27 }
 0x83a   : > { %22455 = vmatpush3.bf16.msra.mxu0 %v28070_v59 }
 0x83b   : > { %22456 = vmatprep.subr.bf16.mxu0 %v24542_v27 }
 0x83e   : > { %22457 = vmatpush3.bf16.msra.mxu0 %v28081_v41 }
 0x83f   : > { %22458 = vmatprep.subr.bf16.mxu0 %v24542_v27 }
 0x842   : > { %22459 = vmatpush3.bf16.msra.mxu0 %v28090_v6 }
 0x843   : > { %22464 = vmatprep.subr.bf16.mxu0 %v24542_v27 }
 0x860   : > { %v13437_v9 = vpop.f32.mrb[72].mxu0  ;;  %v13861_v2 = vpop.f32.mrb[72].mxu1 }
 0x861   : > { %v13868_v55 = vmax.f32 %v13437_v9, %v13861_v2  ;;  %v22186_v14 = vpop.f32.mrb[73].mxu0  ;;  %v22258_v35 = vpop.f32.mrb[73].mxu1  ;;  %v28230_v9 = vld [vmem:[%s28776_s7 + $0xf8] sm:$0xff]  }
 0x862   : > { %v13440_v49 = vpop.f32.mrb[74].mxu0  ;;  %v13864_v46 = vpop.f32.mrb[74].mxu1  ;;  %v28254_v35 = vld [vmem:[%s28776_s7 + $0x108] sm:$0xff]  }
 0x863   : > { %v22187_v30 = vpop.f32.mrb[75].mxu0  ;;  %v22259_v43 = vpop.f32.mrb[75].mxu1  ;;  %v28267_v49 = vld [vmem:[%s28776_s7 + $0x110] sm:$0xff]   ;;  %v28276_v46 = vld [vmem:[%s28776_s7 + $0x118] sm:$0xff]  }
 0x8c8   : > { %v14285_v52 = vpop.f32.mrb[76].mxu0  ;;  %v14672_v0 = vpop.f32.mrb[76].mxu1 }
 0x8c9   : > { %v14292_v39 = vmax.f32 %v13868_v55, %v14285_v52  ;;  %v22330_v5 = vpop.f32.mrb[77].mxu0  ;;  %v22402_v22 = vpop.f32.mrb[77].mxu1  ;;  %v28239_v55 = vld [vmem:[%s28776_s7 + $0x100] sm:$0xff]   ;;  %v15750_v52 = vld [vmem:[#allocation4 + $0xb] ss:$2 sm:$0x1] }
 0x8ca   : > { %v14288_v20 = vpop.f32.mrb[78].mxu0  ;;  %v14675_v50 = vpop.f32.mrb[78].mxu1  ;;  %v24400_v5 = vld [vmem:[%s28778_s9 + $0x40] ss:$16 sps:$4 sm:$0xff]   ;;  %v24402_v22 = vld [vmem:[%s28778_s9 + $0x44] ss:$16 sps:$4 sm:$0xff]  }
 0x8cb   : > { %v14679_v33 = vmax.f32 %v14292_v39, %v14672_v0  ;;  %v22331_v23 = vpop.f32.mrb[79].mxu0  ;;  %v22403_v26 = vpop.f32.mrb[79].mxu1  ;;  %v28306_v0 = vpack.c.bf16 %v15750_v52, %v15750_v52  ;;  %v24403_v20 = vld [vmem:[%s28778_s9 + $0x48] ss:$16 sps:$4 sm:$0xff]   ;;  %v24405_v50 = vld [vmem:[%s28778_s9 + $0x4c] ss:$16 sps:$4 sm:$0xff]  }
 0x8cc   : > { %v24408_v23 = vld [vmem:[%s28778_s9 + $0x64] ss:$16 sps:$4 sm:$0xff]   ;;  %v24406_v26 = vld [vmem:[%s28778_s9 + $0x60] ss:$16 sps:$4 sm:$0xff]  }
 0x8cd   : > { %v14687_v13 = vadd.f32 %v19520_v36, %v14679_v33 }
 0x8cf   : > { %v14688_v34 = vmax.f32 %v14687_v13, 0.0  ;;  %v24411_v13 = vld [vmem:[%s28778_s9 + $0x6c] ss:$16 sps:$4 sm:$0xff]  }
 0x8d1   : > { %14697 = vst.msk [vmem:[#allocation4 + $0x5] sm:$0x3] %vm14696_vm14, %v14688_v34 }
 0x8d2   : > { %14702 = vst.msk [vmem:[#allocation4 + $0x7] sm:$0xc] %vm14701_vm15, %v14688_v34  ;;  %v24409_v34 = vld [vmem:[%s28778_s9 + $0x68] ss:$16 sps:$4 sm:$0xff]  }
 0x8d8   : > { %v15058_v37 = vld [vmem:[#allocation4 + $0x5] ss:$2 sm:$0x1]  ;;  %v15129_v28 = vld [vmem:[#allocation4 + $0x6] ss:$2 sm:$0x1] }
 0x8d9   : > { %v28103_v19 = vpack.c.bf16 %v15058_v37, %v15058_v37  ;;  %v28147_v31 = vpack.c.bf16 %v15129_v28, %v15129_v28  ;;  %v15270_v2 = vld [vmem:[#allocation4 + $0x9] ss:$2 sm:$0x1]  ;;  %v15341_v30 = vld [vmem:[#allocation4 + $0xa] ss:$2 sm:$0x1] }
 0x8da   : > { %v28241_v14 = vpack.c.bf16 %v15270_v2, %v15270_v2  ;;  %v28282_v43 = vpack.c.bf16 %v15341_v30, %v15341_v30  ;;  %v24414_v37 = vld [vmem:[%s28778_s9 + $0x84] ss:$16 sps:$4 sm:$0xff]   ;;  %v24418_v28 = vld [vmem:[%s28778_s9 + $0xa0] ss:$16 sps:$4 sm:$0xff]  }
 0x8db   : > { %22461 = vmatmul.mubr.msk.bf16.vlgmr.msra.gmra.mrb[80].mxu0 %vm14805_vm12, %v28103_v19  ;;  %22557 = vmatmul.mubr.msk.bf16.vlgmr.msra.gmra.mrb[80].mxu1 %vm14805_vm12, %v28103_v19 }
 0x8dc   : > { %22465 = vmatpush3.bf16.msra.mxu0 %v28101_v42  ;;  %22561 = vmatpush3.bf16.msra.mxu1 %v28058_v54 }
 0x8dd   : > { %22466 = vmatprep.subr.bf16.mxu0 %v24542_v27  ;;  %22562 = vmatprep.subr.bf16.mxu1 %v24542_v27 }
 0x8de   : > { %22472 = vmatprep.mubr.msk.bf16.mxu0 %vm24543_vm5, %v24542_v27  ;;  %22568 = vmatprep.mubr.msk.bf16.mxu1 %vm24543_vm5, %v24542_v27 }
 0x8e0   : > { %22467 = vmatpush3.bf16.msra.mxu0 %v28114_v60  ;;  %22563 = vmatpush3.bf16.msra.mxu1 %v28070_v59 }
 0x8e1   : > { %22468 = vmatprep.subr.bf16.mxu0 %v24542_v27  ;;  %22564 = vmatprep.subr.bf16.mxu1 %v24542_v27 }
 0x8e4   : > { %22469 = vmatpush3.bf16.msra.mxu0 %v28127_v61  ;;  %22565 = vmatpush3.bf16.msra.mxu1 %v28081_v41 }
 0x8e5   : > { %22470 = vmatprep.subr.bf16.mxu0 %v24542_v27  ;;  %22566 = vmatprep.subr.bf16.mxu1 %v24542_v27 }
 0x8e8   : > { %22471 = vmatpush3.bf16.msra.mxu0 %v28136_v63  ;;  %22567 = vmatpush3.bf16.msra.mxu1 %v28090_v6 }
 0x8e9   : > { %22476 = vmatprep.subr.bf16.mxu0 %v24542_v27  ;;  %22572 = vmatprep.subr.bf16.mxu1 %v24542_v27 }
 0x8eb   : > { %22473 = vmatmul.mubr.msk.bf16.vlgmr.msra.gmra.mrb[80].mxu0 %vm14805_vm12, %v28147_v31  ;;  %22569 = vmatmul.mubr.msk.bf16.vlgmr.msra.gmra.mrb[80].mxu1 %vm14805_vm12, %v28147_v31 }
 0x8ec   : > { %22477 = vmatpush3.bf16.msra.mxu0 %v28145_v58  ;;  %22573 = vmatpush3.bf16.msra.mxu1 %v28101_v42 }
 0x8ed   : > { %22478 = vmatprep.subr.bf16.mxu0 %v24542_v27  ;;  %22574 = vmatprep.subr.bf16.mxu1 %v24542_v27 }
 0x8ee   : > { %22484 = vmatprep.mubr.msk.bf16.mxu0 %vm24543_vm5, %v24542_v27  ;;  %22580 = vmatprep.mubr.msk.bf16.mxu1 %vm24543_vm5, %v24542_v27 }
 0x8f0   : > { %22479 = vmatpush3.bf16.msra.mxu0 %v28160_v11  ;;  %22575 = vmatpush3.bf16.msra.mxu1 %v28114_v60 }
 0x8f1   : > { %22480 = vmatprep.subr.bf16.mxu0 %v24542_v27  ;;  %22576 = vmatprep.subr.bf16.mxu1 %v24542_v27 }
 0x8f4   : > { %22481 = vmatpush3.bf16.msra.mxu0 %v28173_v38  ;;  %22577 = vmatpush3.bf16.msra.mxu1 %v28127_v61 }
 0x8f5   : > { %22482 = vmatprep.subr.bf16.mxu0 %v24542_v27  ;;  %22578 = vmatprep.subr.bf16.mxu1 %v24542_v27 }
 0x8f8   : > { %22483 = vmatpush3.bf16.msra.mxu0 %v28180_v8  ;;  %22579 = vmatpush3.bf16.msra.mxu1 %v28136_v63 }
 0x8f9   : > { %22488 = vmatprep.subr.bf16.mxu0 %v24542_v27  ;;  %22584 = vmatprep.subr.bf16.mxu1 %v24542_v27 }
 0x8fb   : > { %22485 = vmatmul.mubr.msk.bf16.vlgmr.msra.gmra.mrb[80].mxu0 %vm14805_vm12, %v28186_v32  ;;  %22581 = vmatmul.mubr.msk.bf16.vlgmr.msra.gmra.mrb[80].mxu1 %vm14805_vm12, %v28188_v16 }
 0x8fc   : > { %22489 = vmatpush3.bf16.msra.mxu0 %v28195_v47  ;;  %22585 = vmatpush3.bf16.msra.mxu1 %v28145_v58 }
 0x8fd   : > { %22490 = vmatprep.subr.bf16.mxu0 %v24542_v27  ;;  %22586 = vmatprep.subr.bf16.mxu1 %v24542_v27 }
 0x8fe   : > { %22496 = vmatprep.mubr.msk.bf16.mxu0 %vm24543_vm5, %v24542_v27  ;;  %22592 = vmatprep.mubr.msk.bf16.mxu1 %vm24543_vm5, %v24542_v27 }
 0x900   : > { %22491 = vmatpush3.bf16.msra.mxu0 %v28208_v51  ;;  %22587 = vmatpush3.bf16.msra.mxu1 %v28160_v11 }
 0x901   : > { %22492 = vmatprep.subr.bf16.mxu0 %v24542_v27  ;;  %22588 = vmatprep.subr.bf16.mxu1 %v24542_v27 }
 0x904   : > { %22493 = vmatpush3.bf16.msra.mxu0 %v28221_v48  ;;  %22589 = vmatpush3.bf16.msra.mxu1 %v28173_v38 }
 0x905   : > { %22494 = vmatprep.subr.bf16.mxu0 %v24542_v27  ;;  %22590 = vmatprep.subr.bf16.mxu1 %v24542_v27 }
 0x908   : > { %22495 = vmatpush3.bf16.msra.mxu0 %v28230_v9  ;;  %22591 = vmatpush3.bf16.msra.mxu1 %v28180_v8 }
 0x909   : > { %22500 = vmatprep.subr.bf16.mxu0 %v24542_v27  ;;  %22596 = vmatprep.subr.bf16.mxu1 %v24542_v27 }
 0x90b   : > { %22497 = vmatmul.mubr.msk.bf16.vlgmr.msra.gmra.mrb[80].mxu0 %vm14805_vm12, %v28241_v14  ;;  %22593 = vmatmul.mubr.msk.bf16.vlgmr.msra.gmra.mrb[80].mxu1 %vm14805_vm12, %v28241_v14 }
 0x90c   : > { %22501 = vmatpush3.bf16.msra.mxu0 %v28239_v55  ;;  %22597 = vmatpush3.bf16.msra.mxu1 %v28195_v47 }
 0x90d   : > { %22502 = vmatprep.subr.bf16.mxu0 %v24542_v27  ;;  %22598 = vmatprep.subr.bf16.mxu1 %v24542_v27 }
 0x90e   : > { %22508 = vmatprep.mubr.msk.bf16.mxu0 %vm24543_vm5, %v24542_v27  ;;  %22604 = vmatprep.mubr.msk.bf16.mxu1 %vm24543_vm5, %v24542_v27 }
 0x910   : > { %22503 = vmatpush3.bf16.msra.mxu0 %v28254_v35  ;;  %22599 = vmatpush3.bf16.msra.mxu1 %v28208_v51 }
 0x911   : > { %22504 = vmatprep.subr.bf16.mxu0 %v24542_v27  ;;  %22600 = vmatprep.subr.bf16.mxu1 %v24542_v27 }
 0x914   : > { %22505 = vmatpush3.bf16.msra.mxu0 %v28267_v49  ;;  %22601 = vmatpush3.bf16.msra.mxu1 %v28221_v48 }
 0x915   : > { %22506 = vmatprep.subr.bf16.mxu0 %v24542_v27  ;;  %22602 = vmatprep.subr.bf16.mxu1 %v24542_v27 }
 0x918   : > { %22507 = vmatpush3.bf16.msra.mxu0 %v28276_v46  ;;  %22603 = vmatpush3.bf16.msra.mxu1 %v28230_v9 }
 0x919   : > { %22608 = vmatprep.subr.bf16.mxu1 %v24542_v27  ;;  %22620 = vmatprep.subr.bf16.mxu0 %v24542_v27 }
 0x91b   : > { %22509 = vmatmul.mubr.msk.bf16.vlgmr.msra.gmra.mrb[80].mxu0 %vm14805_vm12, %v28282_v43  ;;  %22605 = vmatmul.mubr.msk.bf16.vlgmr.msra.gmra.mrb[80].mxu1 %vm14805_vm12, %v28282_v43 }
 0x91c   : > { %22609 = vmatpush3.bf16.msra.mxu1 %v28239_v55  ;;  %22621 = vmatpush3.bf16.msra.mxu0 %v27888_v4 }
 0x91d   : > { %22610 = vmatprep.subr.bf16.mxu1 %v24542_v27  ;;  %22622 = vmatprep.subr.bf16.mxu0 %v24542_v27 }
 0x91e   : > { %22616 = vmatprep.mubr.msk.bf16.mxu1 %vm24543_vm5, %v24542_v27  ;;  %22628 = vmatprep.mubr.msk.bf16.mxu0 %vm24543_vm5, %v24542_v27 }
 0x920   : > { %22611 = vmatpush3.bf16.msra.mxu1 %v28254_v35  ;;  %22623 = vmatpush3.bf16.msra.mxu0 %v27896_v17 }
 0x921   : > { %22612 = vmatprep.subr.bf16.mxu1 %v24542_v27  ;;  %22624 = vmatprep.subr.bf16.mxu0 %v24542_v27 }
 0x924   : > { %22613 = vmatpush3.bf16.msra.mxu1 %v28267_v49  ;;  %22625 = vmatpush3.bf16.msra.mxu0 %v27909_v21 }
 0x925   : > { %22614 = vmatprep.subr.bf16.mxu1 %v24542_v27  ;;  %22626 = vmatprep.subr.bf16.mxu0 %v24542_v27 }
 0x928   : > { %22615 = vmatpush3.bf16.msra.mxu1 %v28276_v46  ;;  %22627 = vmatpush3.bf16.msra.mxu0 %v27918_v3 }
 0x929   : > { %22632 = vmatprep.subr.bf16.mxu0 %v24542_v27  ;;  %22728 = vmatprep.subr.bf16.mxu1 %v24542_v27 }
 0x92b   : > { %22617 = vmatmul.mubr.msk.bf16.vlgmr.msra.gmra.mrb[80].mxu1 %vm14805_vm12, %v28306_v0  ;;  %22629 = vmatmul.mubr.msk.bf16.vlgmr.msra.gmra.mrb[84].mxu0 %vm14805_vm12, %v28103_v19 }
 0x92c   : > { %22633 = vmatpush3.bf16.msra.mxu0 %v27927_v29  ;;  %22729 = vmatpush3.bf16.msra.mxu1 %v27888_v4  ;;  %v16041_v4 = vld [vmem:[#allocation4 + $0xc] ss:$2 sm:$0x1] }
 0x92d   : > { %22634 = vmatprep.subr.bf16.mxu0 %v24542_v27  ;;  %22730 = vmatprep.subr.bf16.mxu1 %v24542_v27 }
 0x92e   : > { %22736 = vmatprep.mubr.msk.bf16.mxu1 %vm24543_vm5, %v24542_v27  ;;  %22640 = vmatprep.mubr.msk.bf16.mxu0 %vm24543_vm5, %v24542_v27 }
 0x930   : > { %22635 = vmatpush3.bf16.msra.mxu0 %v27937_v57  ;;  %22731 = vmatpush3.bf16.msra.mxu1 %v27896_v17  ;;  %v16042_v17 = vpack.c.bf16 %v16041_v4, %v16041_v4 }
 0x931   : > { %22636 = vmatprep.subr.bf16.mxu0 %v24542_v27  ;;  %22732 = vmatprep.subr.bf16.mxu1 %v24542_v27 }
 0x934   : > { %22637 = vmatpush3.bf16.msra.mxu0 %v27951_v24  ;;  %22733 = vmatpush3.bf16.msra.mxu1 %v27909_v21  ;;  %v16088_v21 = vld [vmem:[#allocation4 + $0xd] ss:$2 sm:$0x1] }
 0x935   : > { %22638 = vmatprep.subr.bf16.mxu0 %v24542_v27  ;;  %22734 = vmatprep.subr.bf16.mxu1 %v24542_v27 }
 0x938   : > { %22639 = vmatpush3.bf16.msra.mxu0 %v27960_v1  ;;  %22735 = vmatpush3.bf16.msra.mxu1 %v27918_v3  ;;  %v16089_v3 = vpack.c.bf16 %v16088_v21, %v16088_v21  ;;  %v24438_v21 = vld [vmem:[%s28780_s11] sm:$0xff]  }
 0x939   : > { %22644 = vmatprep.subr.bf16.mxu0 %v24542_v27  ;;  %22740 = vmatprep.subr.bf16.mxu1 %v24542_v27 }
 0x93b   : > { %22737 = vmatmul.mubr.msk.bf16.vlgmr.msra.gmra.mrb[84].mxu1 %vm14805_vm12, %v28147_v31  ;;  %22641 = vmatmul.mubr.msk.bf16.vlgmr.msra.gmra.mrb[84].mxu0 %vm14805_vm12, %v28061_v45 }
 0x93c   : > { %22645 = vmatpush3.bf16.msra.mxu0 %v27969_v25  ;;  %22741 = vmatpush3.bf16.msra.mxu1 %v27927_v29  ;;  %v16135_v29 = vld [vmem:[#allocation4 + $0xe] ss:$2 sm:$0x1] }
 0x93d   : > { %22646 = vmatprep.subr.bf16.mxu0 %v24542_v27  ;;  %22742 = vmatprep.subr.bf16.mxu1 %v24542_v27 }
 0x93e   : > { %22652 = vmatprep.mubr.msk.bf16.mxu0 %vm24543_vm5, %v24542_v27  ;;  %22748 = vmatprep.mubr.msk.bf16.mxu1 %vm24543_vm5, %v24542_v27 }
 0x940   : > { %22647 = vmatpush3.bf16.msra.mxu0 %v27979_v53  ;;  %22743 = vmatpush3.bf16.msra.mxu1 %v27937_v57  ;;  %v24390_v57 = vld [vmem:[%s28778_s9 + $0x4] ss:$16 sps:$4 sm:$0xff]  }
 0x941   : > { %22648 = vmatprep.subr.bf16.mxu0 %v24542_v27  ;;  %22744 = vmatprep.subr.bf16.mxu1 %v24542_v27 }
 0x944   : > { %22649 = vmatpush3.bf16.msra.mxu0 %v27993_v10  ;;  %22745 = vmatpush3.bf16.msra.mxu1 %v27951_v24  ;;  %v16136_v24 = vpack.c.bf16 %v16135_v29, %v16135_v29 }
 0x945   : > { %22650 = vmatprep.subr.bf16.mxu0 %v24542_v27  ;;  %22746 = vmatprep.subr.bf16.mxu1 %v24542_v27 }
 0x948   : > { %22651 = vmatpush3.bf16.msra.mxu0 %v28002_v7  ;;  %22747 = vmatpush3.bf16.msra.mxu1 %v27960_v1  ;;  %v24388_v1 = vld [vmem:[%s28778_s9] ss:$16 sps:$4 sm:$0xff]  }
 0x949   : > { %22656 = vmatprep.subr.bf16.mxu0 %v24542_v27  ;;  %22752 = vmatprep.subr.bf16.mxu1 %v24542_v27 }
 0x94b   : > { %22653 = vmatmul.mubr.msk.bf16.vlgmr.msra.gmra.mrb[84].mxu0 %vm14805_vm12, %v28147_v31  ;;  %22749 = vmatmul.mubr.msk.bf16.vlgmr.msra.gmra.mrb[84].mxu1 %vm14805_vm12, %v28103_v19  ;;  %v24412_v19 = vld [vmem:[%s28778_s9 + $0x80] ss:$16 sps:$4 sm:$0xff]  }
 0x94c   : > { %22657 = vmatpush3.bf16.msra.mxu0 %v28011_v15  ;;  %22753 = vmatpush3.bf16.msra.mxu1 %v27969_v25  ;;  %v24396_v25 = vld [vmem:[%s28778_s9 + $0x24] ss:$16 sps:$4 sm:$0xff]   ;;  %v24424_v31 = vld [vmem:[%s28778_s9 + $0xc0] ss:$16 sps:$4 sm:$0xff]  }
 0x94d   : > { %22658 = vmatprep.subr.bf16.mxu0 %v24542_v27  ;;  %22754 = vmatprep.subr.bf16.mxu1 %v24542_v27 }
 0x94e   : > { %22664 = vmatprep.mubr.msk.bf16.mxu0 %vm24543_vm5, %v24542_v27  ;;  %22760 = vmatprep.mubr.msk.bf16.mxu1 %vm24543_vm5, %v24542_v27 }
 0x950   : > { %22659 = vmatpush3.bf16.msra.mxu0 %v28021_v44  ;;  %22755 = vmatpush3.bf16.msra.mxu1 %v27979_v53  ;;  %v24394_v53 = vld [vmem:[%s28778_s9 + $0x20] ss:$16 sps:$4 sm:$0xff]  }
 0x951   : > { %22660 = vmatprep.subr.bf16.mxu0 %v24542_v27  ;;  %22756 = vmatprep.subr.bf16.mxu1 %v24542_v27 }
 0x954   : > { %22661 = vmatpush3.bf16.msra.mxu0 %v28030_v12  ;;  %22757 = vmatpush3.bf16.msra.mxu1 %v27993_v10  ;;  %v16509_v10 = vld [vmem:[#allocation4 + $0xf] ss:$2 sm:$0x1] }
 0x955   : > { %22662 = vmatprep.subr.bf16.mxu0 %v24542_v27  ;;  %22758 = vmatprep.subr.bf16.mxu1 %v24542_v27 }
 0x958   : > { %22663 = vmatpush3.bf16.msra.mxu0 %v28037_v62  ;;  %22759 = vmatpush3.bf16.msra.mxu1 %v28002_v7  ;;  %v24393_v7 = vld [vmem:[%s28778_s9 + $0xc] ss:$16 sps:$4 sm:$0xff]  }
 0x959   : > { %22668 = vmatprep.subr.bf16.mxu0 %v24542_v27  ;;  %22764 = vmatprep.subr.bf16.mxu1 %v24542_v27 }
 0x95b   : > { %22665 = vmatmul.mubr.msk.bf16.vlgmr.msra.gmra.mrb[84].mxu0 %vm14805_vm12, %v28186_v32  ;;  %22761 = vmatmul.mubr.msk.bf16.vlgmr.msra.gmra.mrb[84].mxu1 %vm14805_vm12, %v28188_v16  ;;  %v24430_v32 = vld [vmem:[%s28778_s9 + $0xe0] ss:$16 sps:$4 sm:$0xff]   ;;  %v24433_v16 = vld [vmem:[%s28778_s9 + $0xe8] ss:$16 sps:$4 sm:$0xff]  }
 0x95c   : > { %22669 = vmatpush3.bf16.msra.mxu0 %v28058_v54  ;;  %22765 = vmatpush3.bf16.msra.mxu1 %v28011_v15  ;;  %v16510_v15 = vpack.c.bf16 %v16509_v10, %v16509_v10  ;;  %v24445_v10 = vld [vmem:[%s28780_s11 + $0xd0] sm:$0xff]  }
 0x95d   : > { %22670 = vmatprep.subr.bf16.mxu0 %v24542_v27  ;;  %22766 = vmatprep.subr.bf16.mxu1 %v24542_v27 }
 0x95e   : > { %22676 = vmatprep.mubr.msk.bf16.mxu0 %vm24543_vm5, %v24542_v27  ;;  %22772 = vmatprep.mubr.msk.bf16.mxu1 %vm24543_vm5, %v24542_v27 }
 0x960   : > { %22671 = vmatpush3.bf16.msra.mxu0 %v28070_v59  ;;  %22767 = vmatpush3.bf16.msra.mxu1 %v28021_v44  ;;  %v24391_v44 = vld [vmem:[%s28778_s9 + $0x8] ss:$16 sps:$4 sm:$0xff]  }
 0x961   : > { %22672 = vmatprep.subr.bf16.mxu0 %v24542_v27  ;;  %22768 = vmatprep.subr.bf16.mxu1 %v24542_v27 }
 0x964   : > { %22673 = vmatpush3.bf16.msra.mxu0 %v28081_v41  ;;  %22769 = vmatpush3.bf16.msra.mxu1 %v28030_v12  ;;  %v24399_v12 = vld [vmem:[%s28778_s9 + $0x2c] ss:$16 sps:$4 sm:$0xff]  }
 0x965   : > { %22674 = vmatprep.subr.bf16.mxu0 %v24542_v27  ;;  %22770 = vmatprep.subr.bf16.mxu1 %v24542_v27 }
 0x968   : > { %22675 = vmatpush3.bf16.msra.mxu0 %v28090_v6  ;;  %22771 = vmatpush3.bf16.msra.mxu1 %v28037_v62 }
 0x969   : > { %22680 = vmatprep.subr.bf16.mxu0 %v24542_v27  ;;  %22776 = vmatprep.subr.bf16.mxu1 %v24542_v27 }
 0x96b   : > { %22677 = vmatmul.mubr.msk.bf16.vlgmr.msra.gmra.mrb[84].mxu0 %vm14805_vm12, %v28241_v14  ;;  %22773 = vmatmul.mubr.msk.bf16.vlgmr.msra.gmra.mrb[84].mxu1 %vm14805_vm12, %v28241_v14 }
 0x96c   : > { %22681 = vmatpush3.bf16.msra.mxu0 %v28101_v42  ;;  %22777 = vmatpush3.bf16.msra.mxu1 %v28058_v54 }
 0x96d   : > { %22682 = vmatprep.subr.bf16.mxu0 %v24542_v27  ;;  %22778 = vmatprep.subr.bf16.mxu1 %v24542_v27 }
 0x96e   : > { %22688 = vmatprep.mubr.msk.bf16.mxu0 %vm24543_vm5, %v24542_v27  ;;  %22784 = vmatprep.mubr.msk.bf16.mxu1 %vm24543_vm5, %v24542_v27 }
 0x970   : > { %22683 = vmatpush3.bf16.msra.mxu0 %v28114_v60  ;;  %22779 = vmatpush3.bf16.msra.mxu1 %v28070_v59 }
 0x971   : > { %22684 = vmatprep.subr.bf16.mxu0 %v24542_v27  ;;  %22780 = vmatprep.subr.bf16.mxu1 %v24542_v27 }
 0x974   : > { %22685 = vmatpush3.bf16.msra.mxu0 %v28127_v61  ;;  %22781 = vmatpush3.bf16.msra.mxu1 %v28081_v41 }
 0x975   : > { %22686 = vmatprep.subr.bf16.mxu0 %v24542_v27  ;;  %22782 = vmatprep.subr.bf16.mxu1 %v24542_v27 }
 0x978   : > { %22687 = vmatpush3.bf16.msra.mxu0 %v28136_v63  ;;  %22783 = vmatpush3.bf16.msra.mxu1 %v28090_v6 }
 0x979   : > { %22692 = vmatprep.subr.bf16.mxu0 %v24542_v27  ;;  %22788 = vmatprep.subr.bf16.mxu1 %v24542_v27 }
 0x97b   : > { %22689 = vmatmul.mubr.msk.bf16.vlgmr.msra.gmra.mrb[84].mxu0 %vm14805_vm12, %v28282_v43  ;;  %22785 = vmatmul.mubr.msk.bf16.vlgmr.msra.gmra.mrb[84].mxu1 %vm14805_vm12, %v28282_v43 }
 0x97c   : > { %22693 = vmatpush3.bf16.msra.mxu0 %v28145_v58  ;;  %22789 = vmatpush3.bf16.msra.mxu1 %v28101_v42  ;;  %v24417_v42 = vld [vmem:[%s28778_s9 + $0x8c] ss:$16 sps:$4 sm:$0xff]  }
 0x97d   : > { %22694 = vmatprep.subr.bf16.mxu0 %v24542_v27  ;;  %22790 = vmatprep.subr.bf16.mxu1 %v24542_v27 }
 0x97e   : > { %22700 = vmatprep.mubr.msk.bf16.mxu0 %vm24543_vm5, %v24542_v27  ;;  %22796 = vmatprep.mubr.msk.bf16.mxu1 %vm24543_vm5, %v24542_v27 }
 0x980   : > { %22695 = vmatpush3.bf16.msra.mxu0 %v28160_v11  ;;  %22791 = vmatpush3.bf16.msra.mxu1 %v28114_v60  ;;  %v24415_v60 = vld [vmem:[%s28778_s9 + $0x88] ss:$16 sps:$4 sm:$0xff]  }
 0x981   : > { %22696 = vmatprep.subr.bf16.mxu0 %v24542_v27  ;;  %22792 = vmatprep.subr.bf16.mxu1 %v24542_v27 }
 0x984   : > { %22697 = vmatpush3.bf16.msra.mxu0 %v28173_v38  ;;  %22793 = vmatpush3.bf16.msra.mxu1 %v28127_v61  ;;  %v24420_v61 = vld [vmem:[%s28778_s9 + $0xa4] ss:$16 sps:$4 sm:$0xff]  }
 0x985   : > { %22698 = vmatprep.subr.bf16.mxu0 %v24542_v27  ;;  %22794 = vmatprep.subr.bf16.mxu1 %v24542_v27 }
 0x988   : > { %22699 = vmatpush3.bf16.msra.mxu0 %v28180_v8  ;;  %22795 = vmatpush3.bf16.msra.mxu1 %v28136_v63  ;;  %v24423_v63 = vld [vmem:[%s28778_s9 + $0xac] ss:$16 sps:$4 sm:$0xff]  }
 0x989   : > { %22704 = vmatprep.subr.bf16.mxu0 %v24542_v27  ;;  %22800 = vmatprep.subr.bf16.mxu1 %v24542_v27 }
 0x98b   : > { %22701 = vmatmul.mubr.msk.bf16.vlgmr.msra.gmra.mrb[84].mxu0 %vm14805_vm12, %v16042_v17  ;;  %22797 = vmatmul.mubr.msk.bf16.vlgmr.msra.gmra.mrb[84].mxu1 %vm14805_vm12, %v28306_v0 }
 0x98c   : > { %22705 = vmatpush3.bf16.msra.mxu0 %v28195_v47  ;;  %22801 = vmatpush3.bf16.msra.mxu1 %v28145_v58  ;;  %v24421_v58 = vld [vmem:[%s28778_s9 + $0xa8] ss:$16 sps:$4 sm:$0xff]  }
 0x98d   : > { %22706 = vmatprep.subr.bf16.mxu0 %v24542_v27  ;;  %22802 = vmatprep.subr.bf16.mxu1 %v24542_v27 }
 0x98e   : > { %22712 = vmatprep.mubr.msk.bf16.mxu0 %vm24543_vm5, %v24542_v27  ;;  %22808 = vmatprep.mubr.msk.bf16.mxu1 %vm24543_vm5, %v24542_v27 }
 0x990   : > { %22707 = vmatpush3.bf16.msra.mxu0 %v28208_v51  ;;  %22803 = vmatpush3.bf16.msra.mxu1 %v28160_v11  ;;  %v24426_v11 = vld [vmem:[%s28778_s9 + $0xc4] ss:$16 sps:$4 sm:$0xff]  }
 0x991   : > { %22708 = vmatprep.subr.bf16.mxu0 %v24542_v27  ;;  %22804 = vmatprep.subr.bf16.mxu1 %v24542_v27 }
 0x994   : > { %22709 = vmatpush3.bf16.msra.mxu0 %v28221_v48  ;;  %22805 = vmatpush3.bf16.msra.mxu1 %v28173_v38  ;;  %v24427_v38 = vld [vmem:[%s28778_s9 + $0xc8] ss:$16 sps:$4 sm:$0xff]  }
 0x995   : > { %22710 = vmatprep.subr.bf16.mxu0 %v24542_v27  ;;  %22806 = vmatprep.subr.bf16.mxu1 %v24542_v27 }
 0x998   : > { %22711 = vmatpush3.bf16.msra.mxu0 %v28230_v9  ;;  %22807 = vmatpush3.bf16.msra.mxu1 %v28180_v8  ;;  %v24429_v8 = vld [vmem:[%s28778_s9 + $0xcc] ss:$16 sps:$4 sm:$0xff]  }
 0x999   : > { %22716 = vmatprep.subr.bf16.mxu0 %v24542_v27  ;;  %22812 = vmatprep.subr.bf16.mxu1 %v24542_v27 }
 0x99b   : > { %22713 = vmatmul.mubr.msk.bf16.vlgmr.msra.gmra.mrb[84].mxu0 %vm14805_vm12, %v16089_v3  ;;  %22809 = vmatmul.mubr.msk.bf16.vlgmr.msra.gmra.mrb[84].mxu1 %vm14805_vm12, %v16089_v3  ;;  %v24439_v3 = vld [vmem:[%s28780_s11 + $0x80] sm:$0xff]  }
 0x99c   : > { %22717 = vmatpush3.bf16.msra.mxu0 %v28239_v55  ;;  %22813 = vmatpush3.bf16.msra.mxu1 %v28195_v47  ;;  %v24436_v47 = vld [vmem:[%s28780_s11 + $0x40] sm:$0xff]  }
 0x99d   : > { %22718 = vmatprep.subr.bf16.mxu0 %v24542_v27  ;;  %22814 = vmatprep.subr.bf16.mxu1 %v24542_v27 }
 0x99e   : > { %22724 = vmatprep.mubr.msk.bf16.mxu0 %vm24543_vm5, %v24542_v27  ;;  %22820 = vmatprep.mubr.msk.bf16.mxu1 %vm24543_vm5, %v24542_v27 }
 0x9a0   : > { %22719 = vmatpush3.bf16.msra.mxu0 %v28254_v35  ;;  %22815 = vmatpush3.bf16.msra.mxu1 %v28208_v51  ;;  %v24545_v51 = vmov 0  }
 0x9a1   : > { %22720 = vmatprep.subr.bf16.mxu0 %v24542_v27  ;;  %22816 = vmatprep.subr.bf16.mxu1 %v24542_v27 }
 0x9a4   : > { %22721 = vmatpush3.bf16.msra.mxu0 %v28267_v49  ;;  %22817 = vmatpush3.bf16.msra.mxu1 %v28221_v48  ;;  %v24437_v48 = vld [vmem:[%s28780_s11 + $0xc0] sm:$0xff]  }
 0x9a5   : > { %22722 = vmatprep.subr.bf16.mxu0 %v24542_v27  ;;  %22818 = vmatprep.subr.bf16.mxu1 %v24542_v27 }
 0x9a8   : > { %22723 = vmatpush3.bf16.msra.mxu0 %v28276_v46  ;;  %22819 = vmatpush3.bf16.msra.mxu1 %v28230_v9 }
 0x9a9   : > { %22824 = vmatprep.subr.bf16.mxu1 %v24542_v27  ;;  %16753 = vmatprep.subr.bf16.mxu0 %v24390_v57  ;;  %v24440_v57 = vld [vmem:[%s28780_s11 + $0x48] sm:$0xff]  }
 0x9ab   : > { %22725 = vmatmul.mubr.msk.bf16.vlgmr.msra.gmra.mrb[84].mxu0 %vm14805_vm12, %v16136_v24  ;;  %22821 = vmatmul.mubr.msk.bf16.vlgmr.msra.gmra.mrb[84].mxu1 %vm14805_vm12, %v16136_v24  ;;  %v24441_v24 = vld [vmem:[%s28780_s11 + $0xc8] sm:$0xff]  }
 0x9ac   : > { %22825 = vmatpush3.bf16.msra.mxu1 %v28239_v55  ;;  %22832 = vmatprep.mubr.msk.bf16.mxu1 %vm24543_vm5, %v24542_v27 }
 0x9ad   : > { %22826 = vmatprep.subr.bf16.mxu1 %v24542_v27  ;;  %16754 = vmatpush1.bf16.msra.mxu0 %v24388_v1  ;;  %v24442_v1 = vld [vmem:[%s28780_s11 + $0x8] sm:$0xff]  }
 0x9ae   : > { %16755 = vmatprep.subr.bf16.mxu0 %v24396_v25  ;;  %16785 = vmatprep.mubr.bf16.mxu0 %v24545_v51  ;;  %v24443_v25 = vld [vmem:[%s28780_s11 + $0x88] sm:$0xff]  }
 0x9b0   : > { %22827 = vmatpush3.bf16.msra.mxu1 %v28254_v35 }
 0x9b1   : > { %22828 = vmatprep.subr.bf16.mxu1 %v24542_v27  ;;  %16756 = vmatpush1.bf16.msra.mxu0 %v24394_v53  ;;  %v24444_v53 = vld [vmem:[%s28780_s11 + $0x50] sm:$0xff]  }
 0x9b2   : > { %16757 = vmatprep.subr.bf16.mxu0 %v24402_v22  ;;  %v24459_v22 = vld [vmem:[%s28780_s11 + $0xa8] sm:$0xff]  }
 0x9b4   : > { %22829 = vmatpush3.bf16.msra.mxu1 %v28267_v49 }
 0x9b5   : > { %22830 = vmatprep.subr.bf16.mxu1 %v24542_v27  ;;  %v24397_v27 = vld [vmem:[%s28778_s9 + $0x28] ss:$16 sps:$4 sm:$0xff]   ;;  %16758 = vmatpush1.bf16.msra.mxu0 %v24400_v5 }
 0x9b6   : > { %16759 = vmatprep.subr.bf16.mxu0 %v24408_v23  ;;  %v24458_v5 = vld [vmem:[%s28780_s11 + $0x28] sm:$0xff]   ;;  %v24464_v23 = vld [vmem:[%s28780_s11 + $0x78] sm:$0xff]  }
 0x9b8   : > { %22831 = vmatpush3.bf16.msra.mxu1 %v28276_v46  ;;  %v16556_v46 = vld [vmem:[%s28777_s8] sm:$0x1] }
 0x9b9   : > { %16794 = vmatprep.subr.bf16.mxu1 %v24393_v7  ;;  %16760 = vmatpush1.bf16.msra.mxu0 %v24406_v26  ;;  %v24446_v7 = vld [vmem:[%s28780_s11 + $0x10] sm:$0xff]   ;;  %v24465_v26 = vld [vmem:[%s28780_s11 + $0xf8] sm:$0xff]  }
 0x9ba   : > { %16761 = vmatprep.subr.bf16.mxu0 %v24414_v37  ;;  %v24546_v37 = vmov 1966171168  }
 0x9bb   : > { %22833 = vmatmul.mubr.msk.bf16.vlgmr.msra.gmra.mrb[84].mxu1 %vm14805_vm12, %v16510_v15  ;;  %v24447_v15 = vld [vmem:[%s28780_s11 + $0x90] sm:$0xff]  }
 0x9bc   : > { %16795 = vmatpush1.bf16.msra.mxu1 %v24391_v44  ;;  %16826 = vmatprep.mubr.bf16.mxu1 %v24545_v51  ;;  %v24448_v44 = vld [vmem:[%s28780_s11 + $0x58] sm:$0xff]   ;;  %v16559_v51 = vld [vmem:[%s28779_s10] sm:$0xf] }
 0x9bd   : > { %16796 = vmatprep.subr.bf16.mxu1 %v24399_v12  ;;  %16762 = vmatpush1.bf16.msra.mxu0 %v24412_v19  ;;  %v24449_v12 = vld [vmem:[%s28780_s11 + $0xd8] sm:$0xff]  }
 0x9be   : > { %16763 = vmatprep.subr.bf16.mxu0 %v24420_v61 }
 0x9c0   : > { %16797 = vmatpush1.bf16.msra.mxu1 %v24397_v27  ;;  %v24450_v27 = vld [vmem:[%s28780_s11 + $0x18] sm:$0xff]  }
 0x9c1   : > { %16798 = vmatprep.subr.bf16.mxu1 %v24405_v50  ;;  %16764 = vmatpush1.bf16.msra.mxu0 %v24418_v28  ;;  %v24462_v50 = vld [vmem:[%s28780_s11 + $0x30] sm:$0xff]  }
 0x9c2   : > { %16765 = vmatprep.subr.bf16.mxu0 %v24426_v11 }
 0x9c4   : > { %16799 = vmatpush1.bf16.msra.mxu1 %v24403_v20  ;;  %v24461_v20 = vld [vmem:[%s28780_s11 + $0xf0] sm:$0xff]  }
 0x9c5   : > { %16800 = vmatprep.subr.bf16.mxu1 %v24411_v13  ;;  %16766 = vmatpush1.bf16.msra.mxu0 %v24424_v31  ;;  %v24466_v13 = vld [vmem:[%s28780_s11 + $0x38] sm:$0xff]  }
 0x9c6   : > { %16767 = vmatprep.subr.bf16.mxu0 %v24432_v56 }
 0x9c8   : > { %16801 = vmatpush1.bf16.msra.mxu1 %v24409_v34  ;;  %v24467_v34 = vld [vmem:[%s28780_s11 + $0xb8] sm:$0xff]  }
 0x9c9   : > { %16802 = vmatprep.subr.bf16.mxu1 %v24417_v42  ;;  %16768 = vmatpush1.bf16.msra.mxu0 %v24430_v32  ;;  %v16842_v42 = vunpack.c.l.s4 %v24546_v37 }
 0x9ca   : > { %20632 = vmatprep.subr.bf16.mxu0 %v24436_v47 }
 0x9cb   : > { %v16843_v19 = vunpack.c.0.s8 %v16842_v42 }
 0x9cc   : > { %16803 = vmatpush1.bf16.msra.mxu1 %v24415_v60 }
 0x9cd   : > { %16804 = vmatprep.subr.bf16.mxu1 %v24423_v63  ;;  %v16846_v63 = vsub.s32 %v16843_v19, %v27504_v40 }
 0x9d0   : > { %16805 = vmatpush1.bf16.msra.mxu1 %v24421_v58 }
 0x9d1   : > { %16806 = vmatprep.subr.bf16.mxu1 %v24429_v8 }
 0x9d4   : > { %16807 = vmatpush1.bf16.msra.mxu1 %v24427_v38 }
 0x9d5   : > { %16808 = vmatprep.subr.bf16.mxu1 %v24435_v18 }
 0x9d8   : > { %16809 = vmatpush1.bf16.msra.mxu1 %v24433_v16 }
 0x9d9   : > { %20654 = vmatprep.subr.bf16.mxu1 %v24437_v48 }
 0x9ee   : > { %v28536_v62 = vpop.f32.mrb[80].mxu0 }
 0x9ef   : > { %v22510_v54 = vpop.f32.mrb[81].mxu0 }
 0x9f0   : > { %v15407_v45 = vpop.f32.mrb[82].mxu0  ;;  %v24452_v54 = vld [vmem:[%s28780_s11 + $0x60] sm:$0xff]  }
 0x9f1   : > { %v22511_v59 = vpop.f32.mrb[83].mxu0  ;;  %v24453_v45 = vld [vmem:[%s28780_s11 + $0xe0] sm:$0xff]  }
 0x9f2   : > { %v24454_v59 = vld [vmem:[%s28780_s11 + $0x20] sm:$0xff]  }
 0x9fe   : > { %v15789_v41 = vpop.f32.mrb[80].mxu1 }
 0x9ff   : > { %v15796_v6 = vmax.f32 %v28536_v62, %v15789_v41  ;;  %v22618_v39 = vpop.f32.mrb[81].mxu1  ;;  %v24451_v62 = vld [vmem:[%s28780_s11 + $0x98] sm:$0xff]   ;;  %v24455_v41 = vld [vmem:[%s28780_s11 + $0xa0] sm:$0xff]  }
 0xa00   : > { %v15792_v36 = vpop.f32.mrb[82].mxu1  ;;  %v24457_v39 = vld [vmem:[%s28780_s11 + $0xe8] sm:$0xff]  }
 0xa01   : > { %v22619_v33 = vpop.f32.mrb[83].mxu1  ;;  %v24460_v36 = vld [vmem:[%s28780_s11 + $0x70] sm:$0xff]  }
 0xa02   : > { %v24463_v33 = vld [vmem:[%s28780_s11 + $0xb0] sm:$0xff]  }
 0xa7e   : > { %v16174_v9 = vpop.f32.mrb[84].mxu0 }
 0xa7f   : > { %v16181_v2 = vmax.f32 %v15796_v6, %v16174_v9  ;;  %v22726_v55 = vpop.f32.mrb[85].mxu0  ;;  %v24456_v6 = vld [vmem:[%s28780_s11 + $0x68] sm:$0xff]   ;;  %v16873_v9 = vsub.s32 1, %v27504_v40 }
 0xa80   : > { %v16177_v14 = vpop.f32.mrb[86].mxu0  ;;  %v16881_v55 = vsub.s32 3, %v27504_v40 }
 0xa81   : > { %v22727_v35 = vpop.f32.mrb[87].mxu0  ;;  %v16869_v14 = vsub.s32 0, %v27504_v40 }
 0xa82   : > { %v16877_v35 = vsub.s32 2, %v27504_v40  ;;  %v16955_v40 = vld [vmem:[%s28781_s12] sm:$0x1] }
 0xa8e   : > { %v16548_v49 = vpop.f32.mrb[84].mxu1 }
 0xa8f   : > { %v16555_v30 = vmax.f32 %v16181_v2, %v16548_v49  ;;  %v22834_v43 = vpop.f32.mrb[85].mxu1 }
 0xa90   : > { %v16551_v52 = vpop.f32.mrb[86].mxu1 }
 0xa91   : > { %v16557_v0 = vadd.f32 %v16556_v46, %v16555_v30  ;;  %v22835_v4 = vpop.f32.mrb[87].mxu1 }
 0xa93   : > { %v16558_v17 = vmax.f32 %v16557_v0, 0.0 }
 0xa95   : > { %v16560_v29 = vpack.c.bf16 %v16558_v17, %v16558_v17 }
 0xa97   : > { %16786 = vmatmul.mubr.bf16.vlgmr.msra.gmra.mrb[88].mxu0 %v16560_v29  ;;  %16827 = vmatmul.mubr.bf16.vlgmr.msra.gmra.mrb[88].mxu1 %v16560_v29 }
 0xa98   : > { %20633 = vmatpush3.bf16.msra.mxu0 %v24438_v21  ;;  %20655 = vmatpush3.bf16.msra.mxu1 %v24439_v3 }
 0xa99   : > { %20634 = vmatprep.subr.bf16.mxu0 %v24440_v57  ;;  %20656 = vmatprep.subr.bf16.mxu1 %v24441_v24 }
 0xa9c   : > { %20635 = vmatpush3.bf16.msra.mxu0 %v24442_v1  ;;  %20657 = vmatpush3.bf16.msra.mxu1 %v24443_v25 }
 0xa9d   : > { %20636 = vmatprep.subr.bf16.mxu0 %v24444_v53  ;;  %20658 = vmatprep.subr.bf16.mxu1 %v24445_v10 }
 0xaa0   : > { %20637 = vmatpush3.bf16.msra.mxu0 %v24446_v7  ;;  %20659 = vmatpush3.bf16.msra.mxu1 %v24447_v15 }
 0xaa1   : > { %20638 = vmatprep.subr.bf16.mxu0 %v24448_v44  ;;  %20660 = vmatprep.subr.bf16.mxu1 %v24449_v12 }
 0xaa4   : > { %20639 = vmatpush3.bf16.msra.mxu0 %v24450_v27  ;;  %20661 = vmatpush3.bf16.msra.mxu1 %v24451_v62 }
 0xaa5   : > { %20640 = vmatprep.subr.bf16.mxu0 %v24452_v54  ;;  %20662 = vmatprep.subr.bf16.mxu1 %v24453_v45 }
 0xaa8   : > { %20641 = vmatpush3.bf16.msra.mxu0 %v24454_v59  ;;  %20663 = vmatpush3.bf16.msra.mxu1 %v24455_v41 }
 0xaa9   : > { %20642 = vmatprep.subr.bf16.mxu0 %v24456_v6  ;;  %20664 = vmatprep.subr.bf16.mxu1 %v24457_v39 }
 0xaac   : > { %20643 = vmatpush3.bf16.msra.mxu0 %v24458_v5  ;;  %20665 = vmatpush3.bf16.msra.mxu1 %v24459_v22 }
 0xaad   : > { %20644 = vmatprep.subr.bf16.mxu0 %v24460_v36  ;;  %20666 = vmatprep.subr.bf16.mxu1 %v24461_v20 }
 0xab0   : > { %20645 = vmatpush3.bf16.msra.mxu0 %v24462_v50  ;;  %20667 = vmatpush3.bf16.msra.mxu1 %v24463_v33 }
 0xab1   : > { %20646 = vmatprep.subr.bf16.mxu0 %v24464_v23  ;;  %20668 = vmatprep.subr.bf16.mxu1 %v24465_v26 }
 0xab4   : > { %20647 = vmatpush3.bf16.msra.mxu0 %v24466_v13  ;;  %20669 = vmatpush3.bf16.msra.mxu1 %v24467_v34 }
 0xb6a   : > { %v16787_v60 = vpop.f32.mrb[88].mxu0  ;;  %v16828_v61 = vpop.f32.mrb[88].mxu1 }
 0xb6b   : > { %v16789_v28 = vpop.f32.mrb[89].mxu0  ;;  %v16830_v58 = vpop.f32.mrb[89].mxu1 }
 0xb6c   : > { %v16839_v31 = vcombine.low %v16787_v60, %v16789_v28  ;;  %v16840_v11 = vcombine.low %v16828_v61, %v16830_v58  ;;  %v16791_v38 = vpop.f32.mrb[90].mxu0  ;;  %v16832_v8 = vpop.f32.mrb[90].mxu1 }
 0xb6d   : > { %v16792_v56 = vpop.f32.mrb[91].mxu0  ;;  %v16833_v18 = vpop.f32.mrb[91].mxu1 }
 0xb6e   : > { %v16847_v32 = vrot.slane %v16839_v31, %v16846_v63  ;;  %v16854_v16 = vrot.slane %v16840_v11, %v16846_v63 }
 0xb70   : > { %v16855_v47 = vcombine.low %v16847_v32, %v16854_v16 }
 0xb72   : > { %v16862_v48 = vrot.slane %v16855_v47, %v16846_v63 }
 0xb74   : > { %v16864_v2 = vadd.f32 %v16862_v48, %v16559_v51 }
 0xb76   : > { %v16865_v49 = vmax.f32 %v16864_v2, 0.0 }
 0xb78   : > { %v16874_v46 = vrot.slane %v16865_v49, %v16873_v9  ;;  %v16882_v30 = vrot.slane %v16865_v49, %v16881_v55  ;;  %v16870_v43 = vrot.slane %v16865_v49, %v16869_v14  ;;  %v16878_v52 = vrot.slane %v16865_v49, %v16877_v35 }
 0xb7a   : > { %v16888_v0 = vpack.c.bf16 %v16874_v46, %v16874_v46  ;;  %v16890_v4 = vpack.c.bf16 %v16882_v30, %v16882_v30  ;;  %v16887_v17 = vpack.c.bf16 %v16870_v43, %v16870_v43  ;;  %v16889_v21 = vpack.c.bf16 %v16878_v52, %v16878_v52 }
 0xb7c   : > { %17180 = vmatprep.mubr.bf16.mxu0 %v16888_v0  ;;  %17220 = vmatprep.mubr.bf16.mxu1 %v16890_v4 }
 0xb7d   : > { %17181 = vmatmul.mubr.bf16.vlgmr.msra.gmra.mrb[92].mxu0 %v16887_v17  ;;  %17221 = vmatmul.mubr.bf16.vlgmr.msra.gmra.mrb[92].mxu1 %v16889_v21 }
 0xc50   : > { %v20648_v3 = vpop.f32.mrb[92].mxu0  ;;  %v20670_v29 = vpop.f32.mrb[92].mxu1 }
 0xc51   : > { %v20649_v57 = vpop.f32.mrb[93].mxu0  ;;  %v20671_v24 = vpop.f32.mrb[93].mxu1 }
 0xc52   : > { %v20650_v1 = vadd.f32 %v20649_v57, %v20648_v3  ;;  %v20672_v25 = vadd.f32 %v20671_v24, %v20670_v29  ;;  %v20651_v53 = vpop.f32.mrb[94].mxu0  ;;  %v20673_v10 = vpop.f32.mrb[94].mxu1 }
 0xc53   : > { %v20652_v7 = vpop.f32.mrb[95].mxu0  ;;  %v20674_v15 = vpop.f32.mrb[95].mxu1 }
 0xc54   : > { %v17183_v44 = vadd.f32 %v20650_v1, %v16955_v40 }
 0xc56   : > { %v17223_v12 = vadd.f32 %v20672_v25, %v17183_v44 }
 0xc58   : > { %17228 = vst.msk [vmem:[%s432_s1] sm:$0x1] %vm14694_vm13, %v17223_v12 }
 0xc59   : > { %24491 = shalt.err (!%p24488_p3)
}
 0xc5a   : > { %s24492_s21 = scalar_lea.hbm %s28726_s3, 16  ;;  %s24496_s1 = scalar_lea.hbm %s28782_s13, 32 }
 0xc5b   : > { %p24493_p4 = scmp.ne.s32.totalorder %s28726_s3, %s24492_s21  ;;  %p24497_p9 = scmp.lt.u32.totalorder %s28726_s3, %s28782_s13 }
 0xc5c   : > { %p24498_p10 = scmp.lt.u32.totalorder %s24496_s1, %s24492_s21  ;;  %p24500_p12 = scmp.lt.u32.totalorder %s24492_s21, %s28726_s3 }
 0xc5d   : > { %p24494_p7 = pnand %p24493_p4, %p24656_p5 }
 0xc5e   : > { %p24499_p11 = por %p24498_p10, %p24497_p9 }
 0xc5f   : > { %p24495_p8 = pneg %p24494_p7 }
 0xc60   : > { %p24501_p13 = por %p24500_p12, %p24499_p11 }
 0xc62   : > { %p24502_p0 = pnand %p24501_p13, %p24495_p8 }
 0xc64   : > { %24505 = shalt.err (!%p24502_p0)
}
 0xc65   : > { %24281 = dma.vmem_to_hbm [thread:$0]  (%p24656_p5), %s28728_s23, 16, %s28726_s3, %s17230_s15  }
 0xc66 PF: > { %p24287_p1 = scmp.ge.s32.totalorder %s24540_s28, 2  ;;  %s17254_s20 = sand.u32 1, %s24528_s25  }
 0xc67   : > { %s17255_s29 = scalar_lea.sflag [#allocation6], %s17254_s20 }
 0xc68   : > { %p24284_p2 = pnand %p24287_p1, %p24660_p6 }
 0xc6a   : > { %24523 = dma.done.wait (!%p24284_p2), %s17255_s29, 16  }
 0xc6b   : > { %24525 = vsyncadd (!%p24284_p2), %s17255_s29, 4294967280  ;;  %p23_p3 = scmp.ge.s32.totalorder %s24643_s14, 4   ;;  %s29021_s25 = smov %s24532_s26 }
 0xc6c   : > { %s29022_s26 = smov %s24536_s27  ;;  %s29023_s27 = smov %s24654_s17 }
 0xc6d   : > { %s29024_s28 = smov %s24643_s14  ;;  %25 = sbr.rel (!%p23_p3) target bundleno = 8 (0x8), region = 1066 }
 0xc74   :  { %17259 = vsyncpa [#allocation6], 1 }
 0xc75   :  { %17261 = vsyncpa [#allocation6 + $0x1], 1 }

</bundles_post_ra>
